<compile_context>
chip_gen: v7x
topology: tpu7x:2x2x1
jax: 0.10.0
libtpu: 0.0.40
codegen_flags: <defaults>
</compile_context>

<pallas_src>
import math
import numpy as np
import jax
import jax.numpy as jnp
from jax.experimental import pallas as pl
from jax.experimental.pallas import tpu as pltpu

# ----------------------------- configuration --------------------------------
DIM_MODEL = 32           # dim_model (small, divisible by 4 and n_head)
N_HEAD = 4
HEAD_DIM = DIM_MODEL // N_HEAD
DIM_FF = 64              # dim_feedforward (small)
MAX_CHARGE = 5
N_RESIDUES = 20
N_AA = N_RESIDUES + 1    # residues + '$'
VOCAB = N_AA + 1         # embeddings include padding idx 0  -> 22
AA_DIM = DIM_MODEL - DIM_MODEL // 2  # 16

VOCAB_PAD = 128          # lane-dense logits last dim (sliced to VOCAB outside)
VOCAB_ROWS_PAD = 32      # sublane-aligned row count for the final MLP

NEG_BIAS = -1e9          # finite "masked" bias (Python float -> jaxpr literal)
_ATTN_SCALE = 1.0 / math.sqrt(HEAD_DIM)

# synthetic canonical residue masses (tokens 1..20)
RESIDUE_MASSES = np.array([
    57.02146, 71.03711, 87.03203, 97.05276, 99.06841,
    101.04768, 103.00919, 113.08406, 114.04293, 115.02694,
    128.05858, 128.09496, 129.04259, 131.04049, 137.05891,
    147.06841, 156.10111, 163.06333, 186.07931, 150.95364,
], dtype=np.float32)


# ------------------------- sinusoidal encoders (glue) ------------------------
def _mass_terms(dim, min_wavelength=0.001, max_wavelength=10000.0):
    n_sin = dim // 2
    n_cos = dim - n_sin
    if min_wavelength:
        base = min_wavelength / (2 * np.pi)
        scale = max_wavelength / min_wavelength
    else:
        base = 1.0
        scale = max_wavelength / (2 * np.pi)
    sin_term = base * scale ** (np.arange(n_sin, dtype=np.float32) / (n_sin - 1))
    cos_term = base * scale ** (np.arange(n_cos, dtype=np.float32) / (n_cos - 1))
    return jnp.asarray(sin_term, jnp.float32), jnp.asarray(cos_term, jnp.float32)


def mass_encode(x, dim, min_wavelength=0.001):
    # x: (..., 1) -> (..., dim)
    sin_t, cos_t = _mass_terms(dim, min_wavelength)
    return jnp.concatenate([jnp.sin(x / sin_t), jnp.cos(x / cos_t)], axis=-1)


def pos_encode(x, dim):
    # PositionalEncoder == MassEncoder(min_wavelength=1) over positions, added.
    sin_t, cos_t = _mass_terms(dim, 1.0)
    pos = jnp.arange(x.shape[1], dtype=jnp.float32)[None, :, None]
    enc = jnp.concatenate([jnp.sin(pos / sin_t), jnp.cos(pos / cos_t)], axis=-1)
    return x + enc


# ------------------- fused decoder-layer + logits kernel ----------------------
def _decoder_kernel(tgt_ref, mem_ref, tkb_ref, mkb_ref,
                    wqkv_ref, bqkv_ref, wo_ref,
                    ffw1_ref, ffw2_ref, vec_ref, fmt_ref,
                    out_ref):
    B, Lq, D = tgt_ref.shape
    S = mem_ref.shape[1]
    H, hd = N_HEAD, HEAD_DIM

    # batch stacked on the sublane axis for all dense projections
    x0 = tgt_ref[...].reshape(B * Lq, D)          # (B*Lq, D)
    mem = mem_ref[...].reshape(B * S, D)          # (B*S, D)

    wqkv = wqkv_ref[...]                          # (2D, 3D) [sa ; ca]
    bqkv = bqkv_ref[...]                          # (2, 3D)
    wo = wo_ref[...]                              # (2D, D)  [sa_wo ; ca_wo]
    vecs = vec_ref[...]                           # (10, DIM_FF)
    ff_b1 = vecs[0:1, :]                          # (1, DIM_FF)
    sa_bo = vecs[1:2, 0:D]
    ca_bo = vecs[2:3, 0:D]
    ff_b2 = vecs[3:4, 0:D]
    ln1_g = vecs[4:5, 0:D]; ln1_b = vecs[5:6, 0:D]
    ln2_g = vecs[6:7, 0:D]; ln2_b = vecs[7:8, 0:D]
    ln3_g = vecs[8:9, 0:D]; ln3_b = vecs[9:10, 0:D]

    # causal + key-padding biases built in-kernel (no (B,Lq,Lk) HBM tensors)
    row = jax.lax.broadcasted_iota(jnp.int32, (Lq, Lq), 0)
    col = jax.lax.broadcasted_iota(jnp.int32, (Lq, Lq), 1)
    causal = jnp.where(col <= row, 0.0, NEG_BIAS).astype(jnp.float32)   # (Lq, Lq)
    self_bias = causal[None, :, :] + tkb_ref[...]   # (B, Lq, Lq)
    cross_bias = mkb_ref[...]                       # (B, 1, S) -> broadcast over q

    def layer_norm(z, g, b):
        mu = jnp.mean(z, axis=-1, keepdims=True)
        zc = z - mu
        var = jnp.mean(zc * zc, axis=-1, keepdims=True)
        return zc * jax.lax.rsqrt(var + 1e-5) * g + b

    def mha(q2d, k2d, v2d, klen, bias, w_out, b_out):
        """q2d: (B*Lq, D); k2d/v2d: (B*klen, D); bias broadcastable to (B,Lq,klen)."""
        ctx = []
        for h in range(H):                       # static unroll, H = 4
            qh = q2d[:, h * hd:(h + 1) * hd].reshape(B, Lq, hd)
            kh = k2d[:, h * hd:(h + 1) * hd].reshape(B, klen, hd)
            vh = v2d[:, h * hd:(h + 1) * hd].reshape(B, klen, hd)
            s = jnp.einsum("bqe,bke->bqk", qh, kh,
                           preferred_element_type=jnp.float32) * _ATTN_SCALE + bias
            s = s - jnp.max(s, axis=-1, keepdims=True)
            e = jnp.exp(s)
            p = e * pl.reciprocal(jnp.sum(e, axis=-1, keepdims=True), approx=True)
            ctx.append(jnp.einsum("bqk,bke->bqe", p, vh,
                                  preferred_element_type=jnp.float32))
        o = jnp.concatenate(ctx, axis=-1).reshape(B * Lq, D)     # head concat
        return jnp.dot(o, w_out, preferred_element_type=jnp.float32) + b_out

    # --- self-attention (fused QKV projection) + add & norm ---
    qkv = jnp.dot(x0, wqkv[0:D, :], preferred_element_type=jnp.float32) + bqkv[0:1, :]
    x1 = layer_norm(
        x0 + mha(qkv[:, 0:D], qkv[:, D:2 * D], qkv[:, 2 * D:3 * D],
                 Lq, self_bias, wo[0:D, :], sa_bo),
        ln1_g, ln1_b)

    # --- cross-attention (fused K/V projection) + add & norm ---
    q_c = jnp.dot(x1, wqkv[D:2 * D, 0:D],
                  preferred_element_type=jnp.float32) + bqkv[1:2, 0:D]
    kv_c = jnp.dot(mem, wqkv[D:2 * D, D:3 * D],
                   preferred_element_type=jnp.float32) + bqkv[1:2, D:3 * D]
    x2 = layer_norm(
        x1 + mha(q_c, kv_c[:, 0:D], kv_c[:, D:2 * D],
                 S, cross_bias, wo[D:2 * D, :], ca_bo),
        ln2_g, ln2_b)

    # --- feed-forward + add & norm ---
    hdn = jnp.maximum(
        jnp.dot(x2, ffw1_ref[...], preferred_element_type=jnp.float32) + ff_b1, 0.0)
    ff = jnp.dot(hdn, ffw2_ref[...], preferred_element_type=jnp.float32) + ff_b2
    preds = layer_norm(x2 + ff, ln3_g, ln3_b)                      # (B*Lq, D)

    # --- fused logits (final matrix pre-scaled, pre-transposed, lane-dense) ---
    out_ref[...] = jnp.dot(preds, fmt_ref[...],
                           preferred_element_type=jnp.float32
                           ).reshape(B, Lq, VOCAB_PAD)


def fused_decoder_layer(packed, tgt, memory, tgt_kpm, mem_kpm):
    B, Lq, D = tgt.shape
    S = memory.shape[1]

    # additive key-padding biases, O(Lk) per batch element
    tkb = jnp.where(tgt_kpm, NEG_BIAS, 0.0).astype(jnp.float32)[:, None, :]  # (B,1,Lq)
    mkb = jnp.where(mem_kpm, NEG_BIAS, 0.0).astype(jnp.float32)[:, None, :]  # (B,1,S)

    return pl.pallas_call(
        _decoder_kernel,
        out_shape=jax.ShapeDtypeStruct((B, Lq, VOCAB_PAD), jnp.float32),
    )(tgt, memory, tkb, mkb,
      packed["w_qkv"], packed["b_qkv"], packed["w_o"],
      packed["ff_w1"], packed["ff_w2"], packed["vecs"], packed["fm_t"])


# ----------------------- hoisted final amino-acid MLP -------------------------
def _final_mlp_kernel(x_ref, w0, b0, a0, w1, b1, a1, w2, b2, a2, w3, b3, o_ref):
    h = x_ref[...]
    for w, b, a in ((w0, b0, a0), (w1, b1, a1), (w2, b2, a2)):
        h = jnp.dot(h, w[...], preferred_element_type=jnp.float32) + b[...]
        h = jnp.where(h >= 0.0, h, h * a[...])     # PReLU (single alpha)
    o_ref[...] = jnp.dot(h, w3[...], preferred_element_type=jnp.float32) + b3[...]


def precompute_final_matrix_t(params):
    """Input-independent: compute once per parameter set and reuse.

    Returns the logits projection matrix, already scaled by logit_scale,
    transposed to (D, VOCAB_PAD) and zero-padded to 128 lanes so the fused
    decoder kernel can emit lane-dense scores with a single jnp.dot.
    """
    D = DIM_MODEL
    aa_masses = jnp.concatenate([jnp.zeros((1,), jnp.float32),
                                 jnp.asarray(RESIDUE_MASSES),
                                 params["final_char_mass"]])          # (VOCAB,)
    aa_mass_enc = mass_encode(aa_masses[:, None], D // 2)             # (VOCAB, D/2)
    aa_idx_emb = params["final_aa_emb"]                               # (VOCAB, aaDim)
    fm_in = jnp.concatenate([aa_mass_enc, aa_idx_emb], axis=-1)       # (VOCAB, D)
    # sublane-pad rows 22 -> 32 (free; padded rows dropped after the MLP)
    fm_in = jnp.pad(fm_in, ((0, VOCAB_ROWS_PAD - VOCAB), (0, 0)))

    fm_out = pl.pallas_call(
        _final_mlp_kernel,
        out_shape=jax.ShapeDtypeStruct((VOCAB_ROWS_PAD, DIM_MODEL), jnp.float32),
        compiler_params=pltpu.CompilerParams(vmem_limit_bytes=32 << 20),
    )(fm_in,
      params["fl_w0"], params["fl_b0"], params["fl_a0"],
      params["fl_w1"], params["fl_b1"], params["fl_a1"],
      params["fl_w2"], params["fl_b2"], params["fl_a2"],
      params["fl_w3"], params["fl_b3"])

    fm_scaled = fm_out[:VOCAB] * params["logit_scale"]                # (VOCAB, D)
    fm_t = jnp.zeros((DIM_MODEL, VOCAB_PAD), jnp.float32)
    fm_t = fm_t.at[:, :VOCAB].set(fm_scaled.T)
    return fm_t


def prepare_decoder(params):
    """Once-per-parameter-set packing of the decoder weights into a few slabs
    (fewer DMA descriptors, no per-call layout ops) plus the hoisted final
    amino-acid MLP output."""
    D = DIM_MODEL
    packed = {}
    packed["w_qkv"] = jnp.concatenate([
        jnp.concatenate([params["sa_wq"], params["sa_wk"], params["sa_wv"]], axis=1),
        jnp.concatenate([params["ca_wq"], params["ca_wk"], params["ca_wv"]], axis=1),
    ], axis=0)                                                        # (2D, 3D)
    packed["b_qkv"] = jnp.concatenate([
        jnp.concatenate([params["sa_bq"], params["sa_bk"], params["sa_bv"]], axis=1),
        jnp.concatenate([params["ca_bq"], params["ca_bk"], params["ca_bv"]], axis=1),
    ], axis=0)                                                        # (2, 3D)
    packed["w_o"] = jnp.concatenate([params["sa_wo"], params["ca_wo"]], axis=0)  # (2D, D)
    packed["ff_w1"] = params["ff_w1"]                                 # (D, FF)
    packed["ff_w2"] = params["ff_w2"]                                 # (FF, D)

    def pad_ff(v):  # (1, D) -> (1, DIM_FF) zero lane padding
        return jnp.pad(v, ((0, 0), (0, DIM_FF - D)))

    packed["vecs"] = jnp.concatenate(
        [params["ff_b1"]] + [pad_ff(params[k]) for k in
         ("sa_bo", "ca_bo", "ff_b2",
          "ln1_g", "ln1_b", "ln2_g", "ln2_b", "ln3_g", "ln3_b")],
        axis=0)                                                       # (10, DIM_FF)
    packed["fm_t"] = precompute_final_matrix_t(params)                # (D, 128)
    return packed


# ------------------------------ parameters -----------------------------------
def init_params(key):
    keys = iter(jax.random.split(key, 64))

    def nrm(shape, scale=0.05):
        return (scale * jax.random.normal(next(keys), shape)).astype(jnp.float32)

    D = DIM_MODEL
    p = {}
    p["charge_emb"] = nrm((MAX_CHARGE, D // 2))
    aa_emb = nrm((VOCAB, AA_DIM))
    p["aa_emb"] = aa_emb.at[0].set(0.0)                      # padding_idx=0
    fa_emb = nrm((VOCAB, AA_DIM))
    p["final_aa_emb"] = fa_emb.at[0].set(0.0)                # padding_idx=0
    p["final_char_mass"] = nrm((1,), 1.0)
    p["logit_scale"] = jnp.asarray(np.log(1.0 / 0.07), jnp.float32)

    # transformer decoder layer (post-norm, relu, dropout=0)
    for pre in ("sa", "ca"):
        p[f"{pre}_wq"] = nrm((D, D)); p[f"{pre}_wk"] = nrm((D, D)); p[f"{pre}_wv"] = nrm((D, D))
        p[f"{pre}_bq"] = nrm((1, D)); p[f"{pre}_bk"] = nrm((1, D)); p[f"{pre}_bv"] = nrm((1, D))
        p[f"{pre}_wo"] = nrm((D, D)); p[f"{pre}_bo"] = nrm((1, D))
    for i in (1, 2, 3):
        p[f"ln{i}_g"] = jnp.ones((1, D), jnp.float32)
        p[f"ln{i}_b"] = jnp.zeros((1, D), jnp.float32)
    p["ff_w1"] = nrm((D, DIM_FF)); p["ff_b1"] = nrm((1, DIM_FF))
    p["ff_w2"] = nrm((DIM_FF, D)); p["ff_b2"] = nrm((1, D))

    # finalLinears: dim_model -> 512 -> 1024 -> 1024 -> dim_model, PReLU between
    dims = [DIM_MODEL, 512, 1024, 1024, DIM_MODEL]
    for i in range(4):
        p[f"fl_w{i}"] = nrm((dims[i], dims[i + 1]))
        p[f"fl_b{i}"] = nrm((1, dims[i + 1]))
    for i in range(3):
        p[f"fl_a{i}"] = jnp.full((1, 1), 0.25, jnp.float32)  # PReLU default init
    return p


# ------------------------------- forward --------------------------------------
def peptide_decoder_forward(params, packed, tokens, precursors, memory,
                            memory_key_padding_mask):
    """tokens: (B, L) int32 residue indices (1..20); precursors: (B, 2) [mass, charge].

    `packed` is the cached output of prepare_decoder(params).
    """
    B, L = tokens.shape
    D = DIM_MODEL

    # --- deMass / get_suffix_mass (token -> residue mass, cumulative) [glue] ---
    mass_by_token = jnp.concatenate(
        [jnp.zeros((1,), jnp.float32), jnp.asarray(RESIDUE_MASSES)])
    tok_masses = mass_by_token[tokens]                       # (B, L)
    pre_masses = jnp.cumsum(tok_masses, axis=1)              # prefix masses
    suffix_masses = precursors[:, 0:1] - pre_masses          # suffix masses

    # --- precursor embedding ---
    masses_enc = mass_encode(precursors[:, None, 0:1], D // 2)      # (B,1,D/2)
    charge_idx = precursors[:, 1].astype(jnp.int32) - 1
    charges = params["charge_emb"][charge_idx]                      # (B, D/2)
    prec = masses_enc + charges[:, None, :]                         # (B,1,D/2)
    psz = mass_encode(jnp.zeros((1, 1), jnp.float32), D // 4)       # prefixMassEncoder([[0]])
    psz = jnp.broadcast_to(psz[:, None, :], (B, 1, D // 4))
    precursors_full = jnp.concatenate([prec, psz, psz], axis=2)     # (B,1,D)

    # --- target embedding ---
    tgt_aa = params["aa_emb"][tokens]                               # (B,L,aaDim)
    pre_enc = mass_encode(pre_masses[:, :, None], D // 4)           # (B,L,D/4)
    suf_enc = mass_encode(suffix_masses[:, :, None], D // 4)        # (B,L,D/4)
    tgt_tokens = jnp.concatenate([tgt_aa, pre_enc, suf_enc], axis=2)  # (B,L,D)
    tgt = jnp.concatenate([precursors_full, tgt_tokens], axis=1)    # (B,L+1,D)
    tgt_kpm = jnp.sum(tgt, axis=2) == 0                             # (B,L+1)
    tgt = pos_encode(tgt, D)

    # --- pad query/memory lengths to sublane multiples (masked + sliced off) ---
    Lq = L + 1
    Lq_pad = ((Lq + 7) // 8) * 8
    if Lq_pad != Lq:
        tgt = jnp.pad(tgt, ((0, 0), (0, Lq_pad - Lq), (0, 0)))
        tgt_kpm = jnp.pad(tgt_kpm, ((0, 0), (0, Lq_pad - Lq)), constant_values=True)
    S = memory.shape[1]
    S_pad = ((S + 7) // 8) * 8
    if S_pad != S:
        memory = jnp.pad(memory, ((0, 0), (0, S_pad - S), (0, 0)))
        memory_key_padding_mask = jnp.pad(memory_key_padding_mask,
                                          ((0, 0), (0, S_pad - S)),
                                          constant_values=True)

    # --- fused decoder layer + logits (single Pallas kernel, no grid) ---
    scores_padded = fused_decoder_layer(packed, tgt, memory, tgt_kpm,
                                        memory_key_padding_mask)
    scores = scores_padded[:, :Lq, :VOCAB]
    return scores, tokens

# TODO(synk): string tokenization (regex peptide splitting) has no Pallas / JAX
# equivalent; the forward here takes integer token tensors (supported path of
# the original module).


# --------------------------------- main ---------------------------------------
if __name__ == "__main__":
    key = jax.random.PRNGKey(0)
    pkey, tkey, mkey = jax.random.split(key, 3)
    params = init_params(pkey)

    B, L, S = 2, 6, 8
    tokens = jax.random.randint(tkey, (B, L), 1, N_RESIDUES + 1).astype(jnp.int32)
    precursors = jnp.array([[800.5, 2.0], [950.25, 3.0]], jnp.float32)
    memory = (0.1 * jax.random.normal(mkey, (B, S, DIM_MODEL))).astype(jnp.float32)
    memory_kpm = jnp.zeros((B, S), dtype=bool).at[:, S - 2:].set(True)

    # hoisted out of the hot path: depends only on params, computed once
    packed = prepare_decoder(params)
    packed = jax.tree_util.tree_map(jax.block_until_ready, packed)

    fwd = jax.jit(peptide_decoder_forward)
    scores, out_tokens = fwd(params, packed, tokens, precursors, memory, memory_kpm)
    jax.block_until_ready(scores)

    assert scores.shape == (B, L + 1, VOCAB)
    assert out_tokens.shape == (B, L)
    assert bool(jnp.all(jnp.isfinite(scores)))
    print("KERNEL_OK")
</pallas_src>

<mosaic_0001>
module attributes {stable_mosaic.version = 11 : i64} {
  func.func @_final_mlp_kernel(%arg0: memref<32x32xf32, #tpu.memory_space<vmem>>, %arg1: memref<32x512xf32, #tpu.memory_space<vmem>>, %arg2: memref<1x512xf32, #tpu.memory_space<vmem>>, %arg3: memref<1x1xf32, #tpu.memory_space<vmem>>, %arg4: memref<512x1024xf32, #tpu.memory_space<vmem>>, %arg5: memref<1x1024xf32, #tpu.memory_space<vmem>>, %arg6: memref<1x1xf32, #tpu.memory_space<vmem>>, %arg7: memref<1024x1024xf32, #tpu.memory_space<vmem>>, %arg8: memref<1x1024xf32, #tpu.memory_space<vmem>>, %arg9: memref<1x1xf32, #tpu.memory_space<vmem>>, %arg10: memref<1024x32xf32, #tpu.memory_space<vmem>>, %arg11: memref<1x32xf32, #tpu.memory_space<vmem>>, %arg12: memref<32x32xf32, #tpu.memory_space<vmem>>) attributes {dimension_semantics = [], scalar_prefetch = 0 : i64, scratch_operands = 0 : i64, tpu.core_type = #tpu.core_type<tc>} {
    %c0 = arith.constant 0 : index
    %c0_0 = arith.constant 0 : index
    %0 = vector.load %arg0[%c0, %c0_0] : memref<32x32xf32, #tpu.memory_space<vmem>>, vector<32x32xf32>
    %c0_1 = arith.constant 0 : index
    %c0_2 = arith.constant 0 : index
    %1 = vector.load %arg1[%c0_1, %c0_2] : memref<32x512xf32, #tpu.memory_space<vmem>>, vector<32x512xf32>
    %cst = arith.constant dense<0.000000e+00> : vector<32x512xf32>
    %2 = tpu.matmul %0, %1, %cst {dimension_numbers = #tpu.dot_dimension_numbers<[1], [0], [0], [1], [0, 0, 1, 1], [], []>} : vector<32x32xf32>, vector<32x512xf32>, vector<32x512xf32> -> vector<32x512xf32>
    %c0_3 = arith.constant 0 : index
    %c0_4 = arith.constant 0 : index
    %3 = vector.load %arg2[%c0_3, %c0_4] : memref<1x512xf32, #tpu.memory_space<vmem>>, vector<1x512xf32>
    %4 = vector.broadcast %3 : vector<1x512xf32> to vector<32x512xf32>
    %5 = arith.addf %2, %4 : vector<32x512xf32>
    %cst_5 = arith.constant 0.000000e+00 : f32
    %6 = vector.broadcast %cst_5 : f32 to vector<32x512xf32>
    %7 = arith.cmpf oge, %5, %6 : vector<32x512xf32>
    %c0_6 = arith.constant 0 : index
    %c0_7 = arith.constant 0 : index
    %8 = vector.load %arg3[%c0_6, %c0_7] : memref<1x1xf32, #tpu.memory_space<vmem>>, vector<1x1xf32>
    %9 = vector.broadcast %8 : vector<1x1xf32> to vector<32x512xf32>
    %10 = arith.mulf %5, %9 : vector<32x512xf32>
    %11 = arith.select %7, %5, %10 : vector<32x512xi1>, vector<32x512xf32>
    %c0_8 = arith.constant 0 : index
    %c0_9 = arith.constant 0 : index
    %12 = vector.load %arg4[%c0_8, %c0_9] : memref<512x1024xf32, #tpu.memory_space<vmem>>, vector<512x1024xf32>
    %cst_10 = arith.constant dense<0.000000e+00> : vector<32x1024xf32>
    %13 = tpu.matmul %11, %12, %cst_10 {dimension_numbers = #tpu.dot_dimension_numbers<[1], [0], [0], [1], [0, 0, 1, 1], [], []>} : vector<32x512xf32>, vector<512x1024xf32>, vector<32x1024xf32> -> vector<32x1024xf32>
    %c0_11 = arith.constant 0 : index
    %c0_12 = arith.constant 0 : index
    %14 = vector.load %arg5[%c0_11, %c0_12] : memref<1x1024xf32, #tpu.memory_space<vmem>>, vector<1x1024xf32>
    %15 = vector.broadcast %14 : vector<1x1024xf32> to vector<32x1024xf32>
    %16 = arith.addf %13, %15 : vector<32x1024xf32>
    %cst_13 = arith.constant 0.000000e+00 : f32
    %17 = vector.broadcast %cst_13 : f32 to vector<32x1024xf32>
    %18 = arith.cmpf oge, %16, %17 : vector<32x1024xf32>
    %c0_14 = arith.constant 0 : index
    %c0_15 = arith.constant 0 : index
    %19 = vector.load %arg6[%c0_14, %c0_15] : memref<1x1xf32, #tpu.memory_space<vmem>>, vector<1x1xf32>
    %20 = vector.broadcast %19 : vector<1x1xf32> to vector<32x1024xf32>
    %21 = arith.mulf %16, %20 : vector<32x1024xf32>
    %22 = arith.select %18, %16, %21 : vector<32x1024xi1>, vector<32x1024xf32>
    %c0_16 = arith.constant 0 : index
    %c0_17 = arith.constant 0 : index
    %23 = vector.load %arg7[%c0_16, %c0_17] : memref<1024x1024xf32, #tpu.memory_space<vmem>>, vector<1024x1024xf32>
    %cst_18 = arith.constant dense<0.000000e+00> : vector<32x1024xf32>
    %24 = tpu.matmul %22, %23, %cst_18 {dimension_numbers = #tpu.dot_dimension_numbers<[1], [0], [0], [1], [0, 0, 1, 1], [], []>} : vector<32x1024xf32>, vector<1024x1024xf32>, vector<32x1024xf32> -> vector<32x1024xf32>
    %c0_19 = arith.constant 0 : index
    %c0_20 = arith.constant 0 : index
    %25 = vector.load %arg8[%c0_19, %c0_20] : memref<1x1024xf32, #tpu.memory_space<vmem>>, vector<1x1024xf32>
    %26 = vector.broadcast %25 : vector<1x1024xf32> to vector<32x1024xf32>
    %27 = arith.addf %24, %26 : vector<32x1024xf32>
    %cst_21 = arith.constant 0.000000e+00 : f32
    %28 = vector.broadcast %cst_21 : f32 to vector<32x1024xf32>
    %29 = arith.cmpf oge, %27, %28 : vector<32x1024xf32>
    %c0_22 = arith.constant 0 : index
    %c0_23 = arith.constant 0 : index
    %30 = vector.load %arg9[%c0_22, %c0_23] : memref<1x1xf32, #tpu.memory_space<vmem>>, vector<1x1xf32>
    %31 = vector.broadcast %30 : vector<1x1xf32> to vector<32x1024xf32>
    %32 = arith.mulf %27, %31 : vector<32x1024xf32>
    %33 = arith.select %29, %27, %32 : vector<32x1024xi1>, vector<32x1024xf32>
    %c0_24 = arith.constant 0 : index
    %c0_25 = arith.constant 0 : index
    %34 = vector.load %arg10[%c0_24, %c0_25] : memref<1024x32xf32, #tpu.memory_space<vmem>>, vector<1024x32xf32>
    %cst_26 = arith.constant dense<0.000000e+00> : vector<32x32xf32>
    %35 = tpu.matmul %33, %34, %cst_26 {dimension_numbers = #tpu.dot_dimension_numbers<[1], [0], [0], [1], [0, 0, 1, 1], [], []>} : vector<32x1024xf32>, vector<1024x32xf32>, vector<32x32xf32> -> vector<32x32xf32>
    %c0_27 = arith.constant 0 : index
    %c0_28 = arith.constant 0 : index
    %36 = vector.load %arg11[%c0_27, %c0_28] : memref<1x32xf32, #tpu.memory_space<vmem>>, vector<1x32xf32>
    %37 = vector.broadcast %36 : vector<1x32xf32> to vector<32x32xf32>
    %38 = arith.addf %35, %37 : vector<32x32xf32>
    %c0_29 = arith.constant 0 : index
    %c0_30 = arith.constant 0 : index
    %39 = vector.load %arg12[%c0_29, %c0_30] : memref<32x32xf32, #tpu.memory_space<vmem>>, vector<32x32xf32>
    tpu.vector_store %arg12[%c0_29, %c0_30], %38 {strides = array<i32>} : memref<32x32xf32, #tpu.memory_space<vmem>>, vector<32x32xf32>,
    return
  }
}

</mosaic_0001>

<bundles_post_ra>
// kernel: tpu_custom_call.1
= control target key start
LH: loop header
LB: loop body
LE: loop exit
PB: predicated region body
PF: predicated region fallthrough
CT: control target
= control target key end

     0   :  { %s8676_s0 = inlined_call_operand.hbm [shape: f32[32,32], index: 0, kind: input, shape index: {}]   ;;  %s8677_s1 = inlined_call_operand.hbm [shape: f32[32,512], index: 1, kind: input, shape index: {}]   ;;  %s8678_s2 = inlined_call_operand.hbm [shape: f32[1,512], index: 2, kind: input, shape index: {}]   ;;  %s8679_s3 = inlined_call_operand.<no memory space> [shape: f32[1,1], index: 3, kind: input, shape index: {}]   ;;  %s8680_s4 = inlined_call_operand.hbm [shape: f32[512,1024], index: 4, kind: input, shape index: {}]   ;;  %s8681_s5 = inlined_call_operand.hbm [shape: f32[1,1024], index: 5, kind: input, shape index: {}]   ;;  %s8682_s7 = inlined_call_operand.hbm [shape: f32[1024,1024], index: 7, kind: input, shape index: {}]   ;;  %s8683_s8 = inlined_call_operand.hbm [shape: f32[1,1024], index: 8, kind: input, shape index: {}]   ;;  %s8684_s10 = inlined_call_operand.vmem [shape: f32[1024,32], index: 10, kind: input, shape index: {}]   ;;  %s8685_s11 = inlined_call_operand.hbm [shape: f32[1,32], index: 11, kind: input, shape index: {}]   ;;  %s8686_s12 = inlined_call_operand.hbm [shape: f32[32,32], index: 12, kind: output, shape index: {}]   ;;  %s8687_s6 = inlined_call_operand.<no memory space> [shape: f32[1,1], index: 6, kind: input, shape index: {}]   ;;  %s8688_s9 = inlined_call_operand.<no memory space> [shape: f32[1,1], index: 9, kind: input, shape index: {}]  }
   0x1   :  { %v17_v0 = vstv %s8679_s3  ;;  %v19_v1 = vstv %s8687_s6  ;;  %v21_v2 = vstv %s8688_s9 }
   0x2   :  { %18 = vst [vmem:[#allocation2] sm:$0x1] %v17_v0  ;;  %20 = vst [vmem:[#allocation3] sm:$0x1] %v19_v1 }
   0x3   :  { %22 = vst [vmem:[#allocation4] sm:$0x1] %v21_v2 }
   0x4   :  { %23 = vsyncpa [#allocation6], 0 }
   0x5   :  { %24 = vsyncpa [#allocation9], 0 }
   0x6   :  { %25 = vsyncpa [#allocation12], 0 }
   0x7   :  { %26 = vsyncpa [#allocation15], 0 }
   0x8   :  { %27 = vsyncpa [#allocation18], 0 }
   0x9   :  { %28 = vsyncpa [#allocation7], 0  ;;  %s7198_s27 = smov [#allocation8]   ;;  %s6988_s6 = scalar_lea.hbm %s8677_s1, 2048 }
   0xa   :  { %s46_s28 = sshll.u32 %s7198_s27, 4  ;;  %p6989_p0 = scmp.ne.s32.totalorder %s8677_s1, %s6988_s6  ;;  %s47_s28 = int_to_ptr.vmem [resolvable:$true] %s46_s28 }
   0xb   :  { %p6992_p1 = scmp.lt.u32.totalorder %s6988_s6, %s8677_s1 }
   0xd   :  { %p6994_p2 = pnand %p6992_p1, %p6989_p0 }
   0xf   :  { %6997 = shalt.err (!%p6994_p2)
}
  0x10   :  { %s6998_s15 = scalar_lea.vmem %s47_s28, 2048  ;;  %p7003_p4 = scmp.lt.s32.totalorder %s47_s28, %s47_s28 }
  0x11   :  { %p6999_p3 = scmp.ne.s32.totalorder %s47_s28, %s6998_s15  ;;  %p7004_p5 = scmp.lt.s32.totalorder %s6998_s15, %s6998_s15 }
  0x13   :  { %p7005_p6 = por %p7004_p5, %p7003_p4 }
  0x15   :  { %p7006_p7 = pnand %p7005_p6, %p6999_p3 }
  0x17   :  { %7009 = shalt.err (!%p7006_p7)
}
  0x18   :  { %s7199_s16 = smov 512   ;;  %s7200_s17 = smov 32  }
  0x19   :  { %52 = dma.hbm_to_vmem [thread:$0]  %s8677_s1, 2048, %s47_s28, [#allocation9], %s7199_s16, %s7199_s16, %s7200_s17  }
  0x1a   :  { %s7201_s20 = smov [#allocation11]   ;;  %s7010_s24 = scalar_lea.hbm %s8680_s4, 65536 }
  0x1b   :  { %s70_s21 = sshll.u32 %s7201_s20, 4  ;;  %p7011_p8 = scmp.ne.s32.totalorder %s8680_s4, %s7010_s24  ;;  %s71_s21 = int_to_ptr.vmem [resolvable:$true] %s70_s21 }
  0x1c   :  { %p7014_p9 = scmp.lt.u32.totalorder %s7010_s24, %s8680_s4 }
  0x1e   :  { %p7016_p10 = pnand %p7014_p9, %p7011_p8 }
  0x20   :  { %7019 = shalt.err (!%p7016_p10)
}
  0x21   :  { %s7020_s29 = scalar_lea.vmem %s71_s21, 65536  ;;  %p7025_p12 = scmp.lt.s32.totalorder %s71_s21, %s71_s21 }
  0x22   :  { %p7021_p11 = scmp.ne.s32.totalorder %s71_s21, %s7020_s29  ;;  %p7026_p13 = scmp.lt.s32.totalorder %s7020_s29, %s7020_s29 }
  0x24   :  { %p7027_p0 = por %p7026_p13, %p7025_p12 }
  0x26   :  { %p7028_p1 = pnand %p7027_p0, %p7021_p11 }
  0x28   :  { %7031 = shalt.err (!%p7028_p1)
}
  0x29   :  { %s7202_s1 = smov 1024   ;;  %s7203_s28 = smov 64  }
  0x2a   :  { %76 = dma.hbm_to_vmem [thread:$0]  %s8680_s4, 65536, %s71_s21, [#allocation12], %s7202_s1, %s7202_s1, %s7203_s28  }
  0x2b   :  { %s7204_s13 = smov [#allocation14]   ;;  %s7205_s14 = smov [#allocation5]  }
  0x2c   :  { %s94_s9 = sshll.u32 %s7204_s13, 4  ;;  %s34_s15 = sshll.u32 %s7205_s14, 4  ;;  %s95_s9 = int_to_ptr.vmem [resolvable:$true] %s94_s9  ;;  %s7313_s15 = int_to_ptr.vmem [resolvable:$true] %s34_s15 }
  0x2d   :  { %s7032_s18 = scalar_lea.hbm %s8682_s7, 131072 }
  0x2e   :  { %p7033_p2 = scmp.ne.s32.totalorder %s8682_s7, %s7032_s18  ;;  %p7036_p3 = scmp.lt.u32.totalorder %s7032_s18, %s8682_s7 }
  0x30   :  { %p7038_p4 = pnand %p7036_p3, %p7033_p2 }
  0x32   :  { %7041 = shalt.err (!%p7038_p4)
}
  0x33   :  { %s7042_s4 = scalar_lea.vmem %s95_s9, 131072  ;;  %p7047_p6 = scmp.lt.s32.totalorder %s95_s9, %s95_s9 }
  0x34   :  { %p7043_p5 = scmp.ne.s32.totalorder %s95_s9, %s7042_s4  ;;  %p7048_p7 = scmp.lt.s32.totalorder %s7042_s4, %s7042_s4 }
  0x36   :  { %p7049_p8 = por %p7048_p7, %p7047_p6 }
  0x38   :  { %p7050_p9 = pnand %p7049_p8, %p7043_p5 }
  0x3a   :  { %7053 = shalt.err (!%p7050_p9)
}
  0x3b   :  { %100 = dma.hbm_to_vmem [thread:$0]  %s8682_s7, 131072, %s95_s9, [#allocation15], %s7202_s1, %s7202_s1, %s7203_s28  }
  0x3c   :  { %s7054_s27 = scalar_lea.hbm %s8676_s0, 512 }
  0x3d   :  { %p7055_p10 = scmp.ne.s32.totalorder %s8676_s0, %s7054_s27  ;;  %p7058_p11 = scmp.lt.u32.totalorder %s7054_s27, %s8676_s0 }
  0x3f   :  { %p7060_p12 = pnand %p7058_p11, %p7055_p10 }
  0x41   :  { %7063 = shalt.err (!%p7060_p12)
}
  0x42   :  { %s7064_s13 = scalar_lea.vmem %s7313_s15, 512  ;;  %p7069_p0 = scmp.lt.s32.totalorder %s7313_s15, %s7313_s15 }
  0x43   :  { %p7065_p13 = scmp.ne.s32.totalorder %s7313_s15, %s7064_s13  ;;  %p7070_p1 = scmp.lt.s32.totalorder %s7064_s13, %s7064_s13 }
  0x45   :  { %p7071_p2 = por %p7070_p1, %p7069_p0 }
  0x47   :  { %p7072_p3 = pnand %p7071_p2, %p7065_p13 }
  0x49   :  { %7075 = shalt.err (!%p7072_p3)
}
  0x4a   :  { %s7206_s7 = smov 128   ;;  %s7207_s1 = smov 8  }
  0x4b   :  { %40 = dma.hbm_to_vmem [thread:$0]  %s8676_s0, 512, %s7313_s15, [#allocation6], %s7206_s7, %s7206_s7, %s7207_s1  }
  0x4c   :  { %s7208_s14 = smov [#allocation10]   ;;  %s7209_s17 = smov [#allocation13]  }
  0x4d   :  { %s59_s16 = sshll.u32 %s7208_s14, 4  ;;  %s83_s18 = sshll.u32 %s7209_s17, 4  ;;  %s60_s16 = int_to_ptr.vmem [resolvable:$true] %s59_s16  ;;  %s84_s18 = int_to_ptr.vmem [resolvable:$true] %s83_s18 }
  0x4e   :  { %s7076_s22 = scalar_lea.hbm %s8678_s2, 64 }
  0x4f   :  { %p7077_p4 = scmp.ne.s32.totalorder %s8678_s2, %s7076_s22  ;;  %p7080_p5 = scmp.lt.u32.totalorder %s7076_s22, %s8678_s2 }
  0x51   :  { %p7082_p6 = pnand %p7080_p5, %p7077_p4 }
  0x53   :  { %7085 = shalt.err (!%p7082_p6)
}
  0x54   :  { %s7086_s0 = scalar_lea.vmem %s60_s16, 64  ;;  %p7091_p8 = scmp.lt.s32.totalorder %s60_s16, %s60_s16 }
  0x55   :  { %p7087_p7 = scmp.ne.s32.totalorder %s60_s16, %s7086_s0  ;;  %p7092_p9 = scmp.lt.s32.totalorder %s7086_s0, %s7086_s0 }
  0x57   :  { %p7093_p10 = por %p7092_p9, %p7091_p8 }
  0x59   :  { %p7094_p11 = pnand %p7093_p10, %p7087_p7 }
  0x5b   :  { %7097 = shalt.err (!%p7094_p11)
}
  0x5c   :  { %62 = dma.hbm_to_vmem [thread:$0]  %s8678_s2, 64, %s60_s16, [#allocation9]  }
  0x5d   :  { %s7098_s3 = scalar_lea.hbm %s8681_s5, 128 }
  0x5e   :  { %p7099_p12 = scmp.ne.s32.totalorder %s8681_s5, %s7098_s3  ;;  %p7102_p13 = scmp.lt.u32.totalorder %s7098_s3, %s8681_s5 }
  0x60   :  { %p7104_p0 = pnand %p7102_p13, %p7099_p12 }
  0x62   :  { %7107 = shalt.err (!%p7104_p0)
}
  0x63   :  { %s7108_s28 = scalar_lea.vmem %s84_s18, 128  ;;  %p7113_p2 = scmp.lt.s32.totalorder %s84_s18, %s84_s18 }
  0x64   :  { %p7109_p1 = scmp.ne.s32.totalorder %s84_s18, %s7108_s28  ;;  %p7114_p3 = scmp.lt.s32.totalorder %s7108_s28, %s7108_s28 }
  0x66   :  { %p7115_p4 = por %p7114_p3, %p7113_p2 }
  0x68   :  { %p7116_p5 = pnand %p7115_p4, %p7109_p1 }
  0x6a   :  { %7119 = shalt.err (!%p7116_p5)
}
  0x6b   :  { %86 = dma.hbm_to_vmem [thread:$0]  %s8681_s5, 128, %s84_s18, [#allocation12]  }
  0x6c   :  { %s7210_s14 = smov [#allocation16]   ;;  %s7211_s17 = smov [#allocation17]  }
  0x6d   :  { %s107_s16 = sshll.u32 %s7210_s14, 4  ;;  %s121_s19 = sshll.u32 %s7211_s17, 4  ;;  %s108_s16 = int_to_ptr.vmem [resolvable:$true] %s107_s16  ;;  %s122_s19 = int_to_ptr.vmem [resolvable:$true] %s121_s19 }
  0x6e   :  { %s7120_s23 = scalar_lea.hbm %s8683_s8, 128 }
  0x6f   :  { %p7121_p6 = scmp.ne.s32.totalorder %s8683_s8, %s7120_s23  ;;  %p7124_p7 = scmp.lt.u32.totalorder %s7120_s23, %s8683_s8 }
  0x71   :  { %p7126_p8 = pnand %p7124_p7, %p7121_p6 }
  0x73   :  { %7129 = shalt.err (!%p7126_p8)
}
  0x74   :  { %s7130_s5 = scalar_lea.vmem %s108_s16, 128  ;;  %p7135_p10 = scmp.lt.s32.totalorder %s108_s16, %s108_s16 }
  0x75   :  { %p7131_p9 = scmp.ne.s32.totalorder %s108_s16, %s7130_s5  ;;  %p7136_p11 = scmp.lt.s32.totalorder %s7130_s5, %s7130_s5 }
  0x77   :  { %p7137_p12 = por %p7136_p11, %p7135_p10 }
  0x79   :  { %p7138_p13 = pnand %p7137_p12, %p7131_p9 }
  0x7b   :  { %7141 = shalt.err (!%p7138_p13)
}
  0x7c   :  { %110 = dma.hbm_to_vmem [thread:$0]  %s8683_s8, 128, %s108_s16, [#allocation15]  }
  0x7d   :  { %s7142_s27 = scalar_lea.hbm %s8685_s11, 16 }
  0x7e   :  { %p7143_p0 = scmp.ne.s32.totalorder %s8685_s11, %s7142_s27  ;;  %p7146_p1 = scmp.lt.u32.totalorder %s7142_s27, %s8685_s11 }
  0x80   :  { %p7148_p2 = pnand %p7146_p1, %p7143_p0 }
  0x82   :  { %7151 = shalt.err (!%p7148_p2)
}
  0x83   :  { %s7152_s13 = scalar_lea.vmem %s122_s19, 16  ;;  %s7156_s28 = scalar_lea.vmem %s122_s19, 32 }
  0x84   :  { %p7153_p3 = scmp.ne.s32.totalorder %s122_s19, %s7152_s13  ;;  %p7157_p4 = scmp.lt.s32.totalorder %s122_s19, %s122_s19 }
  0x85   :  { %p7158_p5 = scmp.lt.s32.totalorder %s7156_s28, %s7152_s13 }
  0x87   :  { %p7159_p6 = por %p7158_p5, %p7157_p4 }
  0x89   :  { %p7160_p7 = pnand %p7159_p6, %p7153_p3 }
  0x8b   :  { %7163 = shalt.err (!%p7160_p7)
}
  0x8c   :  { %124 = dma.hbm_to_vmem [thread:$0]  %s8685_s11, 16, %s122_s19, [#allocation18]  }
  0x8d   :  { %7186 = dma.done.wait [#allocation6], 512  }
  0x8e   :  { %7187 = vsyncadd [#allocation6], 4294966784 }
  0x8f   :  { %7188 = dma.done.wait [#allocation9], 2112  }
  0x90   :  { %7189 = vsyncadd [#allocation9], 4294965184 }
  0x91   :  { %7190 = dma.done.wait [#allocation12], 65664  }
  0x92   :  { %7191 = vsyncadd [#allocation12], 4294901632 }
  0x93   :  { %7192 = dma.done.wait [#allocation15], 131200  }
  0x94   :  { %7193 = vsyncadd [#allocation15], 4294836096 }
  0x95   :  { %7194 = dma.done.wait [#allocation18], 16  }
  0x96   :  { %7195 = vsyncadd [#allocation18], 4294967280  ;;  %v7212_v3 = vmov 0.0   ;;  %v7213_v4 = vmov 0   ;;  %v154_v5 = vld [vmem:[#allocation8 + $0x8] sm:$0xff]  ;;  %v156_v7 = vld [vmem:[#allocation8 + $0x18] sm:$0xff] }
  0x97   :  { %268 = vmatprep.mubr.f32.mxu0 %v7212_v3  ;;  %357 = vmatprep.mubr.f32.mxu1 %v7212_v3  ;;  %v158_v6 = vld [vmem:[#allocation8 + $0x28] sm:$0xff]  ;;  %v160_v9 = vld [vmem:[#allocation8 + $0x38] sm:$0xff]  ;;  %v153_v10 = vld [vmem:[#allocation8] sm:$0xff]  ;;  %vm191_vm0 = vcmask 261120  }
  0x98   :  { %6985 = vset.pattern.permute.xlu0 %v7213_v4  ;;  %6986 = vset.pattern.permute.xlu1 %v7213_v4  ;;  %v5096_v8 = vpack.c.bf16 %v158_v6, %v154_v5  ;;  %v157_v11 = vld [vmem:[#allocation8 + $0x20] sm:$0xff]  ;;  %v5104_v12 = vpack.c.bf16 %v160_v9, %v156_v7  ;;  %v155_v14 = vld [vmem:[#allocation8 + $0x10] sm:$0xff]  ;;  %v162_v16 = vld [vmem:[#allocation8 + $0x48] sm:$0xff] }
  0x99   :  { %v5098_v13 = vpack.c.bf16 %v157_v11, %v153_v10  ;;  %v159_v15 = vld [vmem:[#allocation8 + $0x30] sm:$0xff]  ;;  %v166_v18 = vld [vmem:[#allocation8 + $0x68] sm:$0xff]  ;;  %v164_v19 = vld [vmem:[#allocation8 + $0x58] sm:$0xff] }
  0x9a   :  { %5097 = vmatprep.subr.bf16.mxu0 %v5096_v8  ;;  %v5106_v17 = vpack.c.bf16 %v159_v15, %v155_v14  ;;  %v168_v20 = vld [vmem:[#allocation8 + $0x78] sm:$0xff]  ;;  %5105 = vmatprep.subr.bf16.mxu1 %v5104_v12  ;;  %v5100_v21 = vpack.c.bf16 %v166_v18, %v162_v16  ;;  %v161_v23 = vld [vmem:[#allocation8 + $0x40] sm:$0xff]  ;;  %v163_v25 = vld [vmem:[#allocation8 + $0x50] sm:$0xff] }
  0x9b   :  { %5099 = vmatpush1.bf16.msra.mxu0 %v5098_v13  ;;  %v5108_v22 = vpack.c.bf16 %v168_v20, %v164_v19  ;;  %v165_v24 = vld [vmem:[#allocation8 + $0x60] sm:$0xff]  ;;  %v167_v27 = vld [vmem:[#allocation8 + $0x70] sm:$0xff]  ;;  %v4916_v30 = vld [vmem:[#allocation2] ss:$0 sm:$0xff] }
  0x9c   :  { %5107 = vmatpush1.bf16.msra.mxu1 %v5106_v17  ;;  %v5102_v26 = vpack.c.bf16 %v165_v24, %v161_v23  ;;  %5101 = vmatprep.subr.bf16.mxu0 %v5100_v21  ;;  %v5110_v28 = vpack.c.bf16 %v167_v27, %v163_v25  ;;  %v149_v29 = vld [vmem:[#allocation5] sm:$0xff]  ;;  %v4917_v31 = vld [vmem:[#allocation3] ss:$0 sm:$0xff]  ;;  %v441_v32 = vld [vmem:[#allocation11 + $0x8] sm:$0xff] }
  0x9d   :  { %5109 = vmatprep.subr.bf16.mxu1 %v5108_v22  ;;  %405 = vperm.xlu0 %6985, %v4916_v30   ;;  %v449_v33 = vld [vmem:[#allocation11 + $0x48] sm:$0xff]  ;;  %v443_v35 = vld [vmem:[#allocation11 + $0x18] sm:$0xff]  ;;  %v440_v37 = vld [vmem:[#allocation11] sm:$0xff] }
  0x9e   :  { %v5112_v34 = vpack.c.bf16 %v449_v33, %v441_v32  ;;  %v451_v36 = vld [vmem:[#allocation11 + $0x58] sm:$0xff]  ;;  %v448_v39 = vld [vmem:[#allocation11 + $0x40] sm:$0xff]  ;;  %v442_v40 = vld [vmem:[#allocation11 + $0x10] sm:$0xff] }
  0x9f   :  { %5103 = vmatpush1.bf16.msra.mxu0 %v5102_v26  ;;  %v5240_v38 = vpack.c.bf16 %v451_v36, %v443_v35  ;;  %v450_v41 = vld [vmem:[#allocation11 + $0x50] sm:$0xff]  ;;  %v150_v42 = vld [vmem:[#allocation5 + $0x8] sm:$0xff]  ;;  %v5114_v43 = vpack.c.bf16 %v448_v39, %v440_v37  ;;  %v459_v47 = vld [vmem:[#allocation11 + $0x98] sm:$0xff] }
  0xa0   :  { %5111 = vmatpush1.bf16.msra.mxu1 %v5110_v28  ;;  %5113 = vmatprep.subr.bf16.mxu0 %v5112_v34  ;;  %v5242_v44 = vpack.c.bf16 %v450_v41, %v442_v40  ;;  %v457_v45 = vld [vmem:[#allocation11 + $0x88] sm:$0xff]  ;;  %v467_v49 = vld [vmem:[#allocation11 + $0xd8] sm:$0xff]  ;;  %v456_v50 = vld [vmem:[#allocation11 + $0x80] sm:$0xff] }
  0xa1   :  { %v465_v46 = vld [vmem:[#allocation11 + $0xc8] sm:$0xff]  ;;  %1745 = vperm.xlu0 %6985, %v4917_v31   ;;  %v464_v51 = vld [vmem:[#allocation11 + $0xc0] sm:$0xff]  ;;  %v458_v52 = vld [vmem:[#allocation11 + $0x90] sm:$0xff]  ;;  %5241 = vmatprep.subr.bf16.mxu1 %v5240_v38  ;;  %v5244_v55 = vpack.c.bf16 %v467_v49, %v459_v47 }
  0xa2   :  { %4908 = vmatmul.mubr.msk.f32.vlgmr.msra.gmra.mrb[0].mxu0 %vm191_vm0, %v149_v29  ;;  %v5116_v48 = vpack.c.bf16 %v465_v46, %v457_v45  ;;  %v466_v53 = vld [vmem:[#allocation11 + $0xd0] sm:$0xff]  ;;  %v473_v54 = vld [vmem:[#allocation11 + $0x108] sm:$0xff]  ;;  %v5118_v57 = vpack.c.bf16 %v464_v51, %v456_v50  ;;  %v475_v59 = vld [vmem:[#allocation11 + $0x118] sm:$0xff] }
  0xa3   :  { %4912 = vmatmul.mubr.msk.f32.vlgmr.msra.gmra.mrb[0].mxu1 %vm191_vm0, %v149_v29  ;;  %274 = vmatprep.mubr.f32.mxu0 %v7212_v3  ;;  %v481_v56 = vld [vmem:[#allocation11 + $0x148] sm:$0xff]  ;;  %v5246_v58 = vpack.c.bf16 %v466_v53, %v458_v52  ;;  %v483_v60 = vld [vmem:[#allocation11 + $0x158] sm:$0xff]  ;;  %v472_v61 = vld [vmem:[#allocation11 + $0x100] sm:$0xff] }
  0xa4   :  { %363 = vmatprep.mubr.f32.mxu1 %v7212_v3  ;;  %5115 = vmatpush1.bf16.msra.mxu0 %v5114_v43  ;;  %v5120_v62 = vpack.c.bf16 %v481_v56, %v473_v54  ;;  %v480_v63 = vld [vmem:[#allocation11 + $0x140] sm:$0xff]  ;;  %v474_v0 = vld [vmem:[#allocation11 + $0x110] sm:$0xff]  ;;  %v489_v4 = vld [vmem:[#allocation11 + $0x188] sm:$0xff]  ;;  %v5248_v6 = vpack.c.bf16 %v483_v60, %v475_v59 }
  0xa5   :  { %5243 = vmatpush1.bf16.msra.mxu1 %v5242_v44  ;;  %5117 = vmatprep.subr.bf16.mxu0 %v5116_v48  ;;  %v482_v1 = vld [vmem:[#allocation11 + $0x150] sm:$0xff]  ;;  %v497_v5 = vld [vmem:[#allocation11 + $0x1c8] sm:$0xff]  ;;  %v491_v7 = vld [vmem:[#allocation11 + $0x198] sm:$0xff]  ;;  %v5122_v10 = vpack.c.bf16 %v480_v63, %v472_v61 }
  0xa6   :  { %4909 = vmatmul.mubr.msk.f32.gmra.mrb[2].mxu0 %vm191_vm0, %v150_v42  ;;  %v151_v2 = vld [vmem:[#allocation5 + $0x10] sm:$0xff]  ;;  %5245 = vmatprep.subr.bf16.mxu1 %v5244_v55  ;;  %v499_v8 = vld [vmem:[#allocation11 + $0x1d8] sm:$0xff]  ;;  %v5250_v11 = vpack.c.bf16 %v482_v1, %v474_v0  ;;  %v488_v12 = vld [vmem:[#allocation11 + $0x180] sm:$0xff]  ;;  %v5124_v14 = vpack.c.bf16 %v497_v5, %v489_v4 }
  0xa7   :  { %4913 = vmatmul.mubr.msk.f32.gmra.mrb[2].mxu1 %vm191_vm0, %v150_v42  ;;  %280 = vmatprep.mubr.f32.mxu0 %v7212_v3  ;;  %v152_v9 = vld [vmem:[#allocation5 + $0x18] sm:$0xff]  ;;  %v496_v13 = vld [vmem:[#allocation11 + $0x1c0] sm:$0xff]  ;;  %v505_v17 = vld [vmem:[#allocation11 + $0x208] sm:$0xff]  ;;  %v5252_v18 = vpack.c.bf16 %v499_v8, %v491_v7 }
  0xa8   :  { %369 = vmatprep.mubr.f32.mxu1 %v7212_v3  ;;  %5119 = vmatpush1.bf16.msra.mxu0 %v5118_v57  ;;  %v490_v15 = vld [vmem:[#allocation11 + $0x190] sm:$0xff]  ;;  %v513_v19 = vld [vmem:[#allocation11 + $0x248] sm:$0xff]  ;;  %v507_v20 = vld [vmem:[#allocation11 + $0x218] sm:$0xff]  ;;  %v5126_v22 = vpack.c.bf16 %v496_v13, %v488_v12 }
  0xa9   :  { %5247 = vmatpush1.bf16.msra.mxu1 %v5246_v58  ;;  %5121 = vmatprep.subr.bf16.mxu0 %v5120_v62  ;;  %v498_v16 = vld [vmem:[#allocation11 + $0x1d0] sm:$0xff]  ;;  %v515_v21 = vld [vmem:[#allocation11 + $0x258] sm:$0xff]  ;;  %v504_v24 = vld [vmem:[#allocation11 + $0x200] sm:$0xff]  ;;  %v5128_v26 = vpack.c.bf16 %v513_v19, %v505_v17 }
  0xaa   :  { %4910 = vmatmul.mubr.msk.f32.gmra.mrb[4].mxu0 %vm191_vm0, %v151_v2  ;;  %5249 = vmatprep.subr.bf16.mxu1 %v5248_v6  ;;  %v5254_v23 = vpack.c.bf16 %v498_v16, %v490_v15  ;;  %v512_v25 = vld [vmem:[#allocation11 + $0x240] sm:$0xff]  ;;  %v5256_v27 = vpack.c.bf16 %v515_v21, %v507_v20  ;;  %v506_v28 = vld [vmem:[#allocation11 + $0x210] sm:$0xff]  ;;  %v521_v30 = vld [vmem:[#allocation11 + $0x288] sm:$0xff] }
  0xab   :  { %4914 = vmatmul.mubr.msk.f32.gmra.mrb[4].mxu1 %vm191_vm0, %v151_v2  ;;  %286 = vmatprep.mubr.f32.mxu0 %v7212_v3  ;;  %v514_v29 = vld [vmem:[#allocation11 + $0x250] sm:$0xff]  ;;  %v529_v31 = vld [vmem:[#allocation11 + $0x2c8] sm:$0xff]  ;;  %v531_v32 = vld [vmem:[#allocation11 + $0x2d8] sm:$0xff]  ;;  %v5130_v33 = vpack.c.bf16 %v512_v25, %v504_v24 }
  0xac   :  { %375 = vmatprep.mubr.f32.mxu1 %v7212_v3  ;;  %5123 = vmatpush1.bf16.msra.mxu0 %v5122_v10  ;;  %v523_v3 = vld [vmem:[#allocation11 + $0x298] sm:$0xff]  ;;  %v5258_v34 = vpack.c.bf16 %v514_v29, %v506_v28  ;;  %v520_v35 = vld [vmem:[#allocation11 + $0x280] sm:$0xff]  ;;  %v5132_v37 = vpack.c.bf16 %v529_v31, %v521_v30  ;;  %v522_v39 = vld [vmem:[#allocation11 + $0x290] sm:$0xff] }
  0xad   :  { %5251 = vmatpush1.bf16.msra.mxu1 %v5250_v11  ;;  %5125 = vmatprep.subr.bf16.mxu0 %v5124_v14  ;;  %v528_v36 = vld [vmem:[#allocation11 + $0x2c0] sm:$0xff]  ;;  %v5260_v38 = vpack.c.bf16 %v531_v32, %v523_v3  ;;  %v530_v40 = vld [vmem:[#allocation11 + $0x2d0] sm:$0xff]  ;;  %v537_v41 = vld [vmem:[#allocation11 + $0x308] sm:$0xff] }
  0xae   :  { %4911 = vmatmul.mubr.msk.f32.gmra.mrb[6].mxu0 %vm191_vm0, %v152_v9  ;;  %5253 = vmatprep.subr.bf16.mxu1 %v5252_v18  ;;  %v545_v42 = vld [vmem:[#allocation11 + $0x348] sm:$0xff]  ;;  %v539_v43 = vld [vmem:[#allocation11 + $0x318] sm:$0xff]  ;;  %v5134_v45 = vpack.c.bf16 %v528_v36, %v520_v35  ;;  %v5262_v46 = vpack.c.bf16 %v530_v40, %v522_v39  ;;  %v536_v47 = vld [vmem:[#allocation11 + $0x300] sm:$0xff] }
  0xaf   :  { %4915 = vmatmul.mubr.msk.f32.gmra.mrb[6].mxu1 %vm191_vm0, %v152_v9  ;;  %v547_v44 = vld [vmem:[#allocation11 + $0x358] sm:$0xff]  ;;  %v544_v48 = vld [vmem:[#allocation11 + $0x340] sm:$0xff]  ;;  %v5136_v49 = vpack.c.bf16 %v545_v42, %v537_v41  ;;  %v538_v51 = vld [vmem:[#allocation11 + $0x310] sm:$0xff] }
  0xb0   :  { %5127 = vmatpush1.bf16.msra.mxu0 %v5126_v22  ;;  %v5264_v50 = vpack.c.bf16 %v547_v44, %v539_v43  ;;  %v546_v52 = vld [vmem:[#allocation11 + $0x350] sm:$0xff]  ;;  %v553_v53 = vld [vmem:[#allocation11 + $0x388] sm:$0xff]  ;;  %v555_v55 = vld [vmem:[#allocation11 + $0x398] sm:$0xff]  ;;  %v5138_v57 = vpack.c.bf16 %v544_v48, %v536_v47 }
  0xb1   :  { %5255 = vmatpush1.bf16.msra.mxu1 %v5254_v23  ;;  %5129 = vmatprep.subr.bf16.mxu0 %v5128_v26  ;;  %v561_v54 = vld [vmem:[#allocation11 + $0x3c8] sm:$0xff]  ;;  %v563_v56 = vld [vmem:[#allocation11 + $0x3d8] sm:$0xff]  ;;  %v5266_v58 = vpack.c.bf16 %v546_v52, %v538_v51  ;;  %v552_v59 = vld [vmem:[#allocation11 + $0x380] sm:$0xff] }
  0xb2   :  { %5257 = vmatprep.subr.bf16.mxu1 %v5256_v27  ;;  %v560_v60 = vld [vmem:[#allocation11 + $0x3c0] sm:$0xff]  ;;  %v5140_v61 = vpack.c.bf16 %v561_v54, %v553_v53  ;;  %v5268_v62 = vpack.c.bf16 %v563_v56, %v555_v55  ;;  %v554_v63 = vld [vmem:[#allocation11 + $0x390] sm:$0xff]  ;;  %v569_v1 = vld [vmem:[#allocation11 + $0x408] sm:$0xff] }
  0xb3   :  { %v562_v0 = vld [vmem:[#allocation11 + $0x3d0] sm:$0xff]  ;;  %v577_v2 = vld [vmem:[#allocation11 + $0x448] sm:$0xff]  ;;  %v571_v4 = vld [vmem:[#allocation11 + $0x418] sm:$0xff]  ;;  %v5142_v6 = vpack.c.bf16 %v560_v60, %v552_v59 }
  0xb4   :  { %5131 = vmatpush1.bf16.msra.mxu0 %v5130_v33  ;;  %v579_v5 = vld [vmem:[#allocation11 + $0x458] sm:$0xff]  ;;  %v5270_v7 = vpack.c.bf16 %v562_v0, %v554_v63  ;;  %v568_v8 = vld [vmem:[#allocation11 + $0x400] sm:$0xff]  ;;  %v5144_v10 = vpack.c.bf16 %v577_v2, %v569_v1  ;;  %v570_v12 = vld [vmem:[#allocation11 + $0x410] sm:$0xff] }
  0xb5   :  { %5259 = vmatpush1.bf16.msra.mxu1 %v5258_v34  ;;  %5133 = vmatprep.subr.bf16.mxu0 %v5132_v37  ;;  %v576_v9 = vld [vmem:[#allocation11 + $0x440] sm:$0xff]  ;;  %v5272_v11 = vpack.c.bf16 %v579_v5, %v571_v4  ;;  %v578_v13 = vld [vmem:[#allocation11 + $0x450] sm:$0xff]  ;;  %v585_v14 = vld [vmem:[#allocation11 + $0x488] sm:$0xff] }
  0xb6   :  { %5261 = vmatprep.subr.bf16.mxu1 %v5260_v38  ;;  %v593_v15 = vld [vmem:[#allocation11 + $0x4c8] sm:$0xff]  ;;  %v587_v16 = vld [vmem:[#allocation11 + $0x498] sm:$0xff]  ;;  %v5146_v18 = vpack.c.bf16 %v576_v9, %v568_v8  ;;  %v5274_v19 = vpack.c.bf16 %v578_v13, %v570_v12  ;;  %v584_v20 = vld [vmem:[#allocation11 + $0x480] sm:$0xff] }
  0xb7   :  { %v595_v17 = vld [vmem:[#allocation11 + $0x4d8] sm:$0xff]  ;;  %v592_v21 = vld [vmem:[#allocation11 + $0x4c0] sm:$0xff]  ;;  %v5148_v22 = vpack.c.bf16 %v593_v15, %v585_v14  ;;  %v586_v24 = vld [vmem:[#allocation11 + $0x490] sm:$0xff] }
  0xb8   :  { %5135 = vmatpush1.bf16.msra.mxu0 %v5134_v45  ;;  %v5276_v23 = vpack.c.bf16 %v595_v17, %v587_v16  ;;  %v594_v25 = vld [vmem:[#allocation11 + $0x4d0] sm:$0xff]  ;;  %v601_v26 = vld [vmem:[#allocation11 + $0x508] sm:$0xff]  ;;  %v603_v28 = vld [vmem:[#allocation11 + $0x518] sm:$0xff]  ;;  %v5150_v30 = vpack.c.bf16 %v592_v21, %v584_v20 }
  0xb9   :  { %5263 = vmatpush1.bf16.msra.mxu1 %v5262_v46  ;;  %5137 = vmatprep.subr.bf16.mxu0 %v5136_v49  ;;  %v609_v27 = vld [vmem:[#allocation11 + $0x548] sm:$0xff]  ;;  %v611_v29 = vld [vmem:[#allocation11 + $0x558] sm:$0xff]  ;;  %v5278_v31 = vpack.c.bf16 %v594_v25, %v586_v24  ;;  %v600_v3 = vld [vmem:[#allocation11 + $0x500] sm:$0xff] }
  0xba   :  { %5265 = vmatprep.subr.bf16.mxu1 %v5264_v50  ;;  %v608_v32 = vld [vmem:[#allocation11 + $0x540] sm:$0xff]  ;;  %v5152_v33 = vpack.c.bf16 %v609_v27, %v601_v26  ;;  %v5280_v34 = vpack.c.bf16 %v611_v29, %v603_v28  ;;  %v602_v35 = vld [vmem:[#allocation11 + $0x510] sm:$0xff]  ;;  %v617_v37 = vld [vmem:[#allocation11 + $0x588] sm:$0xff] }
  0xbb   :  { %v610_v36 = vld [vmem:[#allocation11 + $0x550] sm:$0xff]  ;;  %v625_v38 = vld [vmem:[#allocation11 + $0x5c8] sm:$0xff]  ;;  %v619_v39 = vld [vmem:[#allocation11 + $0x598] sm:$0xff]  ;;  %v5154_v41 = vpack.c.bf16 %v608_v32, %v600_v3 }
  0xbc   :  { %5139 = vmatpush1.bf16.msra.mxu0 %v5138_v57  ;;  %v627_v40 = vld [vmem:[#allocation11 + $0x5d8] sm:$0xff]  ;;  %v5282_v42 = vpack.c.bf16 %v610_v36, %v602_v35  ;;  %v616_v43 = vld [vmem:[#allocation11 + $0x580] sm:$0xff]  ;;  %v5156_v45 = vpack.c.bf16 %v625_v38, %v617_v37  ;;  %v618_v47 = vld [vmem:[#allocation11 + $0x590] sm:$0xff] }
  0xbd   :  { %5267 = vmatpush1.bf16.msra.mxu1 %v5266_v58  ;;  %5141 = vmatprep.subr.bf16.mxu0 %v5140_v61  ;;  %v624_v44 = vld [vmem:[#allocation11 + $0x5c0] sm:$0xff]  ;;  %v5284_v46 = vpack.c.bf16 %v627_v40, %v619_v39  ;;  %v626_v48 = vld [vmem:[#allocation11 + $0x5d0] sm:$0xff]  ;;  %v633_v49 = vld [vmem:[#allocation11 + $0x608] sm:$0xff] }
  0xbe   :  { %5269 = vmatprep.subr.bf16.mxu1 %v5268_v62  ;;  %v641_v50 = vld [vmem:[#allocation11 + $0x648] sm:$0xff]  ;;  %v635_v51 = vld [vmem:[#allocation11 + $0x618] sm:$0xff]  ;;  %v5158_v53 = vpack.c.bf16 %v624_v44, %v616_v43  ;;  %v5286_v54 = vpack.c.bf16 %v626_v48, %v618_v47  ;;  %v632_v55 = vld [vmem:[#allocation11 + $0x600] sm:$0xff] }
  0xbf   :  { %v643_v52 = vld [vmem:[#allocation11 + $0x658] sm:$0xff]  ;;  %v640_v56 = vld [vmem:[#allocation11 + $0x640] sm:$0xff]  ;;  %v5160_v57 = vpack.c.bf16 %v641_v50, %v633_v49  ;;  %v634_v59 = vld [vmem:[#allocation11 + $0x610] sm:$0xff] }
  0xc0   :  { %5143 = vmatpush1.bf16.msra.mxu0 %v5142_v6  ;;  %v5288_v58 = vpack.c.bf16 %v643_v52, %v635_v51  ;;  %v642_v60 = vld [vmem:[#allocation11 + $0x650] sm:$0xff]  ;;  %v649_v61 = vld [vmem:[#allocation11 + $0x688] sm:$0xff]  ;;  %v651_v63 = vld [vmem:[#allocation11 + $0x698] sm:$0xff]  ;;  %v5162_v1 = vpack.c.bf16 %v640_v56, %v632_v55 }
  0xc1   :  { %5271 = vmatpush1.bf16.msra.mxu1 %v5270_v7  ;;  %5145 = vmatprep.subr.bf16.mxu0 %v5144_v10  ;;  %v657_v62 = vld [vmem:[#allocation11 + $0x6c8] sm:$0xff]  ;;  %v659_v0 = vld [vmem:[#allocation11 + $0x6d8] sm:$0xff]  ;;  %v5290_v2 = vpack.c.bf16 %v642_v60, %v634_v59  ;;  %v648_v4 = vld [vmem:[#allocation11 + $0x680] sm:$0xff] }
  0xc2   :  { %5273 = vmatprep.subr.bf16.mxu1 %v5272_v11  ;;  %v656_v5 = vld [vmem:[#allocation11 + $0x6c0] sm:$0xff]  ;;  %v5164_v6 = vpack.c.bf16 %v657_v62, %v649_v61  ;;  %v5292_v7 = vpack.c.bf16 %v659_v0, %v651_v63  ;;  %v650_v8 = vld [vmem:[#allocation11 + $0x690] sm:$0xff]  ;;  %v665_v10 = vld [vmem:[#allocation11 + $0x708] sm:$0xff] }
  0xc3   :  { %v658_v9 = vld [vmem:[#allocation11 + $0x6d0] sm:$0xff]  ;;  %v673_v11 = vld [vmem:[#allocation11 + $0x748] sm:$0xff]  ;;  %v667_v12 = vld [vmem:[#allocation11 + $0x718] sm:$0xff]  ;;  %v5166_v14 = vpack.c.bf16 %v656_v5, %v648_v4 }
  0xc4   :  { %5147 = vmatpush1.bf16.msra.mxu0 %v5146_v18  ;;  %v675_v13 = vld [vmem:[#allocation11 + $0x758] sm:$0xff]  ;;  %v5294_v15 = vpack.c.bf16 %v658_v9, %v650_v8  ;;  %v5168_v16 = vpack.c.bf16 %v673_v11, %v665_v10  ;;  %v664_v18 = vld [vmem:[#allocation11 + $0x700] sm:$0xff]  ;;  %v666_v20 = vld [vmem:[#allocation11 + $0x710] sm:$0xff] }
  0xc5   :  { %5275 = vmatpush1.bf16.msra.mxu1 %v5274_v19  ;;  %5149 = vmatprep.subr.bf16.mxu0 %v5148_v22  ;;  %v5296_v17 = vpack.c.bf16 %v675_v13, %v667_v12  ;;  %v672_v19 = vld [vmem:[#allocation11 + $0x740] sm:$0xff]  ;;  %v674_v22 = vld [vmem:[#allocation11 + $0x750] sm:$0xff]  ;;  %v681_v24 = vld [vmem:[#allocation11 + $0x788] sm:$0xff] }
  0xc6   :  { %5277 = vmatprep.subr.bf16.mxu1 %v5276_v23  ;;  %v5170_v21 = vpack.c.bf16 %v672_v19, %v664_v18  ;;  %v5298_v23 = vpack.c.bf16 %v674_v22, %v666_v20  ;;  %v689_v25 = vld [vmem:[#allocation11 + $0x7c8] sm:$0xff]  ;;  %v683_v26 = vld [vmem:[#allocation11 + $0x798] sm:$0xff]  ;;  %v680_v29 = vld [vmem:[#allocation11 + $0x780] sm:$0xff] }
  0xc7   :  { %v5172_v27 = vpack.c.bf16 %v689_v25, %v681_v24  ;;  %v691_v28 = vld [vmem:[#allocation11 + $0x7d8] sm:$0xff]  ;;  %v682_v32 = vld [vmem:[#allocation11 + $0x790] sm:$0xff]  ;;  %v697_v35 = vld [vmem:[#allocation11 + $0x808] sm:$0xff] }
  0xc8   :  { %5151 = vmatpush1.bf16.msra.mxu0 %v5150_v30  ;;  %v688_v30 = vld [vmem:[#allocation11 + $0x7c0] sm:$0xff]  ;;  %v705_v36 = vld [vmem:[#allocation11 + $0x848] sm:$0xff]  ;;  %v699_v37 = vld [vmem:[#allocation11 + $0x818] sm:$0xff] }
  0xc9   :  { %5279 = vmatpush1.bf16.msra.mxu1 %v5278_v31  ;;  %5153 = vmatprep.subr.bf16.mxu0 %v5152_v33  ;;  %v5300_v31 = vpack.c.bf16 %v691_v28, %v683_v26  ;;  %v5174_v3 = vpack.c.bf16 %v688_v30, %v680_v29  ;;  %v690_v33 = vld [vmem:[#allocation11 + $0x7d0] sm:$0xff]  ;;  %v5176_v38 = vpack.c.bf16 %v705_v36, %v697_v35  ;;  %v707_v39 = vld [vmem:[#allocation11 + $0x858] sm:$0xff]  ;;  %v696_v52 = vld [vmem:[#allocation11 + $0x800] sm:$0xff] }
  0xca   :  { %5281 = vmatprep.subr.bf16.mxu1 %v5280_v34  ;;  %v5302_v34 = vpack.c.bf16 %v690_v33, %v682_v32  ;;  %v5304_v40 = vpack.c.bf16 %v707_v39, %v699_v37  ;;  %v169_v44 = vld [vmem:[#allocation10] sm:$0xf]  ;;  %v7435_v59 = vld [vmem:[#allocation11 + $0x888] sm:$0xff]  ;;  %v7454_v11 = vld [vmem:[#allocation11 + $0x890] sm:$0xff] }
  0xcb   :  { %v721_v0 = vld [vmem:[#allocation11 + $0x8c8] sm:$0xff]  ;;  %v7456_v12 = vld [vmem:[#allocation11 + $0x8d0] sm:$0xff]  ;;  %v7477_v28 = vld [vmem:[#allocation11 + $0x900] sm:$0xff] }
  0xcc   :  { %5155 = vmatpush1.bf16.msra.mxu0 %v5154_v41  ;;  %v171_v41 = vlaneseq  ;;  %v7460_v19 = vld [vmem:[#allocation11 + $0x908] sm:$0xff]  ;;  %v7479_v29 = vld [vmem:[#allocation11 + $0x940] sm:$0xff]  ;;  %v7494_v35 = vld [vmem:[#allocation11 + $0x910] sm:$0xff] }
  0xcd   :  { %5283 = vmatpush1.bf16.msra.mxu1 %v5282_v42  ;;  %5157 = vmatprep.subr.bf16.mxu0 %v5156_v45  ;;  %v7462_v20 = vld [vmem:[#allocation11 + $0x948] sm:$0xff]  ;;  %v738_v36 = vld [vmem:[#allocation11 + $0x950] sm:$0xff] }
  0xce   :  { %5285 = vmatprep.subr.bf16.mxu1 %v5284_v46  ;;  %v7411_v42 = vshrl.u32 %v171_v41, 7  ;;  %v5186_v41 = vpack.c.bf16 %v7479_v29, %v7477_v28  ;;  %v768_v28 = vld [vmem:[#allocation11 + $0xa40] sm:$0xff] }
  0xd0   :  { %5159 = vmatpush1.bf16.msra.mxu0 %v5158_v53  ;;  %8697 = vst [vmem:[#allocation26_spill] sm:$0xff] %v7411_v42  ;;  %v7414_v43 = vsub.s32 0, %v7411_v42  ;;  %v7417_v45 = vsub.s32 2, %v7411_v42  ;;  %v7420_v46 = vsub.s32 1, %v7411_v42  ;;  %v7432_v50 = vsub.s32 3, %v7411_v42  ;;  %v704_v53 = vld [vmem:[#allocation11 + $0x840] sm:$0xff] }
  0xd1   :  { %5287 = vmatpush1.bf16.msra.mxu1 %v5286_v54  ;;  %5161 = vmatprep.subr.bf16.mxu0 %v5160_v57  ;;  %v698_v57 = vld [vmem:[#allocation11 + $0x810] sm:$0xff]  ;;  %v5178_v10 = vpack.c.bf16 %v704_v53, %v696_v52 }
  0xd2   :  { %5289 = vmatprep.subr.bf16.mxu1 %v5288_v58  ;;  %8698 = vst [vmem:[#allocation27_spill] sm:$0xff] %v7414_v43  ;;  %8699 = vst [vmem:[#allocation28_spill] sm:$0xff] %v7417_v45  ;;  %v7423_v47 = vrot.slane %v169_v44, %v7414_v43  ;;  %v7426_v48 = vrot.slane %v169_v44, %v7417_v45  ;;  %v7429_v49 = vrot.slane %v169_v44, %v7420_v46  ;;  %v706_v58 = vld [vmem:[#allocation11 + $0x850] sm:$0xff] }
  0xd3   :  { %v7447_v5 = vrot.slane %v169_v44, %v7432_v50  ;;  %v745_v44 = vld [vmem:[#allocation11 + $0x988] sm:$0xff] }
  0xd4   :  { %5163 = vmatpush1.bf16.msra.mxu0 %v5162_v1  ;;  %v715_v1 = vld [vmem:[#allocation11 + $0x898] sm:$0xff] }
  0xd5   :  { %5291 = vmatpush1.bf16.msra.mxu1 %v5290_v2  ;;  %5165 = vmatprep.subr.bf16.mxu0 %v5164_v6  ;;  %v723_v2 = vld [vmem:[#allocation11 + $0x8d8] sm:$0xff]  ;;  %v7449_v6 = vld [vmem:[#allocation11 + $0x880] sm:$0xff] }
  0xd6   :  { %5293 = vmatprep.subr.bf16.mxu1 %v5292_v7  ;;  %v7451_v7 = vld [vmem:[#allocation11 + $0x8c0] sm:$0xff]  ;;  %v5308_v18 = vpack.c.bf16 %v723_v2, %v715_v1 }
  0xd7   :  { %v5182_v26 = vpack.c.bf16 %v7451_v7, %v7449_v6 }
  0xd8   :  { %5167 = vmatpush1.bf16.msra.mxu0 %v5166_v14 }
  0xd9   :  { %5295 = vmatpush1.bf16.msra.mxu1 %v5294_v15  ;;  %5169 = vmatprep.subr.bf16.mxu0 %v5168_v16  ;;  %v5306_v16 = vpack.c.bf16 %v706_v58, %v698_v57  ;;  %v755_v57 = vld [vmem:[#allocation11 + $0x9d8] sm:$0xff] }
  0xda   :  { %5297 = vmatprep.subr.bf16.mxu1 %v5296_v17  ;;  %v5180_v17 = vpack.c.bf16 %v721_v0, %v7435_v59 }
  0xdc   :  { %5171 = vmatpush1.bf16.msra.mxu0 %v5170_v21  ;;  %v7464_v21 = vld [vmem:[#allocation11 + $0x918] sm:$0xff] }
  0xdd   :  { %5299 = vmatpush1.bf16.msra.mxu1 %v5298_v23  ;;  %5173 = vmatprep.subr.bf16.mxu0 %v5172_v27  ;;  %v739_v27 = vld [vmem:[#allocation11 + $0x958] sm:$0xff] }
  0xde   :  { %5301 = vmatprep.subr.bf16.mxu1 %v5300_v31 }
  0xe0   :  { %5175 = vmatpush1.bf16.msra.mxu0 %v5174_v3  ;;  %v5310_v3 = vpack.c.bf16 %v7456_v12, %v7454_v11 }
  0xe1   :  { %5303 = vmatpush1.bf16.msra.mxu1 %v5302_v34  ;;  %5177 = vmatprep.subr.bf16.mxu0 %v5176_v38  ;;  %v5184_v34 = vpack.c.bf16 %v7462_v20, %v7460_v19  ;;  %v763_v19 = vld [vmem:[#allocation11 + $0xa18] sm:$0xff] }
  0xe2   :  { %5305 = vmatprep.subr.bf16.mxu1 %v5304_v40  ;;  %v5312_v40 = vpack.c.bf16 %v739_v27, %v7464_v21  ;;  %v771_v20 = vld [vmem:[#allocation11 + $0xa58] sm:$0xff]  ;;  %v760_v27 = vld [vmem:[#allocation11 + $0xa00] sm:$0xff] }
 0x11c   :  { %v7437_v60 = vpop.permute.xlu0 %405 }
 0x175   :  { %v270_v51 = vpop.f32.mrb[0].mxu0 }
 0x176   :  { %v271_v54 = vadd.f32 %v270_v51, %v7423_v47  ;;  %v359_v55 = vpop.f32.mrb[0].mxu1  ;;  %v272_v56 = vpop.f32.mrb[1].mxu0  ;;  %v753_v51 = vld [vmem:[#allocation11 + $0x9c8] sm:$0xff] }
 0x177   :  { %v7440_v61 = vadd.f32 %v359_v55, %v7426_v48  ;;  %v273_v62 = vadd.f32 %v272_v56, %v7429_v49  ;;  %v7443_v63 = vpop.f32.mrb[1].mxu1  ;;  %v747_v56 = vld [vmem:[#allocation11 + $0x998] sm:$0xff]  ;;  %v5188_v2 = vpack.c.bf16 %v753_v51, %v745_v44  ;;  %v776_v44 = vld [vmem:[#allocation11 + $0xa80] sm:$0xff] }
 0x178   :  { %v408_v4 = vmul.f32 %v7437_v60, %v271_v54  ;;  %vm382_vm1 = vcmp.ge.f32.partialorder %v271_v54, 0.0  ;;  %v784_v51 = vld [vmem:[#allocation11 + $0xac0] sm:$0xff] }
 0x179   :  { %vm383_vm2 = vcmp.ge.f32.partialorder %v273_v62, 0.0  ;;  %v409_v8 = vmul.f32 %v7437_v60, %v273_v62  ;;  %v276_v9 = vpop.f32.mrb[2].mxu0  ;;  %vm384_vm10 = vcmp.ge.f32.partialorder %v7440_v61, 0.0 }
 0x17a   :  { %v277_v13 = vadd.f32 %v276_v9, %v7423_v47  ;;  %v365_v14 = vpop.f32.mrb[2].mxu1  ;;  %v278_v15 = vpop.f32.mrb[3].mxu0  ;;  %v7482_v30 = vsel %vm382_vm1, %v271_v54, %v408_v4  ;;  %v362_v4 = vadd.f32 %v7443_v63, %v7447_v5  ;;  %v5316_v9 = vpack.c.bf16 %v755_v57, %v747_v56  ;;  %v752_v63 = vld [vmem:[#allocation11 + $0x9c0] sm:$0xff]  ;;  %v778_v57 = vld [vmem:[#allocation11 + $0xa90] sm:$0xff] }
 0x17b   :  { %v7467_v22 = vadd.f32 %v365_v14, %v7426_v48  ;;  %v279_v23 = vadd.f32 %v278_v15, %v7429_v49  ;;  %v7470_v24 = vpop.f32.mrb[3].mxu1  ;;  %v7473_v25 = vsel %vm383_vm2, %v273_v62, %v409_v8  ;;  %v5314_v62 = vpack.c.bf16 %v738_v36, %v7494_v35  ;;  %v754_v15 = vld [vmem:[#allocation11 + $0x9d0] sm:$0xff]  ;;  %v785_v36 = vld [vmem:[#allocation11 + $0xac8] sm:$0xff] }
 0x17c   :  { %v412_v31 = vmul.f32 %v7437_v60, %v277_v13  ;;  %1058 = vmatprep.mubr.f32.mxu0 %v7473_v25  ;;  %1236 = vmatprep.mubr.f32.mxu1 %v7473_v25  ;;  %vm386_vm3 = vcmp.ge.f32.partialorder %v277_v13, 0.0  ;;  %v411_v21 = vmul.f32 %v7437_v60, %v362_v4  ;;  %vm385_vm9 = vcmp.ge.f32.partialorder %v362_v4, 0.0 }
 0x17d   :  { %vm387_vm4 = vcmp.ge.f32.partialorder %v279_v23, 0.0  ;;  %v413_v32 = vmul.f32 %v7437_v60, %v279_v23  ;;  %v282_v33 = vpop.f32.mrb[4].mxu0  ;;  %1059 = vmatmul.mubr.f32.vlgmr.msra.gmra.mrb[8].mxu0 %v7482_v30  ;;  %1237 = vmatmul.mubr.f32.vlgmr.msra.gmra.mrb[8].mxu1 %v7482_v30  ;;  %v5320_v35 = vpack.c.bf16 %v771_v20, %v763_v19  ;;  %v808_v19 = vld [vmem:[#allocation11 + $0xb80] sm:$0xff]  ;;  %vm388_vm12 = vcmp.ge.f32.partialorder %v7467_v22, 0.0 }
 0x17e   :  { %v283_v37 = vadd.f32 %v282_v33, %v7423_v47  ;;  %v371_v38 = vpop.f32.mrb[4].mxu1  ;;  %5179 = vmatpush1.bf16.msra.mxu0 %v5178_v10  ;;  %5307 = vmatpush1.bf16.msra.mxu1 %v5306_v16  ;;  %v284_v39 = vpop.f32.mrb[5].mxu0  ;;  %v7513_v59 = vsel %vm386_vm3, %v277_v13, %v412_v31  ;;  %v744_v10 = vld [vmem:[#allocation11 + $0x980] sm:$0xff]  ;;  %v762_v31 = vld [vmem:[#allocation11 + $0xa10] sm:$0xff] }
 0x17f   :  { %v7501_v52 = vadd.f32 %v371_v38, %v7426_v48  ;;  %v285_v53 = vadd.f32 %v284_v39, %v7429_v49  ;;  %v7504_v54 = vpop.f32.mrb[5].mxu1  ;;  %v7507_v55 = vsel %vm387_vm4, %v279_v23, %v413_v32  ;;  %5181 = vmatprep.subr.bf16.mxu0 %v5180_v17  ;;  %5309 = vmatprep.subr.bf16.mxu1 %v5308_v18  ;;  %v769_v18 = vld [vmem:[#allocation11 + $0xa48] sm:$0xff]  ;;  %v787_v38 = vld [vmem:[#allocation11 + $0xad8] sm:$0xff]  ;;  %v816_v20 = vld [vmem:[#allocation11 + $0xbc0] sm:$0xff] }
 0x180   :  { %v416_v58 = vmul.f32 %v7437_v60, %v283_v37  ;;  %1064 = vmatprep.mubr.f32.mxu0 %v7507_v55  ;;  %1242 = vmatprep.mubr.f32.mxu1 %v7507_v55  ;;  %vm390_vm5 = vcmp.ge.f32.partialorder %v283_v37, 0.0  ;;  %v5190_v23 = vpack.c.bf16 %v752_v63, %v744_v10  ;;  %v777_v32 = vld [vmem:[#allocation11 + $0xa88] sm:$0xff]  ;;  %v7551_v39 = vsel %vm385_vm9, %v362_v4, %v411_v21  ;;  %v802_v63 = vld [vmem:[#allocation11 + $0xb50] sm:$0xff] }
 0x181   :  { %vm391_vm6 = vcmp.ge.f32.partialorder %v285_v53, 0.0  ;;  %v417_v0 = vmul.f32 %v7437_v60, %v285_v53  ;;  %v288_v1 = vpop.f32.mrb[6].mxu0  ;;  %1065 = vmatmul.mubr.f32.gmra.mrb[10].mxu0 %v7513_v59  ;;  %1243 = vmatmul.mubr.f32.gmra.mrb[10].mxu1 %v7513_v59  ;;  %v5198_v4 = vpack.c.bf16 %v784_v51, %v776_v44  ;;  %v834_v44 = vld [vmem:[#allocation11 + $0xc50] sm:$0xff]  ;;  %v841_v51 = vld [vmem:[#allocation11 + $0xc88] sm:$0xff]  ;;  %vm392_vm14 = vcmp.ge.f32.partialorder %v7501_v52, 0.0 }
 0x182   :  { %v289_v6 = vadd.f32 %v288_v1, %v7423_v47  ;;  %v377_v7 = vpop.f32.mrb[6].mxu1  ;;  %5183 = vmatpush1.bf16.msra.mxu0 %v5182_v26  ;;  %5311 = vmatpush1.bf16.msra.mxu1 %v5310_v3  ;;  %v290_v8 = vpop.f32.mrb[7].mxu0  ;;  %v746_v47 = vld [vmem:[#allocation11 + $0x990] sm:$0xff]  ;;  %v795_v1 = vld [vmem:[#allocation11 + $0xb18] sm:$0xff] }
 0x183   :  { %v7523_v11 = vadd.f32 %v377_v7, %v7426_v48  ;;  %v291_v12 = vadd.f32 %v290_v8, %v7429_v49  ;;  %v7526_v13 = vpop.f32.mrb[7].mxu1  ;;  %v7529_v14 = vsel %vm391_vm6, %v285_v53, %v417_v0  ;;  %5185 = vmatprep.subr.bf16.mxu0 %v5184_v34  ;;  %5313 = vmatprep.subr.bf16.mxu1 %v5312_v40  ;;  %v761_v49 = vld [vmem:[#allocation11 + $0xa08] sm:$0xff]  ;;  %v770_v3 = vld [vmem:[#allocation11 + $0xa50] sm:$0xff]  ;;  %v792_v7 = vld [vmem:[#allocation11 + $0xb00] sm:$0xff] }
 0x184   :  { %v420_v16 = vmul.f32 %v7437_v60, %v289_v6  ;;  %1070 = vmatprep.mubr.f32.mxu0 %v7529_v14  ;;  %1248 = vmatprep.mubr.f32.mxu1 %v7529_v14  ;;  %v7535_v48 = vsel %vm390_vm5, %v283_v37, %v416_v58  ;;  %vm394_vm7 = vcmp.ge.f32.partialorder %v289_v6, 0.0  ;;  %v5318_v26 = vpack.c.bf16 %v754_v15, %v746_v47  ;;  %v779_v37 = vld [vmem:[#allocation11 + $0xa98] sm:$0xff]  ;;  %v786_v58 = vld [vmem:[#allocation11 + $0xad0] sm:$0xff]  ;;  %v801_v0 = vld [vmem:[#allocation11 + $0xb48] sm:$0xff] }
 0x185   :  { %vm395_vm8 = vcmp.ge.f32.partialorder %v291_v12, 0.0  ;;  %v421_v17 = vmul.f32 %v7437_v60, %v291_v12  ;;  %1071 = vmatmul.mubr.f32.gmra.mrb[12].mxu0 %v7535_v48  ;;  %1249 = vmatmul.mubr.f32.gmra.mrb[12].mxu1 %v7535_v48  ;;  %v5192_v34 = vpack.c.bf16 %v769_v18, %v761_v49  ;;  %v5194_v40 = vpack.c.bf16 %v768_v28, %v760_v27  ;;  %v800_v8 = vld [vmem:[#allocation11 + $0xb40] sm:$0xff]  ;;  %v809_v47 = vld [vmem:[#allocation11 + $0xb88] sm:$0xff]  ;;  %v819_v49 = vld [vmem:[#allocation11 + $0xbd8] sm:$0xff] }
 0x186   :  { %5187 = vmatpush1.bf16.msra.mxu0 %v5186_v41  ;;  %5315 = vmatpush1.bf16.msra.mxu1 %v5314_v62  ;;  %v7546_v33 = vsel %vm394_vm7, %v289_v6, %v420_v16  ;;  %v5322_v41 = vpack.c.bf16 %v770_v3, %v762_v31  ;;  %v5196_v53 = vpack.c.bf16 %v785_v36, %v777_v32  ;;  %v793_v62 = vld [vmem:[#allocation11 + $0xb08] sm:$0xff]  ;;  %v811_v16 = vld [vmem:[#allocation11 + $0xb98] sm:$0xff]  ;;  %v818_v27 = vld [vmem:[#allocation11 + $0xbd0] sm:$0xff]  ;;  %vm396_vm1 = vcmp.ge.f32.partialorder %v7523_v11, 0.0 }
 0x187   :  { %v7541_v29 = vsel %vm395_vm8, %v291_v12, %v421_v17  ;;  %5189 = vmatprep.subr.bf16.mxu0 %v5188_v2  ;;  %5317 = vmatprep.subr.bf16.mxu1 %v5316_v9  ;;  %v5324_v56 = vpack.c.bf16 %v787_v38, %v779_v37  ;;  %v803_v2 = vld [vmem:[#allocation11 + $0xb58] sm:$0xff]  ;;  %v5326_v6 = vpack.c.bf16 %v786_v58, %v778_v57  ;;  %v794_v12 = vld [vmem:[#allocation11 + $0xb10] sm:$0xff]  ;;  %v817_v15 = vld [vmem:[#allocation11 + $0xbc8] sm:$0xff] }
 0x188   :  { %1076 = vmatprep.mubr.f32.mxu0 %v7541_v29  ;;  %1254 = vmatprep.mubr.f32.mxu1 %v7541_v29  ;;  %v5200_v9 = vpack.c.bf16 %v801_v0, %v793_v62  ;;  %v5328_v10 = vpack.c.bf16 %v803_v2, %v795_v1  ;;  %v5202_v17 = vpack.c.bf16 %v800_v8, %v792_v7  ;;  %v825_v28 = vld [vmem:[#allocation11 + $0xc08] sm:$0xff]  ;;  %v827_v3 = vld [vmem:[#allocation11 + $0xc18] sm:$0xff]  ;;  %v824_v36 = vld [vmem:[#allocation11 + $0xc00] sm:$0xff] }
 0x189   :  { %1077 = vmatmul.mubr.f32.gmra.mrb[14].mxu0 %v7546_v33  ;;  %1255 = vmatmul.mubr.f32.gmra.mrb[14].mxu1 %v7546_v33  ;;  %v5330_v18 = vpack.c.bf16 %v802_v63, %v794_v12  ;;  %v5204_v21 = vpack.c.bf16 %v817_v15, %v809_v47  ;;  %v833_v31 = vld [vmem:[#allocation11 + $0xc48] sm:$0xff]  ;;  %v835_v32 = vld [vmem:[#allocation11 + $0xc58] sm:$0xff]  ;;  %v832_v37 = vld [vmem:[#allocation11 + $0xc40] sm:$0xff] }
 0x18a   :  { %5191 = vmatpush1.bf16.msra.mxu0 %v5190_v23  ;;  %5319 = vmatpush1.bf16.msra.mxu1 %v5318_v26  ;;  %v5332_v23 = vpack.c.bf16 %v819_v49, %v811_v16  ;;  %v810_v26 = vld [vmem:[#allocation11 + $0xb90] sm:$0xff]  ;;  %v5208_v38 = vpack.c.bf16 %v833_v31, %v825_v28  ;;  %v851_v57 = vld [vmem:[#allocation11 + $0xcd8] sm:$0xff]  ;;  %v5210_v58 = vpack.c.bf16 %v832_v37, %v824_v36  ;;  %v840_v0 = vld [vmem:[#allocation11 + $0xc80] sm:$0xff] }
 0x18b   :  { %1147 = vmatprep.mubr.f32.mxu0 %v7551_v39  ;;  %1325 = vmatprep.mubr.f32.mxu1 %v7551_v39  ;;  %v848_v1 = vld [vmem:[#allocation11 + $0xcc0] sm:$0xff]  ;;  %v850_v7 = vld [vmem:[#allocation11 + $0xcd0] sm:$0xff]  ;;  %v857_v8 = vld [vmem:[#allocation11 + $0xd08] sm:$0xff] }
 0x18c   :  { %5193 = vmatprep.subr.bf16.mxu0 %v5192_v34  ;;  %5321 = vmatprep.subr.bf16.mxu1 %v5320_v35  ;;  %v5206_v34 = vpack.c.bf16 %v816_v20, %v808_v19  ;;  %v5334_v35 = vpack.c.bf16 %v818_v27, %v810_v26  ;;  %v867_v12 = vld [vmem:[#allocation11 + $0xd58] sm:$0xff]  ;;  %v5214_v63 = vpack.c.bf16 %v848_v1, %v840_v0  ;;  %v856_v15 = vld [vmem:[#allocation11 + $0xd00] sm:$0xff]  ;;  %v866_v19 = vld [vmem:[#allocation11 + $0xd50] sm:$0xff] }
 0x18d   :  { %v864_v16 = vld [vmem:[#allocation11 + $0xd40] sm:$0xff]  ;;  %v873_v20 = vld [vmem:[#allocation11 + $0xd88] sm:$0xff]  ;;  %v883_v26 = vld [vmem:[#allocation11 + $0xdd8] sm:$0xff] }
 0x18e   :  { %5195 = vmatpush1.bf16.msra.mxu0 %v5194_v40  ;;  %5323 = vmatpush1.bf16.msra.mxu1 %v5322_v41  ;;  %v5336_v40 = vpack.c.bf16 %v835_v32, %v827_v3  ;;  %v826_v41 = vld [vmem:[#allocation11 + $0xc10] sm:$0xff]  ;;  %v5218_v27 = vpack.c.bf16 %v864_v16, %v856_v15  ;;  %v872_v31 = vld [vmem:[#allocation11 + $0xd80] sm:$0xff]  ;;  %v889_v37 = vld [vmem:[#allocation11 + $0xe08] sm:$0xff] }
 0x18f   :  { %5197 = vmatprep.subr.bf16.mxu0 %v5196_v53  ;;  %5325 = vmatprep.subr.bf16.mxu1 %v5324_v56  ;;  %v849_v53 = vld [vmem:[#allocation11 + $0xcc8] sm:$0xff]  ;;  %v843_v56 = vld [vmem:[#allocation11 + $0xc98] sm:$0xff]  ;;  %v5338_v62 = vpack.c.bf16 %v834_v44, %v826_v41  ;;  %v880_v3 = vld [vmem:[#allocation11 + $0xdc0] sm:$0xff] }
 0x190   :  { %v5212_v2 = vpack.c.bf16 %v849_v53, %v841_v51  ;;  %v882_v36 = vld [vmem:[#allocation11 + $0xdd0] sm:$0xff]  ;;  %v899_v41 = vld [vmem:[#allocation11 + $0xe58] sm:$0xff]  ;;  %v5222_v44 = vpack.c.bf16 %v880_v3, %v872_v31  ;;  %v888_v53 = vld [vmem:[#allocation11 + $0xe00] sm:$0xff] }
 0x191   :  { %v898_v0 = vld [vmem:[#allocation11 + $0xe50] sm:$0xff]  ;;  %v905_v1 = vld [vmem:[#allocation11 + $0xe88] sm:$0xff] }
 0x192   :  { %5199 = vmatpush1.bf16.msra.mxu0 %v5198_v4  ;;  %5327 = vmatpush1.bf16.msra.mxu1 %v5326_v6  ;;  %v5340_v4 = vpack.c.bf16 %v851_v57, %v843_v56  ;;  %v842_v6 = vld [vmem:[#allocation11 + $0xc90] sm:$0xff]  ;;  %v896_v56 = vld [vmem:[#allocation11 + $0xe40] sm:$0xff]  ;;  %v921_v16 = vld [vmem:[#allocation11 + $0xf08] sm:$0xff] }
 0x193   :  { %5201 = vmatprep.subr.bf16.mxu0 %v5200_v9  ;;  %5329 = vmatprep.subr.bf16.mxu1 %v5328_v10  ;;  %v865_v9 = vld [vmem:[#allocation11 + $0xd48] sm:$0xff]  ;;  %v859_v10 = vld [vmem:[#allocation11 + $0xd18] sm:$0xff]  ;;  %v5342_v47 = vpack.c.bf16 %v850_v7, %v842_v6  ;;  %v5226_v7 = vpack.c.bf16 %v896_v56, %v888_v53  ;;  %v914_v15 = vld [vmem:[#allocation11 + $0xed0] sm:$0xff] }
 0x194   :  { %v5216_v49 = vpack.c.bf16 %v865_v9, %v857_v8  ;;  %v915_v6 = vld [vmem:[#allocation11 + $0xed8] sm:$0xff]  ;;  %v904_v9 = vld [vmem:[#allocation11 + $0xe80] sm:$0xff]  ;;  %v930_v31 = vld [vmem:[#allocation11 + $0xf50] sm:$0xff] }
 0x195   :  { %v937_v3 = vld [vmem:[#allocation11 + $0xf88] sm:$0xff]  ;;  %v946_v53 = vld [vmem:[#allocation11 + $0xfd0] sm:$0xff] }
 0x196   :  { %5203 = vmatpush1.bf16.msra.mxu0 %v5202_v17  ;;  %5331 = vmatpush1.bf16.msra.mxu1 %v5330_v18  ;;  %v5344_v17 = vpack.c.bf16 %v867_v12, %v859_v10  ;;  %v858_v18 = vld [vmem:[#allocation11 + $0xd10] sm:$0xff]  ;;  %v912_v10 = vld [vmem:[#allocation11 + $0xec0] sm:$0xff]  ;;  %v445_v56 = vld [vmem:[#allocation11 + $0x28] sm:$0xff] }
 0x197   :  { %5205 = vmatprep.subr.bf16.mxu0 %v5204_v21  ;;  %5333 = vmatprep.subr.bf16.mxu1 %v5332_v23  ;;  %v881_v21 = vld [vmem:[#allocation11 + $0xdc8] sm:$0xff]  ;;  %v875_v23 = vld [vmem:[#allocation11 + $0xd98] sm:$0xff]  ;;  %v5346_v28 = vpack.c.bf16 %v866_v19, %v858_v18  ;;  %v5230_v19 = vpack.c.bf16 %v912_v10, %v904_v9  ;;  %v410_v9 = vmul.f32 %v7437_v60, %v7440_v61  ;;  %v446_v10 = vld [vmem:[#allocation11 + $0x30] sm:$0xff] }
 0x198   :  { %v5220_v32 = vpack.c.bf16 %v881_v21, %v873_v20  ;;  %v931_v18 = vld [vmem:[#allocation11 + $0xf58] sm:$0xff]  ;;  %v920_v21 = vld [vmem:[#allocation11 + $0xf00] sm:$0xff] }
 0x19a   :  { %5207 = vmatpush1.bf16.msra.mxu0 %v5206_v34  ;;  %5335 = vmatpush1.bf16.msra.mxu1 %v5334_v35  ;;  %v5348_v34 = vpack.c.bf16 %v883_v26, %v875_v23  ;;  %v874_v35 = vld [vmem:[#allocation11 + $0xd90] sm:$0xff]  ;;  %v928_v23 = vld [vmem:[#allocation11 + $0xf40] sm:$0xff] }
 0x19b   :  { %5209 = vmatprep.subr.bf16.mxu0 %v5208_v38  ;;  %5337 = vmatprep.subr.bf16.mxu1 %v5336_v40  ;;  %v897_v38 = vld [vmem:[#allocation11 + $0xe48] sm:$0xff]  ;;  %v891_v40 = vld [vmem:[#allocation11 + $0xe18] sm:$0xff]  ;;  %v5350_v51 = vpack.c.bf16 %v882_v36, %v874_v35  ;;  %v5234_v36 = vpack.c.bf16 %v928_v23, %v920_v21  ;;  %v462_v21 = vld [vmem:[#allocation11 + $0xb0] sm:$0xff]  ;;  %v7566_v23 = vsel %vm384_vm10, %v7440_v61, %v410_v9 }
 0x19c   :  { %v5224_v57 = vpack.c.bf16 %v897_v38, %v889_v37  ;;  %v947_v35 = vld [vmem:[#allocation11 + $0xfd8] sm:$0xff]  ;;  %v936_v38 = vld [vmem:[#allocation11 + $0xf80] sm:$0xff]  ;;  %v422_v9 = vmul.f32 %v7437_v60, %v7523_v11 }
 0x19e   :  { %5211 = vmatpush1.bf16.msra.mxu0 %v5210_v58  ;;  %5339 = vmatpush1.bf16.msra.mxu1 %v5338_v62  ;;  %v5352_v58 = vpack.c.bf16 %v899_v41, %v891_v40  ;;  %v890_v62 = vld [vmem:[#allocation11 + $0xe10] sm:$0xff]  ;;  %v944_v40 = vld [vmem:[#allocation11 + $0xfc0] sm:$0xff] }
 0x19f   :  { %5213 = vmatprep.subr.bf16.mxu0 %v5212_v2  ;;  %5341 = vmatprep.subr.bf16.mxu1 %v5340_v4  ;;  %v913_v2 = vld [vmem:[#allocation11 + $0xec8] sm:$0xff]  ;;  %v907_v4 = vld [vmem:[#allocation11 + $0xe98] sm:$0xff]  ;;  %v5354_v8 = vpack.c.bf16 %v898_v0, %v890_v62  ;;  %v368_v0 = vadd.f32 %v7470_v24, %v7447_v5 }
 0x1a0   :  { %v5228_v12 = vpack.c.bf16 %v913_v2, %v905_v1  ;;  %v455_v62 = vld [vmem:[#allocation11 + $0x78] sm:$0xff]  ;;  %v5238_v1 = vpack.c.bf16 %v944_v40, %v936_v38 }
 0x1a1   :  { %v415_v24 = vmul.f32 %v7437_v60, %v368_v0  ;;  %vm389_vm11 = vcmp.ge.f32.partialorder %v368_v0, 0.0 }
 0x1a2   :  { %5215 = vmatpush1.bf16.msra.mxu0 %v5214_v63  ;;  %5343 = vmatpush1.bf16.msra.mxu1 %v5342_v47  ;;  %v5356_v63 = vpack.c.bf16 %v915_v6, %v907_v4  ;;  %v906_v47 = vld [vmem:[#allocation11 + $0xe90] sm:$0xff] }
 0x1a3   :  { %5217 = vmatprep.subr.bf16.mxu0 %v5216_v49  ;;  %5345 = vmatprep.subr.bf16.mxu1 %v5344_v17  ;;  %v929_v49 = vld [vmem:[#allocation11 + $0xf48] sm:$0xff]  ;;  %v923_v17 = vld [vmem:[#allocation11 + $0xf18] sm:$0xff]  ;;  %v5358_v20 = vpack.c.bf16 %v914_v15, %v906_v47  ;;  %v374_v47 = vadd.f32 %v7504_v54, %v7447_v5  ;;  %v414_v54 = vmul.f32 %v7437_v60, %v7467_v22 }
 0x1a4   :  { %v5232_v26 = vpack.c.bf16 %v929_v49, %v921_v16  ;;  %v469_v15 = vld [vmem:[#allocation11 + $0xe8] sm:$0xff]  ;;  %v463_v16 = vld [vmem:[#allocation11 + $0xb8] sm:$0xff]  ;;  %v7577_v61 = vsel %vm389_vm11, %v368_v0, %v415_v24  ;;  %v502_v24 = vld [vmem:[#allocation11 + $0x1f0] sm:$0xff] }
 0x1a5   :  { %v471_v49 = vld [vmem:[#allocation11 + $0xf8] sm:$0xff]  ;;  %vm393_vm13 = vcmp.ge.f32.partialorder %v374_v47, 0.0 }
 0x1a6   :  { %5219 = vmatpush1.bf16.msra.mxu0 %v5218_v27  ;;  %5347 = vmatpush1.bf16.msra.mxu1 %v5346_v28  ;;  %v5360_v27 = vpack.c.bf16 %v931_v18, %v923_v17  ;;  %v922_v28 = vld [vmem:[#allocation11 + $0xf10] sm:$0xff] }
 0x1a7   :  { %5221 = vmatprep.subr.bf16.mxu0 %v5220_v32  ;;  %5349 = vmatprep.subr.bf16.mxu1 %v5348_v34  ;;  %v945_v32 = vld [vmem:[#allocation11 + $0xfc8] sm:$0xff]  ;;  %v939_v34 = vld [vmem:[#allocation11 + $0xf98] sm:$0xff]  ;;  %v5362_v37 = vpack.c.bf16 %v930_v31, %v922_v28  ;;  %v470_v28 = vld [vmem:[#allocation11 + $0xf0] sm:$0xff] }
 0x1a8   :  { %v5236_v41 = vpack.c.bf16 %v945_v32, %v937_v3  ;;  %v477_v31 = vld [vmem:[#allocation11 + $0x128] sm:$0xff]  ;;  %v419_v32 = vmul.f32 %v7437_v60, %v374_v47  ;;  %v5502_v38 = vpack.c.bf16 %v470_v28, %v462_v21 }
 0x1a9   :  { %v485_v3 = vld [vmem:[#allocation11 + $0x168] sm:$0xff] }
 0x1aa   :  { %5223 = vmatpush1.bf16.msra.mxu0 %v5222_v44  ;;  %5351 = vmatpush1.bf16.msra.mxu1 %v5350_v51  ;;  %v5364_v44 = vpack.c.bf16 %v947_v35, %v939_v34  ;;  %v938_v51 = vld [vmem:[#allocation11 + $0xf90] sm:$0xff]  ;;  %v380_v34 = vadd.f32 %v7526_v13, %v7447_v5  ;;  %v479_v35 = vld [vmem:[#allocation11 + $0x138] sm:$0xff]  ;;  %v5376_v40 = vpack.c.bf16 %v485_v3, %v477_v31  ;;  %v476_v5 = vld [vmem:[#allocation11 + $0x120] sm:$0xff] }
 0x1ab   :  { %5225 = vmatprep.subr.bf16.mxu0 %v5224_v57  ;;  %5353 = vmatprep.subr.bf16.mxu1 %v5352_v58  ;;  %v453_v57 = vld [vmem:[#allocation11 + $0x68] sm:$0xff]  ;;  %v447_v58 = vld [vmem:[#allocation11 + $0x38] sm:$0xff]  ;;  %v5366_v2 = vpack.c.bf16 %v946_v53, %v938_v51  ;;  %v484_v13 = vld [vmem:[#allocation11 + $0x160] sm:$0xff]  ;;  %v7586_v51 = vsel %vm388_vm12, %v7467_v22, %v414_v54  ;;  %v7593_v0 = vsel %vm393_vm13, %v374_v47, %v419_v32 }
 0x1ac   :  { %v5368_v4 = vpack.c.bf16 %v453_v57, %v445_v56  ;;  %v5496_v6 = vpack.c.bf16 %v455_v62, %v447_v58  ;;  %v486_v56 = vld [vmem:[#allocation11 + $0x170] sm:$0xff]  ;;  %v493_v57 = vld [vmem:[#allocation11 + $0x1a8] sm:$0xff]  ;;  %v423_v62 = vmul.f32 %v7437_v60, %v380_v34  ;;  %v503_v22 = vld [vmem:[#allocation11 + $0x1f8] sm:$0xff]  ;;  %vm397_vm15 = vcmp.ge.f32.partialorder %v380_v34, 0.0 }
 0x1ad   :  { %v501_v58 = vld [vmem:[#allocation11 + $0x1e8] sm:$0xff]  ;;  %v527_v3 = vld [vmem:[#allocation11 + $0x2b8] sm:$0xff] }
 0x1ae   :  { %5227 = vmatpush1.bf16.msra.mxu0 %v5226_v7  ;;  %5355 = vmatpush1.bf16.msra.mxu1 %v5354_v8  ;;  %v444_v7 = vld [vmem:[#allocation11 + $0x20] sm:$0xff]  ;;  %v509_v47 = vld [vmem:[#allocation11 + $0x228] sm:$0xff]  ;;  %v535_v32 = vld [vmem:[#allocation11 + $0x2f8] sm:$0xff] }
 0x1af   :  { %5229 = vmatprep.subr.bf16.mxu0 %v5228_v12  ;;  %5357 = vmatprep.subr.bf16.mxu1 %v5356_v63  ;;  %v452_v8 = vld [vmem:[#allocation11 + $0x60] sm:$0xff]  ;;  %v454_v12 = vld [vmem:[#allocation11 + $0x70] sm:$0xff]  ;;  %v461_v63 = vld [vmem:[#allocation11 + $0xa8] sm:$0xff] }
 0x1b0   :  { %v5370_v17 = vpack.c.bf16 %v452_v8, %v444_v7  ;;  %v5498_v18 = vpack.c.bf16 %v454_v12, %v446_v10  ;;  %v492_v7 = vld [vmem:[#allocation11 + $0x1a0] sm:$0xff]  ;;  %v525_v28 = vld [vmem:[#allocation11 + $0x2a8] sm:$0xff] }
 0x1b1   :  { %v500_v8 = vld [vmem:[#allocation11 + $0x1e0] sm:$0xff]  ;;  %v533_v31 = vld [vmem:[#allocation11 + $0x2e8] sm:$0xff] }
 0x1b2   :  { %5231 = vmatpush1.bf16.msra.mxu0 %v5230_v19  ;;  %5359 = vmatpush1.bf16.msra.mxu1 %v5358_v20  ;;  %v460_v19 = vld [vmem:[#allocation11 + $0xa0] sm:$0xff] }
 0x1b3   :  { %5233 = vmatprep.subr.bf16.mxu0 %v5232_v26  ;;  %5361 = vmatprep.subr.bf16.mxu1 %v5360_v27  ;;  %v468_v20 = vld [vmem:[#allocation11 + $0xe0] sm:$0xff]  ;;  %v5372_v26 = vpack.c.bf16 %v469_v15, %v461_v63  ;;  %v5500_v27 = vpack.c.bf16 %v471_v49, %v463_v16  ;;  %v494_v63 = vld [vmem:[#allocation11 + $0x1b0] sm:$0xff]  ;;  %v7608_v15 = vsel %vm397_vm15, %v380_v34, %v423_v62  ;;  %v511_v16 = vld [vmem:[#allocation11 + $0x238] sm:$0xff] }
 0x1b4   :  { %v519_v49 = vld [vmem:[#allocation11 + $0x278] sm:$0xff] }
 0x1b5   :  { %v5512_v54 = vpack.c.bf16 %v519_v49, %v511_v16  ;;  %v558_v16 = vld [vmem:[#allocation11 + $0x3b0] sm:$0xff] }
 0x1b6   :  { %5235 = vmatpush1.bf16.msra.mxu0 %v5234_v36  ;;  %5363 = vmatpush1.bf16.msra.mxu1 %v5362_v37  ;;  %v487_v36 = vld [vmem:[#allocation11 + $0x178] sm:$0xff]  ;;  %v5374_v37 = vpack.c.bf16 %v468_v20, %v460_v19  ;;  %v516_v19 = vld [vmem:[#allocation11 + $0x260] sm:$0xff]  ;;  %v7613_v20 = vsel %vm396_vm1, %v7523_v11, %v422_v9  ;;  %v566_v49 = vld [vmem:[#allocation11 + $0x3f0] sm:$0xff] }
 0x1b7   :  { %5237 = vmatprep.subr.bf16.mxu0 %v5236_v41  ;;  %5365 = vmatprep.subr.bf16.mxu1 %v5364_v44  ;;  %v478_v41 = vld [vmem:[#allocation11 + $0x130] sm:$0xff]  ;;  %v418_v44 = vmul.f32 %v7437_v60, %v7501_v52  ;;  %v5504_v53 = vpack.c.bf16 %v487_v36, %v479_v35  ;;  %v517_v60 = vld [vmem:[#allocation11 + $0x268] sm:$0xff]  ;;  %v524_v35 = vld [vmem:[#allocation11 + $0x2a0] sm:$0xff] }
 0x1b8   :  { %v5384_v21 = vpack.c.bf16 %v517_v60, %v509_v47  ;;  %v532_v36 = vld [vmem:[#allocation11 + $0x2e0] sm:$0xff] }
 0x1b9   :  { %v7602_v10 = vsel %vm392_vm14, %v7501_v52, %v418_v44  ;;  %v5382_v52 = vpack.c.bf16 %v500_v8, %v492_v7  ;;  %v543_v44 = vld [vmem:[#allocation11 + $0x338] sm:$0xff] }
 0x1ba   :  { %5239 = vmatpush1.bf16.msra.mxu0 %v5238_v1  ;;  %5367 = vmatpush1.bf16.msra.mxu1 %v5366_v2  ;;  %v495_v1 = vld [vmem:[#allocation11 + $0x1b8] sm:$0xff]  ;;  %v5378_v2 = vpack.c.bf16 %v484_v13, %v476_v5  ;;  %v534_v5 = vld [vmem:[#allocation11 + $0x2f0] sm:$0xff]  ;;  %v541_v13 = vld [vmem:[#allocation11 + $0x328] sm:$0xff] }
 0x1bb   :  { %5369 = vmatprep.subr.bf16.mxu0 %v5368_v4  ;;  %5497 = vmatprep.subr.bf16.mxu1 %v5496_v6  ;;  %v5506_v4 = vpack.c.bf16 %v486_v56, %v478_v41  ;;  %v5380_v6 = vpack.c.bf16 %v501_v58, %v493_v57  ;;  %v5508_v12 = vpack.c.bf16 %v503_v22, %v495_v1  ;;  %v549_v41 = vld [vmem:[#allocation11 + $0x368] sm:$0xff]  ;;  %v540_v57 = vld [vmem:[#allocation11 + $0x320] sm:$0xff]  ;;  %v542_v22 = vld [vmem:[#allocation11 + $0x330] sm:$0xff] }
 0x1bc   :  { %v5390_v56 = vpack.c.bf16 %v532_v36, %v524_v35  ;;  %v548_v58 = vld [vmem:[#allocation11 + $0x360] sm:$0xff]  ;;  %v5392_v62 = vpack.c.bf16 %v549_v41, %v541_v13  ;;  %v559_v7 = vld [vmem:[#allocation11 + $0x3b8] sm:$0xff] }
 0x1bd   :  { %1148 = vmatmul.mubr.f32.vlgmr.msra.gmra.mrb[8].mxu0 %v7566_v23  ;;  %1326 = vmatmul.mubr.f32.vlgmr.msra.gmra.mrb[8].mxu1 %v7566_v23  ;;  %v567_v8 = vld [vmem:[#allocation11 + $0x3f8] sm:$0xff]  ;;  %v5394_v9 = vpack.c.bf16 %v548_v58, %v540_v57 }
 0x1be   :  { %1153 = vmatprep.mubr.f32.mxu0 %v7577_v61  ;;  %1331 = vmatprep.mubr.f32.mxu1 %v7577_v61  ;;  %v5524_v60 = vpack.c.bf16 %v567_v8, %v559_v7  ;;  %v591_v35 = vld [vmem:[#allocation11 + $0x4b8] sm:$0xff]  ;;  %v606_v7 = vld [vmem:[#allocation11 + $0x530] sm:$0xff] }
 0x1bf   :  { %5371 = vmatpush1.bf16.msra.mxu0 %v5370_v17  ;;  %5499 = vmatpush1.bf16.msra.mxu1 %v5498_v18  ;;  %v5510_v17 = vpack.c.bf16 %v502_v24, %v494_v63  ;;  %v508_v18 = vld [vmem:[#allocation11 + $0x220] sm:$0xff]  ;;  %v599_v36 = vld [vmem:[#allocation11 + $0x4f8] sm:$0xff]  ;;  %v614_v8 = vld [vmem:[#allocation11 + $0x570] sm:$0xff] }
 0x1c0   :  { %5373 = vmatprep.subr.bf16.mxu0 %v5372_v26  ;;  %5501 = vmatprep.subr.bf16.mxu1 %v5500_v27  ;;  %v510_v26 = vld [vmem:[#allocation11 + $0x230] sm:$0xff]  ;;  %v5386_v11 = vpack.c.bf16 %v516_v19, %v508_v18  ;;  %v556_v63 = vld [vmem:[#allocation11 + $0x3a0] sm:$0xff]  ;;  %v575_v18 = vld [vmem:[#allocation11 + $0x438] sm:$0xff]  ;;  %v5532_v41 = vpack.c.bf16 %v599_v36, %v591_v35 }
 0x1c1   :  { %1154 = vmatmul.mubr.f32.gmra.mrb[10].mxu0 %v7586_v51  ;;  %1332 = vmatmul.mubr.f32.gmra.mrb[10].mxu1 %v7586_v51  ;;  %v518_v27 = vld [vmem:[#allocation11 + $0x270] sm:$0xff]  ;;  %v564_v24 = vld [vmem:[#allocation11 + $0x3e0] sm:$0xff]  ;;  %v583_v19 = vld [vmem:[#allocation11 + $0x478] sm:$0xff] }
 0x1c2   :  { %1159 = vmatprep.mubr.f32.mxu0 %v7593_v0  ;;  %1337 = vmatprep.mubr.f32.mxu1 %v7593_v0  ;;  %v5514_v34 = vpack.c.bf16 %v518_v27, %v510_v26  ;;  %v572_v26 = vld [vmem:[#allocation11 + $0x420] sm:$0xff]  ;;  %v607_v57 = vld [vmem:[#allocation11 + $0x538] sm:$0xff]  ;;  %v638_v35 = vld [vmem:[#allocation11 + $0x630] sm:$0xff] }
 0x1c3   :  { %5375 = vmatpush1.bf16.msra.mxu0 %v5374_v37  ;;  %5503 = vmatpush1.bf16.msra.mxu1 %v5502_v38  ;;  %v5388_v37 = vpack.c.bf16 %v533_v31, %v525_v28  ;;  %v5516_v38 = vpack.c.bf16 %v535_v32, %v527_v3  ;;  %v580_v27 = vld [vmem:[#allocation11 + $0x460] sm:$0xff]  ;;  %v5528_v31 = vpack.c.bf16 %v583_v19, %v575_v18  ;;  %v574_v3 = vld [vmem:[#allocation11 + $0x430] sm:$0xff]  ;;  %v615_v58 = vld [vmem:[#allocation11 + $0x578] sm:$0xff] }
 0x1c4   :  { %5377 = vmatprep.subr.bf16.mxu0 %v5376_v40  ;;  %5505 = vmatprep.subr.bf16.mxu1 %v5504_v53  ;;  %v526_v40 = vld [vmem:[#allocation11 + $0x2b0] sm:$0xff]  ;;  %v551_v53 = vld [vmem:[#allocation11 + $0x378] sm:$0xff] }
 0x1c5   :  { %1160 = vmatmul.mubr.f32.gmra.mrb[12].mxu0 %v7602_v10  ;;  %1338 = vmatmul.mubr.f32.gmra.mrb[12].mxu1 %v7602_v10  ;;  %v5520_v1 = vpack.c.bf16 %v551_v53, %v543_v44  ;;  %v582_v32 = vld [vmem:[#allocation11 + $0x470] sm:$0xff] }
 0x1c6   :  { %1165 = vmatprep.mubr.f32.mxu0 %v7608_v15  ;;  %1343 = vmatprep.mubr.f32.mxu1 %v7608_v15  ;;  %v590_v44 = vld [vmem:[#allocation11 + $0x4b0] sm:$0xff] }
 0x1c7   :  { %5379 = vmatpush1.bf16.msra.mxu0 %v5378_v2  ;;  %5507 = vmatpush1.bf16.msra.mxu1 %v5506_v4  ;;  %v550_v2 = vld [vmem:[#allocation11 + $0x370] sm:$0xff]  ;;  %v557_v4 = vld [vmem:[#allocation11 + $0x3a8] sm:$0xff] }
 0x1c8   :  { %5381 = vmatprep.subr.bf16.mxu0 %v5380_v6  ;;  %5509 = vmatprep.subr.bf16.mxu1 %v5508_v12  ;;  %v565_v6 = vld [vmem:[#allocation11 + $0x3e8] sm:$0xff]  ;;  %v5522_v12 = vpack.c.bf16 %v550_v2, %v542_v22  ;;  %v598_v53 = vld [vmem:[#allocation11 + $0x4f0] sm:$0xff]  ;;  %v604_v22 = vld [vmem:[#allocation11 + $0x520] sm:$0xff] }
 0x1c9   :  { %1166 = vmatmul.mubr.f32.gmra.mrb[14].mxu0 %v7613_v20  ;;  %1344 = vmatmul.mubr.f32.gmra.mrb[14].mxu1 %v7613_v20  ;;  %v5396_v47 = vpack.c.bf16 %v565_v6, %v557_v4  ;;  %v612_v2 = vld [vmem:[#allocation11 + $0x560] sm:$0xff]  ;;  %v5536_v6 = vpack.c.bf16 %v615_v58, %v607_v57  ;;  %v622_v18 = vld [vmem:[#allocation11 + $0x5b0] sm:$0xff] }
 0x1ca   :  { %1414 = vmatprep.mubr.f32.mxu0 %v7473_v25  ;;  %1592 = vmatprep.mubr.f32.mxu1 %v7473_v25  ;;  %v5518_v25 = vpack.c.bf16 %v534_v5, %v526_v40  ;;  %v588_v40 = vld [vmem:[#allocation11 + $0x4a0] sm:$0xff]  ;;  %v630_v19 = vld [vmem:[#allocation11 + $0x5f0] sm:$0xff] }
 0x1cb   :  { %5383 = vmatpush1.bf16.msra.mxu0 %v5382_v52  ;;  %5511 = vmatpush1.bf16.msra.mxu1 %v5510_v17  ;;  %v573_v52 = vld [vmem:[#allocation11 + $0x428] sm:$0xff]  ;;  %v596_v5 = vld [vmem:[#allocation11 + $0x4e0] sm:$0xff]  ;;  %v646_v36 = vld [vmem:[#allocation11 + $0x670] sm:$0xff] }
 0x1cc   :  { %5385 = vmatprep.subr.bf16.mxu0 %v5384_v21  ;;  %5513 = vmatprep.subr.bf16.mxu1 %v5512_v54  ;;  %v581_v17 = vld [vmem:[#allocation11 + $0x468] sm:$0xff]  ;;  %v5398_v21 = vpack.c.bf16 %v564_v24, %v556_v63  ;;  %v5526_v54 = vpack.c.bf16 %v566_v49, %v558_v16  ;;  %v623_v63 = vld [vmem:[#allocation11 + $0x5b8] sm:$0xff]  ;;  %v620_v16 = vld [vmem:[#allocation11 + $0x5a0] sm:$0xff] }
 0x1cd   :  { %v5400_v28 = vpack.c.bf16 %v581_v17, %v573_v52  ;;  %v631_v24 = vld [vmem:[#allocation11 + $0x5f8] sm:$0xff]  ;;  %v628_v49 = vld [vmem:[#allocation11 + $0x5e0] sm:$0xff]  ;;  %v654_v57 = vld [vmem:[#allocation11 + $0x6b0] sm:$0xff] }
 0x1ce   :  { %v5540_v17 = vpack.c.bf16 %v631_v24, %v623_v63  ;;  %v662_v58 = vld [vmem:[#allocation11 + $0x6f0] sm:$0xff] }
 0x1cf   :  { %5387 = vmatpush1.bf16.msra.mxu0 %v5386_v11  ;;  %5515 = vmatpush1.bf16.msra.mxu1 %v5514_v34  ;;  %v589_v11 = vld [vmem:[#allocation11 + $0x4a8] sm:$0xff]  ;;  %v670_v63 = vld [vmem:[#allocation11 + $0x730] sm:$0xff] }
 0x1d0   :  { %5389 = vmatprep.subr.bf16.mxu0 %v5388_v37  ;;  %5517 = vmatprep.subr.bf16.mxu1 %v5516_v38  ;;  %v597_v34 = vld [vmem:[#allocation11 + $0x4e8] sm:$0xff]  ;;  %v5402_v37 = vpack.c.bf16 %v580_v27, %v572_v26  ;;  %v5530_v38 = vpack.c.bf16 %v582_v32, %v574_v3  ;;  %v639_v26 = vld [vmem:[#allocation11 + $0x638] sm:$0xff]  ;;  %v636_v3 = vld [vmem:[#allocation11 + $0x620] sm:$0xff] }
 0x1d1   :  { %v5404_v13 = vpack.c.bf16 %v597_v34, %v589_v11  ;;  %v647_v27 = vld [vmem:[#allocation11 + $0x678] sm:$0xff]  ;;  %v644_v32 = vld [vmem:[#allocation11 + $0x660] sm:$0xff]  ;;  %v678_v24 = vld [vmem:[#allocation11 + $0x770] sm:$0xff] }
 0x1d2   :  { %v5544_v34 = vpack.c.bf16 %v647_v27, %v639_v26  ;;  %v686_v26 = vld [vmem:[#allocation11 + $0x7b0] sm:$0xff] }
 0x1d3   :  { %5391 = vmatpush1.bf16.msra.mxu0 %v5390_v56  ;;  %5519 = vmatpush1.bf16.msra.mxu1 %v5518_v25  ;;  %v605_v56 = vld [vmem:[#allocation11 + $0x528] sm:$0xff]  ;;  %v694_v27 = vld [vmem:[#allocation11 + $0x7f0] sm:$0xff] }
 0x1d4   :  { %5393 = vmatprep.subr.bf16.mxu0 %v5392_v62  ;;  %5521 = vmatprep.subr.bf16.mxu1 %v5520_v1  ;;  %v613_v25 = vld [vmem:[#allocation11 + $0x568] sm:$0xff]  ;;  %v5406_v62 = vpack.c.bf16 %v596_v5, %v588_v40  ;;  %v5534_v1 = vpack.c.bf16 %v598_v53, %v590_v44  ;;  %v655_v40 = vld [vmem:[#allocation11 + $0x6b8] sm:$0xff]  ;;  %v652_v44 = vld [vmem:[#allocation11 + $0x6a0] sm:$0xff] }
 0x1d5   :  { %v5408_v4 = vpack.c.bf16 %v613_v25, %v605_v56  ;;  %v663_v5 = vld [vmem:[#allocation11 + $0x6f8] sm:$0xff]  ;;  %v660_v53 = vld [vmem:[#allocation11 + $0x6e0] sm:$0xff] }
 0x1d6   :  { %v5548_v25 = vpack.c.bf16 %v663_v5, %v655_v40  ;;  %v702_v40 = vld [vmem:[#allocation11 + $0x830] sm:$0xff] }
 0x1d7   :  { %5395 = vmatpush1.bf16.msra.mxu0 %v5394_v9  ;;  %5523 = vmatpush1.bf16.msra.mxu1 %v5522_v12  ;;  %v621_v9 = vld [vmem:[#allocation11 + $0x5a8] sm:$0xff]  ;;  %v710_v5 = vld [vmem:[#allocation11 + $0x870] sm:$0xff] }
 0x1d8   :  { %5397 = vmatprep.subr.bf16.mxu0 %v5396_v47  ;;  %5525 = vmatprep.subr.bf16.mxu1 %v5524_v60  ;;  %v629_v12 = vld [vmem:[#allocation11 + $0x5e8] sm:$0xff]  ;;  %v5410_v47 = vpack.c.bf16 %v612_v2, %v604_v22  ;;  %v5538_v60 = vpack.c.bf16 %v614_v8, %v606_v7  ;;  %v671_v22 = vld [vmem:[#allocation11 + $0x738] sm:$0xff]  ;;  %v668_v7 = vld [vmem:[#allocation11 + $0x720] sm:$0xff] }
 0x1d9   :  { %v5412_v52 = vpack.c.bf16 %v629_v12, %v621_v9  ;;  %v679_v2 = vld [vmem:[#allocation11 + $0x778] sm:$0xff]  ;;  %v676_v8 = vld [vmem:[#allocation11 + $0x760] sm:$0xff] }
 0x1da   :  { %v5552_v12 = vpack.c.bf16 %v679_v2, %v671_v22  ;;  %v718_v22 = vld [vmem:[#allocation11 + $0x8b0] sm:$0xff] }
 0x1db   :  { %5399 = vmatpush1.bf16.msra.mxu0 %v5398_v21  ;;  %5527 = vmatpush1.bf16.msra.mxu1 %v5526_v54  ;;  %v637_v21 = vld [vmem:[#allocation11 + $0x628] sm:$0xff]  ;;  %v726_v2 = vld [vmem:[#allocation11 + $0x8f0] sm:$0xff] }
 0x1dc   :  { %5401 = vmatprep.subr.bf16.mxu0 %v5400_v28  ;;  %5529 = vmatprep.subr.bf16.mxu1 %v5528_v31  ;;  %v645_v54 = vld [vmem:[#allocation11 + $0x668] sm:$0xff]  ;;  %v5414_v28 = vpack.c.bf16 %v628_v49, %v620_v16  ;;  %v5542_v31 = vpack.c.bf16 %v630_v19, %v622_v18  ;;  %v687_v16 = vld [vmem:[#allocation11 + $0x7b8] sm:$0xff]  ;;  %v684_v18 = vld [vmem:[#allocation11 + $0x7a0] sm:$0xff] }
 0x1dd   :  { %v5416_v11 = vpack.c.bf16 %v645_v54, %v637_v21  ;;  %v695_v49 = vld [vmem:[#allocation11 + $0x7f8] sm:$0xff]  ;;  %v692_v19 = vld [vmem:[#allocation11 + $0x7e0] sm:$0xff] }
 0x1de   :  { %v5556_v54 = vpack.c.bf16 %v695_v49, %v687_v16  ;;  %v734_v16 = vld [vmem:[#allocation11 + $0x930] sm:$0xff] }
 0x1df   :  { %5403 = vmatpush1.bf16.msra.mxu0 %v5402_v37  ;;  %5531 = vmatpush1.bf16.msra.mxu1 %v5530_v38  ;;  %v653_v37 = vld [vmem:[#allocation11 + $0x6a8] sm:$0xff]  ;;  %v742_v49 = vld [vmem:[#allocation11 + $0x970] sm:$0xff] }
 0x1e0   :  { %5405 = vmatprep.subr.bf16.mxu0 %v5404_v13  ;;  %5533 = vmatprep.subr.bf16.mxu1 %v5532_v41  ;;  %v661_v38 = vld [vmem:[#allocation11 + $0x6e8] sm:$0xff]  ;;  %v5418_v13 = vpack.c.bf16 %v644_v32, %v636_v3  ;;  %v5546_v41 = vpack.c.bf16 %v646_v36, %v638_v35  ;;  %v703_v3 = vld [vmem:[#allocation11 + $0x838] sm:$0xff] }
 0x1e1   :  { %v5420_v56 = vpack.c.bf16 %v661_v38, %v653_v37  ;;  %v711_v32 = vld [vmem:[#allocation11 + $0x878] sm:$0xff]  ;;  %v700_v37 = vld [vmem:[#allocation11 + $0x820] sm:$0xff] }
 0x1e2   :  { %v5560_v36 = vpack.c.bf16 %v711_v32, %v703_v3  ;;  %v708_v38 = vld [vmem:[#allocation11 + $0x860] sm:$0xff]  ;;  %v773_v3 = vld [vmem:[#allocation11 + $0xa68] sm:$0xff]  ;;  %v767_v32 = vld [vmem:[#allocation11 + $0xa38] sm:$0xff] }
 0x1e3   :  { %5407 = vmatpush1.bf16.msra.mxu0 %v5406_v62  ;;  %5535 = vmatpush1.bf16.msra.mxu1 %v5534_v1  ;;  %v669_v62 = vld [vmem:[#allocation11 + $0x728] sm:$0xff] }
 0x1e4   :  { %5409 = vmatprep.subr.bf16.mxu0 %v5408_v4  ;;  %5537 = vmatprep.subr.bf16.mxu1 %v5536_v6  ;;  %v677_v1 = vld [vmem:[#allocation11 + $0x768] sm:$0xff]  ;;  %v5422_v4 = vpack.c.bf16 %v660_v53, %v652_v44  ;;  %v5550_v6 = vpack.c.bf16 %v662_v58, %v654_v57  ;;  %v719_v44 = vld [vmem:[#allocation11 + $0x8b8] sm:$0xff]  ;;  %v716_v57 = vld [vmem:[#allocation11 + $0x8a0] sm:$0xff] }
 0x1e5   :  { %v5424_v9 = vpack.c.bf16 %v677_v1, %v669_v62  ;;  %v727_v53 = vld [vmem:[#allocation11 + $0x8f8] sm:$0xff]  ;;  %v724_v58 = vld [vmem:[#allocation11 + $0x8e0] sm:$0xff] }
 0x1e6   :  { %v5564_v1 = vpack.c.bf16 %v727_v53, %v719_v44  ;;  %v791_v44 = vld [vmem:[#allocation11 + $0xaf8] sm:$0xff] }
 0x1e7   :  { %5411 = vmatpush1.bf16.msra.mxu0 %v5410_v47  ;;  %5539 = vmatpush1.bf16.msra.mxu1 %v5538_v60  ;;  %v685_v47 = vld [vmem:[#allocation11 + $0x7a8] sm:$0xff] }
 0x1e8   :  { %5413 = vmatprep.subr.bf16.mxu0 %v5412_v52  ;;  %5541 = vmatprep.subr.bf16.mxu1 %v5540_v17  ;;  %v693_v60 = vld [vmem:[#allocation11 + $0x7e8] sm:$0xff]  ;;  %v5426_v52 = vpack.c.bf16 %v676_v8, %v668_v7  ;;  %v5554_v17 = vpack.c.bf16 %v678_v24, %v670_v63  ;;  %v735_v7 = vld [vmem:[#allocation11 + $0x938] sm:$0xff]  ;;  %v732_v63 = vld [vmem:[#allocation11 + $0x920] sm:$0xff] }
 0x1e9   :  { %v5428_v21 = vpack.c.bf16 %v693_v60, %v685_v47  ;;  %v743_v8 = vld [vmem:[#allocation11 + $0x978] sm:$0xff]  ;;  %v740_v24 = vld [vmem:[#allocation11 + $0x960] sm:$0xff] }
 0x1ea   :  { %v5568_v60 = vpack.c.bf16 %v743_v8, %v735_v7 }
 0x1eb   :  { %5415 = vmatpush1.bf16.msra.mxu0 %v5414_v28  ;;  %5543 = vmatpush1.bf16.msra.mxu1 %v5542_v31  ;;  %v701_v28 = vld [vmem:[#allocation11 + $0x828] sm:$0xff] }
 0x1ec   :  { %5417 = vmatprep.subr.bf16.mxu0 %v5416_v11  ;;  %5545 = vmatprep.subr.bf16.mxu1 %v5544_v34  ;;  %v709_v31 = vld [vmem:[#allocation11 + $0x868] sm:$0xff]  ;;  %v5430_v11 = vpack.c.bf16 %v692_v19, %v684_v18  ;;  %v5558_v34 = vpack.c.bf16 %v694_v27, %v686_v26  ;;  %v759_v18 = vld [vmem:[#allocation11 + $0x9f8] sm:$0xff]  ;;  %v5570_v19 = vpack.c.bf16 %v742_v49, %v734_v16 }
 0x1ed   :  { %v5432_v35 = vpack.c.bf16 %v709_v31, %v701_v28  ;;  %v750_v28 = vld [vmem:[#allocation11 + $0x9b0] sm:$0xff]  ;;  %v815_v16 = vld [vmem:[#allocation11 + $0xbb8] sm:$0xff] }
 0x1ee   :  { %v758_v31 = vld [vmem:[#allocation11 + $0x9f0] sm:$0xff]  ;;  %v823_v49 = vld [vmem:[#allocation11 + $0xbf8] sm:$0xff] }
 0x1ef   :  { %5419 = vmatpush1.bf16.msra.mxu0 %v5418_v13  ;;  %5547 = vmatpush1.bf16.msra.mxu1 %v5546_v41  ;;  %v717_v13 = vld [vmem:[#allocation11 + $0x8a8] sm:$0xff] }
 0x1f0   :  { %5421 = vmatprep.subr.bf16.mxu0 %v5420_v56  ;;  %5549 = vmatprep.subr.bf16.mxu1 %v5548_v25  ;;  %v725_v41 = vld [vmem:[#allocation11 + $0x8e8] sm:$0xff]  ;;  %v5434_v56 = vpack.c.bf16 %v708_v38, %v700_v37  ;;  %v5562_v25 = vpack.c.bf16 %v710_v5, %v702_v40  ;;  %v766_v37 = vld [vmem:[#allocation11 + $0xa30] sm:$0xff] }
 0x1f1   :  { %v5436_v62 = vpack.c.bf16 %v725_v41, %v717_v13  ;;  %v774_v5 = vld [vmem:[#allocation11 + $0xa70] sm:$0xff]  ;;  %v789_v13 = vld [vmem:[#allocation11 + $0xae8] sm:$0xff]  ;;  %v783_v41 = vld [vmem:[#allocation11 + $0xab8] sm:$0xff] }
 0x1f2   :  { %v5578_v53 = vpack.c.bf16 %v774_v5, %v766_v37  ;;  %v845_v37 = vld [vmem:[#allocation11 + $0xca8] sm:$0xff]  ;;  %v855_v5 = vld [vmem:[#allocation11 + $0xcf8] sm:$0xff] }
 0x1f3   :  { %5423 = vmatpush1.bf16.msra.mxu0 %v5422_v4  ;;  %5551 = vmatpush1.bf16.msra.mxu1 %v5550_v6  ;;  %v733_v4 = vld [vmem:[#allocation11 + $0x928] sm:$0xff] }
 0x1f4   :  { %5425 = vmatprep.subr.bf16.mxu0 %v5424_v9  ;;  %5553 = vmatprep.subr.bf16.mxu1 %v5552_v12  ;;  %v741_v6 = vld [vmem:[#allocation11 + $0x968] sm:$0xff]  ;;  %v5438_v9 = vpack.c.bf16 %v724_v58, %v716_v57  ;;  %v5566_v12 = vpack.c.bf16 %v726_v2, %v718_v22  ;;  %v788_v57 = vld [vmem:[#allocation11 + $0xae0] sm:$0xff]  ;;  %v782_v58 = vld [vmem:[#allocation11 + $0xab0] sm:$0xff] }
 0x1f5   :  { %v5440_v47 = vpack.c.bf16 %v741_v6, %v733_v4  ;;  %v797_v22 = vld [vmem:[#allocation11 + $0xb28] sm:$0xff]  ;;  %v799_v2 = vld [vmem:[#allocation11 + $0xb38] sm:$0xff] }
 0x1f6   :  { %v807_v4 = vld [vmem:[#allocation11 + $0xb78] sm:$0xff] }
 0x1f7   :  { %5427 = vmatpush1.bf16.msra.mxu0 %v5426_v52  ;;  %5555 = vmatpush1.bf16.msra.mxu1 %v5554_v17  ;;  %v757_v52 = vld [vmem:[#allocation11 + $0x9e8] sm:$0xff]  ;;  %v751_v17 = vld [vmem:[#allocation11 + $0x9b8] sm:$0xff] }
 0x1f8   :  { %5429 = vmatprep.subr.bf16.mxu0 %v5428_v21  ;;  %5557 = vmatprep.subr.bf16.mxu1 %v5556_v54  ;;  %v748_v21 = vld [vmem:[#allocation11 + $0x9a0] sm:$0xff]  ;;  %v5572_v27 = vpack.c.bf16 %v759_v18, %v751_v17 }
 0x1f9   :  { %v756_v54 = vld [vmem:[#allocation11 + $0x9e0] sm:$0xff] }
 0x1fa   :  { %v812_v18 = vld [vmem:[#allocation11 + $0xba0] sm:$0xff] }
 0x1fb   :  { %5431 = vmatpush1.bf16.msra.mxu0 %v5430_v11  ;;  %5559 = vmatpush1.bf16.msra.mxu1 %v5558_v34  ;;  %v775_v11 = vld [vmem:[#allocation11 + $0xa78] sm:$0xff]  ;;  %v5574_v34 = vpack.c.bf16 %v758_v31, %v750_v28 }
 0x1fc   :  { %5433 = vmatprep.subr.bf16.mxu0 %v5432_v35  ;;  %5561 = vmatprep.subr.bf16.mxu1 %v5560_v36  ;;  %v764_v35 = vld [vmem:[#allocation11 + $0xa20] sm:$0xff]  ;;  %v5576_v40 = vpack.c.bf16 %v775_v11, %v767_v32  ;;  %v831_v28 = vld [vmem:[#allocation11 + $0xc38] sm:$0xff] }
 0x1fd   :  { %v772_v36 = vld [vmem:[#allocation11 + $0xa60] sm:$0xff]  ;;  %v839_v31 = vld [vmem:[#allocation11 + $0xc78] sm:$0xff] }
 0x1fe   :  { %1415 = vmatmul.mubr.f32.vlgmr.msra.gmra.mrb[16].mxu0 %v7482_v30  ;;  %1593 = vmatmul.mubr.f32.vlgmr.msra.gmra.mrb[16].mxu1 %v7482_v30  ;;  %v749_v30 = vld [vmem:[#allocation11 + $0x9a8] sm:$0xff]  ;;  %v828_v11 = vld [vmem:[#allocation11 + $0xc20] sm:$0xff] }
 0x1ff   :  { %1420 = vmatprep.mubr.f32.mxu0 %v7507_v55  ;;  %5435 = vmatpush1.bf16.msra.mxu0 %v5434_v56  ;;  %v5444_v26 = vpack.c.bf16 %v757_v52, %v749_v30 }
 0x200   :  { %1598 = vmatprep.mubr.f32.mxu1 %v7507_v55  ;;  %5563 = vmatpush1.bf16.msra.mxu1 %v5562_v25  ;;  %v5442_v55 = vpack.c.bf16 %v740_v24, %v732_v63  ;;  %v780_v25 = vld [vmem:[#allocation11 + $0xaa0] sm:$0xff]  ;;  %v5584_v63 = vpack.c.bf16 %v807_v4, %v799_v2  ;;  %v806_v24 = vld [vmem:[#allocation11 + $0xb70] sm:$0xff] }
 0x201   :  { %5437 = vmatprep.subr.bf16.mxu0 %v5436_v62  ;;  %5565 = vmatprep.subr.bf16.mxu1 %v5564_v1  ;;  %v5580_v62 = vpack.c.bf16 %v791_v44, %v783_v41  ;;  %v790_v1 = vld [vmem:[#allocation11 + $0xaf0] sm:$0xff]  ;;  %v5454_v6 = vpack.c.bf16 %v788_v57, %v780_v25  ;;  %v844_v44 = vld [vmem:[#allocation11 + $0xca0] sm:$0xff]  ;;  %v861_v57 = vld [vmem:[#allocation11 + $0xd28] sm:$0xff] }
 0x202   :  { %1421 = vmatmul.mubr.f32.gmra.mrb[18].mxu0 %v7513_v59  ;;  %1599 = vmatmul.mubr.f32.gmra.mrb[18].mxu1 %v7513_v59  ;;  %v765_v59 = vld [vmem:[#allocation11 + $0xa28] sm:$0xff]  ;;  %v5582_v7 = vpack.c.bf16 %v790_v1, %v782_v58  ;;  %v854_v25 = vld [vmem:[#allocation11 + $0xcf0] sm:$0xff]  ;;  %v871_v1 = vld [vmem:[#allocation11 + $0xd78] sm:$0xff] }
 0x203   :  { %1426 = vmatprep.mubr.f32.mxu0 %v7529_v14  ;;  %5439 = vmatpush1.bf16.msra.mxu0 %v5438_v9  ;;  %v5448_v38 = vpack.c.bf16 %v773_v3, %v765_v59  ;;  %v804_v9 = vld [vmem:[#allocation11 + $0xb60] sm:$0xff]  ;;  %v869_v58 = vld [vmem:[#allocation11 + $0xd68] sm:$0xff] }
 0x204   :  { %1604 = vmatprep.mubr.f32.mxu1 %v7529_v14  ;;  %5567 = vmatpush1.bf16.msra.mxu1 %v5566_v12  ;;  %v5446_v14 = vpack.c.bf16 %v756_v54, %v748_v21  ;;  %v798_v12 = vld [vmem:[#allocation11 + $0xb30] sm:$0xff]  ;;  %v5588_v21 = vpack.c.bf16 %v823_v49, %v815_v16  ;;  %v5472_v2 = vpack.c.bf16 %v869_v58, %v861_v57  ;;  %v860_v4 = vld [vmem:[#allocation11 + $0xd20] sm:$0xff] }
 0x205   :  { %5441 = vmatprep.subr.bf16.mxu0 %v5440_v47  ;;  %5569 = vmatprep.subr.bf16.mxu1 %v5568_v60  ;;  %v813_v47 = vld [vmem:[#allocation11 + $0xba8] sm:$0xff]  ;;  %v5586_v52 = vpack.c.bf16 %v806_v24, %v798_v12  ;;  %v822_v54 = vld [vmem:[#allocation11 + $0xbf0] sm:$0xff]  ;;  %v887_v24 = vld [vmem:[#allocation11 + $0xdf8] sm:$0xff] }
 0x206   :  { %1427 = vmatmul.mubr.f32.gmra.mrb[20].mxu0 %v7535_v48  ;;  %1605 = vmatmul.mubr.f32.gmra.mrb[20].mxu1 %v7535_v48  ;;  %v781_v48 = vld [vmem:[#allocation11 + $0xaa8] sm:$0xff]  ;;  %v876_v49 = vld [vmem:[#allocation11 + $0xda0] sm:$0xff] }
 0x207   :  { %1432 = vmatprep.mubr.f32.mxu0 %v7541_v29  ;;  %5443 = vmatpush1.bf16.msra.mxu0 %v5442_v55  ;;  %v5452_v56 = vpack.c.bf16 %v789_v13, %v781_v48  ;;  %v821_v60 = vld [vmem:[#allocation11 + $0xbe8] sm:$0xff]  ;;  %v820_v55 = vld [vmem:[#allocation11 + $0xbe0] sm:$0xff] }
 0x208   :  { %1610 = vmatprep.mubr.f32.mxu1 %v7541_v29  ;;  %5571 = vmatpush1.bf16.msra.mxu1 %v5570_v19  ;;  %v5450_v29 = vpack.c.bf16 %v772_v36, %v764_v35  ;;  %v5460_v17 = vpack.c.bf16 %v821_v60, %v813_v47  ;;  %v814_v19 = vld [vmem:[#allocation11 + $0xbb0] sm:$0xff]  ;;  %v5462_v59 = vpack.c.bf16 %v820_v55, %v812_v18  ;;  %v885_v12 = vld [vmem:[#allocation11 + $0xde8] sm:$0xff] }
 0x209   :  { %5445 = vmatprep.subr.bf16.mxu0 %v5444_v26  ;;  %5573 = vmatprep.subr.bf16.mxu1 %v5572_v27  ;;  %v829_v26 = vld [vmem:[#allocation11 + $0xc28] sm:$0xff]  ;;  %v5590_v3 = vpack.c.bf16 %v822_v54, %v814_v19  ;;  %v5592_v35 = vpack.c.bf16 %v839_v31, %v831_v28  ;;  %v838_v36 = vld [vmem:[#allocation11 + $0xc70] sm:$0xff]  ;;  %v903_v54 = vld [vmem:[#allocation11 + $0xe78] sm:$0xff] }
 0x20a   :  { %1433 = vmatmul.mubr.f32.gmra.mrb[22].mxu0 %v7546_v33  ;;  %1611 = vmatmul.mubr.f32.gmra.mrb[22].mxu1 %v7546_v33  ;;  %v805_v33 = vld [vmem:[#allocation11 + $0xb68] sm:$0xff]  ;;  %v886_v18 = vld [vmem:[#allocation11 + $0xdf0] sm:$0xff]  ;;  %v892_v31 = vld [vmem:[#allocation11 + $0xe20] sm:$0xff] }
 0x20b   :  { %5447 = vmatpush1.bf16.msra.mxu0 %v5446_v14  ;;  %1503 = vmatprep.mubr.f32.mxu0 %v7551_v39  ;;  %v5456_v8 = vpack.c.bf16 %v805_v33, %v797_v22  ;;  %v837_v27 = vld [vmem:[#allocation11 + $0xc68] sm:$0xff]  ;;  %v836_v14 = vld [vmem:[#allocation11 + $0xc60] sm:$0xff] }
 0x20c   :  { %5575 = vmatpush1.bf16.msra.mxu1 %v5574_v34  ;;  %1681 = vmatprep.mubr.f32.mxu1 %v7551_v39  ;;  %v796_v39 = vld [vmem:[#allocation11 + $0xb20] sm:$0xff]  ;;  %v5464_v32 = vpack.c.bf16 %v837_v27, %v829_v26  ;;  %v830_v34 = vld [vmem:[#allocation11 + $0xc30] sm:$0xff]  ;;  %v5466_v48 = vpack.c.bf16 %v836_v14, %v828_v11  ;;  %v893_v55 = vld [vmem:[#allocation11 + $0xe28] sm:$0xff] }
 0x20d   :  { %5449 = vmatprep.subr.bf16.mxu0 %v5448_v38  ;;  %5577 = vmatprep.subr.bf16.mxu1 %v5576_v40  ;;  %v5458_v30 = vpack.c.bf16 %v804_v9, %v796_v39  ;;  %v853_v38 = vld [vmem:[#allocation11 + $0xce8] sm:$0xff]  ;;  %v847_v40 = vld [vmem:[#allocation11 + $0xcb8] sm:$0xff]  ;;  %v5594_v13 = vpack.c.bf16 %v838_v36, %v830_v34  ;;  %v870_v39 = vld [vmem:[#allocation11 + $0xd70] sm:$0xff] }
 0x20e   :  { %v5468_v41 = vpack.c.bf16 %v853_v38, %v845_v37  ;;  %v877_v9 = vld [vmem:[#allocation11 + $0xda8] sm:$0xff]  ;;  %v902_v11 = vld [vmem:[#allocation11 + $0xe70] sm:$0xff]  ;;  %v919_v36 = vld [vmem:[#allocation11 + $0xef8] sm:$0xff] }
 0x20f   :  { %5451 = vmatpush1.bf16.msra.mxu0 %v5450_v29  ;;  %v852_v29 = vld [vmem:[#allocation11 + $0xce0] sm:$0xff]  ;;  %v5476_v16 = vpack.c.bf16 %v885_v12, %v877_v9  ;;  %v901_v19 = vld [vmem:[#allocation11 + $0xe68] sm:$0xff] }
 0x210   :  { %5579 = vmatpush1.bf16.msra.mxu1 %v5578_v53  ;;  %5453 = vmatprep.subr.bf16.mxu0 %v5452_v56  ;;  %v846_v53 = vld [vmem:[#allocation11 + $0xcb0] sm:$0xff]  ;;  %v5596_v56 = vpack.c.bf16 %v855_v5, %v847_v40  ;;  %v5470_v22 = vpack.c.bf16 %v852_v29, %v844_v44  ;;  %v5480_v28 = vpack.c.bf16 %v901_v19, %v893_v55  ;;  %v909_v14 = vld [vmem:[#allocation11 + $0xea8] sm:$0xff]  ;;  %v908_v5 = vld [vmem:[#allocation11 + $0xea0] sm:$0xff] }
 0x211   :  { %5581 = vmatprep.subr.bf16.mxu1 %v5580_v62  ;;  %v863_v62 = vld [vmem:[#allocation11 + $0xd38] sm:$0xff]  ;;  %v5598_v33 = vpack.c.bf16 %v854_v25, %v846_v53  ;;  %v917_v34 = vld [vmem:[#allocation11 + $0xee8] sm:$0xff]  ;;  %v918_v44 = vld [vmem:[#allocation11 + $0xef0] sm:$0xff] }
 0x212   :  { %v5484_v40 = vpack.c.bf16 %v917_v34, %v909_v14  ;;  %v925_v29 = vld [vmem:[#allocation11 + $0xf28] sm:$0xff]  ;;  %v935_v25 = vld [vmem:[#allocation11 + $0xf78] sm:$0xff] }
 0x213   :  { %5455 = vmatpush1.bf16.msra.mxu0 %v5454_v6  ;;  %v868_v6 = vld [vmem:[#allocation11 + $0xd60] sm:$0xff]  ;;  %v933_v53 = vld [vmem:[#allocation11 + $0xf68] sm:$0xff] }
 0x214   :  { %5583 = vmatpush1.bf16.msra.mxu1 %v5582_v7  ;;  %5457 = vmatprep.subr.bf16.mxu0 %v5456_v8  ;;  %v862_v7 = vld [vmem:[#allocation11 + $0xd30] sm:$0xff]  ;;  %v5600_v8 = vpack.c.bf16 %v871_v1, %v863_v62  ;;  %v5474_v47 = vpack.c.bf16 %v868_v6, %v860_v4  ;;  %v5488_v62 = vpack.c.bf16 %v933_v53, %v925_v29  ;;  %v924_v1 = vld [vmem:[#allocation11 + $0xf20] sm:$0xff]  ;;  %v941_v6 = vld [vmem:[#allocation11 + $0xfa8] sm:$0xff] }
 0x215   :  { %5585 = vmatprep.subr.bf16.mxu1 %v5584_v63  ;;  %v879_v63 = vld [vmem:[#allocation11 + $0xdb8] sm:$0xff]  ;;  %v5602_v60 = vpack.c.bf16 %v870_v39, %v862_v7  ;;  %v934_v4 = vld [vmem:[#allocation11 + $0xf70] sm:$0xff]  ;;  %v949_v7 = vld [vmem:[#allocation11 + $0xfe8] sm:$0xff] }
 0x216   :  { %v951_v39 = vld [vmem:[#allocation11 + $0xff8] sm:$0xff] }
 0x217   :  { %5459 = vmatpush1.bf16.msra.mxu0 %v5458_v30  ;;  %v884_v30 = vld [vmem:[#allocation11 + $0xde0] sm:$0xff] }
 0x218   :  { %5587 = vmatpush1.bf16.msra.mxu1 %v5586_v52  ;;  %5461 = vmatprep.subr.bf16.mxu0 %v5460_v17  ;;  %v878_v52 = vld [vmem:[#allocation11 + $0xdb0] sm:$0xff]  ;;  %v5604_v17 = vpack.c.bf16 %v887_v24, %v879_v63  ;;  %v5478_v26 = vpack.c.bf16 %v884_v30, %v876_v49  ;;  %v5492_v63 = vpack.c.bf16 %v949_v7, %v941_v6  ;;  %v940_v24 = vld [vmem:[#allocation11 + $0xfa0] sm:$0xff]  ;;  %v1860_v7 = vld [vmem:[#allocation14 + $0x180] sm:$0xff] }
 0x219   :  { %5589 = vmatprep.subr.bf16.mxu1 %v5588_v21  ;;  %v895_v21 = vld [vmem:[#allocation11 + $0xe38] sm:$0xff]  ;;  %v5606_v27 = vpack.c.bf16 %v886_v18, %v878_v52  ;;  %v950_v49 = vld [vmem:[#allocation11 + $0xff0] sm:$0xff]  ;;  %v1823_v18 = vld [vmem:[#allocation14 + $0x58] sm:$0xff] }
 0x21a   :  { %v1813_v30 = vld [vmem:[#allocation14 + $0x8] sm:$0xff] }
 0x21b   :  { %5463 = vmatpush1.bf16.msra.mxu0 %v5462_v59  ;;  %v900_v59 = vld [vmem:[#allocation11 + $0xe60] sm:$0xff]  ;;  %v1821_v52 = vld [vmem:[#allocation14 + $0x48] sm:$0xff] }
 0x21c   :  { %5591 = vmatpush1.bf16.msra.mxu1 %v5590_v3  ;;  %5465 = vmatprep.subr.bf16.mxu0 %v5464_v32  ;;  %v894_v3 = vld [vmem:[#allocation11 + $0xe30] sm:$0xff]  ;;  %v5608_v32 = vpack.c.bf16 %v903_v54, %v895_v21  ;;  %v5482_v37 = vpack.c.bf16 %v900_v59, %v892_v31  ;;  %v5624_v21 = vpack.c.bf16 %v1821_v52, %v1813_v30  ;;  %v1822_v31 = vld [vmem:[#allocation14 + $0x50] sm:$0xff]  ;;  %v1884_v30 = vld [vmem:[#allocation14 + $0x240] sm:$0xff] }
 0x21d   :  { %5593 = vmatprep.subr.bf16.mxu1 %v5592_v35  ;;  %v911_v35 = vld [vmem:[#allocation11 + $0xeb8] sm:$0xff]  ;;  %v5610_v38 = vpack.c.bf16 %v902_v11, %v894_v3  ;;  %v1829_v59 = vld [vmem:[#allocation14 + $0x88] sm:$0xff]  ;;  %v1839_v11 = vld [vmem:[#allocation14 + $0xd8] sm:$0xff] }
 0x21e   :  { %v1837_v3 = vld [vmem:[#allocation14 + $0xc8] sm:$0xff]  ;;  %v1878_v52 = vld [vmem:[#allocation14 + $0x210] sm:$0xff] }
 0x21f   :  { %5467 = vmatpush1.bf16.msra.mxu0 %v5466_v48  ;;  %v916_v48 = vld [vmem:[#allocation11 + $0xee0] sm:$0xff] }
 0x220   :  { %5595 = vmatpush1.bf16.msra.mxu1 %v5594_v13  ;;  %5469 = vmatprep.subr.bf16.mxu0 %v5468_v41  ;;  %v910_v13 = vld [vmem:[#allocation11 + $0xeb0] sm:$0xff]  ;;  %v5612_v41 = vpack.c.bf16 %v919_v36, %v911_v35  ;;  %v5486_v57 = vpack.c.bf16 %v916_v48, %v908_v5  ;;  %v5628_v35 = vpack.c.bf16 %v1837_v3, %v1829_v59  ;;  %v1828_v36 = vld [vmem:[#allocation14 + $0x80] sm:$0xff]  ;;  %v1838_v5 = vld [vmem:[#allocation14 + $0xd0] sm:$0xff] }
 0x221   :  { %5597 = vmatprep.subr.bf16.mxu1 %v5596_v56  ;;  %v927_v56 = vld [vmem:[#allocation11 + $0xf38] sm:$0xff]  ;;  %v5614_v58 = vpack.c.bf16 %v918_v44, %v910_v13  ;;  %v1845_v48 = vld [vmem:[#allocation14 + $0x108] sm:$0xff]  ;;  %v1855_v44 = vld [vmem:[#allocation14 + $0x158] sm:$0xff] }
 0x222   :  { %v1853_v13 = vld [vmem:[#allocation14 + $0x148] sm:$0xff]  ;;  %v1902_v3 = vld [vmem:[#allocation14 + $0x2d0] sm:$0xff] }
 0x223   :  { %5471 = vmatpush1.bf16.msra.mxu0 %v5470_v22  ;;  %v932_v22 = vld [vmem:[#allocation11 + $0xf60] sm:$0xff] }
 0x224   :  { %5599 = vmatpush1.bf16.msra.mxu1 %v5598_v33  ;;  %5473 = vmatprep.subr.bf16.mxu0 %v5472_v2  ;;  %v926_v33 = vld [vmem:[#allocation11 + $0xf30] sm:$0xff]  ;;  %v5616_v2 = vpack.c.bf16 %v935_v25, %v927_v56  ;;  %v5490_v9 = vpack.c.bf16 %v932_v22, %v924_v1  ;;  %v5632_v56 = vpack.c.bf16 %v1853_v13, %v1845_v48  ;;  %v1844_v25 = vld [vmem:[#allocation14 + $0x100] sm:$0xff]  ;;  %v1918_v48 = vld [vmem:[#allocation14 + $0x350] sm:$0xff] }
 0x225   :  { %5601 = vmatprep.subr.bf16.mxu1 %v5600_v8  ;;  %v943_v8 = vld [vmem:[#allocation11 + $0xfb8] sm:$0xff]  ;;  %v5618_v12 = vpack.c.bf16 %v934_v4, %v926_v33  ;;  %v1861_v1 = vld [vmem:[#allocation14 + $0x188] sm:$0xff]  ;;  %v1871_v33 = vld [vmem:[#allocation14 + $0x1d8] sm:$0xff] }
 0x226   :  { %v1869_v22 = vld [vmem:[#allocation14 + $0x1c8] sm:$0xff] }
 0x227   :  { %5475 = vmatpush1.bf16.msra.mxu0 %v5474_v47  ;;  %v948_v47 = vld [vmem:[#allocation11 + $0xfe0] sm:$0xff]  ;;  %v5636_v6 = vpack.c.bf16 %v1869_v22, %v1861_v1  ;;  %v1925_v13 = vld [vmem:[#allocation14 + $0x388] sm:$0xff]  ;;  %v1934_v1 = vld [vmem:[#allocation14 + $0x3d0] sm:$0xff] }
 0x228   :  { %5603 = vmatpush1.bf16.msra.mxu1 %v5602_v60  ;;  %5477 = vmatprep.subr.bf16.mxu0 %v5476_v16  ;;  %v942_v60 = vld [vmem:[#allocation11 + $0xfb0] sm:$0xff]  ;;  %v5620_v16 = vpack.c.bf16 %v951_v39, %v943_v8  ;;  %v5494_v55 = vpack.c.bf16 %v948_v47, %v940_v24  ;;  %v1868_v8 = vld [vmem:[#allocation14 + $0x1c0] sm:$0xff]  ;;  %v1862_v39 = vld [vmem:[#allocation14 + $0x190] sm:$0xff] }
 0x229   :  { %5605 = vmatprep.subr.bf16.mxu1 %v5604_v17  ;;  %v1815_v17 = vld [vmem:[#allocation14 + $0x18] sm:$0xff]  ;;  %v5622_v19 = vpack.c.bf16 %v950_v49, %v942_v60  ;;  %v5638_v47 = vpack.c.bf16 %v1868_v8, %v1860_v7  ;;  %v1876_v49 = vld [vmem:[#allocation14 + $0x200] sm:$0xff]  ;;  %v1941_v22 = vld [vmem:[#allocation14 + $0x408] sm:$0xff] }
 0x22a   :  { %v5880_v54 = vpack.c.bf16 %v1823_v18, %v1815_v17  ;;  %v1887_v24 = vld [vmem:[#allocation14 + $0x258] sm:$0xff]  ;;  %v1893_v18 = vld [vmem:[#allocation14 + $0x288] sm:$0xff]  ;;  %v1940_v8 = vld [vmem:[#allocation14 + $0x400] sm:$0xff] }
 0x22b   :  { %5479 = vmatpush1.bf16.msra.mxu0 %v5478_v26  ;;  %v1812_v26 = vld [vmem:[#allocation14] sm:$0xff] }
 0x22c   :  { %5607 = vmatpush1.bf16.msra.mxu1 %v5606_v27  ;;  %5481 = vmatprep.subr.bf16.mxu0 %v5480_v28  ;;  %v1820_v27 = vld [vmem:[#allocation14 + $0x40] sm:$0xff]  ;;  %v1814_v28 = vld [vmem:[#allocation14 + $0x10] sm:$0xff] }
 0x22d   :  { %5609 = vmatprep.subr.bf16.mxu1 %v5608_v32  ;;  %v1831_v32 = vld [vmem:[#allocation14 + $0x98] sm:$0xff]  ;;  %v5626_v14 = vpack.c.bf16 %v1820_v27, %v1812_v26  ;;  %v5882_v34 = vpack.c.bf16 %v1822_v31, %v1814_v28  ;;  %v1892_v27 = vld [vmem:[#allocation14 + $0x280] sm:$0xff]  ;;  %v1894_v31 = vld [vmem:[#allocation14 + $0x290] sm:$0xff] }
 0x22e   :  { %v1900_v28 = vld [vmem:[#allocation14 + $0x2c0] sm:$0xff] }
 0x22f   :  { %5483 = vmatpush1.bf16.msra.mxu0 %v5482_v37  ;;  %v1836_v37 = vld [vmem:[#allocation14 + $0xc0] sm:$0xff] }
 0x230   :  { %5611 = vmatpush1.bf16.msra.mxu1 %v5610_v38  ;;  %5485 = vmatprep.subr.bf16.mxu0 %v5484_v40  ;;  %v1830_v38 = vld [vmem:[#allocation14 + $0x90] sm:$0xff]  ;;  %v5884_v40 = vpack.c.bf16 %v1839_v11, %v1831_v32  ;;  %v5630_v29 = vpack.c.bf16 %v1836_v37, %v1828_v36  ;;  %v1909_v32 = vld [vmem:[#allocation14 + $0x308] sm:$0xff]  ;;  %v1908_v37 = vld [vmem:[#allocation14 + $0x300] sm:$0xff] }
 0x231   :  { %5613 = vmatprep.subr.bf16.mxu1 %v5612_v41  ;;  %v1847_v41 = vld [vmem:[#allocation14 + $0x118] sm:$0xff]  ;;  %v5886_v53 = vpack.c.bf16 %v1838_v5, %v1830_v38  ;;  %v1917_v11 = vld [vmem:[#allocation14 + $0x348] sm:$0xff]  ;;  %v1916_v38 = vld [vmem:[#allocation14 + $0x340] sm:$0xff] }
 0x232   :  { %v5648_v36 = vpack.c.bf16 %v1917_v11, %v1909_v32  ;;  %v1982_v32 = vld [vmem:[#allocation14 + $0x550] sm:$0xff]  ;;  %v1989_v11 = vld [vmem:[#allocation14 + $0x588] sm:$0xff] }
 0x233   :  { %5487 = vmatpush1.bf16.msra.mxu0 %v5486_v57  ;;  %v1852_v57 = vld [vmem:[#allocation14 + $0x140] sm:$0xff] }
 0x234   :  { %5615 = vmatpush1.bf16.msra.mxu1 %v5614_v58  ;;  %5489 = vmatprep.subr.bf16.mxu0 %v5488_v62  ;;  %v1846_v58 = vld [vmem:[#allocation14 + $0x110] sm:$0xff]  ;;  %v5888_v62 = vpack.c.bf16 %v1855_v44, %v1847_v41  ;;  %v1933_v41 = vld [vmem:[#allocation14 + $0x3c8] sm:$0xff]  ;;  %v1927_v44 = vld [vmem:[#allocation14 + $0x398] sm:$0xff] }
 0x235   :  { %5617 = vmatprep.subr.bf16.mxu1 %v5616_v2  ;;  %v5634_v2 = vpack.c.bf16 %v1852_v57, %v1844_v25  ;;  %v5652_v25 = vpack.c.bf16 %v1933_v41, %v1925_v13  ;;  %v1924_v57 = vld [vmem:[#allocation14 + $0x380] sm:$0xff]  ;;  %v1998_v13 = vld [vmem:[#allocation14 + $0x5d0] sm:$0xff]  ;;  %v2005_v41 = vld [vmem:[#allocation14 + $0x608] sm:$0xff] }
 0x237   :  { %5491 = vmatpush1.bf16.msra.mxu0 %v5490_v9 }
 0x238   :  { %5619 = vmatpush1.bf16.msra.mxu1 %v5618_v12  ;;  %5493 = vmatprep.subr.bf16.mxu0 %v5492_v63  ;;  %v1877_v12 = vld [vmem:[#allocation14 + $0x208] sm:$0xff] }
 0x239   :  { %5621 = vmatprep.subr.bf16.mxu1 %v5620_v16  ;;  %v1885_v63 = vld [vmem:[#allocation14 + $0x248] sm:$0xff] }
 0x23a   :  { %v5640_v16 = vpack.c.bf16 %v1885_v63, %v1877_v12  ;;  %v1950_v12 = vld [vmem:[#allocation14 + $0x450] sm:$0xff]  ;;  %v1957_v63 = vld [vmem:[#allocation14 + $0x488] sm:$0xff] }
 0x23b   :  { %5495 = vmatpush1.bf16.msra.mxu0 %v5494_v55  ;;  %v1901_v55 = vld [vmem:[#allocation14 + $0x2c8] sm:$0xff] }
 0x23c   :  { %5623 = vmatpush1.bf16.msra.mxu1 %v5622_v19  ;;  %5625 = vmatprep.subr.bf16.mxu0 %v5624_v21  ;;  %v1895_v19 = vld [vmem:[#allocation14 + $0x298] sm:$0xff]  ;;  %v5642_v21 = vpack.c.bf16 %v1884_v30, %v1876_v49  ;;  %v5644_v26 = vpack.c.bf16 %v1901_v55, %v1893_v18  ;;  %v1956_v30 = vld [vmem:[#allocation14 + $0x480] sm:$0xff]  ;;  %v1966_v18 = vld [vmem:[#allocation14 + $0x4d0] sm:$0xff] }
 0x23d   :  { %5881 = vmatprep.subr.bf16.mxu1 %v5880_v54  ;;  %v1973_v55 = vld [vmem:[#allocation14 + $0x508] sm:$0xff] }
 0x23e   :  { %1504 = vmatmul.mubr.f32.vlgmr.msra.gmra.mrb[16].mxu0 %v7566_v23 }
 0x23f   :  { %1682 = vmatmul.mubr.f32.vlgmr.msra.gmra.mrb[16].mxu1 %v7566_v23  ;;  %1509 = vmatprep.mubr.f32.mxu0 %v7577_v61  ;;  %v1854_v23 = vld [vmem:[#allocation14 + $0x150] sm:$0xff] }
 0x240   :  { %1687 = vmatprep.mubr.f32.mxu1 %v7577_v61  ;;  %5627 = vmatpush1.bf16.msra.mxu0 %v5626_v14  ;;  %v1863_v61 = vld [vmem:[#allocation14 + $0x198] sm:$0xff]  ;;  %v5890_v4 = vpack.c.bf16 %v1854_v23, %v1846_v58  ;;  %v1932_v58 = vld [vmem:[#allocation14 + $0x3c0] sm:$0xff] }
 0x241   :  { %5883 = vmatpush1.bf16.msra.mxu1 %v5882_v34  ;;  %5629 = vmatprep.subr.bf16.mxu0 %v5628_v35  ;;  %v5892_v9 = vpack.c.bf16 %v1871_v33, %v1863_v61  ;;  %v1911_v14 = vld [vmem:[#allocation14 + $0x318] sm:$0xff]  ;;  %v5902_v35 = vpack.c.bf16 %v1902_v3, %v1894_v31  ;;  %v1949_v61 = vld [vmem:[#allocation14 + $0x448] sm:$0xff]  ;;  %v1980_v31 = vld [vmem:[#allocation14 + $0x540] sm:$0xff] }
 0x242   :  { %1510 = vmatmul.mubr.f32.gmra.mrb[18].mxu0 %v7586_v51  ;;  %5885 = vmatprep.subr.bf16.mxu1 %v5884_v40  ;;  %v1919_v34 = vld [vmem:[#allocation14 + $0x358] sm:$0xff]  ;;  %v1910_v40 = vld [vmem:[#allocation14 + $0x310] sm:$0xff]  ;;  %v5656_v7 = vpack.c.bf16 %v1949_v61, %v1941_v22  ;;  %v2021_v61 = vld [vmem:[#allocation14 + $0x688] sm:$0xff] }
 0x243   :  { %1688 = vmatmul.mubr.f32.gmra.mrb[18].mxu1 %v7586_v51  ;;  %1515 = vmatprep.mubr.f32.mxu0 %v7593_v0  ;;  %v1870_v51 = vld [vmem:[#allocation14 + $0x1d0] sm:$0xff]  ;;  %v5904_v5 = vpack.c.bf16 %v1919_v34, %v1911_v14  ;;  %v1943_v33 = vld [vmem:[#allocation14 + $0x418] sm:$0xff]  ;;  %v1997_v14 = vld [vmem:[#allocation14 + $0x5c8] sm:$0xff] }
 0x244   :  { %1693 = vmatprep.mubr.f32.mxu1 %v7593_v0  ;;  %5631 = vmatpush1.bf16.msra.mxu0 %v5630_v29  ;;  %v1879_v0 = vld [vmem:[#allocation14 + $0x218] sm:$0xff]  ;;  %v5894_v60 = vpack.c.bf16 %v1870_v51, %v1862_v39  ;;  %v1948_v39 = vld [vmem:[#allocation14 + $0x440] sm:$0xff]  ;;  %v2014_v22 = vld [vmem:[#allocation14 + $0x650] sm:$0xff] }
 0x245   :  { %5887 = vmatpush1.bf16.msra.mxu1 %v5886_v53  ;;  %5633 = vmatprep.subr.bf16.mxu0 %v5632_v56  ;;  %v5896_v17 = vpack.c.bf16 %v1887_v24, %v1879_v0  ;;  %v1935_v29 = vld [vmem:[#allocation14 + $0x3d8] sm:$0xff]  ;;  %v5650_v53 = vpack.c.bf16 %v1916_v38, %v1908_v37  ;;  %v5906_v56 = vpack.c.bf16 %v1918_v48, %v1910_v40  ;;  %v1965_v0 = vld [vmem:[#allocation14 + $0x4c8] sm:$0xff]  ;;  %v1988_v38 = vld [vmem:[#allocation14 + $0x580] sm:$0xff] }
 0x246   :  { %1516 = vmatmul.mubr.f32.gmra.mrb[20].mxu0 %v7602_v10  ;;  %5889 = vmatprep.subr.bf16.mxu1 %v5888_v62  ;;  %v1926_v62 = vld [vmem:[#allocation14 + $0x390] sm:$0xff]  ;;  %v5908_v23 = vpack.c.bf16 %v1935_v29, %v1927_v44  ;;  %v1959_v24 = vld [vmem:[#allocation14 + $0x498] sm:$0xff]  ;;  %v5660_v49 = vpack.c.bf16 %v1965_v0, %v1957_v63  ;;  %v5668_v37 = vpack.c.bf16 %v1997_v14, %v1989_v11  ;;  %v1996_v40 = vld [vmem:[#allocation14 + $0x5c0] sm:$0xff] }
 0x247   :  { %1694 = vmatmul.mubr.f32.gmra.mrb[20].mxu1 %v7602_v10  ;;  %1521 = vmatprep.mubr.f32.mxu0 %v7608_v15  ;;  %v1886_v10 = vld [vmem:[#allocation14 + $0x250] sm:$0xff]  ;;  %v1991_v34 = vld [vmem:[#allocation14 + $0x598] sm:$0xff]  ;;  %v2013_v44 = vld [vmem:[#allocation14 + $0x648] sm:$0xff] }
 0x248   :  { %1699 = vmatprep.mubr.f32.mxu1 %v7608_v15  ;;  %5635 = vmatpush1.bf16.msra.mxu0 %v5634_v2  ;;  %v1903_v15 = vld [vmem:[#allocation14 + $0x2d8] sm:$0xff]  ;;  %v5898_v54 = vpack.c.bf16 %v1886_v10, %v1878_v52  ;;  %v1964_v52 = vld [vmem:[#allocation14 + $0x4c0] sm:$0xff]  ;;  %v2030_v63 = vld [vmem:[#allocation14 + $0x6d0] sm:$0xff] }
 0x249   :  { %5891 = vmatpush1.bf16.msra.mxu1 %v5890_v4  ;;  %5637 = vmatprep.subr.bf16.mxu0 %v5636_v6  ;;  %v5900_v59 = vpack.c.bf16 %v1903_v15, %v1895_v19  ;;  %v1951_v2 = vld [vmem:[#allocation14 + $0x458] sm:$0xff]  ;;  %v5654_v4 = vpack.c.bf16 %v1932_v58, %v1924_v57  ;;  %v5910_v6 = vpack.c.bf16 %v1934_v1, %v1926_v62  ;;  %v1981_v19 = vld [vmem:[#allocation14 + $0x548] sm:$0xff]  ;;  %v2004_v58 = vld [vmem:[#allocation14 + $0x600] sm:$0xff] }
 0x24a   :  { %1522 = vmatmul.mubr.f32.gmra.mrb[22].mxu0 %v7613_v20  ;;  %5893 = vmatprep.subr.bf16.mxu1 %v5892_v9  ;;  %v1942_v9 = vld [vmem:[#allocation14 + $0x410] sm:$0xff]  ;;  %v5912_v51 = vpack.c.bf16 %v1951_v2, %v1943_v33  ;;  %v1975_v15 = vld [vmem:[#allocation14 + $0x518] sm:$0xff]  ;;  %v5672_v57 = vpack.c.bf16 %v2013_v44, %v2005_v41  ;;  %v2012_v62 = vld [vmem:[#allocation14 + $0x640] sm:$0xff] }
 0x24b   :  { %1700 = vmatmul.mubr.f32.gmra.mrb[22].mxu1 %v7613_v20  ;;  %v5646_v20 = vpack.c.bf16 %v1900_v28, %v1892_v27  ;;  %v5664_v27 = vpack.c.bf16 %v1981_v19, %v1973_v55  ;;  %v1972_v28 = vld [vmem:[#allocation14 + $0x500] sm:$0xff]  ;;  %v2007_v29 = vld [vmem:[#allocation14 + $0x618] sm:$0xff]  ;;  %v2029_v33 = vld [vmem:[#allocation14 + $0x6c8] sm:$0xff] }
 0x24c   :  { %5639 = vmatpush1.bf16.msra.mxu0 %v5638_v47  ;;  %v1967_v47 = vld [vmem:[#allocation14 + $0x4d8] sm:$0xff]  ;;  %v2037_v0 = vld [vmem:[#allocation14 + $0x708] sm:$0xff]  ;;  %v2046_v55 = vld [vmem:[#allocation14 + $0x750] sm:$0xff] }
 0x24d   :  { %5895 = vmatpush1.bf16.msra.mxu1 %v5894_v60  ;;  %5641 = vmatprep.subr.bf16.mxu0 %v5640_v16  ;;  %v5658_v60 = vpack.c.bf16 %v1948_v39, %v1940_v8  ;;  %v5914_v16 = vpack.c.bf16 %v1950_v12, %v1942_v9  ;;  %v5916_v10 = vpack.c.bf16 %v1967_v47, %v1959_v24  ;;  %v2023_v2 = vld [vmem:[#allocation14 + $0x698] sm:$0xff]  ;;  %v2020_v39 = vld [vmem:[#allocation14 + $0x680] sm:$0xff]  ;;  %v2045_v24 = vld [vmem:[#allocation14 + $0x748] sm:$0xff] }
 0x24e   :  { %5897 = vmatprep.subr.bf16.mxu1 %v5896_v17  ;;  %v1958_v17 = vld [vmem:[#allocation14 + $0x490] sm:$0xff]  ;;  %v5676_v8 = vpack.c.bf16 %v2029_v33, %v2021_v61  ;;  %v2028_v9 = vld [vmem:[#allocation14 + $0x6c0] sm:$0xff]  ;;  %v2039_v47 = vld [vmem:[#allocation14 + $0x718] sm:$0xff] }
 0x24f   :  { %v2053_v19 = vld [vmem:[#allocation14 + $0x788] sm:$0xff]  ;;  %v2062_v11 = vld [vmem:[#allocation14 + $0x7d0] sm:$0xff] }
 0x250   :  { %5643 = vmatpush1.bf16.msra.mxu0 %v5642_v21  ;;  %v1983_v21 = vld [vmem:[#allocation14 + $0x558] sm:$0xff]  ;;  %v2069_v14 = vld [vmem:[#allocation14 + $0x808] sm:$0xff] }
 0x251   :  { %5899 = vmatpush1.bf16.msra.mxu1 %v5898_v54  ;;  %5645 = vmatprep.subr.bf16.mxu0 %v5644_v26  ;;  %v5662_v54 = vpack.c.bf16 %v1964_v52, %v1956_v30  ;;  %v5918_v26 = vpack.c.bf16 %v1966_v18, %v1958_v17  ;;  %v5920_v3 = vpack.c.bf16 %v1983_v21, %v1975_v15  ;;  %v2036_v52 = vld [vmem:[#allocation14 + $0x700] sm:$0xff]  ;;  %v2061_v15 = vld [vmem:[#allocation14 + $0x7c8] sm:$0xff]  ;;  %v2055_v21 = vld [vmem:[#allocation14 + $0x798] sm:$0xff] }
 0x252   :  { %5901 = vmatprep.subr.bf16.mxu1 %v5900_v59  ;;  %v1974_v59 = vld [vmem:[#allocation14 + $0x510] sm:$0xff]  ;;  %v5680_v30 = vpack.c.bf16 %v2045_v24, %v2037_v0  ;;  %v2044_v17 = vld [vmem:[#allocation14 + $0x740] sm:$0xff]  ;;  %v2093_v33 = vld [vmem:[#allocation14 + $0x8c8] sm:$0xff] }
 0x253   :  { %v2084_v0 = vld [vmem:[#allocation14 + $0x880] sm:$0xff] }
 0x254   :  { %5647 = vmatpush1.bf16.msra.mxu0 %v5646_v20  ;;  %v1999_v20 = vld [vmem:[#allocation14 + $0x5d8] sm:$0xff]  ;;  %v2092_v24 = vld [vmem:[#allocation14 + $0x8c0] sm:$0xff] }
 0x255   :  { %5903 = vmatpush1.bf16.msra.mxu1 %v5902_v35  ;;  %5649 = vmatprep.subr.bf16.mxu0 %v5648_v36  ;;  %v5666_v35 = vpack.c.bf16 %v1980_v31, %v1972_v28  ;;  %v5922_v36 = vpack.c.bf16 %v1982_v32, %v1974_v59  ;;  %v5924_v48 = vpack.c.bf16 %v1999_v20, %v1991_v34  ;;  %v2052_v31 = vld [vmem:[#allocation14 + $0x780] sm:$0xff]  ;;  %v2077_v34 = vld [vmem:[#allocation14 + $0x848] sm:$0xff]  ;;  %v2071_v20 = vld [vmem:[#allocation14 + $0x818] sm:$0xff] }
 0x256   :  { %5905 = vmatprep.subr.bf16.mxu1 %v5904_v5  ;;  %v1990_v5 = vld [vmem:[#allocation14 + $0x590] sm:$0xff]  ;;  %v5684_v28 = vpack.c.bf16 %v2061_v15, %v2053_v19  ;;  %v2060_v59 = vld [vmem:[#allocation14 + $0x7c0] sm:$0xff]  ;;  %v2103_v15 = vld [vmem:[#allocation14 + $0x918] sm:$0xff] }
 0x258   :  { %5651 = vmatpush1.bf16.msra.mxu0 %v5650_v53  ;;  %v2015_v53 = vld [vmem:[#allocation14 + $0x658] sm:$0xff] }
 0x259   :  { %5907 = vmatpush1.bf16.msra.mxu1 %v5906_v56  ;;  %5653 = vmatprep.subr.bf16.mxu0 %v5652_v25  ;;  %v5670_v56 = vpack.c.bf16 %v1996_v40, %v1988_v38  ;;  %v5926_v25 = vpack.c.bf16 %v1998_v13, %v1990_v5  ;;  %v5928_v1 = vpack.c.bf16 %v2015_v53, %v2007_v29  ;;  %v7649_v5 = vld [vmem:[#allocation13] sm:$0xff] }
 0x25a   :  { %5909 = vmatprep.subr.bf16.mxu1 %v5908_v23  ;;  %v2006_v23 = vld [vmem:[#allocation14 + $0x610] sm:$0xff]  ;;  %v5688_v38 = vpack.c.bf16 %v2077_v34, %v2069_v14  ;;  %v7657_v13 = vrot.slane %v7649_v5, %v7420_v46 }
 0x25c   :  { %5655 = vmatpush1.bf16.msra.mxu0 %v5654_v4  ;;  %v2031_v4 = vld [vmem:[#allocation14 + $0x6d8] sm:$0xff] }
 0x25d   :  { %5911 = vmatpush1.bf16.msra.mxu1 %v5910_v6  ;;  %5657 = vmatprep.subr.bf16.mxu0 %v5656_v7  ;;  %v5674_v6 = vpack.c.bf16 %v2012_v62, %v2004_v58  ;;  %v5930_v7 = vpack.c.bf16 %v2014_v22, %v2006_v23  ;;  %v5932_v12 = vpack.c.bf16 %v2031_v4, %v2023_v2  ;;  %v7664_v58 = vpop.permute.xlu0 %1745  ;;  %v2070_v23 = vld [vmem:[#allocation14 + $0x810] sm:$0xff]  ;;  %v2085_v22 = vld [vmem:[#allocation14 + $0x888] sm:$0xff]  ;;  %v2087_v2 = vld [vmem:[#allocation14 + $0x898] sm:$0xff] }
 0x25e   :  { %5913 = vmatprep.subr.bf16.mxu1 %v5912_v51  ;;  %v2022_v51 = vld [vmem:[#allocation14 + $0x690] sm:$0xff]  ;;  %v2095_v4 = vld [vmem:[#allocation14 + $0x8d8] sm:$0xff] }
 0x260   :  { %5659 = vmatpush1.bf16.msra.mxu0 %v5658_v60  ;;  %v2047_v60 = vld [vmem:[#allocation14 + $0x758] sm:$0xff] }
 0x261   :  { %5915 = vmatpush1.bf16.msra.mxu1 %v5914_v16  ;;  %5661 = vmatprep.subr.bf16.mxu0 %v5660_v49  ;;  %v5678_v16 = vpack.c.bf16 %v2028_v9, %v2020_v39  ;;  %v5934_v49 = vpack.c.bf16 %v2030_v63, %v2022_v51  ;;  %v5936_v18 = vpack.c.bf16 %v2047_v60, %v2039_v47  ;;  %v2086_v47 = vld [vmem:[#allocation14 + $0x890] sm:$0xff] }
 0x262   :  { %5917 = vmatprep.subr.bf16.mxu1 %v5916_v10  ;;  %v2038_v10 = vld [vmem:[#allocation14 + $0x710] sm:$0xff] }
 0x264   :  { %5663 = vmatpush1.bf16.msra.mxu0 %v5662_v54  ;;  %v2063_v54 = vld [vmem:[#allocation14 + $0x7d8] sm:$0xff] }
 0x265   :  { %5919 = vmatpush1.bf16.msra.mxu1 %v5918_v26  ;;  %5665 = vmatprep.subr.bf16.mxu0 %v5664_v27  ;;  %v5682_v26 = vpack.c.bf16 %v2044_v17, %v2036_v52  ;;  %v5938_v27 = vpack.c.bf16 %v2046_v55, %v2038_v10  ;;  %v5940_v32 = vpack.c.bf16 %v2063_v54, %v2055_v21  ;;  %v2094_v52 = vld [vmem:[#allocation14 + $0x8d0] sm:$0xff]  ;;  %v2101_v17 = vld [vmem:[#allocation14 + $0x908] sm:$0xff]  ;;  %v2111_v21 = vld [vmem:[#allocation14 + $0x958] sm:$0xff] }
 0x266   :  { %5921 = vmatprep.subr.bf16.mxu1 %v5920_v3  ;;  %v2054_v3 = vld [vmem:[#allocation14 + $0x790] sm:$0xff]  ;;  %v2109_v10 = vld [vmem:[#allocation14 + $0x948] sm:$0xff]  ;;  %v7682_v55 = vrot.slane %v7649_v5, %v7432_v50  ;;  %v5950_v14 = vpack.c.bf16 %v2094_v52, %v2086_v47  ;;  %v2143_v52 = vld [vmem:[#allocation14 + $0xa58] sm:$0xff] }
 0x267   :  { %v5696_v34 = vpack.c.bf16 %v2109_v10, %v2101_v17 }
 0x268   :  { %5667 = vmatpush1.bf16.msra.mxu0 %v5666_v35  ;;  %v2079_v35 = vld [vmem:[#allocation14 + $0x858] sm:$0xff] }
 0x269   :  { %5923 = vmatpush1.bf16.msra.mxu1 %v5922_v36  ;;  %5669 = vmatprep.subr.bf16.mxu0 %v5668_v37  ;;  %v5686_v36 = vpack.c.bf16 %v2060_v59, %v2052_v31  ;;  %v5942_v37 = vpack.c.bf16 %v2062_v11, %v2054_v3  ;;  %v5944_v40 = vpack.c.bf16 %v2079_v35, %v2071_v20  ;;  %v7692_v31 = vld [vmem:[#allocation14 + $0x900] sm:$0xff]  ;;  %v2102_v20 = vld [vmem:[#allocation14 + $0x910] sm:$0xff] }
 0x26a   :  { %5925 = vmatprep.subr.bf16.mxu1 %v5924_v48  ;;  %v7653_v48 = vrot.slane %v7649_v5, %v7414_v43  ;;  %v2108_v59 = vld [vmem:[#allocation14 + $0x940] sm:$0xff]  ;;  %v2110_v35 = vld [vmem:[#allocation14 + $0x950] sm:$0xff] }
 0x26c   :  { %5671 = vmatpush1.bf16.msra.mxu0 %v5670_v56 }
 0x26d   :  { %5927 = vmatpush1.bf16.msra.mxu1 %v5926_v25  ;;  %5673 = vmatprep.subr.bf16.mxu0 %v5672_v57  ;;  %v2068_v25 = vld [vmem:[#allocation14 + $0x800] sm:$0xff] }
 0x26e   :  { %5929 = vmatprep.subr.bf16.mxu1 %v5928_v1  ;;  %v2076_v57 = vld [vmem:[#allocation14 + $0x840] sm:$0xff]  ;;  %v2078_v1 = vld [vmem:[#allocation14 + $0x850] sm:$0xff] }
 0x26f   :  { %v5946_v63 = vpack.c.bf16 %v2078_v1, %v2070_v23 }
 0x270   :  { %5675 = vmatpush1.bf16.msra.mxu0 %v5674_v6 }
 0x271   :  { %5931 = vmatpush1.bf16.msra.mxu1 %v5930_v7  ;;  %5677 = vmatprep.subr.bf16.mxu0 %v5676_v8 }
 0x272   :  { %5933 = vmatprep.subr.bf16.mxu1 %v5932_v12  ;;  %v5690_v12 = vpack.c.bf16 %v2076_v57, %v2068_v25  ;;  %v5698_v25 = vpack.c.bf16 %v2108_v59, %v7692_v31  ;;  %v2119_v57 = vld [vmem:[#allocation14 + $0x998] sm:$0xff]  ;;  %v2149_v31 = vld [vmem:[#allocation14 + $0xa88] sm:$0xff] }
 0x274   :  { %5679 = vmatpush1.bf16.msra.mxu0 %v5678_v16 }
 0x275   :  { %5935 = vmatpush1.bf16.msra.mxu1 %v5934_v49  ;;  %5681 = vmatprep.subr.bf16.mxu0 %v5680_v30  ;;  %v5692_v49 = vpack.c.bf16 %v2093_v33, %v2085_v22  ;;  %v5948_v30 = vpack.c.bf16 %v2095_v4, %v2087_v2 }
 0x276   :  { %5937 = vmatprep.subr.bf16.mxu1 %v5936_v18 }
 0x278   :  { %5683 = vmatpush1.bf16.msra.mxu0 %v5682_v26 }
 0x279   :  { %5939 = vmatpush1.bf16.msra.mxu1 %v5938_v27  ;;  %5685 = vmatprep.subr.bf16.mxu0 %v5684_v28  ;;  %v5694_v28 = vpack.c.bf16 %v2092_v24, %v2084_v0  ;;  %v2124_v0 = vld [vmem:[#allocation14 + $0x9c0] sm:$0xff]  ;;  %v2118_v24 = vld [vmem:[#allocation14 + $0x990] sm:$0xff] }
 0x27a   :  { %5941 = vmatprep.subr.bf16.mxu1 %v5940_v32 }
 0x27c   :  { %5687 = vmatpush1.bf16.msra.mxu0 %v5686_v36 }
 0x27d   :  { %5943 = vmatpush1.bf16.msra.mxu1 %v5942_v37  ;;  %5689 = vmatprep.subr.bf16.mxu0 %v5688_v38  ;;  %v5952_v38 = vpack.c.bf16 %v2111_v21, %v2103_v15  ;;  %v2132_v15 = vld [vmem:[#allocation14 + $0xa00] sm:$0xff] }
 0x27e   :  { %5945 = vmatprep.subr.bf16.mxu1 %v5944_v40  ;;  %v2117_v40 = vld [vmem:[#allocation14 + $0x988] sm:$0xff]  ;;  %v2140_v21 = vld [vmem:[#allocation14 + $0xa40] sm:$0xff] }
 0x290   :  { %v1149_v41 = vpop.f32.mrb[8].mxu0  ;;  %v7659_v44 = vpop.f32.mrb[8].mxu1 }
 0x291   :  { %v6776_v29 = vadd.f32 %v1149_v41, %v7653_v48  ;;  %v1151_v53 = vpop.f32.mrb[9].mxu0  ;;  %v7662_v56 = vpop.f32.mrb[9].mxu1  ;;  %v2125_v41 = vld [vmem:[#allocation14 + $0x9c8] sm:$0xff] }
 0x292   :  { %v6777_v62 = vadd.f32 %v1151_v53, %v7657_v13  ;;  %v6785_v33 = vadd.f32 %v7662_v56, %v7682_v55  ;;  %v2126_v56 = vld [vmem:[#allocation14 + $0x9d0] sm:$0xff] }
 0x293   :  { %v1748_v61 = vmul.f32 %v6776_v29, %v7664_v58  ;;  %vm1706_vm2 = vcmp.ge.f32.partialorder %v6776_v29, 0.0 }
 0x294   :  { %vm1707_vm3 = vcmp.ge.f32.partialorder %v6777_v62, 0.0  ;;  %v1749_v6 = vmul.f32 %v6777_v62, %v7664_v58  ;;  %v1155_v7 = vpop.f32.mrb[10].mxu0  ;;  %v7669_v8 = vpop.f32.mrb[10].mxu1  ;;  %v1751_v17 = vmul.f32 %v6785_v33, %v7664_v58  ;;  %vm1709_vm10 = vcmp.ge.f32.partialorder %v6785_v33, 0.0 }
 0x295   :  { %v6778_v39 = vadd.f32 %v1155_v7, %v7653_v48  ;;  %v1157_v9 = vpop.f32.mrb[11].mxu0  ;;  %v7672_v51 = vpop.f32.mrb[11].mxu1  ;;  %v7678_v18 = vsel %vm1706_vm2, %v6776_v29, %v1748_v61  ;;  %v5954_v61 = vpack.c.bf16 %v2110_v35, %v2102_v20  ;;  %v5700_v7 = vpack.c.bf16 %v2125_v41, %v2117_v40  ;;  %v2159_v20 = vld [vmem:[#allocation14 + $0xad8] sm:$0xff]  ;;  %v2148_v40 = vld [vmem:[#allocation14 + $0xa80] sm:$0xff] }
 0x296   :  { %v6779_v60 = vadd.f32 %v1157_v9, %v7657_v13  ;;  %v7675_v16 = vsel %vm1707_vm3, %v6777_v62, %v1749_v6  ;;  %v2127_v62 = vld [vmem:[#allocation14 + $0x9d8] sm:$0xff]  ;;  %v7742_v35 = vsel %vm1709_vm10, %v6785_v33, %v1751_v17  ;;  %v2156_v41 = vld [vmem:[#allocation14 + $0xac0] sm:$0xff] }
 0x297   :  { %v1756_v19 = vmul.f32 %v6778_v39, %v7664_v58  ;;  %2942 = vmatprep.mubr.f32.mxu0 %v7675_v16  ;;  %3298 = vmatprep.mubr.f32.mxu1 %v7675_v16  ;;  %vm1714_vm4 = vcmp.ge.f32.partialorder %v6778_v39, 0.0  ;;  %v5710_v33 = vpack.c.bf16 %v2156_v41, %v2148_v40  ;;  %v2188_v17 = vld [vmem:[#allocation14 + $0xbc0] sm:$0xff]  ;;  %v2198_v40 = vld [vmem:[#allocation14 + $0xc10] sm:$0xff] }
 0x298   :  { %vm1715_vm5 = vcmp.ge.f32.partialorder %v6779_v60, 0.0  ;;  %v1757_v54 = vmul.f32 %v6779_v60, %v7664_v58  ;;  %v1161_v26 = vpop.f32.mrb[12].mxu0  ;;  %v7688_v27 = vpop.f32.mrb[12].mxu1  ;;  %2943 = vmatmul.mubr.f32.vlgmr.msra.gmra.mrb[24].mxu0 %v7678_v18  ;;  %3299 = vmatmul.mubr.f32.vlgmr.msra.gmra.mrb[24].mxu1 %v7678_v18  ;;  %v2206_v41 = vld [vmem:[#allocation14 + $0xc50] sm:$0xff] }
 0x299   :  { %v6780_v3 = vadd.f32 %v1161_v26, %v7653_v48  ;;  %5691 = vmatpush1.bf16.msra.mxu0 %v5690_v12  ;;  %5947 = vmatpush1.bf16.msra.mxu1 %v5946_v63  ;;  %v1163_v32 = vpop.f32.mrb[13].mxu0  ;;  %v7695_v11 = vpop.f32.mrb[13].mxu1  ;;  %v7705_v53 = vsel %vm1714_vm4, %v6778_v39, %v1756_v19  ;;  %v2116_v39 = vld [vmem:[#allocation14 + $0x980] sm:$0xff]  ;;  %v5956_v63 = vpack.c.bf16 %v2127_v62, %v2119_v57  ;;  %v2134_v26 = vld [vmem:[#allocation14 + $0xa10] sm:$0xff] }
 0x29a   :  { %v6781_v36 = vadd.f32 %v1163_v32, %v7657_v13  ;;  %v7699_v37 = vsel %vm1715_vm5, %v6779_v60, %v1757_v54  ;;  %5693 = vmatprep.subr.bf16.mxu0 %v5692_v49  ;;  %5949 = vmatprep.subr.bf16.mxu1 %v5948_v30  ;;  %v2133_v60 = vld [vmem:[#allocation14 + $0xa08] sm:$0xff]  ;;  %v2135_v30 = vld [vmem:[#allocation14 + $0xa18] sm:$0xff]  ;;  %v5702_v10 = vpack.c.bf16 %v2124_v0, %v2116_v39  ;;  %v2150_v57 = vld [vmem:[#allocation14 + $0xa90] sm:$0xff] }
 0x29b   :  { %v1764_v29 = vmul.f32 %v6780_v3, %v7664_v58  ;;  %2948 = vmatprep.mubr.f32.mxu0 %v7699_v37  ;;  %3304 = vmatprep.mubr.f32.mxu1 %v7699_v37  ;;  %vm1722_vm6 = vcmp.ge.f32.partialorder %v6780_v3, 0.0  ;;  %v2141_v49 = vld [vmem:[#allocation14 + $0xa48] sm:$0xff]  ;;  %v5958_v19 = vpack.c.bf16 %v2126_v56, %v2118_v24  ;;  %v5960_v32 = vpack.c.bf16 %v2143_v52, %v2135_v30  ;;  %v2158_v62 = vld [vmem:[#allocation14 + $0xad0] sm:$0xff]  ;;  %v2172_v39 = vld [vmem:[#allocation14 + $0xb40] sm:$0xff] }
 0x29c   :  { %vm1723_vm7 = vcmp.ge.f32.partialorder %v6781_v36, 0.0  ;;  %v1765_v23 = vmul.f32 %v6781_v36, %v7664_v58  ;;  %v1167_v1 = vpop.f32.mrb[14].mxu0  ;;  %v7709_v22 = vpop.f32.mrb[14].mxu1  ;;  %2949 = vmatmul.mubr.f32.gmra.mrb[26].mxu0 %v7705_v53  ;;  %3305 = vmatmul.mubr.f32.gmra.mrb[26].mxu1 %v7705_v53  ;;  %v2166_v0 = vld [vmem:[#allocation14 + $0xb10] sm:$0xff]  ;;  %v2181_v56 = vld [vmem:[#allocation14 + $0xb88] sm:$0xff]  ;;  %v2180_v52 = vld [vmem:[#allocation14 + $0xb80] sm:$0xff] }
 0x29d   :  { %v6782_v2 = vadd.f32 %v1167_v1, %v7653_v48  ;;  %5695 = vmatpush1.bf16.msra.mxu0 %v5694_v28  ;;  %5951 = vmatpush1.bf16.msra.mxu1 %v5950_v14  ;;  %v1169_v4 = vpop.f32.mrb[15].mxu0  ;;  %v7716_v6 = vpop.f32.mrb[15].mxu1  ;;  %v7726_v47 = vsel %vm1722_vm6, %v6780_v3, %v1764_v29  ;;  %v2142_v28 = vld [vmem:[#allocation14 + $0xa50] sm:$0xff]  ;;  %v5704_v3 = vpack.c.bf16 %v2141_v49, %v2133_v60  ;;  %v2157_v14 = vld [vmem:[#allocation14 + $0xac8] sm:$0xff]  ;;  %v2183_v60 = vld [vmem:[#allocation14 + $0xb98] sm:$0xff] }
 0x29e   :  { %v6783_v9 = vadd.f32 %v1169_v4, %v7657_v13  ;;  %v7720_v12 = vsel %vm1723_vm7, %v6781_v36, %v1765_v23  ;;  %5697 = vmatprep.subr.bf16.mxu0 %v5696_v34  ;;  %5953 = vmatprep.subr.bf16.mxu1 %v5952_v38  ;;  %v2151_v34 = vld [vmem:[#allocation14 + $0xa98] sm:$0xff]  ;;  %v5706_v36 = vpack.c.bf16 %v2140_v21, %v2132_v15  ;;  %v2165_v23 = vld [vmem:[#allocation14 + $0xb08] sm:$0xff]  ;;  %v2174_v24 = vld [vmem:[#allocation14 + $0xb50] sm:$0xff] }
 0x29f   :  { %v1772_v48 = vmul.f32 %v6782_v2, %v7664_v58  ;;  %2954 = vmatprep.mubr.f32.mxu0 %v7720_v12  ;;  %3310 = vmatprep.mubr.f32.mxu1 %v7720_v12  ;;  %vm1730_vm8 = vcmp.ge.f32.partialorder %v6782_v2, 0.0  ;;  %v5962_v38 = vpack.c.bf16 %v2142_v28, %v2134_v26  ;;  %v5708_v29 = vpack.c.bf16 %v2157_v14, %v2149_v31  ;;  %v2173_v1 = vld [vmem:[#allocation14 + $0xb48] sm:$0xff]  ;;  %v2182_v15 = vld [vmem:[#allocation14 + $0xb90] sm:$0xff]  ;;  %v2199_v31 = vld [vmem:[#allocation14 + $0xc18] sm:$0xff] }
 0x2a0   :  { %vm1731_vm9 = vcmp.ge.f32.partialorder %v6783_v9, 0.0  ;;  %v1773_v13 = vmul.f32 %v6783_v9, %v7664_v58  ;;  %2955 = vmatmul.mubr.f32.gmra.mrb[28].mxu0 %v7726_v47  ;;  %3311 = vmatmul.mubr.f32.gmra.mrb[28].mxu1 %v7726_v47  ;;  %v5966_v4 = vpack.c.bf16 %v2158_v62, %v2150_v57  ;;  %v5970_v30 = vpack.c.bf16 %v2174_v24, %v2166_v0  ;;  %v2190_v21 = vld [vmem:[#allocation14 + $0xbd0] sm:$0xff]  ;;  %v2197_v26 = vld [vmem:[#allocation14 + $0xc08] sm:$0xff]  ;;  %v2215_v57 = vld [vmem:[#allocation14 + $0xc98] sm:$0xff] }
 0x2a1   :  { %5699 = vmatpush1.bf16.msra.mxu0 %v5698_v25  ;;  %5955 = vmatpush1.bf16.msra.mxu1 %v5954_v61  ;;  %v7737_v59 = vsel %vm1730_vm8, %v6782_v2, %v1772_v48  ;;  %v5964_v25 = vpack.c.bf16 %v2159_v20, %v2151_v34  ;;  %v2167_v61 = vld [vmem:[#allocation14 + $0xb18] sm:$0xff]  ;;  %v2189_v48 = vld [vmem:[#allocation14 + $0xbc8] sm:$0xff]  ;;  %v5974_v14 = vpack.c.bf16 %v2190_v21, %v2182_v15  ;;  %v2196_v34 = vld [vmem:[#allocation14 + $0xc00] sm:$0xff] }
 0x2a2   :  { %v7732_v54 = vsel %vm1731_vm9, %v6783_v9, %v1773_v13  ;;  %5701 = vmatprep.subr.bf16.mxu0 %v5700_v7  ;;  %5957 = vmatprep.subr.bf16.mxu1 %v5956_v63  ;;  %v2175_v2 = vld [vmem:[#allocation14 + $0xb58] sm:$0xff]  ;;  %v2164_v7 = vld [vmem:[#allocation14 + $0xb00] sm:$0xff]  ;;  %v5712_v9 = vpack.c.bf16 %v2173_v1, %v2165_v23  ;;  %v2205_v28 = vld [vmem:[#allocation14 + $0xc48] sm:$0xff]  ;;  %v5978_v1 = vpack.c.bf16 %v2206_v41, %v2198_v40 }
 0x2a3   :  { %2960 = vmatprep.mubr.f32.mxu0 %v7732_v54  ;;  %3316 = vmatprep.mubr.f32.mxu1 %v7732_v54  ;;  %v5968_v63 = vpack.c.bf16 %v2175_v2, %v2167_v61  ;;  %v2191_v13 = vld [vmem:[#allocation14 + $0xbd8] sm:$0xff]  ;;  %v5714_v49 = vpack.c.bf16 %v2172_v39, %v2164_v7  ;;  %v2204_v20 = vld [vmem:[#allocation14 + $0xc40] sm:$0xff]  ;;  %v2214_v7 = vld [vmem:[#allocation14 + $0xc90] sm:$0xff] }
 0x2a4   :  { %2961 = vmatmul.mubr.f32.gmra.mrb[30].mxu0 %v7737_v59  ;;  %3317 = vmatmul.mubr.f32.gmra.mrb[30].mxu1 %v7737_v59  ;;  %v2223_v62 = vld [vmem:[#allocation14 + $0xcd8] sm:$0xff]  ;;  %v5722_v23 = vpack.c.bf16 %v2204_v20, %v2196_v34  ;;  %v2212_v61 = vld [vmem:[#allocation14 + $0xc80] sm:$0xff]  ;;  %v2222_v39 = vld [vmem:[#allocation14 + $0xcd0] sm:$0xff] }
 0x2a5   :  { %5703 = vmatpush1.bf16.msra.mxu0 %v5702_v10  ;;  %5959 = vmatpush1.bf16.msra.mxu1 %v5958_v19  ;;  %v5716_v10 = vpack.c.bf16 %v2189_v48, %v2181_v56  ;;  %v5972_v19 = vpack.c.bf16 %v2191_v13, %v2183_v60  ;;  %v2220_v2 = vld [vmem:[#allocation14 + $0xcc0] sm:$0xff]  ;;  %v2231_v0 = vld [vmem:[#allocation14 + $0xd18] sm:$0xff]  ;;  %v5982_v48 = vpack.c.bf16 %v2222_v39, %v2214_v7  ;;  %v2246_v34 = vld [vmem:[#allocation14 + $0xd90] sm:$0xff] }
 0x2a6   :  { %3031 = vmatprep.mubr.f32.mxu0 %v7742_v35  ;;  %3387 = vmatprep.mubr.f32.mxu1 %v7742_v35  ;;  %v2239_v24 = vld [vmem:[#allocation14 + $0xd58] sm:$0xff]  ;;  %v5726_v56 = vpack.c.bf16 %v2220_v2, %v2212_v61  ;;  %v2228_v60 = vld [vmem:[#allocation14 + $0xd00] sm:$0xff]  ;;  %v2254_v20 = vld [vmem:[#allocation14 + $0xdd0] sm:$0xff] }
 0x2a7   :  { %5705 = vmatprep.subr.bf16.mxu0 %v5704_v3  ;;  %5961 = vmatprep.subr.bf16.mxu1 %v5960_v32  ;;  %v2207_v3 = vld [vmem:[#allocation14 + $0xc58] sm:$0xff]  ;;  %v5718_v32 = vpack.c.bf16 %v2188_v17, %v2180_v52  ;;  %v2236_v13 = vld [vmem:[#allocation14 + $0xd40] sm:$0xff]  ;;  %v2230_v52 = vld [vmem:[#allocation14 + $0xd10] sm:$0xff] }
 0x2a8   :  { %v2238_v17 = vld [vmem:[#allocation14 + $0xd50] sm:$0xff]  ;;  %v2247_v15 = vld [vmem:[#allocation14 + $0xd98] sm:$0xff] }
 0x2a9   :  { %5707 = vmatpush1.bf16.msra.mxu0 %v5706_v36  ;;  %5963 = vmatpush1.bf16.msra.mxu1 %v5962_v38  ;;  %v5720_v36 = vpack.c.bf16 %v2205_v28, %v2197_v26  ;;  %v5976_v38 = vpack.c.bf16 %v2207_v3, %v2199_v31  ;;  %v2255_v21 = vld [vmem:[#allocation14 + $0xdd8] sm:$0xff]  ;;  %v5730_v26 = vpack.c.bf16 %v2236_v13, %v2228_v60  ;;  %v2244_v31 = vld [vmem:[#allocation14 + $0xd80] sm:$0xff]  ;;  %v2262_v61 = vld [vmem:[#allocation14 + $0xe10] sm:$0xff] }
 0x2aa   :  { %5709 = vmatprep.subr.bf16.mxu0 %v5708_v29  ;;  %5965 = vmatprep.subr.bf16.mxu1 %v5964_v25  ;;  %v2213_v29 = vld [vmem:[#allocation14 + $0xc88] sm:$0xff]  ;;  %v5986_v28 = vpack.c.bf16 %v2238_v17, %v2230_v52  ;;  %v2252_v3 = vld [vmem:[#allocation14 + $0xdc0] sm:$0xff]  ;;  %v2263_v40 = vld [vmem:[#allocation14 + $0xe18] sm:$0xff] }
 0x2ab   :  { %v2221_v25 = vld [vmem:[#allocation14 + $0xcc8] sm:$0xff]  ;;  %v2271_v41 = vld [vmem:[#allocation14 + $0xe58] sm:$0xff]  ;;  %v2270_v2 = vld [vmem:[#allocation14 + $0xe50] sm:$0xff] }
 0x2ac   :  { %v2279_v7 = vld [vmem:[#allocation14 + $0xe98] sm:$0xff]  ;;  %v2278_v60 = vld [vmem:[#allocation14 + $0xe90] sm:$0xff] }
 0x2ad   :  { %5711 = vmatpush1.bf16.msra.mxu0 %v5710_v33  ;;  %5967 = vmatpush1.bf16.msra.mxu1 %v5966_v4  ;;  %v5724_v33 = vpack.c.bf16 %v2221_v25, %v2213_v29  ;;  %v5980_v4 = vpack.c.bf16 %v2223_v62, %v2215_v57  ;;  %v5734_v29 = vpack.c.bf16 %v2252_v3, %v2244_v31  ;;  %v2260_v57 = vld [vmem:[#allocation14 + $0xe00] sm:$0xff]  ;;  %v2287_v39 = vld [vmem:[#allocation14 + $0xed8] sm:$0xff]  ;;  %v2286_v13 = vld [vmem:[#allocation14 + $0xed0] sm:$0xff] }
 0x2ae   :  { %5713 = vmatprep.subr.bf16.mxu0 %v5712_v9  ;;  %5969 = vmatprep.subr.bf16.mxu1 %v5968_v63  ;;  %v2229_v9 = vld [vmem:[#allocation14 + $0xd08] sm:$0xff]  ;;  %v5990_v25 = vpack.c.bf16 %v2254_v20, %v2246_v34  ;;  %v2268_v62 = vld [vmem:[#allocation14 + $0xe40] sm:$0xff]  ;;  %v2295_v52 = vld [vmem:[#allocation14 + $0xf18] sm:$0xff] }
 0x2af   :  { %v2237_v63 = vld [vmem:[#allocation14 + $0xd48] sm:$0xff]  ;;  %v2303_v17 = vld [vmem:[#allocation14 + $0xf58] sm:$0xff]  ;;  %v2294_v31 = vld [vmem:[#allocation14 + $0xf10] sm:$0xff] }
 0x2b0   :  { %v2302_v3 = vld [vmem:[#allocation14 + $0xf50] sm:$0xff]  ;;  %v2317_v34 = vld [vmem:[#allocation14 + $0xfc8] sm:$0xff]  ;;  %v2311_v20 = vld [vmem:[#allocation14 + $0xf98] sm:$0xff] }
 0x2b1   :  { %5715 = vmatpush1.bf16.msra.mxu0 %v5714_v49  ;;  %5971 = vmatpush1.bf16.msra.mxu1 %v5970_v30  ;;  %v5728_v49 = vpack.c.bf16 %v2237_v63, %v2229_v9  ;;  %v5984_v30 = vpack.c.bf16 %v2239_v24, %v2231_v0  ;;  %v5738_v9 = vpack.c.bf16 %v2268_v62, %v2260_v57  ;;  %v2276_v0 = vld [vmem:[#allocation14 + $0xe80] sm:$0xff]  ;;  %v2310_v62 = vld [vmem:[#allocation14 + $0xf90] sm:$0xff] }
 0x2b2   :  { %5717 = vmatprep.subr.bf16.mxu0 %v5716_v10  ;;  %5973 = vmatprep.subr.bf16.mxu1 %v5972_v19  ;;  %v2245_v10 = vld [vmem:[#allocation14 + $0xd88] sm:$0xff]  ;;  %v5994_v63 = vpack.c.bf16 %v2270_v2, %v2262_v61  ;;  %v2284_v24 = vld [vmem:[#allocation14 + $0xec0] sm:$0xff]  ;;  %v2327_v2 = vld [vmem:[#allocation14 + $0x1018] sm:$0xff] }
 0x2b3   :  { %v2253_v19 = vld [vmem:[#allocation14 + $0xdc8] sm:$0xff] }
 0x2b4   :  { %v2333_v61 = vld [vmem:[#allocation14 + $0x1048] sm:$0xff] }
 0x2b5   :  { %5719 = vmatpush1.bf16.msra.mxu0 %v5718_v32  ;;  %5975 = vmatpush1.bf16.msra.mxu1 %v5974_v14  ;;  %v5732_v32 = vpack.c.bf16 %v2253_v19, %v2245_v10  ;;  %v5988_v14 = vpack.c.bf16 %v2255_v21, %v2247_v15  ;;  %v5742_v10 = vpack.c.bf16 %v2284_v24, %v2276_v0  ;;  %v2292_v15 = vld [vmem:[#allocation14 + $0xf00] sm:$0xff] }
 0x2b6   :  { %5721 = vmatprep.subr.bf16.mxu0 %v5720_v36  ;;  %5977 = vmatprep.subr.bf16.mxu1 %v5976_v38  ;;  %v2261_v36 = vld [vmem:[#allocation14 + $0xe08] sm:$0xff]  ;;  %v5998_v19 = vpack.c.bf16 %v2286_v13, %v2278_v60  ;;  %v2300_v21 = vld [vmem:[#allocation14 + $0xf40] sm:$0xff]  ;;  %v2334_v60 = vld [vmem:[#allocation14 + $0x1050] sm:$0xff] }
 0x2b7   :  { %v2269_v38 = vld [vmem:[#allocation14 + $0xe48] sm:$0xff]  ;;  %v2324_v0 = vld [vmem:[#allocation14 + $0x1000] sm:$0xff] }
 0x2b8   :  { %v2332_v24 = vld [vmem:[#allocation14 + $0x1040] sm:$0xff]  ;;  %v2341_v13 = vld [vmem:[#allocation14 + $0x1088] sm:$0xff] }
 0x2b9   :  { %5723 = vmatpush1.bf16.msra.mxu0 %v5722_v23  ;;  %5979 = vmatpush1.bf16.msra.mxu1 %v5978_v1  ;;  %v5736_v23 = vpack.c.bf16 %v2269_v38, %v2261_v36  ;;  %v5992_v1 = vpack.c.bf16 %v2271_v41, %v2263_v40  ;;  %v2319_v36 = vld [vmem:[#allocation14 + $0xfd8] sm:$0xff]  ;;  %v5746_v38 = vpack.c.bf16 %v2300_v21, %v2292_v15  ;;  %v2308_v41 = vld [vmem:[#allocation14 + $0xf80] sm:$0xff] }
 0x2ba   :  { %5725 = vmatprep.subr.bf16.mxu0 %v5724_v33  ;;  %5981 = vmatprep.subr.bf16.mxu1 %v5980_v4  ;;  %v2277_v33 = vld [vmem:[#allocation14 + $0xe88] sm:$0xff]  ;;  %v6002_v40 = vpack.c.bf16 %v2302_v3, %v2294_v31  ;;  %v6004_v57 = vpack.c.bf16 %v2319_v36, %v2311_v20  ;;  %v2348_v15 = vld [vmem:[#allocation14 + $0x10c0] sm:$0xff]  ;;  %v2359_v36 = vld [vmem:[#allocation14 + $0x1118] sm:$0xff] }
 0x2bb   :  { %v2285_v4 = vld [vmem:[#allocation14 + $0xec8] sm:$0xff] }
 0x2bc   :  { %v2357_v31 = vld [vmem:[#allocation14 + $0x1108] sm:$0xff] }
 0x2bd   :  { %5727 = vmatpush1.bf16.msra.mxu0 %v5726_v56  ;;  %5983 = vmatpush1.bf16.msra.mxu1 %v5982_v48  ;;  %v5740_v56 = vpack.c.bf16 %v2285_v4, %v2277_v33  ;;  %v5996_v48 = vpack.c.bf16 %v2287_v39, %v2279_v7  ;;  %v2335_v33 = vld [vmem:[#allocation14 + $0x1058] sm:$0xff]  ;;  %v6787_v4 = vadd.f32 %v7672_v51, %v7682_v55  ;;  %v2365_v20 = vld [vmem:[#allocation14 + $0x1148] sm:$0xff] }
 0x2be   :  { %5729 = vmatprep.subr.bf16.mxu0 %v5728_v49  ;;  %5985 = vmatprep.subr.bf16.mxu1 %v5984_v30  ;;  %v2293_v49 = vld [vmem:[#allocation14 + $0xf08] sm:$0xff] }
 0x2bf   :  { %v2301_v30 = vld [vmem:[#allocation14 + $0xf48] sm:$0xff]  ;;  %v1759_v51 = vmul.f32 %v6787_v4, %v7664_v58  ;;  %vm1717_vm12 = vcmp.ge.f32.partialorder %v6787_v4, 0.0 }
 0x2c1   :  { %5731 = vmatpush1.bf16.msra.mxu0 %v5730_v26  ;;  %5987 = vmatpush1.bf16.msra.mxu1 %v5986_v28  ;;  %v5744_v26 = vpack.c.bf16 %v2301_v30, %v2293_v49  ;;  %v6000_v28 = vpack.c.bf16 %v2303_v17, %v2295_v52  ;;  %v2349_v49 = vld [vmem:[#allocation14 + $0x10c8] sm:$0xff]  ;;  %v6789_v30 = vadd.f32 %v7695_v11, %v7682_v55  ;;  %v2343_v52 = vld [vmem:[#allocation14 + $0x1098] sm:$0xff] }
 0x2c2   :  { %5733 = vmatprep.subr.bf16.mxu0 %v5732_v32  ;;  %5989 = vmatprep.subr.bf16.mxu1 %v5988_v14  ;;  %v2309_v32 = vld [vmem:[#allocation14 + $0xf88] sm:$0xff]  ;;  %v7748_v14 = vrot.slane %v7649_v5, %v7417_v45  ;;  %v2351_v17 = vld [vmem:[#allocation14 + $0x10d8] sm:$0xff]  ;;  %v5756_v21 = vpack.c.bf16 %v2349_v49, %v2341_v13  ;;  %v2382_v49 = vld [vmem:[#allocation14 + $0x11d0] sm:$0xff] }
 0x2c3   :  { %vm1725_vm14 = vcmp.ge.f32.partialorder %v6789_v30, 0.0  ;;  %v2695_v45 = vld [vmem:[#allocation14 + $0x1b98] sm:$0xff] }
 0x2c4   :  { %v6784_v5 = vadd.f32 %v7659_v44, %v7748_v14  ;;  %v6786_v44 = vadd.f32 %v7669_v8, %v7748_v14 }
 0x2c5   :  { %5735 = vmatpush1.bf16.msra.mxu0 %v5734_v29  ;;  %5991 = vmatpush1.bf16.msra.mxu1 %v5990_v25  ;;  %v2316_v29 = vld [vmem:[#allocation14 + $0xfc0] sm:$0xff]  ;;  %v5748_v25 = vpack.c.bf16 %v2317_v34, %v2309_v32  ;;  %v6788_v32 = vadd.f32 %v7688_v27, %v7748_v14  ;;  %v6012_v34 = vpack.c.bf16 %v2351_v17, %v2343_v52  ;;  %v2391_v17 = vld [vmem:[#allocation14 + $0x1218] sm:$0xff] }
 0x2c6   :  { %5737 = vmatprep.subr.bf16.mxu0 %v5736_v23  ;;  %5993 = vmatprep.subr.bf16.mxu1 %v5992_v1  ;;  %v2318_v23 = vld [vmem:[#allocation14 + $0xfd0] sm:$0xff]  ;;  %v2325_v1 = vld [vmem:[#allocation14 + $0x1008] sm:$0xff]  ;;  %v5750_v7 = vpack.c.bf16 %v2316_v29, %v2308_v41  ;;  %vm1708_vm11 = vcmp.ge.f32.partialorder %v6784_v5, 0.0  ;;  %v1758_v11 = vmul.f32 %v6786_v44, %v7664_v58  ;;  %vm1716_vm13 = vcmp.ge.f32.partialorder %v6786_v44, 0.0 }
 0x2c7   :  { %v6006_v39 = vpack.c.bf16 %v2318_v23, %v2310_v62  ;;  %v6791_v41 = vadd.f32 %v7716_v6, %v7682_v55  ;;  %v7772_v29 = vsel %vm1717_vm12, %v6787_v4, %v1759_v51  ;;  %v2356_v23 = vld [vmem:[#allocation14 + $0x1100] sm:$0xff]  ;;  %v2358_v6 = vld [vmem:[#allocation14 + $0x1110] sm:$0xff]  ;;  %v2381_v4 = vld [vmem:[#allocation14 + $0x11c8] sm:$0xff]  ;;  %vm1724_vm15 = vcmp.ge.f32.partialorder %v6788_v32, 0.0 }
 0x2c8   :  { %v2364_v55 = vld [vmem:[#allocation14 + $0x1140] sm:$0xff]  ;;  %v2389_v51 = vld [vmem:[#allocation14 + $0x1208] sm:$0xff] }
 0x2c9   :  { %5739 = vmatpush1.bf16.msra.mxu0 %v5738_v9  ;;  %5995 = vmatpush1.bf16.msra.mxu1 %v5994_v63  ;;  %v5752_v9 = vpack.c.bf16 %v2333_v61, %v2325_v1  ;;  %v6008_v63 = vpack.c.bf16 %v2335_v33, %v2327_v2  ;;  %v1766_v1 = vmul.f32 %v6788_v32, %v7664_v58  ;;  %v2366_v2 = vld [vmem:[#allocation14 + $0x1150] sm:$0xff]  ;;  %v2373_v33 = vld [vmem:[#allocation14 + $0x1188] sm:$0xff]  ;;  %vm1733_vm1 = vcmp.ge.f32.partialorder %v6791_v41, 0.0 }
 0x2ca   :  { %5741 = vmatprep.subr.bf16.mxu0 %v5740_v56  ;;  %5997 = vmatprep.subr.bf16.mxu1 %v5996_v48  ;;  %v2326_v56 = vld [vmem:[#allocation14 + $0x1010] sm:$0xff]  ;;  %v1750_v48 = vmul.f32 %v6784_v5, %v7664_v58  ;;  %v7780_v61 = vsel %vm1716_vm13, %v6786_v44, %v1758_v11 }
 0x2cb   :  { %v6010_v8 = vpack.c.bf16 %v2334_v60, %v2326_v56  ;;  %v2380_v56 = vld [vmem:[#allocation14 + $0x11c0] sm:$0xff]  ;;  %v7792_v60 = vsel %vm1724_vm15, %v6788_v32, %v1766_v1  ;;  %v2398_v32 = vld [vmem:[#allocation14 + $0x1250] sm:$0xff]  ;;  %v2429_v1 = vld [vmem:[#allocation14 + $0x1348] sm:$0xff] }
 0x2cc   :  { %v7761_v3 = vsel %vm1708_vm11, %v6784_v5, %v1750_v48  ;;  %v6790_v5 = vadd.f32 %v7709_v22, %v7748_v14  ;;  %v2383_v22 = vld [vmem:[#allocation14 + $0x11d8] sm:$0xff]  ;;  %v5762_v14 = vpack.c.bf16 %v2364_v55, %v2356_v23  ;;  %v2374_v48 = vld [vmem:[#allocation14 + $0x1190] sm:$0xff] }
 0x2cd   :  { %5743 = vmatpush1.bf16.msra.mxu0 %v5742_v10  ;;  %5999 = vmatpush1.bf16.msra.mxu1 %v5998_v19  ;;  %v5754_v10 = vpack.c.bf16 %v2332_v24, %v2324_v0  ;;  %v2340_v19 = vld [vmem:[#allocation14 + $0x1080] sm:$0xff]  ;;  %v5764_v0 = vpack.c.bf16 %v2381_v4, %v2373_v33  ;;  %v2414_v55 = vld [vmem:[#allocation14 + $0x12d0] sm:$0xff] }
 0x2ce   :  { %5745 = vmatprep.subr.bf16.mxu0 %v5744_v26  ;;  %6001 = vmatprep.subr.bf16.mxu1 %v6000_v28  ;;  %v2342_v26 = vld [vmem:[#allocation14 + $0x1090] sm:$0xff]  ;;  %v5758_v27 = vpack.c.bf16 %v2348_v15, %v2340_v19  ;;  %v2372_v24 = vld [vmem:[#allocation14 + $0x1180] sm:$0xff]  ;;  %v1774_v44 = vmul.f32 %v6790_v5, %v7664_v58  ;;  %vm1732_vm2 = vcmp.ge.f32.partialorder %v6790_v5, 0.0  ;;  %v6022_v15 = vpack.c.bf16 %v2382_v49, %v2374_v48  ;;  %v2439_v48 = vld [vmem:[#allocation14 + $0x1398] sm:$0xff] }
 0x2cf   :  { %v2350_v28 = vld [vmem:[#allocation14 + $0x10d0] sm:$0xff]  ;;  %v5766_v19 = vpack.c.bf16 %v2380_v56, %v2372_v24  ;;  %v2437_v24 = vld [vmem:[#allocation14 + $0x1388] sm:$0xff] }
 0x2d0   :  { %v2445_v56 = vld [vmem:[#allocation14 + $0x13c8] sm:$0xff] }
 0x2d1   :  { %5747 = vmatpush1.bf16.msra.mxu0 %v5746_v38  ;;  %6003 = vmatpush1.bf16.msra.mxu1 %v6002_v40  ;;  %v2367_v38 = vld [vmem:[#allocation14 + $0x1158] sm:$0xff]  ;;  %v1767_v40 = vmul.f32 %v6789_v30, %v7664_v58 }
 0x2d2   :  { %5749 = vmatprep.subr.bf16.mxu0 %v5748_v25  ;;  %6005 = vmatprep.subr.bf16.mxu1 %v6004_v57  ;;  %v6014_v25 = vpack.c.bf16 %v2350_v28, %v2342_v26  ;;  %v5760_v57 = vpack.c.bf16 %v2365_v20, %v2357_v31  ;;  %v6016_v62 = vpack.c.bf16 %v2367_v38, %v2359_v36  ;;  %v2396_v26 = vld [vmem:[#allocation14 + $0x1240] sm:$0xff]  ;;  %v2390_v28 = vld [vmem:[#allocation14 + $0x1210] sm:$0xff]  ;;  %v2413_v20 = vld [vmem:[#allocation14 + $0x12c8] sm:$0xff] }
 0x2d3   :  { %v7802_v31 = vsel %vm1732_vm2, %v6790_v5, %v1774_v44  ;;  %v2407_v36 = vld [vmem:[#allocation14 + $0x1298] sm:$0xff] }
 0x2d4   :  { %v2415_v38 = vld [vmem:[#allocation14 + $0x12d8] sm:$0xff] }
 0x2d5   :  { %5751 = vmatpush1.bf16.msra.mxu0 %v5750_v7  ;;  %6007 = vmatpush1.bf16.msra.mxu1 %v6006_v39  ;;  %v1775_v7 = vmul.f32 %v6791_v41, %v7664_v58  ;;  %v7786_v39 = vsel %vm1725_vm14, %v6789_v30, %v1767_v40  ;;  %v2397_v30 = vld [vmem:[#allocation14 + $0x1248] sm:$0xff]  ;;  %v6028_v23 = vpack.c.bf16 %v2415_v38, %v2407_v36  ;;  %v2423_v5 = vld [vmem:[#allocation14 + $0x1318] sm:$0xff]  ;;  %v2460_v36 = vld [vmem:[#allocation14 + $0x1440] sm:$0xff] }
 0x2d6   :  { %5753 = vmatprep.subr.bf16.mxu0 %v5752_v9  ;;  %6009 = vmatprep.subr.bf16.mxu1 %v6008_v63  ;;  %v2375_v9 = vld [vmem:[#allocation14 + $0x1198] sm:$0xff]  ;;  %v6018_v63 = vpack.c.bf16 %v2366_v2, %v2358_v6  ;;  %v2421_v6 = vld [vmem:[#allocation14 + $0x1308] sm:$0xff]  ;;  %v2454_v38 = vld [vmem:[#allocation14 + $0x1410] sm:$0xff] }
 0x2d7   :  { %v6020_v13 = vpack.c.bf16 %v2383_v22, %v2375_v9  ;;  %v7797_v52 = vsel %vm1733_vm1, %v6791_v41, %v1775_v7  ;;  %v6026_v41 = vpack.c.bf16 %v2398_v32, %v2390_v28  ;;  %v2431_v2 = vld [vmem:[#allocation14 + $0x1358] sm:$0xff]  ;;  %v5776_v7 = vpack.c.bf16 %v2429_v1, %v2421_v6  ;;  %v2420_v9 = vld [vmem:[#allocation14 + $0x1300] sm:$0xff] }
 0x2d8   :  { %3032 = vmatmul.mubr.f32.vlgmr.msra.gmra.mrb[24].mxu0 %v7761_v3  ;;  %3388 = vmatmul.mubr.f32.vlgmr.msra.gmra.mrb[24].mxu1 %v7761_v3  ;;  %v2428_v22 = vld [vmem:[#allocation14 + $0x1340] sm:$0xff]  ;;  %v2447_v44 = vld [vmem:[#allocation14 + $0x13d8] sm:$0xff] }
 0x2d9   :  { %3037 = vmatprep.mubr.f32.mxu0 %v7772_v29  ;;  %5755 = vmatpush1.bf16.msra.mxu0 %v5754_v10  ;;  %v2399_v10 = vld [vmem:[#allocation14 + $0x1258] sm:$0xff]  ;;  %v2468_v1 = vld [vmem:[#allocation14 + $0x1480] sm:$0xff] }
 0x2da   :  { %3393 = vmatprep.mubr.f32.mxu1 %v7772_v29  ;;  %6011 = vmatpush1.bf16.msra.mxu1 %v6010_v8  ;;  %v5768_v8 = vpack.c.bf16 %v2397_v30, %v2389_v51  ;;  %v6024_v11 = vpack.c.bf16 %v2399_v10, %v2391_v17  ;;  %v5780_v51 = vpack.c.bf16 %v2445_v56, %v2437_v24  ;;  %v2436_v30 = vld [vmem:[#allocation14 + $0x1380] sm:$0xff]  ;;  %v2438_v10 = vld [vmem:[#allocation14 + $0x1390] sm:$0xff]  ;;  %v2463_v28 = vld [vmem:[#allocation14 + $0x1458] sm:$0xff] }
 0x2db   :  { %5757 = vmatprep.subr.bf16.mxu0 %v5756_v21  ;;  %6013 = vmatprep.subr.bf16.mxu1 %v6012_v34  ;;  %v2388_v21 = vld [vmem:[#allocation14 + $0x1200] sm:$0xff]  ;;  %v2405_v34 = vld [vmem:[#allocation14 + $0x1288] sm:$0xff] }
 0x2dc   :  { %3038 = vmatmul.mubr.f32.gmra.mrb[26].mxu0 %v7780_v61  ;;  %3394 = vmatmul.mubr.f32.gmra.mrb[26].mxu1 %v7780_v61  ;;  %v5770_v40 = vpack.c.bf16 %v2396_v26, %v2388_v21  ;;  %v2444_v17 = vld [vmem:[#allocation14 + $0x13c0] sm:$0xff]  ;;  %v2461_v21 = vld [vmem:[#allocation14 + $0x1448] sm:$0xff]  ;;  %v2455_v26 = vld [vmem:[#allocation14 + $0x1418] sm:$0xff] }
 0x2dd   :  { %3043 = vmatprep.mubr.f32.mxu0 %v7786_v39  ;;  %5759 = vmatpush1.bf16.msra.mxu0 %v5758_v27  ;;  %v5772_v27 = vpack.c.bf16 %v2413_v20, %v2405_v34  ;;  %v2452_v20 = vld [vmem:[#allocation14 + $0x1400] sm:$0xff] }
 0x2de   :  { %3399 = vmatprep.mubr.f32.mxu1 %v7786_v39  ;;  %6015 = vmatpush1.bf16.msra.mxu1 %v6014_v25  ;;  %v2404_v25 = vld [vmem:[#allocation14 + $0x1280] sm:$0xff] }
 0x2df   :  { %5761 = vmatprep.subr.bf16.mxu0 %v5760_v57  ;;  %6017 = vmatprep.subr.bf16.mxu1 %v6016_v62  ;;  %v2412_v57 = vld [vmem:[#allocation14 + $0x12c0] sm:$0xff]  ;;  %v2406_v62 = vld [vmem:[#allocation14 + $0x1290] sm:$0xff] }
 0x2e0   :  { %3044 = vmatmul.mubr.f32.gmra.mrb[28].mxu0 %v7792_v60  ;;  %3400 = vmatmul.mubr.f32.gmra.mrb[28].mxu1 %v7792_v60  ;;  %v5774_v33 = vpack.c.bf16 %v2412_v57, %v2404_v25  ;;  %v6030_v4 = vpack.c.bf16 %v2414_v55, %v2406_v62  ;;  %v2477_v25 = vld [vmem:[#allocation14 + $0x14c8] sm:$0xff]  ;;  %v2471_v57 = vld [vmem:[#allocation14 + $0x1498] sm:$0xff]  ;;  %v2484_v56 = vld [vmem:[#allocation14 + $0x1500] sm:$0xff] }
 0x2e1   :  { %3049 = vmatprep.mubr.f32.mxu0 %v7797_v52  ;;  %5763 = vmatpush1.bf16.msra.mxu0 %v5762_v14  ;;  %v2422_v14 = vld [vmem:[#allocation14 + $0x1310] sm:$0xff]  ;;  %v2479_v62 = vld [vmem:[#allocation14 + $0x14d8] sm:$0xff] }
 0x2e2   :  { %3405 = vmatprep.mubr.f32.mxu1 %v7797_v52  ;;  %6019 = vmatpush1.bf16.msra.mxu1 %v6018_v63  ;;  %v6032_v63 = vpack.c.bf16 %v2431_v2, %v2423_v5  ;;  %v2476_v5 = vld [vmem:[#allocation14 + $0x14c0] sm:$0xff]  ;;  %v2470_v2 = vld [vmem:[#allocation14 + $0x1490] sm:$0xff] }
 0x2e3   :  { %5765 = vmatprep.subr.bf16.mxu0 %v5764_v0  ;;  %6021 = vmatprep.subr.bf16.mxu1 %v6020_v13  ;;  %v2430_v0 = vld [vmem:[#allocation14 + $0x1350] sm:$0xff]  ;;  %v5778_v13 = vpack.c.bf16 %v2428_v22, %v2420_v9  ;;  %v2493_v9 = vld [vmem:[#allocation14 + $0x1548] sm:$0xff]  ;;  %v2487_v22 = vld [vmem:[#allocation14 + $0x1518] sm:$0xff] }
 0x2e4   :  { %3050 = vmatmul.mubr.f32.gmra.mrb[30].mxu0 %v7802_v31  ;;  %3406 = vmatmul.mubr.f32.gmra.mrb[30].mxu1 %v7802_v31  ;;  %v6034_v49 = vpack.c.bf16 %v2430_v0, %v2422_v14  ;;  %v2495_v14 = vld [vmem:[#allocation14 + $0x1558] sm:$0xff] }
 0x2e5   :  { %5767 = vmatpush1.bf16.msra.mxu0 %v5766_v19  ;;  %v6036_v19 = vpack.c.bf16 %v2447_v44, %v2439_v48  ;;  %v2492_v48 = vld [vmem:[#allocation14 + $0x1540] sm:$0xff]  ;;  %v2486_v44 = vld [vmem:[#allocation14 + $0x1510] sm:$0xff] }
 0x2e6   :  { %6023 = vmatpush1.bf16.msra.mxu1 %v6022_v15  ;;  %5769 = vmatprep.subr.bf16.mxu0 %v5768_v8  ;;  %v2446_v15 = vld [vmem:[#allocation14 + $0x13d0] sm:$0xff]  ;;  %v2453_v8 = vld [vmem:[#allocation14 + $0x1408] sm:$0xff] }
 0x2e7   :  { %6025 = vmatprep.subr.bf16.mxu1 %v6024_v11  ;;  %v5782_v11 = vpack.c.bf16 %v2444_v17, %v2436_v30  ;;  %v6038_v32 = vpack.c.bf16 %v2446_v15, %v2438_v10  ;;  %v5784_v34 = vpack.c.bf16 %v2461_v21, %v2453_v8  ;;  %v2509_v30 = vld [vmem:[#allocation14 + $0x15c8] sm:$0xff]  ;;  %v2503_v17 = vld [vmem:[#allocation14 + $0x1598] sm:$0xff]  ;;  %v2500_v21 = vld [vmem:[#allocation14 + $0x1580] sm:$0xff] }
 0x2e8   :  { %v2511_v10 = vld [vmem:[#allocation14 + $0x15d8] sm:$0xff] }
 0x2e9   :  { %5771 = vmatpush1.bf16.msra.mxu0 %v5770_v40  ;;  %v6040_v40 = vpack.c.bf16 %v2463_v28, %v2455_v26  ;;  %v2508_v26 = vld [vmem:[#allocation14 + $0x15c0] sm:$0xff]  ;;  %v2502_v28 = vld [vmem:[#allocation14 + $0x1590] sm:$0xff] }
 0x2ea   :  { %6027 = vmatpush1.bf16.msra.mxu1 %v6026_v41  ;;  %5773 = vmatprep.subr.bf16.mxu0 %v5772_v27  ;;  %v2462_v41 = vld [vmem:[#allocation14 + $0x1450] sm:$0xff]  ;;  %v2469_v27 = vld [vmem:[#allocation14 + $0x1488] sm:$0xff] }
 0x2eb   :  { %6029 = vmatprep.subr.bf16.mxu1 %v6028_v23  ;;  %v5786_v23 = vpack.c.bf16 %v2460_v36, %v2452_v20  ;;  %v6042_v55 = vpack.c.bf16 %v2462_v41, %v2454_v38  ;;  %v5788_v6 = vpack.c.bf16 %v2477_v25, %v2469_v27  ;;  %v2525_v20 = vld [vmem:[#allocation14 + $0x1648] sm:$0xff]  ;;  %v2519_v36 = vld [vmem:[#allocation14 + $0x1618] sm:$0xff]  ;;  %v2516_v25 = vld [vmem:[#allocation14 + $0x1600] sm:$0xff] }
 0x2ec   :  { %v2527_v38 = vld [vmem:[#allocation14 + $0x1658] sm:$0xff] }
 0x2ed   :  { %5775 = vmatpush1.bf16.msra.mxu0 %v5774_v33  ;;  %v6044_v33 = vpack.c.bf16 %v2479_v62, %v2471_v57  ;;  %v2524_v57 = vld [vmem:[#allocation14 + $0x1640] sm:$0xff]  ;;  %v2518_v62 = vld [vmem:[#allocation14 + $0x1610] sm:$0xff] }
 0x2ee   :  { %6031 = vmatpush1.bf16.msra.mxu1 %v6030_v4  ;;  %5777 = vmatprep.subr.bf16.mxu0 %v5776_v7  ;;  %v2478_v4 = vld [vmem:[#allocation14 + $0x14d0] sm:$0xff]  ;;  %v2485_v7 = vld [vmem:[#allocation14 + $0x1508] sm:$0xff] }
 0x2ef   :  { %6033 = vmatprep.subr.bf16.mxu1 %v6032_v63  ;;  %v5790_v63 = vpack.c.bf16 %v2476_v5, %v2468_v1  ;;  %v6046_v0 = vpack.c.bf16 %v2478_v4, %v2470_v2  ;;  %v5792_v24 = vpack.c.bf16 %v2493_v9, %v2485_v7  ;;  %v2541_v1 = vld [vmem:[#allocation14 + $0x16c8] sm:$0xff]  ;;  %v2535_v5 = vld [vmem:[#allocation14 + $0x1698] sm:$0xff]  ;;  %v2532_v9 = vld [vmem:[#allocation14 + $0x1680] sm:$0xff] }
 0x2f0   :  { %v2543_v2 = vld [vmem:[#allocation14 + $0x16d8] sm:$0xff] }
 0x2f1   :  { %5779 = vmatpush1.bf16.msra.mxu0 %v5778_v13  ;;  %v6048_v13 = vpack.c.bf16 %v2495_v14, %v2487_v22  ;;  %v2540_v22 = vld [vmem:[#allocation14 + $0x16c0] sm:$0xff]  ;;  %v2534_v14 = vld [vmem:[#allocation14 + $0x1690] sm:$0xff] }
 0x2f2   :  { %6035 = vmatpush1.bf16.msra.mxu1 %v6034_v49  ;;  %5781 = vmatprep.subr.bf16.mxu0 %v5780_v51  ;;  %v2494_v49 = vld [vmem:[#allocation14 + $0x1550] sm:$0xff]  ;;  %v2501_v51 = vld [vmem:[#allocation14 + $0x1588] sm:$0xff] }
 0x2f3   :  { %6037 = vmatprep.subr.bf16.mxu1 %v6036_v19  ;;  %v5794_v19 = vpack.c.bf16 %v2492_v48, %v2484_v56  ;;  %v6050_v15 = vpack.c.bf16 %v2494_v49, %v2486_v44  ;;  %v5796_v8 = vpack.c.bf16 %v2509_v30, %v2501_v51  ;;  %v2557_v56 = vld [vmem:[#allocation14 + $0x1748] sm:$0xff]  ;;  %v2551_v48 = vld [vmem:[#allocation14 + $0x1718] sm:$0xff]  ;;  %v8691_v30 = vsub.s32 4, %v7411_v42 }
 0x2f4   :  { %v2559_v44 = vld [vmem:[#allocation14 + $0x1758] sm:$0xff] }
 0x2f5   :  { %5783 = vmatpush1.bf16.msra.mxu0 %v5782_v11  ;;  %v6052_v11 = vpack.c.bf16 %v2511_v10, %v2503_v17  ;;  %v2548_v17 = vld [vmem:[#allocation14 + $0x1700] sm:$0xff] }
 0x2f6   :  { %6039 = vmatpush1.bf16.msra.mxu1 %v6038_v32  ;;  %5785 = vmatprep.subr.bf16.mxu0 %v5784_v34  ;;  %v2510_v32 = vld [vmem:[#allocation14 + $0x15d0] sm:$0xff]  ;;  %v2517_v34 = vld [vmem:[#allocation14 + $0x1608] sm:$0xff]  ;;  %v2556_v10 = vld [vmem:[#allocation14 + $0x1740] sm:$0xff] }
 0x2f7   :  { %6041 = vmatprep.subr.bf16.mxu1 %v6040_v40  ;;  %v5798_v40 = vpack.c.bf16 %v2508_v26, %v2500_v21  ;;  %v6054_v41 = vpack.c.bf16 %v2510_v32, %v2502_v28  ;;  %v5800_v27 = vpack.c.bf16 %v2525_v20, %v2517_v34  ;;  %v8690_v21 = vsub.s32 5, %v7411_v42  ;;  %v2565_v26 = vld [vmem:[#allocation14 + $0x1788] sm:$0xff]  ;;  %v2575_v32 = vld [vmem:[#allocation14 + $0x17d8] sm:$0xff] }
 0x2f8   :  { %v2573_v28 = vld [vmem:[#allocation14 + $0x17c8] sm:$0xff]  ;;  %v5810_v34 = vpack.c.bf16 %v2556_v10, %v2548_v17  ;;  %v7808_v20 = vld [vmem:[#allocation13] sm:$0xff]  ;;  %v8689_v17 = vsub.s32 7, %v7411_v42 }
 0x2f9   :  { %5787 = vmatpush1.bf16.msra.mxu0 %v5786_v23  ;;  %v6056_v23 = vpack.c.bf16 %v2527_v38, %v2519_v36  ;;  %v7813_v36 = vrot.slane %v7808_v20, %v8691_v30  ;;  %v2605_v10 = vld [vmem:[#allocation14 + $0x18c8] sm:$0xff] }
 0x2fa   :  { %6043 = vmatpush1.bf16.msra.mxu1 %v6042_v55  ;;  %5789 = vmatprep.subr.bf16.mxu0 %v5788_v6  ;;  %v2526_v55 = vld [vmem:[#allocation14 + $0x1650] sm:$0xff]  ;;  %v2533_v6 = vld [vmem:[#allocation14 + $0x1688] sm:$0xff] }
 0x2fb   :  { %6045 = vmatprep.subr.bf16.mxu1 %v6044_v33  ;;  %v5802_v33 = vpack.c.bf16 %v2524_v57, %v2516_v25  ;;  %v6058_v4 = vpack.c.bf16 %v2526_v55, %v2518_v62  ;;  %v5804_v7 = vpack.c.bf16 %v2541_v1, %v2533_v6  ;;  %v2566_v25 = vld [vmem:[#allocation14 + $0x1790] sm:$0xff]  ;;  %v7818_v57 = vrot.slane %v7808_v20, %v8690_v21  ;;  %v2581_v55 = vld [vmem:[#allocation14 + $0x1808] sm:$0xff]  ;;  %v2583_v1 = vld [vmem:[#allocation14 + $0x1818] sm:$0xff] }
 0x2fc   :  { %v2589_v6 = vld [vmem:[#allocation14 + $0x1848] sm:$0xff] }
 0x2fd   :  { %5791 = vmatpush1.bf16.msra.mxu0 %v5790_v63  ;;  %v6060_v63 = vpack.c.bf16 %v2543_v2, %v2535_v5  ;;  %v2591_v5 = vld [vmem:[#allocation14 + $0x1858] sm:$0xff]  ;;  %v2661_v21 = vld [vmem:[#allocation14 + $0x1a88] sm:$0xff] }
 0x2fe   :  { %6047 = vmatpush1.bf16.msra.mxu1 %v6046_v0  ;;  %5793 = vmatprep.subr.bf16.mxu0 %v5792_v24  ;;  %v2542_v0 = vld [vmem:[#allocation14 + $0x16d0] sm:$0xff]  ;;  %v2549_v24 = vld [vmem:[#allocation14 + $0x1708] sm:$0xff] }
 0x2ff   :  { %6049 = vmatprep.subr.bf16.mxu1 %v6048_v13  ;;  %v5806_v13 = vpack.c.bf16 %v2540_v22, %v2532_v9  ;;  %v6062_v49 = vpack.c.bf16 %v2542_v0, %v2534_v14  ;;  %v5808_v51 = vpack.c.bf16 %v2557_v56, %v2549_v24  ;;  %v5816_v14 = vpack.c.bf16 %v2589_v6, %v2581_v55  ;;  %v2588_v0 = vld [vmem:[#allocation14 + $0x1840] sm:$0xff] }
 0x301   :  { %5795 = vmatpush1.bf16.msra.mxu0 %v5794_v19  ;;  %v2550_v19 = vld [vmem:[#allocation14 + $0x1710] sm:$0xff] }
 0x302   :  { %6051 = vmatpush1.bf16.msra.mxu1 %v6050_v15  ;;  %5797 = vmatprep.subr.bf16.mxu0 %v5796_v8  ;;  %v6064_v15 = vpack.c.bf16 %v2559_v44, %v2551_v48  ;;  %v2558_v8 = vld [vmem:[#allocation14 + $0x1750] sm:$0xff]  ;;  %v6072_v48 = vpack.c.bf16 %v2591_v5, %v2583_v1  ;;  %v2613_v5 = vld [vmem:[#allocation14 + $0x1908] sm:$0xff] }
 0x303   :  { %6053 = vmatprep.subr.bf16.mxu1 %v6052_v11  ;;  %v2567_v11 = vld [vmem:[#allocation14 + $0x1798] sm:$0xff]  ;;  %v6066_v38 = vpack.c.bf16 %v2558_v8, %v2550_v19  ;;  %v2582_v44 = vld [vmem:[#allocation14 + $0x1810] sm:$0xff] }
 0x304   :  { %v6068_v62 = vpack.c.bf16 %v2575_v32, %v2567_v11  ;;  %v2599_v19 = vld [vmem:[#allocation14 + $0x1898] sm:$0xff]  ;;  %v2606_v1 = vld [vmem:[#allocation14 + $0x18d0] sm:$0xff] }
 0x305   :  { %5799 = vmatpush1.bf16.msra.mxu0 %v5798_v40  ;;  %v5812_v40 = vpack.c.bf16 %v2573_v28, %v2565_v26 }
 0x306   :  { %6055 = vmatpush1.bf16.msra.mxu1 %v6054_v41  ;;  %5801 = vmatprep.subr.bf16.mxu0 %v5800_v27  ;;  %v2564_v41 = vld [vmem:[#allocation14 + $0x1780] sm:$0xff] }
 0x307   :  { %6057 = vmatprep.subr.bf16.mxu1 %v6056_v23  ;;  %v2572_v27 = vld [vmem:[#allocation14 + $0x17c0] sm:$0xff]  ;;  %v2574_v23 = vld [vmem:[#allocation14 + $0x17d0] sm:$0xff] }
 0x308   :  { %v6070_v22 = vpack.c.bf16 %v2574_v23, %v2566_v25 }
 0x309   :  { %5803 = vmatpush1.bf16.msra.mxu0 %v5802_v33  ;;  %v5814_v33 = vpack.c.bf16 %v2572_v27, %v2564_v41  ;;  %v2604_v41 = vld [vmem:[#allocation14 + $0x18c0] sm:$0xff]  ;;  %v2598_v27 = vld [vmem:[#allocation14 + $0x1890] sm:$0xff] }
 0x30a   :  { %6059 = vmatpush1.bf16.msra.mxu1 %v6058_v4  ;;  %5805 = vmatprep.subr.bf16.mxu0 %v5804_v7 }
 0x30b   :  { %6061 = vmatprep.subr.bf16.mxu1 %v6060_v63  ;;  %v2580_v63 = vld [vmem:[#allocation14 + $0x1800] sm:$0xff] }
 0x30d   :  { %5807 = vmatpush1.bf16.msra.mxu0 %v5806_v13  ;;  %v2590_v13 = vld [vmem:[#allocation14 + $0x1850] sm:$0xff] }
 0x30e   :  { %6063 = vmatpush1.bf16.msra.mxu1 %v6062_v49  ;;  %5809 = vmatprep.subr.bf16.mxu0 %v5808_v51  ;;  %v2597_v49 = vld [vmem:[#allocation14 + $0x1888] sm:$0xff] }
 0x30f   :  { %6065 = vmatprep.subr.bf16.mxu1 %v6064_v15  ;;  %v2607_v15 = vld [vmem:[#allocation14 + $0x18d8] sm:$0xff]  ;;  %v5820_v55 = vpack.c.bf16 %v2605_v10, %v2597_v49  ;;  %v6078_v10 = vpack.c.bf16 %v2606_v1, %v2598_v27 }
 0x310   :  { %v6076_v6 = vpack.c.bf16 %v2607_v15, %v2599_v19  ;;  %v2614_v15 = vld [vmem:[#allocation14 + $0x1910] sm:$0xff]  ;;  %v2631_v1 = vld [vmem:[#allocation14 + $0x1998] sm:$0xff] }
 0x311   :  { %v1505_v2 = vpop.f32.mrb[16].mxu0  ;;  %5811 = vmatpush1.bf16.msra.mxu0 %v5810_v34  ;;  %v5818_v34 = vpack.c.bf16 %v2588_v0, %v2580_v63  ;;  %v2623_v63 = vld [vmem:[#allocation14 + $0x1958] sm:$0xff] }
 0x312   :  { %v6792_v4 = vadd.f32 %v1505_v2, %v7813_v36  ;;  %v7821_v7 = vpop.f32.mrb[16].mxu1  ;;  %6067 = vmatpush1.bf16.msra.mxu1 %v6066_v38  ;;  %v1507_v9 = vpop.f32.mrb[17].mxu0  ;;  %5813 = vmatprep.subr.bf16.mxu0 %v5812_v40  ;;  %v6074_v38 = vpack.c.bf16 %v2590_v13, %v2582_v44  ;;  %v2596_v40 = vld [vmem:[#allocation14 + $0x1880] sm:$0xff]  ;;  %v2621_v2 = vld [vmem:[#allocation14 + $0x1948] sm:$0xff] }
 0x313   :  { %v6793_v24 = vadd.f32 %v1507_v9, %v7818_v57  ;;  %v7824_v56 = vpop.f32.mrb[17].mxu1  ;;  %6069 = vmatprep.subr.bf16.mxu1 %v6068_v62  ;;  %v7844_v9 = vrot.slane %v7808_v20, %v8689_v17  ;;  %v7854_v44 = vld [vmem:[#allocation14 + $0x1940] sm:$0xff]  ;;  %v5824_v19 = vpack.c.bf16 %v2621_v2, %v2613_v5  ;;  %v2637_v17 = vld [vmem:[#allocation14 + $0x19c8] sm:$0xff] }
 0x314   :  { %v1752_v51 = vmul.f32 %v6792_v4, %v7664_v58  ;;  %vm1710_vm3 = vcmp.ge.f32.partialorder %v6792_v4, 0.0 }
 0x315   :  { %vm1711_vm4 = vcmp.ge.f32.partialorder %v6793_v24, 0.0  ;;  %v1753_v8 = vmul.f32 %v6793_v24, %v7664_v58  ;;  %v1511_v26 = vpop.f32.mrb[18].mxu0  ;;  %5815 = vmatpush1.bf16.msra.mxu0 %v5814_v33  ;;  %v6801_v2 = vadd.f32 %v7824_v56, %v7844_v9  ;;  %v2636_v56 = vld [vmem:[#allocation14 + $0x19c0] sm:$0xff] }
 0x316   :  { %v6794_v28 = vadd.f32 %v1511_v26, %v7813_v36  ;;  %v7830_v11 = vpop.f32.mrb[18].mxu1  ;;  %6071 = vmatpush1.bf16.msra.mxu1 %v6070_v22  ;;  %v1513_v32 = vpop.f32.mrb[19].mxu0  ;;  %5817 = vmatprep.subr.bf16.mxu0 %v5816_v14  ;;  %v7839_v33 = vsel %vm1710_vm3, %v6792_v4, %v1752_v51  ;;  %v2615_v14 = vld [vmem:[#allocation14 + $0x1918] sm:$0xff]  ;;  %v5822_v4 = vpack.c.bf16 %v2604_v41, %v2596_v40 }
 0x317   :  { %v6795_v25 = vadd.f32 %v1513_v32, %v7818_v57  ;;  %v7833_v62 = vpop.f32.mrb[19].mxu1  ;;  %v7836_v23 = vsel %vm1711_vm4, %v6793_v24, %v1753_v8  ;;  %6073 = vmatprep.subr.bf16.mxu1 %v6072_v48  ;;  %v7852_v48 = vld [vmem:[#allocation14 + $0x1900] sm:$0xff]  ;;  %v2622_v8 = vld [vmem:[#allocation14 + $0x1950] sm:$0xff]  ;;  %v6080_v41 = vpack.c.bf16 %v2623_v63, %v2615_v14  ;;  %vm1713_vm11 = vcmp.ge.f32.partialorder %v6801_v2, 0.0 }
 0x318   :  { %v1760_v22 = vmul.f32 %v6794_v28, %v7664_v58  ;;  %3120 = vmatprep.mubr.f32.mxu0 %v7836_v23  ;;  %3476 = vmatprep.mubr.f32.mxu1 %v7836_v23  ;;  %vm1718_vm5 = vcmp.ge.f32.partialorder %v6794_v28, 0.0  ;;  %v5826_v27 = vpack.c.bf16 %v7854_v44, %v7852_v48  ;;  %v6082_v5 = vpack.c.bf16 %v2622_v8, %v2614_v15  ;;  %v2630_v8 = vld [vmem:[#allocation14 + $0x1990] sm:$0xff] }
 0x319   :  { %vm1719_vm6 = vcmp.ge.f32.partialorder %v6795_v25, 0.0  ;;  %v1761_v0 = vmul.f32 %v6795_v25, %v7664_v58  ;;  %v1517_v24 = vpop.f32.mrb[20].mxu0  ;;  %3121 = vmatmul.mubr.f32.vlgmr.msra.gmra.mrb[24].mxu0 %v7839_v33  ;;  %3477 = vmatmul.mubr.f32.vlgmr.msra.gmra.mrb[24].mxu1 %v7839_v33 }
 0x31a   :  { %v6796_v13 = vadd.f32 %v1517_v24, %v7813_v36  ;;  %v7857_v49 = vpop.f32.mrb[20].mxu1  ;;  %5819 = vmatpush1.bf16.msra.mxu0 %v5818_v34  ;;  %6075 = vmatpush1.bf16.msra.mxu1 %v6074_v38  ;;  %v1519_v51 = vpop.f32.mrb[21].mxu0  ;;  %v2629_v24 = vld [vmem:[#allocation14 + $0x1988] sm:$0xff]  ;;  %v7869_v38 = vsel %vm1718_vm5, %v6794_v28, %v1760_v22 }
 0x31b   :  { %v6797_v26 = vadd.f32 %v1519_v51, %v7818_v57  ;;  %v7860_v32 = vpop.f32.mrb[21].mxu1  ;;  %v7863_v40 = vsel %vm1719_vm6, %v6795_v25, %v1761_v0  ;;  %5821 = vmatprep.subr.bf16.mxu0 %v5820_v55  ;;  %6077 = vmatprep.subr.bf16.mxu1 %v6076_v6  ;;  %v2639_v25 = vld [vmem:[#allocation14 + $0x19d8] sm:$0xff]  ;;  %v5828_v63 = vpack.c.bf16 %v2637_v17, %v2629_v24  ;;  %v2628_v0 = vld [vmem:[#allocation14 + $0x1980] sm:$0xff] }
 0x31c   :  { %v1768_v34 = vmul.f32 %v6796_v13, %v7664_v58  ;;  %3126 = vmatprep.mubr.f32.mxu0 %v7863_v40  ;;  %3482 = vmatprep.mubr.f32.mxu1 %v7863_v40  ;;  %vm1726_vm7 = vcmp.ge.f32.partialorder %v6796_v13, 0.0  ;;  %v6084_v15 = vpack.c.bf16 %v2639_v25, %v2631_v1  ;;  %v5830_v24 = vpack.c.bf16 %v2636_v56, %v2628_v0  ;;  %v2669_v0 = vld [vmem:[#allocation14 + $0x1ac8] sm:$0xff]  ;;  %v2663_v56 = vld [vmem:[#allocation14 + $0x1a98] sm:$0xff] }
 0x31d   :  { %vm1727_vm8 = vcmp.ge.f32.partialorder %v6797_v26, 0.0  ;;  %v1769_v55 = vmul.f32 %v6797_v26, %v7664_v58  ;;  %v1523_v6 = vpop.f32.mrb[22].mxu0  ;;  %3127 = vmatmul.mubr.f32.gmra.mrb[26].mxu0 %v7869_v38  ;;  %3483 = vmatmul.mubr.f32.gmra.mrb[26].mxu1 %v7869_v38 }
 0x31e   :  { %v6798_v28 = vadd.f32 %v1523_v6, %v7813_v36  ;;  %v7879_v22 = vpop.f32.mrb[22].mxu1  ;;  %5823 = vmatpush1.bf16.msra.mxu0 %v5822_v4  ;;  %6079 = vmatpush1.bf16.msra.mxu1 %v6078_v10  ;;  %v1525_v14 = vpop.f32.mrb[23].mxu0  ;;  %v2638_v36 = vld [vmem:[#allocation14 + $0x19d0] sm:$0xff]  ;;  %v7891_v17 = vsel %vm1726_vm7, %v6796_v13, %v1768_v34  ;;  %v2653_v10 = vld [vmem:[#allocation14 + $0x1a48] sm:$0xff]  ;;  %v2644_v13 = vld [vmem:[#allocation14 + $0x1a00] sm:$0xff] }
 0x31f   :  { %v6799_v48 = vadd.f32 %v1525_v14, %v7818_v57  ;;  %v7882_v44 = vpop.f32.mrb[23].mxu1  ;;  %v7885_v51 = vsel %vm1727_vm8, %v6797_v26, %v1769_v55  ;;  %5825 = vmatprep.subr.bf16.mxu0 %v5824_v19  ;;  %6081 = vmatprep.subr.bf16.mxu1 %v6080_v41  ;;  %v2645_v57 = vld [vmem:[#allocation14 + $0x1a08] sm:$0xff]  ;;  %v2647_v19 = vld [vmem:[#allocation14 + $0x1a18] sm:$0xff]  ;;  %v1755_v41 = vmul.f32 %v6801_v2, %v7664_v58  ;;  %v2652_v34 = vld [vmem:[#allocation14 + $0x1a40] sm:$0xff] }
 0x320   :  { %v1776_v6 = vmul.f32 %v6798_v28, %v7664_v58  ;;  %3132 = vmatprep.mubr.f32.mxu0 %v7885_v51  ;;  %3488 = vmatprep.mubr.f32.mxu1 %v7885_v51  ;;  %vm1734_vm9 = vcmp.ge.f32.partialorder %v6798_v28, 0.0  ;;  %v2655_v26 = vld [vmem:[#allocation14 + $0x1a58] sm:$0xff]  ;;  %v6086_v1 = vpack.c.bf16 %v2638_v36, %v2630_v8  ;;  %v2646_v55 = vld [vmem:[#allocation14 + $0x1a10] sm:$0xff]  ;;  %v2660_v36 = vld [vmem:[#allocation14 + $0x1a80] sm:$0xff] }
 0x321   :  { %vm1735_vm10 = vcmp.ge.f32.partialorder %v6799_v48, 0.0  ;;  %v1777_v4 = vmul.f32 %v6799_v48, %v7664_v58  ;;  %3133 = vmatmul.mubr.f32.gmra.mrb[28].mxu0 %v7891_v17  ;;  %3489 = vmatmul.mubr.f32.gmra.mrb[28].mxu1 %v7891_v17  ;;  %v2654_v14 = vld [vmem:[#allocation14 + $0x1a50] sm:$0xff]  ;;  %v2671_v8 = vld [vmem:[#allocation14 + $0x1ad8] sm:$0xff] }
 0x322   :  { %5827 = vmatpush1.bf16.msra.mxu0 %v5826_v27  ;;  %6083 = vmatpush1.bf16.msra.mxu1 %v6082_v5  ;;  %v7902_v30 = vsel %vm1734_vm9, %v6798_v28, %v1776_v6  ;;  %v5832_v27 = vpack.c.bf16 %v2653_v10, %v2645_v57  ;;  %v6088_v5 = vpack.c.bf16 %v2655_v26, %v2647_v19  ;;  %v2662_v57 = vld [vmem:[#allocation14 + $0x1a90] sm:$0xff]  ;;  %v2677_v19 = vld [vmem:[#allocation14 + $0x1b08] sm:$0xff] }
 0x323   :  { %v7897_v25 = vsel %vm1735_vm10, %v6799_v48, %v1777_v4  ;;  %5829 = vmatprep.subr.bf16.mxu0 %v5828_v63  ;;  %6085 = vmatprep.subr.bf16.mxu1 %v6084_v15  ;;  %v7907_v63 = vsel %vm1713_vm11, %v6801_v2, %v1755_v41  ;;  %v5834_v48 = vpack.c.bf16 %v2652_v34, %v2644_v13  ;;  %v2668_v4 = vld [vmem:[#allocation14 + $0x1ac0] sm:$0xff]  ;;  %v2670_v10 = vld [vmem:[#allocation14 + $0x1ad0] sm:$0xff]  ;;  %v2685_v26 = vld [vmem:[#allocation14 + $0x1b48] sm:$0xff] }
 0x324   :  { %3138 = vmatprep.mubr.f32.mxu0 %v7897_v25  ;;  %3494 = vmatprep.mubr.f32.mxu1 %v7897_v25  ;;  %v6090_v15 = vpack.c.bf16 %v2654_v14, %v2646_v55  ;;  %v5836_v28 = vpack.c.bf16 %v2669_v0, %v2661_v21  ;;  %v6092_v6 = vpack.c.bf16 %v2671_v8, %v2663_v56  ;;  %v2676_v13 = vld [vmem:[#allocation14 + $0x1b00] sm:$0xff]  ;;  %v2678_v21 = vld [vmem:[#allocation14 + $0x1b10] sm:$0xff]  ;;  %v2693_v56 = vld [vmem:[#allocation14 + $0x1b88] sm:$0xff] }
 0x325   :  { %3139 = vmatmul.mubr.f32.gmra.mrb[30].mxu0 %v7902_v30  ;;  %3495 = vmatmul.mubr.f32.gmra.mrb[30].mxu1 %v7902_v30  ;;  %v5838_v2 = vpack.c.bf16 %v2668_v4, %v2660_v36  ;;  %v6094_v41 = vpack.c.bf16 %v2670_v10, %v2662_v57  ;;  %v2684_v34 = vld [vmem:[#allocation14 + $0x1b40] sm:$0xff]  ;;  %v5840_v55 = vpack.c.bf16 %v2685_v26, %v2677_v19  ;;  %v2686_v0 = vld [vmem:[#allocation14 + $0x1b50] sm:$0xff]  ;;  %v2701_v8 = vld [vmem:[#allocation14 + $0x1bc8] sm:$0xff] }
 0x326   :  { %5831 = vmatpush1.bf16.msra.mxu0 %v5830_v24  ;;  %6087 = vmatpush1.bf16.msra.mxu1 %v6086_v1  ;;  %v2679_v24 = vld [vmem:[#allocation14 + $0x1b18] sm:$0xff]  ;;  %v6098_v43 = vpack.c.bf16 %v2686_v0, %v2678_v21  ;;  %v2694_v36 = vld [vmem:[#allocation14 + $0x1b90] sm:$0xff]  ;;  %v5844_v4 = vpack.c.bf16 %v2701_v8, %v2693_v56  ;;  %v2709_v57 = vld [vmem:[#allocation14 + $0x1c08] sm:$0xff] }
 0x327   :  { %3209 = vmatprep.mubr.f32.mxu0 %v7907_v63  ;;  %3565 = vmatprep.mubr.f32.mxu1 %v7907_v63  ;;  %v2687_v1 = vld [vmem:[#allocation14 + $0x1b58] sm:$0xff]  ;;  %v2717_v10 = vld [vmem:[#allocation14 + $0x1c48] sm:$0xff]  ;;  %v2718_v21 = vld [vmem:[#allocation14 + $0x1c50] sm:$0xff] }
 0x328   :  { %5833 = vmatprep.subr.bf16.mxu0 %v5832_v27  ;;  %6089 = vmatprep.subr.bf16.mxu1 %v6088_v5  ;;  %v6096_v14 = vpack.c.bf16 %v2687_v1, %v2679_v24  ;;  %v2703_v27 = vld [vmem:[#allocation14 + $0x1bd8] sm:$0xff]  ;;  %v5842_v5 = vpack.c.bf16 %v2684_v34, %v2676_v13  ;;  %v4918_v24 = vld [vmem:[#allocation4] ss:$0 sm:$0xff]  ;;  %v2716_v13 = vld [vmem:[#allocation14 + $0x1c40] sm:$0xff]  ;;  %v5848_v34 = vpack.c.bf16 %v2717_v10, %v2709_v57 }
 0x329   :  { %v2711_v19 = vld [vmem:[#allocation14 + $0x1c18] sm:$0xff]  ;;  %4341 = vperm.xlu1 %6986, %v4918_v24   ;;  %v2733_v0 = vld [vmem:[#allocation14 + $0x1cc8] sm:$0xff] }
 0x32a   :  { %5835 = vmatpush1.bf16.msra.mxu0 %v5834_v48  ;;  %6091 = vmatpush1.bf16.msra.mxu1 %v6090_v15  ;;  %v2692_v48 = vld [vmem:[#allocation14 + $0x1b80] sm:$0xff]  ;;  %v2719_v26 = vld [vmem:[#allocation14 + $0x1c58] sm:$0xff] }
 0x32b   :  { %5837 = vmatprep.subr.bf16.mxu0 %v5836_v28  ;;  %6093 = vmatprep.subr.bf16.mxu1 %v6092_v6  ;;  %v2700_v15 = vld [vmem:[#allocation14 + $0x1bc0] sm:$0xff]  ;;  %v6100_v28 = vpack.c.bf16 %v2703_v27, %v2695_v45  ;;  %v2702_v6 = vld [vmem:[#allocation14 + $0x1bd0] sm:$0xff]  ;;  %v2725_v45 = vld [vmem:[#allocation14 + $0x1c88] sm:$0xff] }
 0x32c   :  { %v5846_v1 = vpack.c.bf16 %v2700_v15, %v2692_v48  ;;  %v2727_v56 = vld [vmem:[#allocation14 + $0x1c98] sm:$0xff]  ;;  %v5852_v48 = vpack.c.bf16 %v2733_v0, %v2725_v45 }
 0x32d   :  { %v2735_v8 = vld [vmem:[#allocation14 + $0x1cd8] sm:$0xff] }
 0x32e   :  { %5839 = vmatpush1.bf16.msra.mxu0 %v5838_v2  ;;  %6095 = vmatpush1.bf16.msra.mxu1 %v6094_v41  ;;  %v6102_v2 = vpack.c.bf16 %v2702_v6, %v2694_v36  ;;  %v2708_v41 = vld [vmem:[#allocation14 + $0x1c00] sm:$0xff]  ;;  %v6108_v15 = vpack.c.bf16 %v2735_v8, %v2727_v56  ;;  %v2726_v36 = vld [vmem:[#allocation14 + $0x1c90] sm:$0xff]  ;;  %v2749_v6 = vld [vmem:[#allocation14 + $0x1d48] sm:$0xff] }
 0x32f   :  { %5841 = vmatprep.subr.bf16.mxu0 %v5840_v55  ;;  %6097 = vmatprep.subr.bf16.mxu1 %v6096_v14  ;;  %v6104_v55 = vpack.c.bf16 %v2719_v26, %v2711_v19  ;;  %v2710_v14 = vld [vmem:[#allocation14 + $0x1c10] sm:$0xff]  ;;  %v5850_v27 = vpack.c.bf16 %v2716_v13, %v2708_v41  ;;  %v2743_v57 = vld [vmem:[#allocation14 + $0x1d18] sm:$0xff] }
 0x330   :  { %v6106_v24 = vpack.c.bf16 %v2718_v21, %v2710_v14  ;;  %v2751_v10 = vld [vmem:[#allocation14 + $0x1d58] sm:$0xff]  ;;  %v2757_v14 = vld [vmem:[#allocation14 + $0x1d88] sm:$0xff] }
 0x331   :  { %v6112_v13 = vpack.c.bf16 %v2751_v10, %v2743_v57  ;;  %v2765_v21 = vld [vmem:[#allocation14 + $0x1dc8] sm:$0xff]  ;;  %v2759_v45 = vld [vmem:[#allocation14 + $0x1d98] sm:$0xff] }
 0x332   :  { %5843 = vmatpush1.bf16.msra.mxu0 %v5842_v5  ;;  %6099 = vmatpush1.bf16.msra.mxu1 %v6098_v43  ;;  %v2724_v5 = vld [vmem:[#allocation14 + $0x1c80] sm:$0xff]  ;;  %v2767_v0 = vld [vmem:[#allocation14 + $0x1dd8] sm:$0xff] }
 0x333   :  { %5845 = vmatprep.subr.bf16.mxu0 %v5844_v4  ;;  %6101 = vmatprep.subr.bf16.mxu1 %v6100_v28  ;;  %v2732_v43 = vld [vmem:[#allocation14 + $0x1cc0] sm:$0xff]  ;;  %v2734_v4 = vld [vmem:[#allocation14 + $0x1cd0] sm:$0xff]  ;;  %v2741_v28 = vld [vmem:[#allocation14 + $0x1d08] sm:$0xff] }
 0x334   :  { %v5854_v19 = vpack.c.bf16 %v2732_v43, %v2724_v5  ;;  %v6110_v26 = vpack.c.bf16 %v2734_v4, %v2726_v36  ;;  %v5856_v41 = vpack.c.bf16 %v2749_v6, %v2741_v28  ;;  %v5860_v5 = vpack.c.bf16 %v2765_v21, %v2757_v14  ;;  %v2773_v36 = vld [vmem:[#allocation14 + $0x1e08] sm:$0xff]  ;;  %v2775_v28 = vld [vmem:[#allocation14 + $0x1e18] sm:$0xff] }
 0x335   :  { %v6116_v43 = vpack.c.bf16 %v2767_v0, %v2759_v45  ;;  %v2781_v4 = vld [vmem:[#allocation14 + $0x1e48] sm:$0xff]  ;;  %v2783_v6 = vld [vmem:[#allocation14 + $0x1e58] sm:$0xff] }
 0x336   :  { %5847 = vmatpush1.bf16.msra.mxu0 %v5846_v1  ;;  %6103 = vmatpush1.bf16.msra.mxu1 %v6102_v2  ;;  %v2740_v1 = vld [vmem:[#allocation14 + $0x1d00] sm:$0xff]  ;;  %v2791_v14 = vld [vmem:[#allocation14 + $0x1e98] sm:$0xff] }
 0x337   :  { %5849 = vmatprep.subr.bf16.mxu0 %v5848_v34  ;;  %6105 = vmatprep.subr.bf16.mxu1 %v6104_v55  ;;  %v2748_v2 = vld [vmem:[#allocation14 + $0x1d40] sm:$0xff]  ;;  %v2742_v34 = vld [vmem:[#allocation14 + $0x1d10] sm:$0xff]  ;;  %v2799_v21 = vld [vmem:[#allocation14 + $0x1ed8] sm:$0xff] }
 0x338   :  { %v2750_v55 = vld [vmem:[#allocation14 + $0x1d50] sm:$0xff]  ;;  %v5858_v56 = vpack.c.bf16 %v2748_v2, %v2740_v1  ;;  %v5864_v1 = vpack.c.bf16 %v2781_v4, %v2773_v36  ;;  %v6120_v2 = vpack.c.bf16 %v2783_v6, %v2775_v28  ;;  %v2813_v36 = vld [vmem:[#allocation14 + $0x1f48] sm:$0xff]  ;;  %v2807_v4 = vld [vmem:[#allocation14 + $0x1f18] sm:$0xff] }
 0x339   :  { %v6114_v8 = vpack.c.bf16 %v2750_v55, %v2742_v34  ;;  %v2789_v34 = vld [vmem:[#allocation14 + $0x1e88] sm:$0xff]  ;;  %v2815_v28 = vld [vmem:[#allocation14 + $0x1f58] sm:$0xff] }
 0x33a   :  { %5851 = vmatpush1.bf16.msra.mxu0 %v5850_v27  ;;  %6107 = vmatpush1.bf16.msra.mxu1 %v6106_v24  ;;  %v2756_v27 = vld [vmem:[#allocation14 + $0x1d80] sm:$0xff]  ;;  %v2797_v55 = vld [vmem:[#allocation14 + $0x1ec8] sm:$0xff] }
 0x33b   :  { %5853 = vmatprep.subr.bf16.mxu0 %v5852_v48  ;;  %6109 = vmatprep.subr.bf16.mxu1 %v6108_v15  ;;  %v2764_v24 = vld [vmem:[#allocation14 + $0x1dc0] sm:$0xff]  ;;  %v2758_v48 = vld [vmem:[#allocation14 + $0x1d90] sm:$0xff] }
 0x33c   :  { %v2766_v15 = vld [vmem:[#allocation14 + $0x1dd0] sm:$0xff]  ;;  %v5862_v57 = vpack.c.bf16 %v2764_v24, %v2756_v27  ;;  %v5868_v27 = vpack.c.bf16 %v2797_v55, %v2789_v34  ;;  %v6124_v24 = vpack.c.bf16 %v2799_v21, %v2791_v14  ;;  %v2829_v55 = vld [vmem:[#allocation14 + $0x1fc8] sm:$0xff]  ;;  %v2823_v14 = vld [vmem:[#allocation14 + $0x1f98] sm:$0xff] }
 0x33d   :  { %v6118_v10 = vpack.c.bf16 %v2766_v15, %v2758_v48  ;;  %v2805_v48 = vld [vmem:[#allocation14 + $0x1f08] sm:$0xff]  ;;  %v8694_v15 = vsub.s32 6, %v7411_v42  ;;  %v2831_v21 = vld [vmem:[#allocation14 + $0x1fd8] sm:$0xff] }
 0x33e   :  { %5855 = vmatpush1.bf16.msra.mxu0 %v5854_v19  ;;  %6111 = vmatpush1.bf16.msra.mxu1 %v6110_v26  ;;  %v2772_v19 = vld [vmem:[#allocation14 + $0x1e00] sm:$0xff]  ;;  %v1859_v42 = vld [vmem:[#allocation14 + $0x178] sm:$0xff] }
 0x33f   :  { %5857 = vmatprep.subr.bf16.mxu0 %v5856_v41  ;;  %6113 = vmatprep.subr.bf16.mxu1 %v6112_v13  ;;  %v2780_v26 = vld [vmem:[#allocation14 + $0x1e40] sm:$0xff]  ;;  %v2774_v41 = vld [vmem:[#allocation14 + $0x1e10] sm:$0xff]  ;;  %v7915_v34 = vrot.slane %v7808_v20, %v8694_v15  ;;  %v1851_v15 = vld [vmem:[#allocation14 + $0x138] sm:$0xff] }
 0x340   :  { %v2782_v13 = vld [vmem:[#allocation14 + $0x1e50] sm:$0xff]  ;;  %v5866_v45 = vpack.c.bf16 %v2780_v26, %v2772_v19  ;;  %v2812_v19 = vld [vmem:[#allocation14 + $0x1f40] sm:$0xff]  ;;  %v5872_v26 = vpack.c.bf16 %v2813_v36, %v2805_v48  ;;  %v1817_v48 = vld [vmem:[#allocation14 + $0x28] sm:$0xff] }
 0x341   :  { %v6122_v0 = vpack.c.bf16 %v2782_v13, %v2774_v41  ;;  %v2814_v41 = vld [vmem:[#allocation14 + $0x1f50] sm:$0xff]  ;;  %v2821_v13 = vld [vmem:[#allocation14 + $0x1f88] sm:$0xff]  ;;  %v6800_v20 = vadd.f32 %v7821_v7, %v7915_v34  ;;  %v6802_v7 = vadd.f32 %v7830_v11, %v7915_v34 }
 0x342   :  { %5859 = vmatpush1.bf16.msra.mxu0 %v5858_v56  ;;  %6115 = vmatpush1.bf16.msra.mxu1 %v6114_v8  ;;  %v2788_v56 = vld [vmem:[#allocation14 + $0x1e80] sm:$0xff]  ;;  %v1825_v36 = vld [vmem:[#allocation14 + $0x68] sm:$0xff] }
 0x343   :  { %5861 = vmatprep.subr.bf16.mxu0 %v5860_v5  ;;  %6117 = vmatprep.subr.bf16.mxu1 %v6116_v43  ;;  %v2796_v8 = vld [vmem:[#allocation14 + $0x1ec0] sm:$0xff]  ;;  %v2790_v5 = vld [vmem:[#allocation14 + $0x1e90] sm:$0xff]  ;;  %vm1712_vm12 = vcmp.ge.f32.partialorder %v6800_v20, 0.0  ;;  %vm1720_vm14 = vcmp.ge.f32.partialorder %v6802_v7, 0.0 }
 0x344   :  { %v2798_v43 = vld [vmem:[#allocation14 + $0x1ed0] sm:$0xff]  ;;  %v5870_v6 = vpack.c.bf16 %v2796_v8, %v2788_v56  ;;  %v2820_v56 = vld [vmem:[#allocation14 + $0x1f80] sm:$0xff] }
 0x345   :  { %v2828_v8 = vld [vmem:[#allocation14 + $0x1fc0] sm:$0xff] }
 0x346   :  { %5863 = vmatpush1.bf16.msra.mxu0 %v5862_v57  ;;  %6119 = vmatpush1.bf16.msra.mxu1 %v6118_v10  ;;  %v6126_v57 = vpack.c.bf16 %v2798_v43, %v2790_v5  ;;  %v2804_v10 = vld [vmem:[#allocation14 + $0x1f00] sm:$0xff]  ;;  %v2822_v5 = vld [vmem:[#allocation14 + $0x1f90] sm:$0xff] }
 0x347   :  { %5865 = vmatprep.subr.bf16.mxu0 %v5864_v1  ;;  %6121 = vmatprep.subr.bf16.mxu1 %v6120_v2  ;;  %v6128_v1 = vpack.c.bf16 %v2815_v28, %v2807_v4  ;;  %v2806_v2 = vld [vmem:[#allocation14 + $0x1f10] sm:$0xff]  ;;  %v1819_v4 = vld [vmem:[#allocation14 + $0x38] sm:$0xff] }
 0x348   :  { %v2830_v43 = vld [vmem:[#allocation14 + $0x1fd0] sm:$0xff]  ;;  %v1827_v28 = vld [vmem:[#allocation14 + $0x78] sm:$0xff] }
 0x34a   :  { %5867 = vmatpush1.bf16.msra.mxu0 %v5866_v45  ;;  %6123 = vmatpush1.bf16.msra.mxu1 %v6122_v0  ;;  %v5874_v45 = vpack.c.bf16 %v2812_v19, %v2804_v10  ;;  %v6130_v0 = vpack.c.bf16 %v2814_v41, %v2806_v2  ;;  %v6134_v10 = vpack.c.bf16 %v2830_v43, %v2822_v5  ;;  %v1824_v2 = vld [vmem:[#allocation14 + $0x60] sm:$0xff]  ;;  %v1818_v41 = vld [vmem:[#allocation14 + $0x30] sm:$0xff] }
 0x34b   :  { %5869 = vmatprep.subr.bf16.mxu0 %v5868_v27  ;;  %6125 = vmatprep.subr.bf16.mxu1 %v6124_v24  ;;  %v5876_v27 = vpack.c.bf16 %v2829_v55, %v2821_v13  ;;  %v6132_v24 = vpack.c.bf16 %v2831_v21, %v2823_v14  ;;  %v6136_v19 = vpack.c.bf16 %v1825_v36, %v1817_v48  ;;  %v1826_v55 = vld [vmem:[#allocation14 + $0x70] sm:$0xff]  ;;  %v1833_v14 = vld [vmem:[#allocation14 + $0xa8] sm:$0xff] }
 0x34c   :  { %v1754_v13 = vmul.f32 %v6800_v20, %v7664_v58  ;;  %v1841_v21 = vld [vmem:[#allocation14 + $0xe8] sm:$0xff]  ;;  %v6394_v11 = vpack.c.bf16 %v1826_v55, %v1818_v41  ;;  %v1834_v43 = vld [vmem:[#allocation14 + $0xb0] sm:$0xff]  ;;  %v6400_v41 = vpack.c.bf16 %v1859_v42, %v1851_v15  ;;  %v1867_v15 = vld [vmem:[#allocation14 + $0x1b8] sm:$0xff] }
 0x34d   :  { %v6140_v5 = vpack.c.bf16 %v1841_v21, %v1833_v14  ;;  %v1842_v48 = vld [vmem:[#allocation14 + $0xf0] sm:$0xff]  ;;  %v1849_v36 = vld [vmem:[#allocation14 + $0x128] sm:$0xff] }
 0x34e   :  { %5871 = vmatpush1.bf16.msra.mxu0 %v5870_v6  ;;  %6127 = vmatpush1.bf16.msra.mxu1 %v6126_v57  ;;  %v6803_v6 = vadd.f32 %v7833_v62, %v7844_v9  ;;  %v5878_v57 = vpack.c.bf16 %v2828_v8, %v2820_v56  ;;  %v1843_v56 = vld [vmem:[#allocation14 + $0xf8] sm:$0xff]  ;;  %v1832_v8 = vld [vmem:[#allocation14 + $0xa0] sm:$0xff]  ;;  %v1858_v21 = vld [vmem:[#allocation14 + $0x170] sm:$0xff] }
 0x34f   :  { %5873 = vmatprep.subr.bf16.mxu0 %v5872_v26  ;;  %6129 = vmatprep.subr.bf16.mxu1 %v6128_v1  ;;  %v6392_v26 = vpack.c.bf16 %v1827_v28, %v1819_v4  ;;  %v1816_v1 = vld [vmem:[#allocation14 + $0x20] sm:$0xff]  ;;  %v7928_v4 = vsel %vm1712_vm12, %v6800_v20, %v1754_v13  ;;  %v6804_v28 = vadd.f32 %v7857_v49, %v7915_v34 }
 0x350   :  { %v1763_v62 = vmul.f32 %v6803_v6, %v7664_v58  ;;  %vm1721_vm13 = vcmp.ge.f32.partialorder %v6803_v6, 0.0  ;;  %v1848_v13 = vld [vmem:[#allocation14 + $0x120] sm:$0xff] }
 0x351   :  { %v1770_v55 = vmul.f32 %v6804_v28, %v7664_v58  ;;  %vm1728_vm1 = vcmp.ge.f32.partialorder %v6804_v28, 0.0 }
 0x352   :  { %5875 = vmatpush1.bf16.msra.mxu0 %v5874_v45  ;;  %6131 = vmatpush1.bf16.msra.mxu1 %v6130_v0  ;;  %v6805_v45 = vadd.f32 %v7860_v32, %v7844_v9  ;;  %v1835_v0 = vld [vmem:[#allocation14 + $0xb8] sm:$0xff]  ;;  %v1762_v32 = vmul.f32 %v6802_v7, %v7664_v58  ;;  %v7939_v20 = vsel %vm1721_vm13, %v6803_v6, %v1763_v62  ;;  %v1865_v62 = vld [vmem:[#allocation14 + $0x1a8] sm:$0xff] }
 0x353   :  { %5877 = vmatprep.subr.bf16.mxu0 %v5876_v27  ;;  %6133 = vmatprep.subr.bf16.mxu1 %v6132_v24  ;;  %v1840_v27 = vld [vmem:[#allocation14 + $0xe0] sm:$0xff]  ;;  %v6138_v24 = vpack.c.bf16 %v1824_v2, %v1816_v1  ;;  %v6398_v1 = vpack.c.bf16 %v1842_v48, %v1834_v43  ;;  %v6806_v6 = vadd.f32 %v7879_v22, %v7915_v34  ;;  %v1875_v22 = vld [vmem:[#allocation14 + $0x1f8] sm:$0xff]  ;;  %v1866_v43 = vld [vmem:[#allocation14 + $0x1b0] sm:$0xff] }
 0x354   :  { %vm1729_vm15 = vcmp.ge.f32.partialorder %v6805_v45, 0.0  ;;  %v6142_v49 = vpack.c.bf16 %v1840_v27, %v1832_v8  ;;  %v7947_v14 = vsel %vm1720_vm14, %v6802_v7, %v1762_v32  ;;  %v1864_v27 = vld [vmem:[#allocation14 + $0x1a0] sm:$0xff]  ;;  %v1874_v48 = vld [vmem:[#allocation14 + $0x1f0] sm:$0xff] }
 0x355   :  { %vm1736_vm3 = vcmp.ge.f32.partialorder %v6806_v6, 0.0 }
 0x356   :  { %5879 = vmatpush1.bf16.msra.mxu0 %v5878_v57  ;;  %6135 = vmatpush1.bf16.msra.mxu1 %v6134_v10  ;;  %v6396_v57 = vpack.c.bf16 %v1843_v56, %v1835_v0  ;;  %v1857_v10 = vld [vmem:[#allocation14 + $0x168] sm:$0xff] }
 0x357   :  { %6137 = vmatprep.subr.bf16.mxu0 %v6136_v19  ;;  %6393 = vmatprep.subr.bf16.mxu1 %v6392_v26  ;;  %v1771_v19 = vmul.f32 %v6805_v45, %v7664_v58  ;;  %v6807_v26 = vadd.f32 %v7882_v44, %v7844_v9  ;;  %v6144_v2 = vpack.c.bf16 %v1857_v10, %v1849_v36  ;;  %v1856_v9 = vld [vmem:[#allocation14 + $0x160] sm:$0xff]  ;;  %v1850_v44 = vld [vmem:[#allocation14 + $0x130] sm:$0xff]  ;;  %v1873_v0 = vld [vmem:[#allocation14 + $0x1e8] sm:$0xff] }
 0x358   :  { %v6146_v34 = vpack.c.bf16 %v1856_v9, %v1848_v13  ;;  %v6402_v7 = vpack.c.bf16 %v1858_v21, %v1850_v44  ;;  %v6148_v8 = vpack.c.bf16 %v1873_v0, %v1865_v62  ;;  %v1881_v36 = vld [vmem:[#allocation14 + $0x228] sm:$0xff]  ;;  %v1883_v10 = vld [vmem:[#allocation14 + $0x238] sm:$0xff]  ;;  %v1882_v13 = vld [vmem:[#allocation14 + $0x230] sm:$0xff] }
 0x359   :  { %3210 = vmatmul.mubr.f32.vlgmr.msra.gmra.mrb[24].mxu0 %v7928_v4  ;;  %3566 = vmatmul.mubr.f32.vlgmr.msra.gmra.mrb[24].mxu1 %v7928_v4  ;;  %v1779_v56 = vmul.f32 %v6807_v26, %v7664_v58  ;;  %v7953_v42 = vsel %vm1729_vm15, %v6805_v45, %v1771_v19  ;;  %vm1737_vm2 = vcmp.ge.f32.partialorder %v6807_v26, 0.0  ;;  %v6404_v45 = vpack.c.bf16 %v1875_v22, %v1867_v15  ;;  %v1890_v9 = vld [vmem:[#allocation14 + $0x270] sm:$0xff]  ;;  %v1897_v44 = vld [vmem:[#allocation14 + $0x2a8] sm:$0xff]  ;;  %v1899_v21 = vld [vmem:[#allocation14 + $0x2b8] sm:$0xff] }
 0x35a   :  { %3215 = vmatprep.mubr.f32.mxu0 %v7939_v20  ;;  %3571 = vmatprep.mubr.f32.mxu1 %v7939_v20  ;;  %v6406_v19 = vpack.c.bf16 %v1874_v48, %v1866_v43  ;;  %v1907_v62 = vld [vmem:[#allocation14 + $0x2f8] sm:$0xff]  ;;  %v6410_v0 = vpack.c.bf16 %v1890_v9, %v1882_v13  ;;  %v1904_v15 = vld [vmem:[#allocation14 + $0x2e0] sm:$0xff] }
 0x35b   :  { %6139 = vmatpush1.bf16.msra.mxu0 %v6138_v24  ;;  %6395 = vmatpush1.bf16.msra.mxu1 %v6394_v11  ;;  %v1872_v24 = vld [vmem:[#allocation14 + $0x1e0] sm:$0xff]  ;;  %v1778_v11 = vmul.f32 %v6806_v6, %v7664_v58  ;;  %v7964_v32 = vsel %vm1737_vm2, %v6807_v26, %v1779_v56  ;;  %v1891_v58 = vld [vmem:[#allocation14 + $0x278] sm:$0xff] }
 0x35c   :  { %6141 = vmatprep.subr.bf16.mxu0 %v6140_v5  ;;  %6397 = vmatprep.subr.bf16.mxu1 %v6396_v57  ;;  %v7959_v5 = vsel %vm1728_vm1, %v6804_v28, %v1770_v55  ;;  %v1889_v57 = vld [vmem:[#allocation14 + $0x268] sm:$0xff]  ;;  %v6150_v28 = vpack.c.bf16 %v1872_v24, %v1864_v27  ;;  %v6408_v26 = vpack.c.bf16 %v1891_v58, %v1883_v10  ;;  %v1896_v56 = vld [vmem:[#allocation14 + $0x2a0] sm:$0xff]  ;;  %v1914_v58 = vld [vmem:[#allocation14 + $0x330] sm:$0xff] }
 0x35d   :  { %3216 = vmatmul.mubr.f32.gmra.mrb[26].mxu0 %v7947_v14  ;;  %3572 = vmatmul.mubr.f32.gmra.mrb[26].mxu1 %v7947_v14  ;;  %v1905_v55 = vld [vmem:[#allocation14 + $0x2e8] sm:$0xff]  ;;  %v6158_v43 = vpack.c.bf16 %v1904_v15, %v1896_v56  ;;  %v1912_v48 = vld [vmem:[#allocation14 + $0x320] sm:$0xff]  ;;  %v1947_v15 = vld [vmem:[#allocation14 + $0x438] sm:$0xff] }
 0x35e   :  { %3221 = vmatprep.mubr.f32.mxu0 %v7953_v42  ;;  %3577 = vmatprep.mubr.f32.mxu1 %v7953_v42  ;;  %v6156_v22 = vpack.c.bf16 %v1905_v55, %v1897_v44  ;;  %v1913_v27 = vld [vmem:[#allocation14 + $0x328] sm:$0xff]  ;;  %v1928_v9 = vld [vmem:[#allocation14 + $0x3a0] sm:$0xff] }
 0x35f   :  { %6143 = vmatpush1.bf16.msra.mxu0 %v6142_v49  ;;  %6399 = vmatpush1.bf16.msra.mxu1 %v6398_v1  ;;  %v1880_v49 = vld [vmem:[#allocation14 + $0x220] sm:$0xff]  ;;  %v1921_v24 = vld [vmem:[#allocation14 + $0x368] sm:$0xff] }
 0x360   :  { %6145 = vmatprep.subr.bf16.mxu0 %v6144_v2  ;;  %6401 = vmatprep.subr.bf16.mxu1 %v6400_v41  ;;  %v1888_v1 = vld [vmem:[#allocation14 + $0x260] sm:$0xff]  ;;  %v7968_v2 = vsel %vm1736_vm3, %v6806_v6, %v1778_v11  ;;  %v6152_v41 = vpack.c.bf16 %v1889_v57, %v1881_v36  ;;  %v1915_v11 = vld [vmem:[#allocation14 + $0x338] sm:$0xff]  ;;  %v6160_v57 = vpack.c.bf16 %v1921_v24, %v1913_v27  ;;  %v1953_v56 = vld [vmem:[#allocation14 + $0x468] sm:$0xff] }
 0x361   :  { %3222 = vmatmul.mubr.f32.gmra.mrb[28].mxu0 %v7959_v5  ;;  %3578 = vmatmul.mubr.f32.gmra.mrb[28].mxu1 %v7959_v5  ;;  %v6154_v6 = vpack.c.bf16 %v1888_v1, %v1880_v49  ;;  %v1920_v36 = vld [vmem:[#allocation14 + $0x360] sm:$0xff]  ;;  %v1937_v49 = vld [vmem:[#allocation14 + $0x3e8] sm:$0xff]  ;;  %v1931_v1 = vld [vmem:[#allocation14 + $0x3b8] sm:$0xff] }
 0x362   :  { %3227 = vmatprep.mubr.f32.mxu0 %v7964_v32  ;;  %3583 = vmatprep.mubr.f32.mxu1 %v7964_v32  ;;  %v1936_v44 = vld [vmem:[#allocation14 + $0x3e0] sm:$0xff] }
 0x363   :  { %6147 = vmatpush1.bf16.msra.mxu0 %v6146_v34  ;;  %6403 = vmatpush1.bf16.msra.mxu1 %v6402_v7  ;;  %v6412_v34 = vpack.c.bf16 %v1907_v62, %v1899_v21  ;;  %v1898_v7 = vld [vmem:[#allocation14 + $0x2b0] sm:$0xff]  ;;  %v1952_v27 = vld [vmem:[#allocation14 + $0x460] sm:$0xff] }
 0x364   :  { %6149 = vmatprep.subr.bf16.mxu0 %v6148_v8  ;;  %6405 = vmatprep.subr.bf16.mxu1 %v6404_v45  ;;  %v1906_v8 = vld [vmem:[#allocation14 + $0x2f0] sm:$0xff]  ;;  %v1923_v45 = vld [vmem:[#allocation14 + $0x378] sm:$0xff] }
 0x365   :  { %3228 = vmatmul.mubr.f32.gmra.mrb[30].mxu0 %v7968_v2  ;;  %3584 = vmatmul.mubr.f32.gmra.mrb[30].mxu1 %v7968_v2  ;;  %v6416_v10 = vpack.c.bf16 %v1923_v45, %v1915_v11  ;;  %v1930_v62 = vld [vmem:[#allocation14 + $0x3b0] sm:$0xff] }
 0x366   :  { %3654 = vmatprep.mubr.f32.mxu0 %v7675_v16  ;;  %4010 = vmatprep.mubr.f32.mxu1 %v7675_v16  ;;  %v6414_v16 = vpack.c.bf16 %v1906_v8, %v1898_v7  ;;  %v1944_v8 = vld [vmem:[#allocation14 + $0x420] sm:$0xff]  ;;  %v1946_v45 = vld [vmem:[#allocation14 + $0x430] sm:$0xff] }
 0x367   :  { %6151 = vmatpush1.bf16.msra.mxu0 %v6150_v28  ;;  %6407 = vmatpush1.bf16.msra.mxu1 %v6406_v19  ;;  %v1922_v28 = vld [vmem:[#allocation14 + $0x370] sm:$0xff]  ;;  %v1929_v19 = vld [vmem:[#allocation14 + $0x3a8] sm:$0xff] }
 0x368   :  { %6153 = vmatprep.subr.bf16.mxu0 %v6152_v41  ;;  %6409 = vmatprep.subr.bf16.mxu1 %v6408_v26  ;;  %v1939_v41 = vld [vmem:[#allocation14 + $0x3f8] sm:$0xff]  ;;  %v6162_v26 = vpack.c.bf16 %v1920_v36, %v1912_v48  ;;  %v6418_v13 = vpack.c.bf16 %v1922_v28, %v1914_v58  ;;  %v6164_v55 = vpack.c.bf16 %v1937_v49, %v1929_v19  ;;  %v1969_v48 = vld [vmem:[#allocation14 + $0x4e8] sm:$0xff]  ;;  %v1960_v28 = vld [vmem:[#allocation14 + $0x4a0] sm:$0xff] }
 0x369   :  { %v6420_v21 = vpack.c.bf16 %v1939_v41, %v1931_v1  ;;  %v1963_v36 = vld [vmem:[#allocation14 + $0x4b8] sm:$0xff]  ;;  %v1968_v19 = vld [vmem:[#allocation14 + $0x4e0] sm:$0xff]  ;;  %v1962_v41 = vld [vmem:[#allocation14 + $0x4b0] sm:$0xff] }
 0x36b   :  { %6155 = vmatpush1.bf16.msra.mxu0 %v6154_v6  ;;  %6411 = vmatpush1.bf16.msra.mxu1 %v6410_v0  ;;  %v1938_v6 = vld [vmem:[#allocation14 + $0x3f0] sm:$0xff]  ;;  %v1945_v0 = vld [vmem:[#allocation14 + $0x428] sm:$0xff] }
 0x36c   :  { %6157 = vmatprep.subr.bf16.mxu0 %v6156_v22  ;;  %6413 = vmatprep.subr.bf16.mxu1 %v6412_v34  ;;  %v1955_v22 = vld [vmem:[#allocation14 + $0x478] sm:$0xff]  ;;  %v6166_v34 = vpack.c.bf16 %v1936_v44, %v1928_v9  ;;  %v6422_v7 = vpack.c.bf16 %v1938_v6, %v1930_v62  ;;  %v6168_v24 = vpack.c.bf16 %v1953_v56, %v1945_v0  ;;  %v1985_v9 = vld [vmem:[#allocation14 + $0x568] sm:$0xff]  ;;  %v1976_v6 = vld [vmem:[#allocation14 + $0x520] sm:$0xff] }
 0x36d   :  { %v6424_v11 = vpack.c.bf16 %v1955_v22, %v1947_v15  ;;  %v1979_v44 = vld [vmem:[#allocation14 + $0x538] sm:$0xff]  ;;  %v1984_v0 = vld [vmem:[#allocation14 + $0x560] sm:$0xff]  ;;  %v1978_v22 = vld [vmem:[#allocation14 + $0x530] sm:$0xff] }
 0x36f   :  { %6159 = vmatpush1.bf16.msra.mxu0 %v6158_v43  ;;  %6415 = vmatpush1.bf16.msra.mxu1 %v6414_v16  ;;  %v1954_v43 = vld [vmem:[#allocation14 + $0x470] sm:$0xff]  ;;  %v1961_v16 = vld [vmem:[#allocation14 + $0x4a8] sm:$0xff] }
 0x370   :  { %6161 = vmatprep.subr.bf16.mxu0 %v6160_v57  ;;  %6417 = vmatprep.subr.bf16.mxu1 %v6416_v10  ;;  %v1971_v57 = vld [vmem:[#allocation14 + $0x4f8] sm:$0xff]  ;;  %v6170_v10 = vpack.c.bf16 %v1952_v27, %v1944_v8  ;;  %v6426_v58 = vpack.c.bf16 %v1954_v43, %v1946_v45  ;;  %v6172_v49 = vpack.c.bf16 %v1969_v48, %v1961_v16  ;;  %v2001_v8 = vld [vmem:[#allocation14 + $0x5e8] sm:$0xff]  ;;  %v1992_v43 = vld [vmem:[#allocation14 + $0x5a0] sm:$0xff] }
 0x371   :  { %v6428_v1 = vpack.c.bf16 %v1971_v57, %v1963_v36  ;;  %v1995_v27 = vld [vmem:[#allocation14 + $0x5b8] sm:$0xff]  ;;  %v2000_v16 = vld [vmem:[#allocation14 + $0x5e0] sm:$0xff]  ;;  %v1994_v57 = vld [vmem:[#allocation14 + $0x5b0] sm:$0xff] }
 0x373   :  { %6163 = vmatpush1.bf16.msra.mxu0 %v6162_v26  ;;  %6419 = vmatpush1.bf16.msra.mxu1 %v6418_v13  ;;  %v1970_v26 = vld [vmem:[#allocation14 + $0x4f0] sm:$0xff]  ;;  %v1977_v13 = vld [vmem:[#allocation14 + $0x528] sm:$0xff] }
 0x374   :  { %6165 = vmatprep.subr.bf16.mxu0 %v6164_v55  ;;  %6421 = vmatprep.subr.bf16.mxu1 %v6420_v21  ;;  %v1987_v55 = vld [vmem:[#allocation14 + $0x578] sm:$0xff]  ;;  %v6174_v21 = vpack.c.bf16 %v1968_v19, %v1960_v28  ;;  %v6430_v62 = vpack.c.bf16 %v1970_v26, %v1962_v41  ;;  %v6176_v56 = vpack.c.bf16 %v1985_v9, %v1977_v13  ;;  %v2017_v28 = vld [vmem:[#allocation14 + $0x668] sm:$0xff]  ;;  %v2008_v26 = vld [vmem:[#allocation14 + $0x620] sm:$0xff] }
 0x375   :  { %v6432_v15 = vpack.c.bf16 %v1987_v55, %v1979_v44  ;;  %v2011_v19 = vld [vmem:[#allocation14 + $0x638] sm:$0xff]  ;;  %v2016_v13 = vld [vmem:[#allocation14 + $0x660] sm:$0xff]  ;;  %v2010_v55 = vld [vmem:[#allocation14 + $0x630] sm:$0xff] }
 0x377   :  { %6167 = vmatpush1.bf16.msra.mxu0 %v6166_v34  ;;  %6423 = vmatpush1.bf16.msra.mxu1 %v6422_v7  ;;  %v1986_v34 = vld [vmem:[#allocation14 + $0x570] sm:$0xff]  ;;  %v1993_v7 = vld [vmem:[#allocation14 + $0x5a8] sm:$0xff] }
 0x378   :  { %6169 = vmatprep.subr.bf16.mxu0 %v6168_v24  ;;  %6425 = vmatprep.subr.bf16.mxu1 %v6424_v11  ;;  %v2003_v24 = vld [vmem:[#allocation14 + $0x5f8] sm:$0xff]  ;;  %v6178_v11 = vpack.c.bf16 %v1984_v0, %v1976_v6  ;;  %v6434_v45 = vpack.c.bf16 %v1986_v34, %v1978_v22  ;;  %v6180_v48 = vpack.c.bf16 %v2001_v8, %v1993_v7  ;;  %v2033_v6 = vld [vmem:[#allocation14 + $0x6e8] sm:$0xff]  ;;  %v2024_v34 = vld [vmem:[#allocation14 + $0x6a0] sm:$0xff] }
 0x379   :  { %v6436_v36 = vpack.c.bf16 %v2003_v24, %v1995_v27  ;;  %v2027_v0 = vld [vmem:[#allocation14 + $0x6b8] sm:$0xff]  ;;  %v2032_v7 = vld [vmem:[#allocation14 + $0x6e0] sm:$0xff]  ;;  %v2026_v24 = vld [vmem:[#allocation14 + $0x6b0] sm:$0xff] }
 0x37b   :  { %6171 = vmatpush1.bf16.msra.mxu0 %v6170_v10  ;;  %6427 = vmatpush1.bf16.msra.mxu1 %v6426_v58  ;;  %v2002_v10 = vld [vmem:[#allocation14 + $0x5f0] sm:$0xff]  ;;  %v2009_v58 = vld [vmem:[#allocation14 + $0x628] sm:$0xff] }
 0x37c   :  { %6173 = vmatprep.subr.bf16.mxu0 %v6172_v49  ;;  %6429 = vmatprep.subr.bf16.mxu1 %v6428_v1  ;;  %v2019_v49 = vld [vmem:[#allocation14 + $0x678] sm:$0xff]  ;;  %v6182_v1 = vpack.c.bf16 %v2000_v16, %v1992_v43  ;;  %v6438_v41 = vpack.c.bf16 %v2002_v10, %v1994_v57  ;;  %v6184_v9 = vpack.c.bf16 %v2017_v28, %v2009_v58  ;;  %v2049_v43 = vld [vmem:[#allocation14 + $0x768] sm:$0xff]  ;;  %v2040_v10 = vld [vmem:[#allocation14 + $0x720] sm:$0xff] }
 0x37d   :  { %v6440_v44 = vpack.c.bf16 %v2019_v49, %v2011_v19  ;;  %v2043_v16 = vld [vmem:[#allocation14 + $0x738] sm:$0xff]  ;;  %v2048_v58 = vld [vmem:[#allocation14 + $0x760] sm:$0xff]  ;;  %v2042_v49 = vld [vmem:[#allocation14 + $0x730] sm:$0xff] }
 0x37f   :  { %6175 = vmatpush1.bf16.msra.mxu0 %v6174_v21  ;;  %6431 = vmatpush1.bf16.msra.mxu1 %v6430_v62  ;;  %v2018_v21 = vld [vmem:[#allocation14 + $0x670] sm:$0xff]  ;;  %v2025_v62 = vld [vmem:[#allocation14 + $0x6a8] sm:$0xff] }
 0x380   :  { %6177 = vmatprep.subr.bf16.mxu0 %v6176_v56  ;;  %6433 = vmatprep.subr.bf16.mxu1 %v6432_v15  ;;  %v2035_v56 = vld [vmem:[#allocation14 + $0x6f8] sm:$0xff]  ;;  %v6186_v15 = vpack.c.bf16 %v2016_v13, %v2008_v26  ;;  %v6442_v22 = vpack.c.bf16 %v2018_v21, %v2010_v55  ;;  %v6188_v8 = vpack.c.bf16 %v2033_v6, %v2025_v62  ;;  %v2065_v26 = vld [vmem:[#allocation14 + $0x7e8] sm:$0xff]  ;;  %v2056_v21 = vld [vmem:[#allocation14 + $0x7a0] sm:$0xff] }
 0x381   :  { %v6444_v27 = vpack.c.bf16 %v2035_v56, %v2027_v0  ;;  %v2059_v13 = vld [vmem:[#allocation14 + $0x7b8] sm:$0xff]  ;;  %v2064_v62 = vld [vmem:[#allocation14 + $0x7e0] sm:$0xff]  ;;  %v2058_v56 = vld [vmem:[#allocation14 + $0x7b0] sm:$0xff] }
 0x383   :  { %6179 = vmatpush1.bf16.msra.mxu0 %v6178_v11  ;;  %6435 = vmatpush1.bf16.msra.mxu1 %v6434_v45  ;;  %v2034_v11 = vld [vmem:[#allocation14 + $0x6f0] sm:$0xff]  ;;  %v2041_v45 = vld [vmem:[#allocation14 + $0x728] sm:$0xff] }
 0x384   :  { %6181 = vmatprep.subr.bf16.mxu0 %v6180_v48  ;;  %6437 = vmatprep.subr.bf16.mxu1 %v6436_v36  ;;  %v2051_v48 = vld [vmem:[#allocation14 + $0x778] sm:$0xff]  ;;  %v6190_v36 = vpack.c.bf16 %v2032_v7, %v2024_v34  ;;  %v6446_v57 = vpack.c.bf16 %v2034_v11, %v2026_v24  ;;  %v6192_v28 = vpack.c.bf16 %v2049_v43, %v2041_v45  ;;  %v2081_v34 = vld [vmem:[#allocation14 + $0x868] sm:$0xff]  ;;  %v2072_v43 = vld [vmem:[#allocation14 + $0x820] sm:$0xff] }
 0x385   :  { %v6448_v19 = vpack.c.bf16 %v2051_v48, %v2043_v16  ;;  %v2075_v7 = vld [vmem:[#allocation14 + $0x838] sm:$0xff]  ;;  %v2080_v16 = vld [vmem:[#allocation14 + $0x860] sm:$0xff]  ;;  %v2074_v48 = vld [vmem:[#allocation14 + $0x830] sm:$0xff] }
 0x387   :  { %6183 = vmatpush1.bf16.msra.mxu0 %v6182_v1  ;;  %6439 = vmatpush1.bf16.msra.mxu1 %v6438_v41  ;;  %v2050_v1 = vld [vmem:[#allocation14 + $0x770] sm:$0xff]  ;;  %v2057_v41 = vld [vmem:[#allocation14 + $0x7a8] sm:$0xff] }
 0x388   :  { %6185 = vmatprep.subr.bf16.mxu0 %v6184_v9  ;;  %6441 = vmatprep.subr.bf16.mxu1 %v6440_v44  ;;  %v2067_v9 = vld [vmem:[#allocation14 + $0x7f8] sm:$0xff]  ;;  %v6194_v44 = vpack.c.bf16 %v2048_v58, %v2040_v10  ;;  %v6450_v55 = vpack.c.bf16 %v2050_v1, %v2042_v49  ;;  %v6196_v6 = vpack.c.bf16 %v2065_v26, %v2057_v41  ;;  %v2097_v10 = vld [vmem:[#allocation14 + $0x8e8] sm:$0xff]  ;;  %v2088_v1 = vld [vmem:[#allocation14 + $0x8a0] sm:$0xff] }
 0x389   :  { %v6452_v0 = vpack.c.bf16 %v2067_v9, %v2059_v13  ;;  %v2091_v58 = vld [vmem:[#allocation14 + $0x8b8] sm:$0xff]  ;;  %v2096_v41 = vld [vmem:[#allocation14 + $0x8e0] sm:$0xff]  ;;  %v2090_v9 = vld [vmem:[#allocation14 + $0x8b0] sm:$0xff] }
 0x38b   :  { %6187 = vmatpush1.bf16.msra.mxu0 %v6186_v15  ;;  %6443 = vmatpush1.bf16.msra.mxu1 %v6442_v22  ;;  %v2066_v15 = vld [vmem:[#allocation14 + $0x7f0] sm:$0xff]  ;;  %v2073_v22 = vld [vmem:[#allocation14 + $0x828] sm:$0xff] }
 0x38c   :  { %6189 = vmatprep.subr.bf16.mxu0 %v6188_v8  ;;  %6445 = vmatprep.subr.bf16.mxu1 %v6444_v27  ;;  %v2083_v8 = vld [vmem:[#allocation14 + $0x878] sm:$0xff]  ;;  %v6198_v27 = vpack.c.bf16 %v2064_v62, %v2056_v21  ;;  %v6454_v24 = vpack.c.bf16 %v2066_v15, %v2058_v56  ;;  %v6200_v11 = vpack.c.bf16 %v2081_v34, %v2073_v22  ;;  %v2113_v21 = vld [vmem:[#allocation14 + $0x968] sm:$0xff]  ;;  %v2104_v15 = vld [vmem:[#allocation14 + $0x920] sm:$0xff] }
 0x38d   :  { %v6456_v45 = vpack.c.bf16 %v2083_v8, %v2075_v7  ;;  %v2107_v62 = vld [vmem:[#allocation14 + $0x938] sm:$0xff]  ;;  %v2112_v22 = vld [vmem:[#allocation14 + $0x960] sm:$0xff]  ;;  %v2106_v8 = vld [vmem:[#allocation14 + $0x930] sm:$0xff] }
 0x38f   :  { %6191 = vmatpush1.bf16.msra.mxu0 %v6190_v36  ;;  %6447 = vmatpush1.bf16.msra.mxu1 %v6446_v57  ;;  %v2082_v36 = vld [vmem:[#allocation14 + $0x870] sm:$0xff]  ;;  %v2089_v57 = vld [vmem:[#allocation14 + $0x8a8] sm:$0xff] }
 0x390   :  { %6193 = vmatprep.subr.bf16.mxu0 %v6192_v28  ;;  %6449 = vmatprep.subr.bf16.mxu1 %v6448_v19  ;;  %v2099_v28 = vld [vmem:[#allocation14 + $0x8f8] sm:$0xff]  ;;  %v6202_v19 = vpack.c.bf16 %v2080_v16, %v2072_v43  ;;  %v6458_v49 = vpack.c.bf16 %v2082_v36, %v2074_v48  ;;  %v6204_v26 = vpack.c.bf16 %v2097_v10, %v2089_v57  ;;  %v2120_v16 = vld [vmem:[#allocation14 + $0x9a0] sm:$0xff]  ;;  %v2122_v10 = vld [vmem:[#allocation14 + $0x9b0] sm:$0xff] }
 0x391   :  { %v6460_v13 = vpack.c.bf16 %v2099_v28, %v2091_v58  ;;  %v2128_v48 = vld [vmem:[#allocation14 + $0x9e0] sm:$0xff]  ;;  %v2130_v58 = vld [vmem:[#allocation14 + $0x9f0] sm:$0xff]  ;;  %v2145_v28 = vld [vmem:[#allocation14 + $0xa68] sm:$0xff] }
 0x393   :  { %6195 = vmatpush1.bf16.msra.mxu0 %v6194_v44  ;;  %6451 = vmatpush1.bf16.msra.mxu1 %v6450_v55  ;;  %v2098_v44 = vld [vmem:[#allocation14 + $0x8f0] sm:$0xff]  ;;  %v2105_v55 = vld [vmem:[#allocation14 + $0x928] sm:$0xff] }
 0x394   :  { %6197 = vmatprep.subr.bf16.mxu0 %v6196_v6  ;;  %6453 = vmatprep.subr.bf16.mxu1 %v6452_v0  ;;  %v2115_v6 = vld [vmem:[#allocation14 + $0x978] sm:$0xff]  ;;  %v6206_v0 = vpack.c.bf16 %v2096_v41, %v2088_v1  ;;  %v6462_v56 = vpack.c.bf16 %v2098_v44, %v2090_v9  ;;  %v6208_v34 = vpack.c.bf16 %v2113_v21, %v2105_v55  ;;  %v2136_v41 = vld [vmem:[#allocation14 + $0xa20] sm:$0xff]  ;;  %v2146_v55 = vld [vmem:[#allocation14 + $0xa70] sm:$0xff] }
 0x395   :  { %v6464_v7 = vpack.c.bf16 %v2115_v6, %v2107_v62  ;;  %v6470_v1 = vpack.c.bf16 %v2130_v58, %v2122_v10  ;;  %v2161_v21 = vld [vmem:[#allocation14 + $0xae8] sm:$0xff]  ;;  %v2155_v62 = vld [vmem:[#allocation14 + $0xab8] sm:$0xff] }
 0x396   :  { %v2163_v6 = vld [vmem:[#allocation14 + $0xaf8] sm:$0xff]  ;;  %v2193_v10 = vld [vmem:[#allocation14 + $0xbe8] sm:$0xff] }
 0x397   :  { %6199 = vmatpush1.bf16.msra.mxu0 %v6198_v27  ;;  %6455 = vmatpush1.bf16.msra.mxu1 %v6454_v24  ;;  %v2114_v27 = vld [vmem:[#allocation14 + $0x970] sm:$0xff]  ;;  %v2129_v24 = vld [vmem:[#allocation14 + $0x9e8] sm:$0xff]  ;;  %v2187_v58 = vld [vmem:[#allocation14 + $0xbb8] sm:$0xff] }
 0x398   :  { %6201 = vmatprep.subr.bf16.mxu0 %v6200_v11  ;;  %6457 = vmatprep.subr.bf16.mxu1 %v6456_v45  ;;  %v2123_v11 = vld [vmem:[#allocation14 + $0x9b8] sm:$0xff]  ;;  %v6466_v43 = vpack.c.bf16 %v2114_v27, %v2106_v8  ;;  %v2162_v8 = vld [vmem:[#allocation14 + $0xaf0] sm:$0xff]  ;;  %v2169_v27 = vld [vmem:[#allocation14 + $0xb28] sm:$0xff] }
 0x399   :  { %v2131_v45 = vld [vmem:[#allocation14 + $0x9f8] sm:$0xff] }
 0x39a   :  { %3655 = vmatmul.mubr.f32.vlgmr.msra.gmra.mrb[32].mxu0 %v7678_v18  ;;  %4011 = vmatmul.mubr.f32.vlgmr.msra.gmra.mrb[32].mxu1 %v7678_v18  ;;  %v2121_v18 = vld [vmem:[#allocation14 + $0x9a8] sm:$0xff]  ;;  %v6468_v57 = vpack.c.bf16 %v2131_v45, %v2123_v11 }
 0x39b   :  { %3660 = vmatprep.mubr.f32.mxu0 %v7699_v37  ;;  %6203 = vmatpush1.bf16.msra.mxu0 %v6202_v19  ;;  %v6212_v36 = vpack.c.bf16 %v2129_v24, %v2121_v18  ;;  %v2139_v19 = vld [vmem:[#allocation14 + $0xa38] sm:$0xff] }
 0x39c   :  { %4016 = vmatprep.mubr.f32.mxu1 %v7699_v37  ;;  %6459 = vmatpush1.bf16.msra.mxu1 %v6458_v49  ;;  %v6210_v37 = vpack.c.bf16 %v2112_v22, %v2104_v15  ;;  %v2147_v49 = vld [vmem:[#allocation14 + $0xa78] sm:$0xff]  ;;  %v2152_v15 = vld [vmem:[#allocation14 + $0xaa0] sm:$0xff] }
 0x39d   :  { %6205 = vmatprep.subr.bf16.mxu0 %v6204_v26  ;;  %6461 = vmatprep.subr.bf16.mxu1 %v6460_v13  ;;  %v2144_v26 = vld [vmem:[#allocation14 + $0xa60] sm:$0xff]  ;;  %v2138_v13 = vld [vmem:[#allocation14 + $0xa30] sm:$0xff]  ;;  %v6472_v44 = vpack.c.bf16 %v2147_v49, %v2139_v19  ;;  %v2171_v18 = vld [vmem:[#allocation14 + $0xb38] sm:$0xff] }
 0x39e   :  { %3661 = vmatmul.mubr.f32.gmra.mrb[34].mxu0 %v7705_v53  ;;  %4017 = vmatmul.mubr.f32.gmra.mrb[34].mxu1 %v7705_v53  ;;  %v2137_v53 = vld [vmem:[#allocation14 + $0xa28] sm:$0xff]  ;;  %v2160_v22 = vld [vmem:[#allocation14 + $0xae0] sm:$0xff]  ;;  %v2179_v24 = vld [vmem:[#allocation14 + $0xb78] sm:$0xff] }
 0x39f   :  { %3666 = vmatprep.mubr.f32.mxu0 %v7720_v12  ;;  %6207 = vmatpush1.bf16.msra.mxu0 %v6206_v0  ;;  %v6216_v9 = vpack.c.bf16 %v2145_v28, %v2137_v53  ;;  %v6474_v0 = vpack.c.bf16 %v2146_v55, %v2138_v13  ;;  %v6222_v11 = vpack.c.bf16 %v2160_v22, %v2152_v15  ;;  %v2195_v53 = vld [vmem:[#allocation14 + $0xbf8] sm:$0xff]  ;;  %v2194_v13 = vld [vmem:[#allocation14 + $0xbf0] sm:$0xff] }
 0x3a0   :  { %4022 = vmatprep.mubr.f32.mxu1 %v7720_v12  ;;  %6463 = vmatpush1.bf16.msra.mxu1 %v6462_v56  ;;  %v6214_v12 = vpack.c.bf16 %v2128_v48, %v2120_v16  ;;  %v2170_v16 = vld [vmem:[#allocation14 + $0xb30] sm:$0xff]  ;;  %v6480_v48 = vpack.c.bf16 %v2179_v24, %v2171_v18  ;;  %v2203_v55 = vld [vmem:[#allocation14 + $0xc38] sm:$0xff] }
 0x3a1   :  { %6209 = vmatprep.subr.bf16.mxu0 %v6208_v34  ;;  %6465 = vmatprep.subr.bf16.mxu1 %v6464_v7  ;;  %v2154_v34 = vld [vmem:[#allocation14 + $0xab0] sm:$0xff]  ;;  %v6476_v7 = vpack.c.bf16 %v2163_v6, %v2155_v62 }
 0x3a2   :  { %3667 = vmatmul.mubr.f32.gmra.mrb[36].mxu0 %v7726_v47  ;;  %4023 = vmatmul.mubr.f32.gmra.mrb[36].mxu1 %v7726_v47  ;;  %v2153_v47 = vld [vmem:[#allocation14 + $0xaa8] sm:$0xff]  ;;  %v6478_v45 = vpack.c.bf16 %v2162_v8, %v2154_v34  ;;  %v2210_v22 = vld [vmem:[#allocation14 + $0xc70] sm:$0xff]  ;;  %v2219_v8 = vld [vmem:[#allocation14 + $0xcb8] sm:$0xff] }
 0x3a3   :  { %3672 = vmatprep.mubr.f32.mxu0 %v7732_v54  ;;  %6211 = vmatpush1.bf16.msra.mxu0 %v6210_v37  ;;  %v6220_v56 = vpack.c.bf16 %v2161_v21, %v2153_v47  ;;  %v2211_v47 = vld [vmem:[#allocation14 + $0xc78] sm:$0xff]  ;;  %v2217_v34 = vld [vmem:[#allocation14 + $0xca8] sm:$0xff] }
 0x3a4   :  { %4028 = vmatprep.mubr.f32.mxu1 %v7732_v54  ;;  %6467 = vmatpush1.bf16.msra.mxu1 %v6466_v43  ;;  %v6218_v54 = vpack.c.bf16 %v2144_v26, %v2136_v41  ;;  %v2176_v43 = vld [vmem:[#allocation14 + $0xb60] sm:$0xff]  ;;  %v2186_v41 = vld [vmem:[#allocation14 + $0xbb0] sm:$0xff]  ;;  %v6484_v26 = vpack.c.bf16 %v2195_v53, %v2187_v58  ;;  %v6488_v15 = vpack.c.bf16 %v2211_v47, %v2203_v55 }
 0x3a5   :  { %6213 = vmatprep.subr.bf16.mxu0 %v6212_v36  ;;  %6469 = vmatprep.subr.bf16.mxu1 %v6468_v57  ;;  %v2178_v36 = vld [vmem:[#allocation14 + $0xb70] sm:$0xff]  ;;  %v2185_v57 = vld [vmem:[#allocation14 + $0xba8] sm:$0xff]  ;;  %v6486_v62 = vpack.c.bf16 %v2194_v13, %v2186_v41  ;;  %v2251_v13 = vld [vmem:[#allocation14 + $0xdb8] sm:$0xff] }
 0x3a6   :  { %3673 = vmatmul.mubr.f32.gmra.mrb[38].mxu0 %v7737_v59  ;;  %4029 = vmatmul.mubr.f32.gmra.mrb[38].mxu1 %v7737_v59  ;;  %v2177_v59 = vld [vmem:[#allocation14 + $0xb68] sm:$0xff]  ;;  %v6482_v19 = vpack.c.bf16 %v2178_v36, %v2170_v16  ;;  %v6228_v49 = vpack.c.bf16 %v2193_v10, %v2185_v57  ;;  %v2235_v36 = vld [vmem:[#allocation14 + $0xd38] sm:$0xff] }
 0x3a7   :  { %6215 = vmatpush1.bf16.msra.mxu0 %v6214_v12  ;;  %3743 = vmatprep.mubr.f32.mxu0 %v7742_v35  ;;  %v6224_v37 = vpack.c.bf16 %v2177_v59, %v2169_v27  ;;  %v2184_v12 = vld [vmem:[#allocation14 + $0xba0] sm:$0xff]  ;;  %v2227_v27 = vld [vmem:[#allocation14 + $0xcf8] sm:$0xff]  ;;  %v2233_v16 = vld [vmem:[#allocation14 + $0xd28] sm:$0xff] }
 0x3a8   :  { %6471 = vmatpush1.bf16.msra.mxu1 %v6470_v1  ;;  %4099 = vmatprep.mubr.f32.mxu1 %v7742_v35  ;;  %v2168_v35 = vld [vmem:[#allocation14 + $0xb20] sm:$0xff]  ;;  %v2243_v57 = vld [vmem:[#allocation14 + $0xd78] sm:$0xff]  ;;  %v2249_v41 = vld [vmem:[#allocation14 + $0xda8] sm:$0xff] }
 0x3a9   :  { %6217 = vmatprep.subr.bf16.mxu0 %v6216_v9  ;;  %6473 = vmatprep.subr.bf16.mxu1 %v6472_v44  ;;  %v6226_v28 = vpack.c.bf16 %v2176_v43, %v2168_v35  ;;  %v2192_v1 = vld [vmem:[#allocation14 + $0xbe0] sm:$0xff]  ;;  %v2201_v9 = vld [vmem:[#allocation14 + $0xc28] sm:$0xff]  ;;  %v6492_v35 = vpack.c.bf16 %v2227_v27, %v2219_v8  ;;  %v2226_v43 = vld [vmem:[#allocation14 + $0xcf0] sm:$0xff] }
 0x3aa   :  { %v2209_v44 = vld [vmem:[#allocation14 + $0xc68] sm:$0xff]  ;;  %v6230_v21 = vpack.c.bf16 %v2192_v1, %v2184_v12  ;;  %v6496_v12 = vpack.c.bf16 %v2243_v57, %v2235_v36  ;;  %v2242_v1 = vld [vmem:[#allocation14 + $0xd70] sm:$0xff] }
 0x3ab   :  { %6219 = vmatpush1.bf16.msra.mxu0 %v6218_v54  ;;  %v6232_v6 = vpack.c.bf16 %v2209_v44, %v2201_v9  ;;  %v2200_v54 = vld [vmem:[#allocation14 + $0xc20] sm:$0xff]  ;;  %v2259_v9 = vld [vmem:[#allocation14 + $0xdf8] sm:$0xff] }
 0x3ac   :  { %6475 = vmatpush1.bf16.msra.mxu1 %v6474_v0  ;;  %6221 = vmatprep.subr.bf16.mxu0 %v6220_v56  ;;  %v2208_v0 = vld [vmem:[#allocation14 + $0xc60] sm:$0xff]  ;;  %v2202_v56 = vld [vmem:[#allocation14 + $0xc30] sm:$0xff] }
 0x3ad   :  { %6477 = vmatprep.subr.bf16.mxu1 %v6476_v7  ;;  %v2225_v7 = vld [vmem:[#allocation14 + $0xce8] sm:$0xff]  ;;  %v6234_v59 = vpack.c.bf16 %v2208_v0, %v2200_v54  ;;  %v6490_v18 = vpack.c.bf16 %v2210_v22, %v2202_v56  ;;  %v6500_v54 = vpack.c.bf16 %v2259_v9, %v2251_v13  ;;  %v2258_v0 = vld [vmem:[#allocation14 + $0xdf0] sm:$0xff]  ;;  %v2267_v22 = vld [vmem:[#allocation14 + $0xe38] sm:$0xff] }
 0x3ae   :  { %v6236_v24 = vpack.c.bf16 %v2225_v7, %v2217_v34  ;;  %v2265_v56 = vld [vmem:[#allocation14 + $0xe28] sm:$0xff]  ;;  %v2275_v34 = vld [vmem:[#allocation14 + $0xe78] sm:$0xff] }
 0x3af   :  { %6223 = vmatpush1.bf16.msra.mxu0 %v6222_v11  ;;  %v2216_v11 = vld [vmem:[#allocation14 + $0xca0] sm:$0xff] }
 0x3b0   :  { %6479 = vmatpush1.bf16.msra.mxu1 %v6478_v45  ;;  %6225 = vmatprep.subr.bf16.mxu0 %v6224_v37  ;;  %v2224_v45 = vld [vmem:[#allocation14 + $0xce0] sm:$0xff]  ;;  %v2218_v37 = vld [vmem:[#allocation14 + $0xcb0] sm:$0xff] }
 0x3b1   :  { %6481 = vmatprep.subr.bf16.mxu1 %v6480_v48  ;;  %v2241_v48 = vld [vmem:[#allocation14 + $0xd68] sm:$0xff]  ;;  %v6238_v10 = vpack.c.bf16 %v2224_v45, %v2216_v11  ;;  %v6494_v58 = vpack.c.bf16 %v2226_v43, %v2218_v37  ;;  %v6504_v11 = vpack.c.bf16 %v2275_v34, %v2267_v22  ;;  %v2274_v45 = vld [vmem:[#allocation14 + $0xe70] sm:$0xff]  ;;  %v2283_v43 = vld [vmem:[#allocation14 + $0xeb8] sm:$0xff] }
 0x3b2   :  { %v6240_v53 = vpack.c.bf16 %v2241_v48, %v2233_v16  ;;  %v2281_v37 = vld [vmem:[#allocation14 + $0xea8] sm:$0xff]  ;;  %v2291_v16 = vld [vmem:[#allocation14 + $0xef8] sm:$0xff] }
 0x3b3   :  { %6227 = vmatpush1.bf16.msra.mxu0 %v6226_v28  ;;  %v2232_v28 = vld [vmem:[#allocation14 + $0xd20] sm:$0xff] }
 0x3b4   :  { %6483 = vmatpush1.bf16.msra.mxu1 %v6482_v19  ;;  %6229 = vmatprep.subr.bf16.mxu0 %v6228_v49  ;;  %v2240_v19 = vld [vmem:[#allocation14 + $0xd60] sm:$0xff]  ;;  %v2234_v49 = vld [vmem:[#allocation14 + $0xd30] sm:$0xff] }
 0x3b5   :  { %6485 = vmatprep.subr.bf16.mxu1 %v6484_v26  ;;  %v2257_v26 = vld [vmem:[#allocation14 + $0xde8] sm:$0xff]  ;;  %v6242_v44 = vpack.c.bf16 %v2240_v19, %v2232_v28  ;;  %v6498_v55 = vpack.c.bf16 %v2242_v1, %v2234_v49  ;;  %v6508_v28 = vpack.c.bf16 %v2291_v16, %v2283_v43  ;;  %v2290_v19 = vld [vmem:[#allocation14 + $0xef0] sm:$0xff]  ;;  %v2299_v1 = vld [vmem:[#allocation14 + $0xf38] sm:$0xff] }
 0x3b6   :  { %v6244_v47 = vpack.c.bf16 %v2257_v26, %v2249_v41  ;;  %v2297_v49 = vld [vmem:[#allocation14 + $0xf28] sm:$0xff]  ;;  %v2307_v41 = vld [vmem:[#allocation14 + $0xf78] sm:$0xff] }
 0x3b7   :  { %6231 = vmatpush1.bf16.msra.mxu0 %v6230_v21  ;;  %v2248_v21 = vld [vmem:[#allocation14 + $0xda0] sm:$0xff] }
 0x3b8   :  { %6487 = vmatpush1.bf16.msra.mxu1 %v6486_v62  ;;  %6233 = vmatprep.subr.bf16.mxu0 %v6232_v6  ;;  %v2256_v62 = vld [vmem:[#allocation14 + $0xde0] sm:$0xff]  ;;  %v2250_v6 = vld [vmem:[#allocation14 + $0xdb0] sm:$0xff] }
 0x3b9   :  { %6489 = vmatprep.subr.bf16.mxu1 %v6488_v15  ;;  %v2273_v15 = vld [vmem:[#allocation14 + $0xe68] sm:$0xff]  ;;  %v6246_v7 = vpack.c.bf16 %v2256_v62, %v2248_v21  ;;  %v6502_v8 = vpack.c.bf16 %v2258_v0, %v2250_v6  ;;  %v6512_v21 = vpack.c.bf16 %v2307_v41, %v2299_v1  ;;  %v2306_v62 = vld [vmem:[#allocation14 + $0xf70] sm:$0xff]  ;;  %v2315_v0 = vld [vmem:[#allocation14 + $0xfb8] sm:$0xff] }
 0x3ba   :  { %v6248_v27 = vpack.c.bf16 %v2273_v15, %v2265_v56  ;;  %v2313_v6 = vld [vmem:[#allocation14 + $0xfa8] sm:$0xff]  ;;  %v2323_v56 = vld [vmem:[#allocation14 + $0xff8] sm:$0xff] }
 0x3bb   :  { %6235 = vmatpush1.bf16.msra.mxu0 %v6234_v59  ;;  %v2264_v59 = vld [vmem:[#allocation14 + $0xe20] sm:$0xff] }
 0x3bc   :  { %6491 = vmatpush1.bf16.msra.mxu1 %v6490_v18  ;;  %6237 = vmatprep.subr.bf16.mxu0 %v6236_v24  ;;  %v2272_v18 = vld [vmem:[#allocation14 + $0xe60] sm:$0xff]  ;;  %v2266_v24 = vld [vmem:[#allocation14 + $0xe30] sm:$0xff] }
 0x3bd   :  { %6493 = vmatprep.subr.bf16.mxu1 %v6492_v35  ;;  %v2289_v35 = vld [vmem:[#allocation14 + $0xee8] sm:$0xff]  ;;  %v6250_v48 = vpack.c.bf16 %v2272_v18, %v2264_v59  ;;  %v6506_v36 = vpack.c.bf16 %v2274_v45, %v2266_v24  ;;  %v6516_v59 = vpack.c.bf16 %v2323_v56, %v2315_v0  ;;  %v2322_v18 = vld [vmem:[#allocation14 + $0xff0] sm:$0xff]  ;;  %v2331_v45 = vld [vmem:[#allocation14 + $0x1038] sm:$0xff] }
 0x3be   :  { %v6252_v57 = vpack.c.bf16 %v2289_v35, %v2281_v37  ;;  %v2329_v24 = vld [vmem:[#allocation14 + $0x1028] sm:$0xff]  ;;  %v2339_v37 = vld [vmem:[#allocation14 + $0x1078] sm:$0xff] }
 0x3bf   :  { %6239 = vmatpush1.bf16.msra.mxu0 %v6238_v10  ;;  %v2280_v10 = vld [vmem:[#allocation14 + $0xea0] sm:$0xff] }
 0x3c0   :  { %6495 = vmatpush1.bf16.msra.mxu1 %v6494_v58  ;;  %6241 = vmatprep.subr.bf16.mxu0 %v6240_v53  ;;  %v2288_v58 = vld [vmem:[#allocation14 + $0xee0] sm:$0xff]  ;;  %v2282_v53 = vld [vmem:[#allocation14 + $0xeb0] sm:$0xff] }
 0x3c1   :  { %6497 = vmatprep.subr.bf16.mxu1 %v6496_v12  ;;  %v2305_v12 = vld [vmem:[#allocation14 + $0xf68] sm:$0xff]  ;;  %v6254_v26 = vpack.c.bf16 %v2288_v58, %v2280_v10  ;;  %v6510_v13 = vpack.c.bf16 %v2290_v19, %v2282_v53  ;;  %v2330_v10 = vld [vmem:[#allocation14 + $0x1030] sm:$0xff]  ;;  %v2347_v19 = vld [vmem:[#allocation14 + $0x10b8] sm:$0xff] }
 0x3c2   :  { %v6256_v9 = vpack.c.bf16 %v2305_v12, %v2297_v49  ;;  %v2338_v58 = vld [vmem:[#allocation14 + $0x1070] sm:$0xff]  ;;  %v2345_v53 = vld [vmem:[#allocation14 + $0x10a8] sm:$0xff]  ;;  %v2355_v49 = vld [vmem:[#allocation14 + $0x10f8] sm:$0xff] }
 0x3c3   :  { %6243 = vmatpush1.bf16.msra.mxu0 %v6242_v44  ;;  %v2296_v44 = vld [vmem:[#allocation14 + $0xf20] sm:$0xff]  ;;  %v6522_v1 = vpack.c.bf16 %v2338_v58, %v2330_v10 }
 0x3c4   :  { %6499 = vmatpush1.bf16.msra.mxu1 %v6498_v55  ;;  %6245 = vmatprep.subr.bf16.mxu0 %v6244_v47  ;;  %v2304_v55 = vld [vmem:[#allocation14 + $0xf60] sm:$0xff]  ;;  %v2298_v47 = vld [vmem:[#allocation14 + $0xf30] sm:$0xff] }
 0x3c5   :  { %6501 = vmatprep.subr.bf16.mxu1 %v6500_v54  ;;  %v2321_v54 = vld [vmem:[#allocation14 + $0xfe8] sm:$0xff]  ;;  %v6258_v15 = vpack.c.bf16 %v2304_v55, %v2296_v44  ;;  %v6514_v22 = vpack.c.bf16 %v2306_v62, %v2298_v47  ;;  %v6524_v44 = vpack.c.bf16 %v2355_v49, %v2347_v19  ;;  %v2354_v55 = vld [vmem:[#allocation14 + $0x10f0] sm:$0xff]  ;;  %v2363_v62 = vld [vmem:[#allocation14 + $0x1138] sm:$0xff] }
 0x3c6   :  { %v6260_v34 = vpack.c.bf16 %v2321_v54, %v2313_v6  ;;  %v2361_v47 = vld [vmem:[#allocation14 + $0x1128] sm:$0xff]  ;;  %v2371_v6 = vld [vmem:[#allocation14 + $0x1178] sm:$0xff]  ;;  %v2394_v19 = vld [vmem:[#allocation14 + $0x1230] sm:$0xff] }
 0x3c7   :  { %6247 = vmatpush1.bf16.msra.mxu0 %v6246_v7  ;;  %v2312_v7 = vld [vmem:[#allocation14 + $0xfa0] sm:$0xff] }
 0x3c8   :  { %6503 = vmatpush1.bf16.msra.mxu1 %v6502_v8  ;;  %6249 = vmatprep.subr.bf16.mxu0 %v6248_v27  ;;  %v2320_v8 = vld [vmem:[#allocation14 + $0xfe0] sm:$0xff]  ;;  %v2314_v27 = vld [vmem:[#allocation14 + $0xfb0] sm:$0xff] }
 0x3c9   :  { %6505 = vmatprep.subr.bf16.mxu1 %v6504_v11  ;;  %v2337_v11 = vld [vmem:[#allocation14 + $0x1068] sm:$0xff]  ;;  %v6262_v35 = vpack.c.bf16 %v2320_v8, %v2312_v7  ;;  %v6518_v43 = vpack.c.bf16 %v2322_v18, %v2314_v27  ;;  %v6528_v7 = vpack.c.bf16 %v2371_v6, %v2363_v62  ;;  %v2418_v62 = vld [vmem:[#allocation14 + $0x12f0] sm:$0xff] }
 0x3ca   :  { %v6264_v16 = vpack.c.bf16 %v2337_v11, %v2329_v24  ;;  %v2377_v8 = vld [vmem:[#allocation14 + $0x11a8] sm:$0xff] }
 0x3cb   :  { %6251 = vmatpush1.bf16.msra.mxu0 %v6250_v48  ;;  %v6520_v48 = vpack.c.bf16 %v2339_v37, %v2331_v45  ;;  %v2385_v27 = vld [vmem:[#allocation14 + $0x11e8] sm:$0xff]  ;;  %v2376_v45 = vld [vmem:[#allocation14 + $0x11a0] sm:$0xff] }
 0x3cc   :  { %6507 = vmatpush1.bf16.msra.mxu1 %v6506_v36  ;;  %6253 = vmatprep.subr.bf16.mxu0 %v6252_v57  ;;  %v2328_v36 = vld [vmem:[#allocation14 + $0x1020] sm:$0xff]  ;;  %v6276_v11 = vpack.c.bf16 %v2385_v27, %v2377_v8  ;;  %v2425_v6 = vld [vmem:[#allocation14 + $0x1328] sm:$0xff]  ;;  %v2434_v8 = vld [vmem:[#allocation14 + $0x1370] sm:$0xff] }
 0x3cd   :  { %6509 = vmatprep.subr.bf16.mxu1 %v6508_v28  ;;  %v2336_v57 = vld [vmem:[#allocation14 + $0x1060] sm:$0xff]  ;;  %v2353_v28 = vld [vmem:[#allocation14 + $0x10e8] sm:$0xff] }
 0x3ce   :  { %v6266_v12 = vpack.c.bf16 %v2336_v57, %v2328_v36  ;;  %v6268_v41 = vpack.c.bf16 %v2353_v28, %v2345_v53  ;;  %v2384_v37 = vld [vmem:[#allocation14 + $0x11e0] sm:$0xff]  ;;  %v2403_v36 = vld [vmem:[#allocation14 + $0x1278] sm:$0xff]  ;;  %v2441_v27 = vld [vmem:[#allocation14 + $0x13a8] sm:$0xff] }
 0x3cf   :  { %6255 = vmatpush1.bf16.msra.mxu0 %v6254_v26  ;;  %v2344_v26 = vld [vmem:[#allocation14 + $0x10a0] sm:$0xff]  ;;  %v6278_v57 = vpack.c.bf16 %v2384_v37, %v2376_v45 }
 0x3d0   :  { %6511 = vmatpush1.bf16.msra.mxu1 %v6510_v13  ;;  %6257 = vmatprep.subr.bf16.mxu0 %v6256_v9  ;;  %v2352_v13 = vld [vmem:[#allocation14 + $0x10e0] sm:$0xff]  ;;  %v2346_v9 = vld [vmem:[#allocation14 + $0x10b0] sm:$0xff] }
 0x3d1   :  { %6513 = vmatprep.subr.bf16.mxu1 %v6512_v21  ;;  %v2369_v21 = vld [vmem:[#allocation14 + $0x1168] sm:$0xff]  ;;  %v6270_v54 = vpack.c.bf16 %v2352_v13, %v2344_v26  ;;  %v6526_v0 = vpack.c.bf16 %v2354_v55, %v2346_v9  ;;  %v2392_v53 = vld [vmem:[#allocation14 + $0x1220] sm:$0xff] }
 0x3d2   :  { %v6272_v56 = vpack.c.bf16 %v2369_v21, %v2361_v47  ;;  %v2400_v28 = vld [vmem:[#allocation14 + $0x1260] sm:$0xff]  ;;  %v2410_v47 = vld [vmem:[#allocation14 + $0x12b0] sm:$0xff] }
 0x3d3   :  { %6259 = vmatpush1.bf16.msra.mxu0 %v6258_v15  ;;  %v2360_v15 = vld [vmem:[#allocation14 + $0x1120] sm:$0xff]  ;;  %v6282_v26 = vpack.c.bf16 %v2400_v28, %v2392_v53 }
 0x3d4   :  { %6515 = vmatpush1.bf16.msra.mxu1 %v6514_v22  ;;  %6261 = vmatprep.subr.bf16.mxu0 %v6260_v34  ;;  %v2368_v22 = vld [vmem:[#allocation14 + $0x1160] sm:$0xff]  ;;  %v2362_v34 = vld [vmem:[#allocation14 + $0x1130] sm:$0xff] }
 0x3d5   :  { %6517 = vmatprep.subr.bf16.mxu1 %v6516_v59  ;;  %v2387_v59 = vld [vmem:[#allocation14 + $0x11f8] sm:$0xff]  ;;  %v6274_v18 = vpack.c.bf16 %v2368_v22, %v2360_v15  ;;  %v2416_v55 = vld [vmem:[#allocation14 + $0x12e0] sm:$0xff] }
 0x3d6   :  { %v2424_v22 = vld [vmem:[#allocation14 + $0x1320] sm:$0xff] }
 0x3d7   :  { %6263 = vmatpush1.bf16.msra.mxu0 %v6262_v35  ;;  %v2378_v35 = vld [vmem:[#allocation14 + $0x11b0] sm:$0xff]  ;;  %v2440_v37 = vld [vmem:[#allocation14 + $0x13a0] sm:$0xff] }
 0x3d8   :  { %6519 = vmatpush1.bf16.msra.mxu1 %v6518_v43  ;;  %6265 = vmatprep.subr.bf16.mxu0 %v6264_v16  ;;  %v2393_v16 = vld [vmem:[#allocation14 + $0x1228] sm:$0xff]  ;;  %v2456_v28 = vld [vmem:[#allocation14 + $0x1420] sm:$0xff] }
 0x3d9   :  { %6521 = vmatprep.subr.bf16.mxu1 %v6520_v48  ;;  %v2401_v48 = vld [vmem:[#allocation14 + $0x1268] sm:$0xff] }
 0x3da   :  { %3744 = vmatmul.mubr.f32.vlgmr.msra.gmra.mrb[32].mxu0 %v7761_v3  ;;  %v6280_v58 = vpack.c.bf16 %v2401_v48, %v2393_v16  ;;  %v2450_v16 = vld [vmem:[#allocation14 + $0x13f0] sm:$0xff]  ;;  %v2457_v48 = vld [vmem:[#allocation14 + $0x1428] sm:$0xff] }
 0x3db   :  { %4100 = vmatmul.mubr.f32.vlgmr.msra.gmra.mrb[32].mxu1 %v7761_v3  ;;  %3749 = vmatprep.mubr.f32.mxu0 %v7772_v29  ;;  %v2370_v3 = vld [vmem:[#allocation14 + $0x1170] sm:$0xff] }
 0x3dc   :  { %6267 = vmatpush1.bf16.msra.mxu0 %v6266_v12  ;;  %4105 = vmatprep.mubr.f32.mxu1 %v7772_v29  ;;  %v2379_v29 = vld [vmem:[#allocation14 + $0x11b8] sm:$0xff]  ;;  %v6530_v24 = vpack.c.bf16 %v2370_v3, %v2362_v34  ;;  %v2409_v12 = vld [vmem:[#allocation14 + $0x12a8] sm:$0xff]  ;;  %v2432_v34 = vld [vmem:[#allocation14 + $0x1360] sm:$0xff] }
 0x3dd   :  { %6523 = vmatpush1.bf16.msra.mxu1 %v6522_v1  ;;  %6269 = vmatprep.subr.bf16.mxu0 %v6268_v41  ;;  %v6532_v43 = vpack.c.bf16 %v2387_v59, %v2379_v29  ;;  %v2417_v1 = vld [vmem:[#allocation14 + $0x12e8] sm:$0xff]  ;;  %v2419_v41 = vld [vmem:[#allocation14 + $0x12f8] sm:$0xff] }
 0x3de   :  { %3750 = vmatmul.mubr.f32.gmra.mrb[34].mxu0 %v7780_v61  ;;  %6525 = vmatprep.subr.bf16.mxu1 %v6524_v44  ;;  %v6284_v9 = vpack.c.bf16 %v2417_v1, %v2409_v12  ;;  %v2408_v44 = vld [vmem:[#allocation14 + $0x12a0] sm:$0xff]  ;;  %v2449_v29 = vld [vmem:[#allocation14 + $0x13e8] sm:$0xff]  ;;  %v2443_v59 = vld [vmem:[#allocation14 + $0x13b8] sm:$0xff] }
 0x3df   :  { %4106 = vmatmul.mubr.f32.gmra.mrb[34].mxu1 %v7780_v61  ;;  %3755 = vmatprep.mubr.f32.mxu0 %v7786_v39  ;;  %v2386_v61 = vld [vmem:[#allocation14 + $0x11f0] sm:$0xff]  ;;  %v6292_v45 = vpack.c.bf16 %v2449_v29, %v2441_v27  ;;  %v2473_v1 = vld [vmem:[#allocation14 + $0x14a8] sm:$0xff] }
 0x3e0   :  { %6271 = vmatpush1.bf16.msra.mxu0 %v6270_v54  ;;  %4111 = vmatprep.mubr.f32.mxu1 %v7786_v39  ;;  %v2395_v39 = vld [vmem:[#allocation14 + $0x1238] sm:$0xff]  ;;  %v6534_v10 = vpack.c.bf16 %v2386_v61, %v2378_v35  ;;  %v2448_v35 = vld [vmem:[#allocation14 + $0x13e0] sm:$0xff]  ;;  %v2466_v12 = vld [vmem:[#allocation14 + $0x1470] sm:$0xff] }
 0x3e1   :  { %6527 = vmatpush1.bf16.msra.mxu1 %v6526_v0  ;;  %6273 = vmatprep.subr.bf16.mxu0 %v6272_v56  ;;  %v6536_v49 = vpack.c.bf16 %v2403_v36, %v2395_v39  ;;  %v2427_v54 = vld [vmem:[#allocation14 + $0x1338] sm:$0xff]  ;;  %v6286_v56 = vpack.c.bf16 %v2416_v55, %v2408_v44  ;;  %v2465_v39 = vld [vmem:[#allocation14 + $0x1468] sm:$0xff]  ;;  %v2472_v55 = vld [vmem:[#allocation14 + $0x14a0] sm:$0xff] }
 0x3e2   :  { %3756 = vmatmul.mubr.f32.gmra.mrb[36].mxu0 %v7792_v60  ;;  %6529 = vmatprep.subr.bf16.mxu1 %v6528_v7  ;;  %v2435_v0 = vld [vmem:[#allocation14 + $0x1378] sm:$0xff]  ;;  %v2426_v7 = vld [vmem:[#allocation14 + $0x1330] sm:$0xff]  ;;  %v6296_v53 = vpack.c.bf16 %v2465_v39, %v2457_v48  ;;  %v2505_v29 = vld [vmem:[#allocation14 + $0x15a8] sm:$0xff] }
 0x3e3   :  { %4112 = vmatmul.mubr.f32.gmra.mrb[36].mxu1 %v7792_v60  ;;  %3761 = vmatprep.mubr.f32.mxu0 %v7797_v52  ;;  %v2402_v60 = vld [vmem:[#allocation14 + $0x1270] sm:$0xff]  ;;  %v6544_v3 = vpack.c.bf16 %v2435_v0, %v2427_v54  ;;  %v2459_v36 = vld [vmem:[#allocation14 + $0x1438] sm:$0xff]  ;;  %v2497_v54 = vld [vmem:[#allocation14 + $0x1568] sm:$0xff] }
 0x3e4   :  { %6275 = vmatpush1.bf16.msra.mxu0 %v6274_v18  ;;  %4117 = vmatprep.mubr.f32.mxu1 %v7797_v52  ;;  %v2411_v52 = vld [vmem:[#allocation14 + $0x12b8] sm:$0xff]  ;;  %v6538_v13 = vpack.c.bf16 %v2402_v60, %v2394_v19  ;;  %v2464_v19 = vld [vmem:[#allocation14 + $0x1460] sm:$0xff]  ;;  %v2498_v27 = vld [vmem:[#allocation14 + $0x1570] sm:$0xff] }
 0x3e5   :  { %6531 = vmatpush1.bf16.msra.mxu1 %v6530_v24  ;;  %6277 = vmatprep.subr.bf16.mxu0 %v6276_v11  ;;  %v6540_v21 = vpack.c.bf16 %v2419_v41, %v2411_v52  ;;  %v2451_v18 = vld [vmem:[#allocation14 + $0x13f8] sm:$0xff]  ;;  %v6290_v24 = vpack.c.bf16 %v2432_v34, %v2424_v22  ;;  %v6546_v11 = vpack.c.bf16 %v2434_v8, %v2426_v7  ;;  %v2481_v52 = vld [vmem:[#allocation14 + $0x14e8] sm:$0xff]  ;;  %v2488_v34 = vld [vmem:[#allocation14 + $0x1520] sm:$0xff] }
 0x3e6   :  { %3762 = vmatmul.mubr.f32.gmra.mrb[38].mxu0 %v7802_v31  ;;  %6533 = vmatprep.subr.bf16.mxu1 %v6532_v43  ;;  %v2442_v43 = vld [vmem:[#allocation14 + $0x13b0] sm:$0xff]  ;;  %v6548_v61 = vpack.c.bf16 %v2451_v18, %v2443_v59  ;;  %v2475_v41 = vld [vmem:[#allocation14 + $0x14b8] sm:$0xff]  ;;  %v6300_v44 = vpack.c.bf16 %v2481_v52, %v2473_v1  ;;  %v2496_v7 = vld [vmem:[#allocation14 + $0x1560] sm:$0xff] }
 0x3e7   :  { %4118 = vmatmul.mubr.f32.gmra.mrb[38].mxu1 %v7802_v31  ;;  %3832 = vmatprep.mubr.f32.mxu0 %v7836_v23  ;;  %v2433_v31 = vld [vmem:[#allocation14 + $0x1368] sm:$0xff]  ;;  %v2491_v0 = vld [vmem:[#allocation14 + $0x1538] sm:$0xff]  ;;  %v2514_v48 = vld [vmem:[#allocation14 + $0x15f0] sm:$0xff] }
 0x3e8   :  { %6279 = vmatpush1.bf16.msra.mxu0 %v6278_v57  ;;  %4188 = vmatprep.mubr.f32.mxu1 %v7836_v23  ;;  %v6542_v23 = vpack.c.bf16 %v2418_v62, %v2410_v47  ;;  %v6288_v15 = vpack.c.bf16 %v2433_v31, %v2425_v6  ;;  %v2467_v57 = vld [vmem:[#allocation14 + $0x1478] sm:$0xff]  ;;  %v2480_v47 = vld [vmem:[#allocation14 + $0x14e0] sm:$0xff]  ;;  %v2482_v6 = vld [vmem:[#allocation14 + $0x14f0] sm:$0xff] }
 0x3e9   :  { %6535 = vmatpush1.bf16.msra.mxu1 %v6534_v10  ;;  %6281 = vmatprep.subr.bf16.mxu0 %v6280_v58  ;;  %v6294_v10 = vpack.c.bf16 %v2448_v35, %v2440_v37  ;;  %v6550_v58 = vpack.c.bf16 %v2450_v16, %v2442_v43  ;;  %v6552_v60 = vpack.c.bf16 %v2467_v57, %v2459_v36  ;;  %v2489_v31 = vld [vmem:[#allocation14 + $0x1528] sm:$0xff]  ;;  %v2507_v18 = vld [vmem:[#allocation14 + $0x15b8] sm:$0xff]  ;;  %v2504_v35 = vld [vmem:[#allocation14 + $0x15a0] sm:$0xff] }
 0x3ea   :  { %6537 = vmatprep.subr.bf16.mxu1 %v6536_v49  ;;  %v2458_v49 = vld [vmem:[#allocation14 + $0x1430] sm:$0xff]  ;;  %v6304_v22 = vpack.c.bf16 %v2497_v54, %v2489_v31  ;;  %v2513_v59 = vld [vmem:[#allocation14 + $0x15e8] sm:$0xff]  ;;  %v2512_v43 = vld [vmem:[#allocation14 + $0x15e0] sm:$0xff] }
 0x3eb   :  { %v6308_v37 = vpack.c.bf16 %v2513_v59, %v2505_v29  ;;  %v2521_v39 = vld [vmem:[#allocation14 + $0x1628] sm:$0xff]  ;;  %v2523_v57 = vld [vmem:[#allocation14 + $0x1638] sm:$0xff]  ;;  %v2530_v1 = vld [vmem:[#allocation14 + $0x1670] sm:$0xff] }
 0x3ec   :  { %6283 = vmatpush1.bf16.msra.mxu0 %v6282_v26  ;;  %v2483_v26 = vld [vmem:[#allocation14 + $0x14f8] sm:$0xff]  ;;  %v2529_v36 = vld [vmem:[#allocation14 + $0x1668] sm:$0xff]  ;;  %v2546_v31 = vld [vmem:[#allocation14 + $0x16f0] sm:$0xff] }
 0x3ed   :  { %6539 = vmatpush1.bf16.msra.mxu1 %v6538_v13  ;;  %6285 = vmatprep.subr.bf16.mxu0 %v6284_v9  ;;  %v6298_v13 = vpack.c.bf16 %v2464_v19, %v2456_v28  ;;  %v6554_v9 = vpack.c.bf16 %v2466_v12, %v2458_v49  ;;  %v6556_v62 = vpack.c.bf16 %v2483_v26, %v2475_v41  ;;  %v2520_v19 = vld [vmem:[#allocation14 + $0x1620] sm:$0xff]  ;;  %v2537_v52 = vld [vmem:[#allocation14 + $0x16a8] sm:$0xff]  ;;  %v2539_v26 = vld [vmem:[#allocation14 + $0x16b8] sm:$0xff] }
 0x3ee   :  { %6541 = vmatprep.subr.bf16.mxu1 %v6540_v21  ;;  %v2474_v21 = vld [vmem:[#allocation14 + $0x14b0] sm:$0xff]  ;;  %v6312_v28 = vpack.c.bf16 %v2529_v36, %v2521_v39  ;;  %v2528_v49 = vld [vmem:[#allocation14 + $0x1660] sm:$0xff]  ;;  %v2545_v41 = vld [vmem:[#allocation14 + $0x16e8] sm:$0xff] }
 0x3ef   :  { %v2553_v54 = vld [vmem:[#allocation14 + $0x1728] sm:$0xff]  ;;  %v2562_v29 = vld [vmem:[#allocation14 + $0x1770] sm:$0xff] }
 0x3f0   :  { %6287 = vmatpush1.bf16.msra.mxu0 %v6286_v56  ;;  %v2499_v56 = vld [vmem:[#allocation14 + $0x1578] sm:$0xff]  ;;  %v2569_v59 = vld [vmem:[#allocation14 + $0x17a8] sm:$0xff]  ;;  %v2578_v39 = vld [vmem:[#allocation14 + $0x17f0] sm:$0xff] }
 0x3f1   :  { %6543 = vmatpush1.bf16.msra.mxu1 %v6542_v23  ;;  %6289 = vmatprep.subr.bf16.mxu0 %v6288_v15  ;;  %v6302_v23 = vpack.c.bf16 %v2480_v47, %v2472_v55  ;;  %v6558_v15 = vpack.c.bf16 %v2482_v6, %v2474_v21  ;;  %v6560_v8 = vpack.c.bf16 %v2499_v56, %v2491_v0  ;;  %v2536_v47 = vld [vmem:[#allocation14 + $0x16a0] sm:$0xff]  ;;  %v2561_v0 = vld [vmem:[#allocation14 + $0x1768] sm:$0xff]  ;;  %v2555_v56 = vld [vmem:[#allocation14 + $0x1738] sm:$0xff] }
 0x3f2   :  { %6545 = vmatprep.subr.bf16.mxu1 %v6544_v3  ;;  %v2490_v3 = vld [vmem:[#allocation14 + $0x1530] sm:$0xff]  ;;  %v6316_v55 = vpack.c.bf16 %v2545_v41, %v2537_v52  ;;  %v2544_v21 = vld [vmem:[#allocation14 + $0x16e0] sm:$0xff]  ;;  %v2585_v36 = vld [vmem:[#allocation14 + $0x1828] sm:$0xff] }
 0x3f3   :  { %v2594_v52 = vld [vmem:[#allocation14 + $0x1870] sm:$0xff]  ;;  %v2601_v41 = vld [vmem:[#allocation14 + $0x18a8] sm:$0xff] }
 0x3f4   :  { %6291 = vmatpush1.bf16.msra.mxu0 %v6290_v24  ;;  %v2515_v24 = vld [vmem:[#allocation14 + $0x15f8] sm:$0xff] }
 0x3f5   :  { %6547 = vmatpush1.bf16.msra.mxu1 %v6546_v11  ;;  %6293 = vmatprep.subr.bf16.mxu0 %v6292_v45  ;;  %v6306_v11 = vpack.c.bf16 %v2496_v7, %v2488_v34  ;;  %v6562_v45 = vpack.c.bf16 %v2498_v27, %v2490_v3  ;;  %v6564_v16 = vpack.c.bf16 %v2515_v24, %v2507_v18  ;;  %v2552_v7 = vld [vmem:[#allocation14 + $0x1720] sm:$0xff]  ;;  %v2577_v18 = vld [vmem:[#allocation14 + $0x17e8] sm:$0xff]  ;;  %v2571_v24 = vld [vmem:[#allocation14 + $0x17b8] sm:$0xff] }
 0x3f6   :  { %6549 = vmatprep.subr.bf16.mxu1 %v6548_v61  ;;  %v2506_v61 = vld [vmem:[#allocation14 + $0x15b0] sm:$0xff]  ;;  %v6320_v34 = vpack.c.bf16 %v2561_v0, %v2553_v54  ;;  %v2560_v3 = vld [vmem:[#allocation14 + $0x1760] sm:$0xff]  ;;  %v2617_v0 = vld [vmem:[#allocation14 + $0x1928] sm:$0xff] }
 0x3f7   :  { %v2610_v54 = vld [vmem:[#allocation14 + $0x18f0] sm:$0xff] }
 0x3f8   :  { %6295 = vmatpush1.bf16.msra.mxu0 %v6294_v10  ;;  %v2531_v10 = vld [vmem:[#allocation14 + $0x1678] sm:$0xff] }
 0x3f9   :  { %6551 = vmatpush1.bf16.msra.mxu1 %v6550_v58  ;;  %6297 = vmatprep.subr.bf16.mxu0 %v6296_v53  ;;  %v6310_v58 = vpack.c.bf16 %v2512_v43, %v2504_v35  ;;  %v6566_v53 = vpack.c.bf16 %v2514_v48, %v2506_v61  ;;  %v6568_v12 = vpack.c.bf16 %v2531_v10, %v2523_v57  ;;  %v2568_v43 = vld [vmem:[#allocation14 + $0x17a0] sm:$0xff]  ;;  %v2593_v57 = vld [vmem:[#allocation14 + $0x1868] sm:$0xff]  ;;  %v2587_v10 = vld [vmem:[#allocation14 + $0x1838] sm:$0xff] }
 0x3fa   :  { %6553 = vmatprep.subr.bf16.mxu1 %v6552_v60  ;;  %v2522_v60 = vld [vmem:[#allocation14 + $0x1630] sm:$0xff]  ;;  %v6324_v35 = vpack.c.bf16 %v2577_v18, %v2569_v59  ;;  %v2576_v61 = vld [vmem:[#allocation14 + $0x17e0] sm:$0xff]  ;;  %v2633_v59 = vld [vmem:[#allocation14 + $0x19a8] sm:$0xff] }
 0x3fb   :  { %v2641_v18 = vld [vmem:[#allocation14 + $0x19e8] sm:$0xff] }
 0x3fc   :  { %6299 = vmatpush1.bf16.msra.mxu0 %v6298_v13  ;;  %v2547_v13 = vld [vmem:[#allocation14 + $0x16f8] sm:$0xff] }
 0x3fd   :  { %6555 = vmatpush1.bf16.msra.mxu1 %v6554_v9  ;;  %6301 = vmatprep.subr.bf16.mxu0 %v6300_v44  ;;  %v6314_v9 = vpack.c.bf16 %v2528_v49, %v2520_v19  ;;  %v6570_v44 = vpack.c.bf16 %v2530_v1, %v2522_v60  ;;  %v6572_v6 = vpack.c.bf16 %v2547_v13, %v2539_v26  ;;  %v2584_v60 = vld [vmem:[#allocation14 + $0x1820] sm:$0xff]  ;;  %v2586_v1 = vld [vmem:[#allocation14 + $0x1830] sm:$0xff]  ;;  %v2609_v26 = vld [vmem:[#allocation14 + $0x18e8] sm:$0xff] }
 0x3fe   :  { %6557 = vmatprep.subr.bf16.mxu1 %v6556_v62  ;;  %v2538_v62 = vld [vmem:[#allocation14 + $0x16b0] sm:$0xff]  ;;  %v6328_v19 = vpack.c.bf16 %v2593_v57, %v2585_v36  ;;  %v2603_v13 = vld [vmem:[#allocation14 + $0x18b8] sm:$0xff] }
 0x3ff   :  { %v2659_v36 = vld [vmem:[#allocation14 + $0x1a78] sm:$0xff] }
 0x400   :  { %6303 = vmatpush1.bf16.msra.mxu0 %v6302_v23  ;;  %v2563_v23 = vld [vmem:[#allocation14 + $0x1778] sm:$0xff] }
 0x401   :  { %6559 = vmatpush1.bf16.msra.mxu1 %v6558_v15  ;;  %6305 = vmatprep.subr.bf16.mxu0 %v6304_v22  ;;  %v6318_v15 = vpack.c.bf16 %v2544_v21, %v2536_v47  ;;  %v6574_v22 = vpack.c.bf16 %v2546_v31, %v2538_v62  ;;  %v6576_v27 = vpack.c.bf16 %v2563_v23, %v2555_v56  ;;  %v2600_v21 = vld [vmem:[#allocation14 + $0x18a0] sm:$0xff]  ;;  %v2625_v56 = vld [vmem:[#allocation14 + $0x1968] sm:$0xff]  ;;  %v2619_v23 = vld [vmem:[#allocation14 + $0x1938] sm:$0xff] }
 0x402   :  { %6561 = vmatprep.subr.bf16.mxu1 %v6560_v8  ;;  %v2554_v8 = vld [vmem:[#allocation14 + $0x1730] sm:$0xff]  ;;  %v6332_v47 = vpack.c.bf16 %v2609_v26, %v2601_v41  ;;  %v2608_v62 = vld [vmem:[#allocation14 + $0x18e0] sm:$0xff] }
 0x404   :  { %6307 = vmatpush1.bf16.msra.mxu0 %v6306_v11  ;;  %v2579_v11 = vld [vmem:[#allocation14 + $0x17f8] sm:$0xff] }
 0x405   :  { %6563 = vmatpush1.bf16.msra.mxu1 %v6562_v45  ;;  %6309 = vmatprep.subr.bf16.mxu0 %v6308_v37  ;;  %v6322_v45 = vpack.c.bf16 %v2560_v3, %v2552_v7  ;;  %v6578_v37 = vpack.c.bf16 %v2562_v29, %v2554_v8  ;;  %v6580_v48 = vpack.c.bf16 %v2579_v11, %v2571_v24  ;;  %v2616_v3 = vld [vmem:[#allocation14 + $0x1920] sm:$0xff]  ;;  %v2643_v24 = vld [vmem:[#allocation14 + $0x19f8] sm:$0xff] }
 0x406   :  { %6565 = vmatprep.subr.bf16.mxu1 %v6564_v16  ;;  %v2570_v16 = vld [vmem:[#allocation14 + $0x17b0] sm:$0xff]  ;;  %v6336_v7 = vpack.c.bf16 %v2625_v56, %v2617_v0  ;;  %v2624_v8 = vld [vmem:[#allocation14 + $0x1960] sm:$0xff] }
 0x407   :  { %v6338_v11 = vpack.c.bf16 %v2624_v8, %v2616_v3  ;;  %v2690_v8 = vld [vmem:[#allocation14 + $0x1b70] sm:$0xff] }
 0x408   :  { %6311 = vmatpush1.bf16.msra.mxu0 %v6310_v58  ;;  %v2595_v58 = vld [vmem:[#allocation14 + $0x1878] sm:$0xff] }
 0x409   :  { %6567 = vmatpush1.bf16.msra.mxu1 %v6566_v53  ;;  %6313 = vmatprep.subr.bf16.mxu0 %v6312_v28  ;;  %v6326_v53 = vpack.c.bf16 %v2576_v61, %v2568_v43  ;;  %v6582_v28 = vpack.c.bf16 %v2578_v39, %v2570_v16  ;;  %v6584_v49 = vpack.c.bf16 %v2595_v58, %v2587_v10  ;;  %v2640_v43 = vld [vmem:[#allocation14 + $0x19e0] sm:$0xff]  ;;  %v2634_v61 = vld [vmem:[#allocation14 + $0x19b0] sm:$0xff]  ;;  %v2657_v39 = vld [vmem:[#allocation14 + $0x1a68] sm:$0xff] }
 0x40a   :  { %6569 = vmatprep.subr.bf16.mxu1 %v6568_v12  ;;  %v2592_v12 = vld [vmem:[#allocation14 + $0x1860] sm:$0xff] }
 0x40c   :  { %6315 = vmatpush1.bf16.msra.mxu0 %v6314_v9  ;;  %v2611_v9 = vld [vmem:[#allocation14 + $0x18f8] sm:$0xff] }
 0x40d   :  { %6571 = vmatpush1.bf16.msra.mxu1 %v6570_v44  ;;  %6317 = vmatprep.subr.bf16.mxu0 %v6316_v55  ;;  %v6330_v44 = vpack.c.bf16 %v2592_v12, %v2584_v60  ;;  %v6586_v55 = vpack.c.bf16 %v2594_v52, %v2586_v1  ;;  %v6588_v31 = vpack.c.bf16 %v2611_v9, %v2603_v13  ;;  %v2665_v60 = vld [vmem:[#allocation14 + $0x1aa8] sm:$0xff]  ;;  %v2675_v1 = vld [vmem:[#allocation14 + $0x1af8] sm:$0xff]  ;;  %v2664_v13 = vld [vmem:[#allocation14 + $0x1aa0] sm:$0xff] }
 0x40e   :  { %6573 = vmatprep.subr.bf16.mxu1 %v6572_v6  ;;  %v2602_v6 = vld [vmem:[#allocation14 + $0x18b0] sm:$0xff]  ;;  %v2673_v12 = vld [vmem:[#allocation14 + $0x1ae8] sm:$0xff]  ;;  %v2672_v9 = vld [vmem:[#allocation14 + $0x1ae0] sm:$0xff] }
 0x40f   :  { %v6348_v26 = vpack.c.bf16 %v2673_v12, %v2665_v60  ;;  %v6350_v56 = vpack.c.bf16 %v2672_v9, %v2664_v13  ;;  %v2712_v60 = vld [vmem:[#allocation14 + $0x1c20] sm:$0xff] }
 0x410   :  { %6319 = vmatpush1.bf16.msra.mxu0 %v6318_v15  ;;  %v2627_v15 = vld [vmem:[#allocation14 + $0x1978] sm:$0xff]  ;;  %v2720_v12 = vld [vmem:[#allocation14 + $0x1c60] sm:$0xff] }
 0x411   :  { %6575 = vmatpush1.bf16.msra.mxu1 %v6574_v22  ;;  %6321 = vmatprep.subr.bf16.mxu0 %v6320_v34  ;;  %v6334_v22 = vpack.c.bf16 %v2608_v62, %v2600_v21  ;;  %v6590_v34 = vpack.c.bf16 %v2610_v54, %v2602_v6  ;;  %v6592_v29 = vpack.c.bf16 %v2627_v15, %v2619_v23  ;;  %v2681_v21 = vld [vmem:[#allocation14 + $0x1b28] sm:$0xff]  ;;  %v2691_v54 = vld [vmem:[#allocation14 + $0x1b78] sm:$0xff] }
 0x412   :  { %6577 = vmatprep.subr.bf16.mxu1 %v6576_v27  ;;  %v2618_v27 = vld [vmem:[#allocation14 + $0x1930] sm:$0xff] }
 0x414   :  { %6323 = vmatpush1.bf16.msra.mxu0 %v6322_v45 }
 0x415   :  { %6579 = vmatpush1.bf16.msra.mxu1 %v6578_v37  ;;  %6325 = vmatprep.subr.bf16.mxu0 %v6324_v35  ;;  %v6340_v37 = vpack.c.bf16 %v2641_v18, %v2633_v59  ;;  %v2632_v35 = vld [vmem:[#allocation14 + $0x19a0] sm:$0xff]  ;;  %v2699_v18 = vld [vmem:[#allocation14 + $0x1bb8] sm:$0xff] }
 0x416   :  { %6581 = vmatprep.subr.bf16.mxu1 %v6580_v48  ;;  %v2649_v48 = vld [vmem:[#allocation14 + $0x1a28] sm:$0xff]  ;;  %v6342_v57 = vpack.c.bf16 %v2640_v43, %v2632_v35  ;;  %v2696_v43 = vld [vmem:[#allocation14 + $0x1ba0] sm:$0xff] }
 0x417   :  { %v6344_v58 = vpack.c.bf16 %v2657_v39, %v2649_v48  ;;  %v2706_v48 = vld [vmem:[#allocation14 + $0x1bf0] sm:$0xff]  ;;  %v2713_v39 = vld [vmem:[#allocation14 + $0x1c28] sm:$0xff] }
 0x418   :  { %6327 = vmatpush1.bf16.msra.mxu0 %v6326_v53  ;;  %v2648_v53 = vld [vmem:[#allocation14 + $0x1a20] sm:$0xff] }
 0x419   :  { %6583 = vmatpush1.bf16.msra.mxu1 %v6582_v28  ;;  %6329 = vmatprep.subr.bf16.mxu0 %v6328_v19  ;;  %v2656_v28 = vld [vmem:[#allocation14 + $0x1a60] sm:$0xff]  ;;  %v2650_v19 = vld [vmem:[#allocation14 + $0x1a30] sm:$0xff] }
 0x41a   :  { %6585 = vmatprep.subr.bf16.mxu1 %v6584_v49  ;;  %v6346_v52 = vpack.c.bf16 %v2656_v28, %v2648_v53 }
 0x41b   :  { %3833 = vmatmul.mubr.f32.vlgmr.msra.gmra.mrb[32].mxu0 %v7839_v33 }
 0x41c   :  { %4189 = vmatmul.mubr.f32.vlgmr.msra.gmra.mrb[32].mxu1 %v7839_v33  ;;  %3838 = vmatprep.mubr.f32.mxu0 %v7863_v40  ;;  %v2626_v33 = vld [vmem:[#allocation14 + $0x1970] sm:$0xff] }
 0x41d   :  { %6331 = vmatpush1.bf16.msra.mxu0 %v6330_v44  ;;  %4194 = vmatprep.mubr.f32.mxu1 %v7863_v40  ;;  %v2635_v40 = vld [vmem:[#allocation14 + $0x19b8] sm:$0xff]  ;;  %v6594_v45 = vpack.c.bf16 %v2626_v33, %v2618_v27  ;;  %v2666_v44 = vld [vmem:[#allocation14 + $0x1ab0] sm:$0xff]  ;;  %v2697_v27 = vld [vmem:[#allocation14 + $0x1ba8] sm:$0xff] }
 0x41e   :  { %6587 = vmatpush1.bf16.msra.mxu1 %v6586_v55  ;;  %6333 = vmatprep.subr.bf16.mxu0 %v6332_v47  ;;  %v6596_v16 = vpack.c.bf16 %v2643_v24, %v2635_v40  ;;  %v2674_v47 = vld [vmem:[#allocation14 + $0x1af0] sm:$0xff]  ;;  %v2707_v40 = vld [vmem:[#allocation14 + $0x1bf8] sm:$0xff] }
 0x41f   :  { %3839 = vmatmul.mubr.f32.gmra.mrb[34].mxu0 %v7869_v38  ;;  %6589 = vmatprep.subr.bf16.mxu1 %v6588_v31  ;;  %v2683_v31 = vld [vmem:[#allocation14 + $0x1b38] sm:$0xff]  ;;  %v6606_v23 = vpack.c.bf16 %v2674_v47, %v2666_v44 }
 0x420   :  { %4195 = vmatmul.mubr.f32.gmra.mrb[34].mxu1 %v7869_v38  ;;  %3844 = vmatprep.mubr.f32.mxu0 %v7885_v51  ;;  %v2642_v38 = vld [vmem:[#allocation14 + $0x19f0] sm:$0xff]  ;;  %v6608_v3 = vpack.c.bf16 %v2691_v54, %v2683_v31  ;;  %v2731_v44 = vld [vmem:[#allocation14 + $0x1cb8] sm:$0xff] }
 0x421   :  { %6335 = vmatpush1.bf16.msra.mxu0 %v6334_v22  ;;  %4200 = vmatprep.mubr.f32.mxu1 %v7885_v51  ;;  %v2651_v51 = vld [vmem:[#allocation14 + $0x1a38] sm:$0xff]  ;;  %v6598_v10 = vpack.c.bf16 %v2642_v38, %v2634_v61  ;;  %v2680_v22 = vld [vmem:[#allocation14 + $0x1b20] sm:$0xff]  ;;  %v6612_v38 = vpack.c.bf16 %v2707_v40, %v2699_v18 }
 0x422   :  { %6591 = vmatpush1.bf16.msra.mxu1 %v6590_v34  ;;  %6337 = vmatprep.subr.bf16.mxu0 %v6336_v7  ;;  %v6600_v49 = vpack.c.bf16 %v2659_v36, %v2651_v51  ;;  %v2688_v34 = vld [vmem:[#allocation14 + $0x1b60] sm:$0xff]  ;;  %v2682_v7 = vld [vmem:[#allocation14 + $0x1b30] sm:$0xff]  ;;  %v2721_v51 = vld [vmem:[#allocation14 + $0x1c68] sm:$0xff] }
 0x423   :  { %3845 = vmatmul.mubr.f32.gmra.mrb[36].mxu0 %v7891_v17  ;;  %6593 = vmatprep.subr.bf16.mxu1 %v6592_v29  ;;  %v2705_v29 = vld [vmem:[#allocation14 + $0x1be8] sm:$0xff]  ;;  %v2704_v61 = vld [vmem:[#allocation14 + $0x1be0] sm:$0xff] }
 0x424   :  { %4201 = vmatmul.mubr.f32.gmra.mrb[36].mxu1 %v7891_v17  ;;  %3850 = vmatprep.mubr.f32.mxu0 %v7897_v25  ;;  %v2658_v17 = vld [vmem:[#allocation14 + $0x1a70] sm:$0xff]  ;;  %v6356_v35 = vpack.c.bf16 %v2705_v29, %v2697_v27  ;;  %v2755_v27 = vld [vmem:[#allocation14 + $0x1d78] sm:$0xff] }
 0x425   :  { %6339 = vmatpush1.bf16.msra.mxu0 %v6338_v11  ;;  %4206 = vmatprep.mubr.f32.mxu1 %v7897_v25  ;;  %v2667_v25 = vld [vmem:[#allocation14 + $0x1ab8] sm:$0xff]  ;;  %v6602_v41 = vpack.c.bf16 %v2658_v17, %v2650_v19  ;;  %v6358_v19 = vpack.c.bf16 %v2704_v61, %v2696_v43  ;;  %v6360_v17 = vpack.c.bf16 %v2721_v51, %v2713_v39  ;;  %v2754_v61 = vld [vmem:[#allocation14 + $0x1d70] sm:$0xff] }
 0x426   :  { %6595 = vmatpush1.bf16.msra.mxu1 %v6594_v45  ;;  %6341 = vmatprep.subr.bf16.mxu0 %v6340_v37  ;;  %v6604_v55 = vpack.c.bf16 %v2675_v1, %v2667_v25  ;;  %v6354_v45 = vpack.c.bf16 %v2688_v34, %v2680_v22  ;;  %v6610_v37 = vpack.c.bf16 %v2690_v8, %v2682_v7  ;;  %v2714_v25 = vld [vmem:[#allocation14 + $0x1c30] sm:$0xff]  ;;  %v2745_v7 = vld [vmem:[#allocation14 + $0x1d28] sm:$0xff]  ;;  %v2747_v8 = vld [vmem:[#allocation14 + $0x1d38] sm:$0xff] }
 0x427   :  { %3851 = vmatmul.mubr.f32.gmra.mrb[38].mxu0 %v7902_v30  ;;  %6597 = vmatprep.subr.bf16.mxu1 %v6596_v16  ;;  %v2698_v16 = vld [vmem:[#allocation14 + $0x1bb0] sm:$0xff]  ;;  %v6624_v43 = vpack.c.bf16 %v2755_v27, %v2747_v8  ;;  %v2771_v39 = vld [vmem:[#allocation14 + $0x1df8] sm:$0xff] }
 0x428   :  { %4207 = vmatmul.mubr.f32.gmra.mrb[38].mxu1 %v7902_v30  ;;  %3921 = vmatprep.mubr.f32.mxu0 %v7907_v63  ;;  %v2689_v30 = vld [vmem:[#allocation14 + $0x1b68] sm:$0xff]  ;;  %v2738_v34 = vld [vmem:[#allocation14 + $0x1cf0] sm:$0xff] }
 0x429   :  { %6343 = vmatpush1.bf16.msra.mxu0 %v6342_v57  ;;  %4277 = vmatprep.mubr.f32.mxu1 %v7907_v63  ;;  %v6352_v15 = vpack.c.bf16 %v2689_v30, %v2681_v21  ;;  %v6362_v30 = vpack.c.bf16 %v2720_v12, %v2712_v60  ;;  %v2770_v12 = vld [vmem:[#allocation14 + $0x1df0] sm:$0xff] }
 0x42a   :  { %6599 = vmatpush1.bf16.msra.mxu1 %v6598_v10  ;;  %6345 = vmatprep.subr.bf16.mxu0 %v6344_v58  ;;  %v2715_v10 = vld [vmem:[#allocation14 + $0x1c38] sm:$0xff] }
 0x42b   :  { %6601 = vmatprep.subr.bf16.mxu1 %v6600_v49  ;;  %v2723_v58 = vld [vmem:[#allocation14 + $0x1c78] sm:$0xff]  ;;  %v6614_v49 = vpack.c.bf16 %v2706_v48, %v2698_v16  ;;  %v2761_v16 = vld [vmem:[#allocation14 + $0x1da8] sm:$0xff] }
 0x42c   :  { %v8022_v62 = vpop.f32.mrb[24].mxu0  ;;  %v8024_v6 = vpop.f32.mrb[24].mxu1  ;;  %v6616_v1 = vpack.c.bf16 %v2723_v58, %v2715_v10  ;;  %v2763_v48 = vld [vmem:[#allocation14 + $0x1db8] sm:$0xff] }
 0x42d   :  { %6347 = vmatpush1.bf16.msra.mxu0 %v6346_v52  ;;  %v8026_v63 = vpop.f32.mrb[25].mxu0  ;;  %v8028_v0 = vpop.f32.mrb[25].mxu1  ;;  %v2722_v52 = vld [vmem:[#allocation14 + $0x1c70] sm:$0xff]  ;;  %v6628_v60 = vpack.c.bf16 %v2771_v39, %v2763_v48 }
 0x42e   :  { %6603 = vmatpush1.bf16.msra.mxu1 %v6602_v41  ;;  %6349 = vmatprep.subr.bf16.mxu0 %v6348_v26  ;;  %v2729_v41 = vld [vmem:[#allocation14 + $0x1ca8] sm:$0xff]  ;;  %v6618_v31 = vpack.c.bf16 %v2722_v52, %v2714_v25  ;;  %v2779_v52 = vld [vmem:[#allocation14 + $0x1e38] sm:$0xff] }
 0x42f   :  { %6605 = vmatprep.subr.bf16.mxu1 %v6604_v55  ;;  %v2737_v26 = vld [vmem:[#allocation14 + $0x1ce8] sm:$0xff]  ;;  %v2739_v55 = vld [vmem:[#allocation14 + $0x1cf8] sm:$0xff] }
 0x430   :  { %v8030_v33 = vpop.f32.mrb[26].mxu0  ;;  %v8032_v59 = vpop.f32.mrb[26].mxu1  ;;  %v6364_v54 = vpack.c.bf16 %v2737_v26, %v2729_v41  ;;  %v6620_v22 = vpack.c.bf16 %v2739_v55, %v2731_v44  ;;  %v2777_v25 = vld [vmem:[#allocation14 + $0x1e28] sm:$0xff]  ;;  %v2787_v41 = vld [vmem:[#allocation14 + $0x1e78] sm:$0xff] }
 0x431   :  { %6351 = vmatpush1.bf16.msra.mxu0 %v6350_v56  ;;  %v8034_v24 = vpop.f32.mrb[27].mxu0  ;;  %v8036_v11 = vpop.f32.mrb[27].mxu1  ;;  %v2728_v56 = vld [vmem:[#allocation14 + $0x1ca0] sm:$0xff] }
 0x432   :  { %6607 = vmatpush1.bf16.msra.mxu1 %v6606_v23  ;;  %6353 = vmatprep.subr.bf16.mxu0 %v6352_v15  ;;  %v2736_v23 = vld [vmem:[#allocation14 + $0x1ce0] sm:$0xff]  ;;  %v2730_v15 = vld [vmem:[#allocation14 + $0x1cb0] sm:$0xff] }
 0x433   :  { %6609 = vmatprep.subr.bf16.mxu1 %v6608_v3  ;;  %v2753_v3 = vld [vmem:[#allocation14 + $0x1d68] sm:$0xff]  ;;  %v6366_v29 = vpack.c.bf16 %v2736_v23, %v2728_v56  ;;  %v6622_v18 = vpack.c.bf16 %v2738_v34, %v2730_v15  ;;  %v6632_v56 = vpack.c.bf16 %v2787_v41, %v2779_v52  ;;  %v2786_v23 = vld [vmem:[#allocation14 + $0x1e70] sm:$0xff]  ;;  %v2795_v34 = vld [vmem:[#allocation14 + $0x1eb8] sm:$0xff] }
 0x434   :  { %v8038_v36 = vpop.f32.mrb[28].mxu0  ;;  %v8040_v57 = vpop.f32.mrb[28].mxu1  ;;  %v6368_v40 = vpack.c.bf16 %v2753_v3, %v2745_v7  ;;  %v2793_v15 = vld [vmem:[#allocation14 + $0x1ea8] sm:$0xff]  ;;  %v2803_v7 = vld [vmem:[#allocation14 + $0x1ef8] sm:$0xff] }
 0x435   :  { %6355 = vmatpush1.bf16.msra.mxu0 %v6354_v45  ;;  %v8042_v53 = vpop.f32.mrb[29].mxu0  ;;  %v8044_v28 = vpop.f32.mrb[29].mxu1  ;;  %v2744_v45 = vld [vmem:[#allocation14 + $0x1d20] sm:$0xff] }
 0x436   :  { %6611 = vmatpush1.bf16.msra.mxu1 %v6610_v37  ;;  %6357 = vmatprep.subr.bf16.mxu0 %v6356_v35  ;;  %v2752_v37 = vld [vmem:[#allocation14 + $0x1d60] sm:$0xff]  ;;  %v2746_v35 = vld [vmem:[#allocation14 + $0x1d30] sm:$0xff] }
 0x437   :  { %6613 = vmatprep.subr.bf16.mxu1 %v6612_v38  ;;  %v2769_v38 = vld [vmem:[#allocation14 + $0x1de8] sm:$0xff]  ;;  %v6370_v51 = vpack.c.bf16 %v2752_v37, %v2744_v45  ;;  %v6626_v10 = vpack.c.bf16 %v2754_v61, %v2746_v35  ;;  %v6636_v45 = vpack.c.bf16 %v2803_v7, %v2795_v34  ;;  %v2802_v37 = vld [vmem:[#allocation14 + $0x1ef0] sm:$0xff]  ;;  %v2811_v61 = vld [vmem:[#allocation14 + $0x1f38] sm:$0xff] }
 0x438   :  { %v8046_v13 = vpop.f32.mrb[30].mxu0  ;;  %v8048_v9 = vpop.f32.mrb[30].mxu1  ;;  %v6372_v58 = vpack.c.bf16 %v2769_v38, %v2761_v16  ;;  %v2809_v35 = vld [vmem:[#allocation14 + $0x1f28] sm:$0xff]  ;;  %v2819_v16 = vld [vmem:[#allocation14 + $0x1f78] sm:$0xff] }
 0x439   :  { %6359 = vmatpush1.bf16.msra.mxu0 %v6358_v19  ;;  %v8050_v47 = vpop.f32.mrb[31].mxu0  ;;  %v8052_v21 = vpop.f32.mrb[31].mxu1  ;;  %v2760_v19 = vld [vmem:[#allocation14 + $0x1da0] sm:$0xff] }
 0x43a   :  { %6615 = vmatpush1.bf16.msra.mxu1 %v6614_v49  ;;  %6361 = vmatprep.subr.bf16.mxu0 %v6360_v17  ;;  %v2768_v49 = vld [vmem:[#allocation14 + $0x1de0] sm:$0xff]  ;;  %v2762_v17 = vld [vmem:[#allocation14 + $0x1db0] sm:$0xff] }
 0x43b   :  { %6617 = vmatprep.subr.bf16.mxu1 %v6616_v1  ;;  %v2785_v1 = vld [vmem:[#allocation14 + $0x1e68] sm:$0xff]  ;;  %v6374_v26 = vpack.c.bf16 %v2768_v49, %v2760_v19  ;;  %v6630_v44 = vpack.c.bf16 %v2770_v12, %v2762_v17  ;;  %v6640_v19 = vpack.c.bf16 %v2819_v16, %v2811_v61  ;;  %v2818_v49 = vld [vmem:[#allocation14 + $0x1f70] sm:$0xff]  ;;  %v2827_v12 = vld [vmem:[#allocation14 + $0x1fb8] sm:$0xff] }
 0x43c   :  { %v6376_v55 = vpack.c.bf16 %v2785_v1, %v2777_v25  ;;  %v2825_v17 = vld [vmem:[#allocation14 + $0x1fa8] sm:$0xff]  ;;  %v2835_v25 = vld [vmem:[#allocation14 + $0x1ff8] sm:$0xff] }
 0x43d   :  { %6363 = vmatpush1.bf16.msra.mxu0 %v6362_v30  ;;  %v2776_v30 = vld [vmem:[#allocation14 + $0x1e20] sm:$0xff] }
 0x43e   :  { %6619 = vmatpush1.bf16.msra.mxu1 %v6618_v31  ;;  %6365 = vmatprep.subr.bf16.mxu0 %v6364_v54  ;;  %v2784_v31 = vld [vmem:[#allocation14 + $0x1e60] sm:$0xff]  ;;  %v2778_v54 = vld [vmem:[#allocation14 + $0x1e30] sm:$0xff] }
 0x43f   :  { %6621 = vmatprep.subr.bf16.mxu1 %v6620_v22  ;;  %v2801_v22 = vld [vmem:[#allocation14 + $0x1ee8] sm:$0xff]  ;;  %v6378_v3 = vpack.c.bf16 %v2784_v31, %v2776_v30  ;;  %v6634_v8 = vpack.c.bf16 %v2786_v23, %v2778_v54  ;;  %v6644_v30 = vpack.c.bf16 %v2835_v25, %v2827_v12  ;;  %v2834_v31 = vld [vmem:[#allocation14 + $0x1ff0] sm:$0xff]  ;;  %v4461_v12 = vld [vmem:[%s8684_s10 + $0x1a8] sm:$0xff] }
 0x440   :  { %v6380_v27 = vpack.c.bf16 %v2801_v22, %v2793_v15  ;;  %v4424_v54 = vld [vmem:[%s8684_s10 + $0x80] sm:$0xff]  ;;  %v4457_v15 = vld [vmem:[%s8684_s10 + $0x188] sm:$0xff] }
 0x441   :  { %6367 = vmatpush1.bf16.msra.mxu0 %v6366_v29  ;;  %v2792_v29 = vld [vmem:[#allocation14 + $0x1ea0] sm:$0xff]  ;;  %v4456_v23 = vld [vmem:[%s8684_s10 + $0x180] sm:$0xff] }
 0x442   :  { %6623 = vmatpush1.bf16.msra.mxu1 %v6622_v18  ;;  %6369 = vmatprep.subr.bf16.mxu0 %v6368_v40  ;;  %v2800_v18 = vld [vmem:[#allocation14 + $0x1ee0] sm:$0xff]  ;;  %v2794_v40 = vld [vmem:[#allocation14 + $0x1eb0] sm:$0xff] }
 0x443   :  { %6625 = vmatprep.subr.bf16.mxu1 %v6624_v43  ;;  %v2817_v43 = vld [vmem:[#allocation14 + $0x1f68] sm:$0xff]  ;;  %v6382_v38 = vpack.c.bf16 %v2800_v18, %v2792_v29  ;;  %v6638_v48 = vpack.c.bf16 %v2802_v37, %v2794_v40  ;;  %v4440_v29 = vld [vmem:[%s8684_s10 + $0x100] sm:$0xff]  ;;  %v4441_v18 = vld [vmem:[%s8684_s10 + $0x108] sm:$0xff] }
 0x444   :  { %v6384_v39 = vpack.c.bf16 %v2817_v43, %v2809_v35  ;;  %v4426_v40 = vld [vmem:[%s8684_s10 + $0x90] sm:$0xff]  ;;  %v4459_v43 = vld [vmem:[%s8684_s10 + $0x198] sm:$0xff]  ;;  %v6682_v16 = vpack.c.bf16 %v4441_v18, %v4440_v29  ;;  %v4464_v18 = vld [vmem:[%s8684_s10 + $0x1c0] sm:$0xff] }
 0x445   :  { %6371 = vmatpush1.bf16.msra.mxu0 %v6370_v51  ;;  %v2808_v51 = vld [vmem:[#allocation14 + $0x1f20] sm:$0xff] }
 0x446   :  { %6627 = vmatpush1.bf16.msra.mxu1 %v6626_v10  ;;  %6373 = vmatprep.subr.bf16.mxu0 %v6372_v58  ;;  %v2816_v10 = vld [vmem:[#allocation14 + $0x1f60] sm:$0xff]  ;;  %v2810_v58 = vld [vmem:[#allocation14 + $0x1f30] sm:$0xff] }
 0x447   :  { %6629 = vmatprep.subr.bf16.mxu1 %v6628_v60  ;;  %v2833_v60 = vld [vmem:[#allocation14 + $0x1fe8] sm:$0xff]  ;;  %v6386_v1 = vpack.c.bf16 %v2816_v10, %v2808_v51  ;;  %v6642_v52 = vpack.c.bf16 %v2818_v49, %v2810_v58  ;;  %v8084_v37 = vld [vmem:[#allocation16] sm:$0xff]  ;;  %v4428_v49 = vld [vmem:[%s8684_s10 + $0xa0] sm:$0xff] }
 0x448   :  { %v6388_v41 = vpack.c.bf16 %v2833_v60, %v2825_v17  ;;  %v4458_v35 = vld [vmem:[%s8684_s10 + $0x190] sm:$0xff]  ;;  %v8103_v10 = vrot.slane %v8084_v37, %v7420_v46  ;;  %v4429_v17 = vld [vmem:[%s8684_s10 + $0xa8] sm:$0xff]  ;;  %v8117_v60 = vrot.slane %v8084_v37, %v7432_v50  ;;  %v4460_v46 = vld [vmem:[%s8684_s10 + $0x1a0] sm:$0xff] }
 0x449   :  { %6375 = vmatpush1.bf16.msra.mxu0 %v6374_v26  ;;  %v2824_v26 = vld [vmem:[#allocation14 + $0x1fa0] sm:$0xff]  ;;  %v6684_v58 = vpack.c.bf16 %v4459_v43, %v4458_v35  ;;  %v4416_v43 = vld [vmem:[%s8684_s10 + $0x40] sm:$0xff] }
 0x44a   :  { %6631 = vmatpush1.bf16.msra.mxu1 %v6630_v44  ;;  %6377 = vmatprep.subr.bf16.mxu0 %v6376_v55  ;;  %v2832_v44 = vld [vmem:[#allocation14 + $0x1fe0] sm:$0xff]  ;;  %v2826_v55 = vld [vmem:[#allocation14 + $0x1fb0] sm:$0xff] }
 0x44b   :  { %6633 = vmatprep.subr.bf16.mxu1 %v6632_v56  ;;  %v4425_v56 = vld [vmem:[%s8684_s10 + $0x88] sm:$0xff]  ;;  %v6390_v22 = vpack.c.bf16 %v2832_v44, %v2824_v26  ;;  %v6646_v34 = vpack.c.bf16 %v2834_v31, %v2826_v55  ;;  %v4442_v51 = vld [vmem:[%s8684_s10 + $0x110] sm:$0xff]  ;;  %v6688_v26 = vpack.c.bf16 %v4461_v12, %v4460_v46  ;;  %v6817_v31 = vadd.f32 %v8028_v0, %v8117_v60 }
 0x44c   :  { %v6648_v7 = vpack.c.bf16 %v4425_v56, %v4424_v54  ;;  %v4445_v44 = vld [vmem:[%s8684_s10 + $0x128] sm:$0xff]  ;;  %v4430_v55 = vld [vmem:[%s8684_s10 + $0xb0] sm:$0xff]  ;;  %v4463_v56 = vld [vmem:[%s8684_s10 + $0x1b8] sm:$0xff] }
 0x44d   :  { %6379 = vmatpush1.bf16.msra.mxu0 %v6378_v3  ;;  %v6680_v3 = vpack.c.bf16 %v4457_v15, %v4456_v23  ;;  %v4462_v54 = vld [vmem:[%s8684_s10 + $0x1b0] sm:$0xff]  ;;  %vm4305_vm5 = vcmp.ge.f32.partialorder %v6817_v31, 0.0 }
 0x44e   :  { %6635 = vmatpush1.bf16.msra.mxu1 %v6634_v8  ;;  %6381 = vmatprep.subr.bf16.mxu0 %v6380_v27  ;;  %v4408_v8 = vld [vmem:[%s8684_s10] sm:$0xff]  ;;  %v4409_v27 = vld [vmem:[%s8684_s10 + $0x8] sm:$0xff]  ;;  %v4418_v46 = vld [vmem:[%s8684_s10 + $0x50] sm:$0xff] }
 0x44f   :  { %6637 = vmatprep.subr.bf16.mxu1 %v6636_v45  ;;  %v4427_v45 = vld [vmem:[%s8684_s10 + $0x98] sm:$0xff]  ;;  %v6650_v61 = vpack.c.bf16 %v4409_v27, %v4408_v8  ;;  %v4432_v8 = vld [vmem:[%s8684_s10 + $0xc0] sm:$0xff]  ;;  %v4433_v27 = vld [vmem:[%s8684_s10 + $0xc8] sm:$0xff] }
 0x450   :  { %v6664_v35 = vpack.c.bf16 %v4433_v27, %v4432_v8  ;;  %v8701_v8 = vld [vmem:[#allocation28_spill] sm:$0xff] }
 0x451   :  { %6383 = vmatpush1.bf16.msra.mxu0 %v6382_v38  ;;  %v6652_v38 = vpack.c.bf16 %v4427_v45, %v4426_v40  ;;  %v4465_v40 = vld [vmem:[%s8684_s10 + $0x1c8] sm:$0xff]  ;;  %v8280_v27 = vrot.slane %v8084_v37, %v8701_v8 }
 0x452   :  { %6639 = vmatpush1.bf16.msra.mxu1 %v6638_v48  ;;  %6385 = vmatprep.subr.bf16.mxu0 %v6384_v39  ;;  %v4410_v48 = vld [vmem:[%s8684_s10 + $0x10] sm:$0xff]  ;;  %v4411_v39 = vld [vmem:[%s8684_s10 + $0x18] sm:$0xff] }
 0x453   :  { %6641 = vmatprep.subr.bf16.mxu1 %v6640_v19  ;;  %v4443_v19 = vld [vmem:[%s8684_s10 + $0x118] sm:$0xff]  ;;  %v6654_v25 = vpack.c.bf16 %v4411_v39, %v4410_v48  ;;  %v4449_v48 = vld [vmem:[%s8684_s10 + $0x148] sm:$0xff]  ;;  %v4434_v39 = vld [vmem:[%s8684_s10 + $0xd0] sm:$0xff] }
 0x454   :  { %v6686_v50 = vpack.c.bf16 %v4443_v19, %v4442_v51  ;;  %v4435_v51 = vld [vmem:[%s8684_s10 + $0xd8] sm:$0xff]  ;;  %v4466_v19 = vld [vmem:[%s8684_s10 + $0x1d0] sm:$0xff] }
 0x455   :  { %6387 = vmatpush1.bf16.msra.mxu0 %v6386_v1  ;;  %v6656_v1 = vpack.c.bf16 %v4429_v17, %v4428_v49  ;;  %v4467_v49 = vld [vmem:[%s8684_s10 + $0x1d8] sm:$0xff]  ;;  %v6668_v12 = vpack.c.bf16 %v4435_v51, %v4434_v39 }
 0x456   :  { %6643 = vmatpush1.bf16.msra.mxu1 %v6642_v52  ;;  %6389 = vmatprep.subr.bf16.mxu0 %v6388_v41  ;;  %v4413_v52 = vld [vmem:[%s8684_s10 + $0x28] sm:$0xff]  ;;  %v4444_v41 = vld [vmem:[%s8684_s10 + $0x120] sm:$0xff] }
 0x457   :  { %6645 = vmatprep.subr.bf16.mxu1 %v6644_v30  ;;  %v4431_v30 = vld [vmem:[%s8684_s10 + $0xb8] sm:$0xff]  ;;  %v6690_v0 = vpack.c.bf16 %v4445_v44, %v4444_v41  ;;  %v4437_v41 = vld [vmem:[%s8684_s10 + $0xe8] sm:$0xff]  ;;  %v4420_v44 = vld [vmem:[%s8684_s10 + $0x60] sm:$0xff] }
 0x458   :  { %v6660_v15 = vpack.c.bf16 %v4431_v30, %v4430_v55  ;;  %v4421_v55 = vld [vmem:[%s8684_s10 + $0x68] sm:$0xff] }
 0x459   :  { %6391 = vmatpush1.bf16.msra.mxu0 %v6390_v22  ;;  %v4415_v22 = vld [vmem:[%s8684_s10 + $0x38] sm:$0xff] }
 0x45a   :  { %6647 = vmatpush1.bf16.msra.mxu1 %v6646_v34  ;;  %6649 = vmatprep.subr.bf16.mxu0 %v6648_v7  ;;  %v4446_v34 = vld [vmem:[%s8684_s10 + $0x130] sm:$0xff] }
 0x45b   :  { %6681 = vmatprep.subr.bf16.mxu1 %v6680_v3  ;;  %v4447_v3 = vld [vmem:[%s8684_s10 + $0x138] sm:$0xff] }
 0x45c   :  { %3922 = vmatmul.mubr.f32.vlgmr.msra.gmra.mrb[32].mxu0 %v7928_v4 }
 0x45d   :  { %4278 = vmatmul.mubr.f32.vlgmr.msra.gmra.mrb[32].mxu1 %v7928_v4  ;;  %3927 = vmatprep.mubr.f32.mxu0 %v7939_v20  ;;  %v4412_v4 = vld [vmem:[%s8684_s10 + $0x20] sm:$0xff] }
 0x45e   :  { %4283 = vmatprep.mubr.f32.mxu1 %v7939_v20  ;;  %6651 = vmatpush3.bf16.msra.mxu0 %v6650_v61  ;;  %v6809_v20 = vadd.f32 %v8026_v63, %v8103_v10  ;;  %v8151_v63 = vpop.permute.xlu1 %4341  ;;  %v6658_v23 = vpack.c.bf16 %v4413_v52, %v4412_v4  ;;  %v4417_v61 = vld [vmem:[%s8684_s10 + $0x48] sm:$0xff]  ;;  %v6700_v4 = vpack.c.bf16 %v4467_v49, %v4466_v19  ;;  %v4436_v52 = vld [vmem:[%s8684_s10 + $0xe0] sm:$0xff]  ;;  %v8329_v19 = vld [vmem:[%s8684_s10 + $0x290] sm:$0xff] }
 0x45f   :  { %6683 = vmatpush3.bf16.msra.mxu1 %v6682_v16  ;;  %6653 = vmatprep.subr.bf16.mxu0 %v6652_v38  ;;  %v4347_v29 = vmul.f32 %v6817_v31, %v8151_v63  ;;  %v4448_v16 = vld [vmem:[%s8684_s10 + $0x140] sm:$0xff]  ;;  %v6696_v38 = vpack.c.bf16 %v4465_v40, %v4464_v18  ;;  %v6666_v17 = vpack.c.bf16 %v4417_v61, %v4416_v43  ;;  %v4454_v18 = vld [vmem:[%s8684_s10 + $0x170] sm:$0xff]  ;;  %v4455_v40 = vld [vmem:[%s8684_s10 + $0x178] sm:$0xff] }
 0x460   :  { %3928 = vmatmul.mubr.f32.gmra.mrb[34].mxu0 %v7947_v14  ;;  %6685 = vmatprep.subr.bf16.mxu1 %v6684_v58  ;;  %v4345_v7 = vmul.f32 %v6809_v20, %v8151_v63  ;;  %vm4303_vm4 = vcmp.ge.f32.partialorder %v6809_v20, 0.0  ;;  %v8302_v43 = vld [vmem:[%s8684_s10 + $0x388] sm:$0xff]  ;;  %v6674_v61 = vpack.c.bf16 %v4421_v55, %v4420_v44  ;;  %v8334_v49 = vld [vmem:[%s8684_s10 + $0x298] sm:$0xff]  ;;  %v8373_v44 = vld [vmem:[%s8684_s10 + $0x310] sm:$0xff] }
 0x461   :  { %4284 = vmatmul.mubr.f32.gmra.mrb[34].mxu1 %v7947_v14  ;;  %3933 = vmatprep.mubr.f32.mxu0 %v7953_v42  ;;  %v4414_v14 = vld [vmem:[%s8684_s10 + $0x30] sm:$0xff]  ;;  %v4379_v58 = vsel %vm4305_vm5, %v6817_v31, %v4347_v29  ;;  %v4452_v31 = vld [vmem:[%s8684_s10 + $0x160] sm:$0xff]  ;;  %v8378_v55 = vld [vmem:[%s8684_s10 + $0x318] sm:$0xff] }
 0x462   :  { %4289 = vmatprep.mubr.f32.mxu1 %v7953_v42  ;;  %6655 = vmatpush3.bf16.msra.mxu0 %v6654_v25  ;;  %v6692_v42 = vpack.c.bf16 %v4463_v56, %v4462_v54  ;;  %v6662_v45 = vpack.c.bf16 %v4415_v22, %v4414_v14  ;;  %v4419_v25 = vld [vmem:[%s8684_s10 + $0x58] sm:$0xff]  ;;  %v4453_v54 = vld [vmem:[%s8684_s10 + $0x168] sm:$0xff]  ;;  %v4438_v56 = vld [vmem:[%s8684_s10 + $0xf0] sm:$0xff]  ;;  %v6672_v22 = vpack.c.bf16 %v4437_v41, %v4436_v52 }
 0x463   :  { %6687 = vmatpush3.bf16.msra.mxu1 %v6686_v50  ;;  %6657 = vmatprep.subr.bf16.mxu0 %v6656_v1  ;;  %v4450_v50 = vld [vmem:[%s8684_s10 + $0x150] sm:$0xff]  ;;  %v4451_v1 = vld [vmem:[%s8684_s10 + $0x158] sm:$0xff]  ;;  %v6670_v30 = vpack.c.bf16 %v4419_v25, %v4418_v46  ;;  %v6706_v39 = vpack.c.bf16 %v4453_v54, %v4452_v31  ;;  %v6811_v25 = vadd.f32 %v8034_v24, %v8103_v10  ;;  %v8388_v54 = vld [vmem:[%s8684_s10 + $0x2a0] sm:$0xff] }
 0x464   :  { %3934 = vmatmul.mubr.f32.gmra.mrb[36].mxu0 %v7959_v5  ;;  %6689 = vmatprep.subr.bf16.mxu1 %v6688_v26  ;;  %v4469_v26 = vld [vmem:[%s8684_s10 + $0x1e8] sm:$0xff]  ;;  %v6702_v14 = vpack.c.bf16 %v4451_v1, %v4450_v50  ;;  %v6710_v50 = vpack.c.bf16 %v4455_v40, %v4454_v18  ;;  %v8360_v52 = vld [vmem:[%s8684_s10 + $0x218] sm:$0xff]  ;;  %v6819_v41 = vadd.f32 %v8036_v11, %v8117_v60  ;;  %v8423_v40 = vld [vmem:[%s8684_s10 + $0x3a0] sm:$0xff] }
 0x465   :  { %4290 = vmatmul.mubr.f32.gmra.mrb[36].mxu1 %v7959_v5  ;;  %3939 = vmatprep.mubr.f32.mxu0 %v7964_v32  ;;  %v6694_v5 = vpack.c.bf16 %v4447_v3, %v4446_v34  ;;  %v4470_v34 = vld [vmem:[%s8684_s10 + $0x1f0] sm:$0xff]  ;;  %v4423_v3 = vld [vmem:[%s8684_s10 + $0x78] sm:$0xff]  ;;  %vm4311_vm8 = vcmp.ge.f32.partialorder %v6811_v25, 0.0 }
 0x466   :  { %4295 = vmatprep.mubr.f32.mxu1 %v7964_v32  ;;  %6659 = vmatpush3.bf16.msra.mxu0 %v6658_v23  ;;  %v4377_v32 = vsel %vm4303_vm4, %v6809_v20, %v4345_v7  ;;  %v4468_v20 = vld [vmem:[%s8684_s10 + $0x1e0] sm:$0xff]  ;;  %v4439_v23 = vld [vmem:[%s8684_s10 + $0xf8] sm:$0xff]  ;;  %v4422_v7 = vld [vmem:[%s8684_s10 + $0x70] sm:$0xff]  ;;  %vm4313_vm9 = vcmp.ge.f32.partialorder %v6819_v41, 0.0 }
 0x467   :  { %6691 = vmatpush3.bf16.msra.mxu1 %v6690_v0  ;;  %6661 = vmatprep.subr.bf16.mxu0 %v6660_v15  ;;  %v8700_v0 = vld [vmem:[#allocation27_spill] sm:$0xff]  ;;  %v6704_v29 = vpack.c.bf16 %v4469_v26, %v4468_v20  ;;  %v6676_v51 = vpack.c.bf16 %v4439_v23, %v4438_v56  ;;  %v6678_v46 = vpack.c.bf16 %v4423_v3, %v4422_v7 }
 0x468   :  { %3940 = vmatmul.mubr.f32.gmra.mrb[38].mxu0 %v7968_v2  ;;  %6693 = vmatprep.subr.bf16.mxu1 %v6692_v42  ;;  %v8264_v15 = vrot.slane %v8084_v37, %v8700_v0  ;;  %v4471_v42 = vld [vmem:[%s8684_s10 + $0x1f8] sm:$0xff]  ;;  %v6716_v26 = vpack.c.bf16 %v8334_v49, %v8329_v19  ;;  %v8393_v56 = vld [vmem:[%s8684_s10 + $0x2a8] sm:$0xff]  ;;  %v6822_v49 = vadd.f32 %v8048_v9, %v8280_v27 }
 0x469   :  { %4296 = vmatmul.mubr.f32.gmra.mrb[38].mxu1 %v7968_v2  ;;  %4607 = vmatprep.mubr.f32.mxu0 %v4377_v32  ;;  %v6698_v2 = vpack.c.bf16 %v4449_v48, %v4448_v16  ;;  %v8307_v16 = vld [vmem:[%s8684_s10 + $0x200] sm:$0xff]  ;;  %v8312_v32 = vld [vmem:[%s8684_s10 + $0x208] sm:$0xff]  ;;  %v6720_v7 = vpack.c.bf16 %v8393_v56, %v8388_v54  ;;  %v4495_v19 = vld [vmem:[%s8684_s10 + $0x2b8] sm:$0xff] }
 0x46a   :  { %6663 = vmatpush3.bf16.msra.mxu0 %v6662_v45  ;;  %4692 = vmatprep.mubr.f32.mxu1 %v4379_v58  ;;  %v4488_v45 = vld [vmem:[%s8684_s10 + $0x280] sm:$0xff]  ;;  %v6808_v48 = vadd.f32 %v8022_v62, %v8264_v15  ;;  %v8324_v58 = vld [vmem:[%s8684_s10 + $0x308] sm:$0xff]  ;;  %v6816_v62 = vadd.f32 %v8024_v6, %v8280_v27  ;;  %v6714_v24 = vpack.c.bf16 %v8312_v32, %v8307_v16  ;;  %vm4328_vm4 = vcmp.ge.f32.partialorder %v6822_v49, 0.0 }
 0x46b   :  { %6695 = vmatpush3.bf16.msra.mxu1 %v6694_v5  ;;  %6665 = vmatprep.subr.bf16.mxu0 %v6664_v35  ;;  %v4489_v5 = vld [vmem:[%s8684_s10 + $0x288] sm:$0xff]  ;;  %v8297_v35 = vld [vmem:[%s8684_s10 + $0x380] sm:$0xff]  ;;  %v6810_v11 = vadd.f32 %v8030_v33, %v8264_v15  ;;  %v6818_v33 = vadd.f32 %v8032_v59, %v8280_v27  ;;  %v6821_v59 = vadd.f32 %v8044_v28, %v8117_v60 }
 0x46c   :  { %6697 = vmatprep.subr.bf16.mxu1 %v6696_v38  ;;  %v8317_v38 = vld [vmem:[%s8684_s10 + $0x300] sm:$0xff]  ;;  %v6712_v1 = vpack.c.bf16 %v4489_v5, %v4488_v45  ;;  %v6744_v6 = vpack.c.bf16 %v8302_v43, %v8297_v35  ;;  %vm4302_vm6 = vcmp.ge.f32.partialorder %v6808_v48, 0.0  ;;  %v4346_v23 = vmul.f32 %v6816_v62, %v8151_v63 }
 0x46d   :  { %v6746_v20 = vpack.c.bf16 %v8324_v58, %v8317_v38  ;;  %vm4304_vm7 = vcmp.ge.f32.partialorder %v6816_v62, 0.0  ;;  %v4352_v3 = vmul.f32 %v6810_v11, %v8151_v63  ;;  %v6812_v8 = vadd.f32 %v8038_v36, %v8264_v15  ;;  %v4525_v36 = vld [vmem:[%s8684_s10 + $0x3a8] sm:$0xff]  ;;  %v4494_v58 = vld [vmem:[%s8684_s10 + $0x2b0] sm:$0xff] }
 0x46e   :  { %6667 = vmatpush3.bf16.msra.mxu0 %v6666_v17  ;;  %v6708_v17 = vpack.c.bf16 %v4471_v42, %v4470_v34  ;;  %v6750_v34 = vpack.c.bf16 %v8378_v55, %v8373_v44  ;;  %v4355_v42 = vmul.f32 %v6819_v41, %v8151_v63  ;;  %v8417_v28 = vadd.f32 %v8040_v57, %v8280_v27  ;;  %v4496_v44 = vld [vmem:[%s8684_s10 + $0x2c0] sm:$0xff]  ;;  %v4497_v55 = vld [vmem:[%s8684_s10 + $0x2c8] sm:$0xff] }
 0x46f   :  { %6699 = vmatpush3.bf16.msra.mxu1 %v6698_v2  ;;  %6669 = vmatprep.subr.bf16.mxu0 %v6668_v12  ;;  %v8341_v2 = vld [vmem:[%s8684_s10 + $0x390] sm:$0xff]  ;;  %v8346_v12 = vld [vmem:[%s8684_s10 + $0x398] sm:$0xff]  ;;  %v4378_v18 = vsel %vm4304_vm7, %v6816_v62, %v4346_v23  ;;  %vm4310_vm10 = vcmp.ge.f32.partialorder %v6810_v11, 0.0  ;;  %v6815_v5 = vadd.f32 %v8050_v47, %v8103_v10  ;;  %vm4312_vm11 = vcmp.ge.f32.partialorder %v6818_v33, 0.0 }
 0x470   :  { %6701 = vmatprep.subr.bf16.mxu1 %v6700_v4  ;;  %v8355_v4 = vld [vmem:[%s8684_s10 + $0x210] sm:$0xff]  ;;  %v6748_v31 = vpack.c.bf16 %v8346_v12, %v8341_v2  ;;  %v4363_v35 = vmul.f32 %v6821_v59, %v8151_v63  ;;  %v6823_v43 = vadd.f32 %v8052_v21, %v8117_v60  ;;  %v4360_v16 = vmul.f32 %v6812_v8, %v8151_v63  ;;  %v4477_v21 = vld [vmem:[%s8684_s10 + $0x228] sm:$0xff]  ;;  %v4508_v60 = vld [vmem:[%s8684_s10 + $0x320] sm:$0xff] }
 0x471   :  { %v6718_v0 = vpack.c.bf16 %v8360_v52, %v8355_v4  ;;  %v4384_v32 = vsel %vm4310_vm10, %v6810_v11, %v4352_v3  ;;  %vm4321_vm13 = vcmp.ge.f32.partialorder %v6821_v59, 0.0  ;;  %v6752_v47 = vpack.c.bf16 %v4525_v36, %v8423_v40  ;;  %v4526_v62 = vld [vmem:[%s8684_s10 + $0x3b0] sm:$0xff]  ;;  %v4479_v4 = vld [vmem:[%s8684_s10 + $0x238] sm:$0xff] }
 0x472   :  { %6671 = vmatpush3.bf16.msra.mxu0 %v6670_v30  ;;  %v4344_v30 = vmul.f32 %v6808_v48, %v8151_v63  ;;  %v4362_v38 = vmul.f32 %v8417_v28, %v8151_v63  ;;  %vm4318_vm14 = vcmp.ge.f32.partialorder %v6812_v8, 0.0  ;;  %v4371_v9 = vmul.f32 %v6823_v43, %v8151_v63  ;;  %v4510_v52 = vld [vmem:[%s8684_s10 + $0x330] sm:$0xff]  ;;  %v4499_v3 = vld [vmem:[%s8684_s10 + $0x2d8] sm:$0xff] }
 0x473   :  { %6703 = vmatpush3.bf16.msra.mxu1 %v6702_v14  ;;  %6673 = vmatprep.subr.bf16.mxu0 %v6672_v22  ;;  %v4353_v14 = vmul.f32 %v6811_v25, %v8151_v63  ;;  %v6813_v22 = vadd.f32 %v8042_v53, %v8103_v10  ;;  %v4476_v10 = vld [vmem:[%s8684_s10 + $0x220] sm:$0xff]  ;;  %v4395_v27 = vsel %vm4321_vm13, %v6821_v59, %v4363_v35  ;;  %vm4320_vm15 = vcmp.ge.f32.partialorder %v8417_v28, 0.0  ;;  %v4513_v59 = vld [vmem:[%s8684_s10 + $0x348] sm:$0xff]  ;;  %v4482_v40 = vld [vmem:[%s8684_s10 + $0x250] sm:$0xff] }
 0x474   :  { %6705 = vmatprep.subr.bf16.mxu1 %v6704_v29  ;;  %v4376_v53 = vsel %vm4302_vm6, %v6808_v48, %v4344_v30  ;;  %v4354_v29 = vmul.f32 %v6818_v33, %v8151_v63  ;;  %v6814_v48 = vadd.f32 %v8046_v13, %v8264_v15  ;;  %v4369_v13 = vmul.f32 %v6815_v5, %v8151_v63  ;;  %v4528_v30 = vld [vmem:[%s8684_s10 + $0x3c0] sm:$0xff]  ;;  %v4483_v36 = vld [vmem:[%s8684_s10 + $0x258] sm:$0xff] }
 0x475   :  { %v4361_v45 = vmul.f32 %v6813_v22, %v8151_v63  ;;  %v4385_v57 = vsel %vm4311_vm8, %v6811_v25, %v4353_v14  ;;  %vm4319_vm12 = vcmp.ge.f32.partialorder %v6813_v22, 0.0  ;;  %vm4327_vm1 = vcmp.ge.f32.partialorder %v6815_v5, 0.0  ;;  %v4481_v14 = vld [vmem:[%s8684_s10 + $0x248] sm:$0xff] }
 0x476   :  { %6675 = vmatpush3.bf16.msra.mxu0 %v6674_v61  ;;  %v4387_v61 = vsel %vm4313_vm9, %v6819_v41, %v4355_v42  ;;  %vm4329_vm2 = vcmp.ge.f32.partialorder %v6823_v43, 0.0  ;;  %v6724_v12 = vpack.c.bf16 %v4495_v19, %v4494_v58  ;;  %v4368_v25 = vmul.f32 %v6814_v48, %v8151_v63  ;;  %v4502_v19 = vld [vmem:[%s8684_s10 + $0x2f0] sm:$0xff] }
 0x477   :  { %6707 = vmatpush3.bf16.msra.mxu1 %v6706_v39  ;;  %6677 = vmatprep.subr.bf16.mxu0 %v6676_v51  ;;  %v4386_v39 = vsel %vm4312_vm11, %v6818_v33, %v4354_v29  ;;  %v4509_v51 = vld [vmem:[%s8684_s10 + $0x328] sm:$0xff]  ;;  %v4393_v15 = vsel %vm4319_vm12, %v6813_v22, %v4361_v45  ;;  %v4370_v41 = vmul.f32 %v6822_v49, %v8151_v63  ;;  %vm4326_vm3 = vcmp.ge.f32.partialorder %v6814_v48, 0.0  ;;  %v4512_v22 = vld [vmem:[%s8684_s10 + $0x340] sm:$0xff] }
 0x478   :  { %6709 = vmatprep.subr.bf16.mxu1 %v6708_v17  ;;  %v4527_v17 = vld [vmem:[%s8684_s10 + $0x3b8] sm:$0xff]  ;;  %v6754_v2 = vpack.c.bf16 %v4509_v51, %v4508_v60  ;;  %v4403_v11 = vsel %vm4329_vm2, %v6823_v43, %v4371_v9  ;;  %v4400_v56 = vsel %vm4326_vm3, %v6814_v48, %v4368_v25  ;;  %v6728_v23 = vpack.c.bf16 %v4497_v55, %v4496_v44  ;;  %v4485_v60 = vld [vmem:[%s8684_s10 + $0x268] sm:$0xff] }
 0x479   :  { %v6734_v35 = vpack.c.bf16 %v4483_v36, %v4482_v40  ;;  %v4517_v51 = vld [vmem:[%s8684_s10 + $0x368] sm:$0xff]  ;;  %v4487_v9 = vld [vmem:[%s8684_s10 + $0x278] sm:$0xff] }
 0x47a   :  { %6679 = vmatpush3.bf16.msra.mxu0 %v6678_v46  ;;  %v6722_v46 = vpack.c.bf16 %v4477_v21, %v4476_v10  ;;  %v4533_v10 = vld [vmem:[%s8684_s10 + $0x3e8] sm:$0xff]  ;;  %v4484_v21 = vld [vmem:[%s8684_s10 + $0x260] sm:$0xff] }
 0x47b   :  { %6711 = vmatpush3.bf16.msra.mxu1 %v6710_v50  ;;  %6713 = vmatprep.subr.bf16.mxu0 %v6712_v1  ;;  %v4392_v50 = vsel %vm4318_vm14, %v6812_v8, %v4360_v16  ;;  %v6756_v1 = vpack.c.bf16 %v4527_v17, %v4526_v62  ;;  %v4530_v8 = vld [vmem:[%s8684_s10 + $0x3d0] sm:$0xff]  ;;  %v4501_v16 = vld [vmem:[%s8684_s10 + $0x2e8] sm:$0xff]  ;;  %v6738_v48 = vpack.c.bf16 %v4485_v60, %v4484_v21  ;;  %v4535_v62 = vld [vmem:[%s8684_s10 + $0x3f8] sm:$0xff] }
 0x47c   :  { %6745 = vmatprep.subr.bf16.mxu1 %v6744_v6  ;;  %v4478_v6 = vld [vmem:[%s8684_s10 + $0x230] sm:$0xff] }
 0x47d   :  { %4608 = vmatmul.mubr.f32.vlgmr.msra.gmra.mrb[40].mxu0 %v4376_v53  ;;  %v6726_v54 = vpack.c.bf16 %v4479_v4, %v4478_v6  ;;  %v4531_v53 = vld [vmem:[%s8684_s10 + $0x3d8] sm:$0xff]  ;;  %v4486_v17 = vld [vmem:[%s8684_s10 + $0x270] sm:$0xff] }
 0x47e   :  { %4693 = vmatmul.mubr.f32.vlgmr.msra.gmra.mrb[40].mxu1 %v4378_v18  ;;  %4612 = vmatprep.mubr.f32.mxu0 %v4385_v57  ;;  %v6764_v45 = vpack.c.bf16 %v4531_v53, %v4530_v8  ;;  %v4515_v57 = vld [vmem:[%s8684_s10 + $0x358] sm:$0xff] }
 0x47f   :  { %4697 = vmatprep.mubr.f32.mxu1 %v4387_v61  ;;  %6715 = vmatpush3.bf16.msra.mxu0 %v6714_v24  ;;  %v4394_v24 = vsel %vm4320_vm15, %v8417_v28, %v4362_v38  ;;  %v6762_v28 = vpack.c.bf16 %v4513_v59, %v4512_v22  ;;  %v4500_v61 = vld [vmem:[%s8684_s10 + $0x2e0] sm:$0xff] }
 0x480   :  { %6747 = vmatpush3.bf16.msra.mxu1 %v6746_v20  ;;  %6717 = vmatprep.subr.bf16.mxu0 %v6716_v26  ;;  %v4401_v20 = vsel %vm4327_vm1, %v6815_v5, %v4369_v13  ;;  %v4511_v26 = vld [vmem:[%s8684_s10 + $0x338] sm:$0xff]  ;;  %v4514_v5 = vld [vmem:[%s8684_s10 + $0x350] sm:$0xff] }
 0x481   :  { %4613 = vmatmul.mubr.f32.gmra.mrb[42].mxu0 %v4384_v32  ;;  %6749 = vmatprep.subr.bf16.mxu1 %v6748_v31  ;;  %v4529_v31 = vld [vmem:[%s8684_s10 + $0x3c8] sm:$0xff]  ;;  %v6758_v33 = vpack.c.bf16 %v4511_v26, %v4510_v52  ;;  %v6766_v43 = vpack.c.bf16 %v4515_v57, %v4514_v5  ;;  %v4532_v32 = vld [vmem:[%s8684_s10 + $0x3e0] sm:$0xff]  ;;  %v4534_v13 = vld [vmem:[%s8684_s10 + $0x3f0] sm:$0xff] }
 0x482   :  { %4698 = vmatmul.mubr.f32.gmra.mrb[42].mxu1 %v4386_v39  ;;  %4617 = vmatprep.mubr.f32.mxu0 %v4393_v15  ;;  %v6760_v42 = vpack.c.bf16 %v4529_v31, %v4528_v30  ;;  %v6768_v38 = vpack.c.bf16 %v4533_v10, %v4532_v32  ;;  %v4516_v39 = vld [vmem:[%s8684_s10 + $0x360] sm:$0xff] }
 0x483   :  { %4702 = vmatprep.mubr.f32.mxu1 %v4395_v27  ;;  %6719 = vmatpush3.bf16.msra.mxu0 %v6718_v0  ;;  %v4480_v0 = vld [vmem:[%s8684_s10 + $0x240] sm:$0xff]  ;;  %v6770_v58 = vpack.c.bf16 %v4517_v51, %v4516_v39  ;;  %v6772_v27 = vpack.c.bf16 %v4535_v62, %v4534_v13 }
 0x484   :  { %6751 = vmatpush3.bf16.msra.mxu1 %v6750_v34  ;;  %6721 = vmatprep.subr.bf16.mxu0 %v6720_v7  ;;  %v4402_v34 = vsel %vm4328_vm4, %v6822_v49, %v4370_v41  ;;  %v4498_v7 = vld [vmem:[%s8684_s10 + $0x2d0] sm:$0xff]  ;;  %v6730_v29 = vpack.c.bf16 %v4481_v14, %v4480_v0  ;;  %v4503_v49 = vld [vmem:[%s8684_s10 + $0x2f8] sm:$0xff] }
 0x485   :  { %4618 = vmatmul.mubr.f32.gmra.mrb[44].mxu0 %v4392_v50  ;;  %6753 = vmatprep.subr.bf16.mxu1 %v6752_v47  ;;  %v6732_v18 = vpack.c.bf16 %v4499_v3, %v4498_v7  ;;  %v6736_v47 = vpack.c.bf16 %v4501_v16, %v4500_v61  ;;  %v6740_v15 = vpack.c.bf16 %v4503_v49, %v4502_v19  ;;  %v8702_v50 = vld [vmem:[#allocation26_spill] sm:$0xff] }
 0x486   :  { %4703 = vmatmul.mubr.f32.gmra.mrb[44].mxu1 %v4394_v24  ;;  %4622 = vmatprep.mubr.f32.mxu0 %v4401_v20  ;;  %v8704_v4 = vsub.s32 6, %v8702_v50  ;;  %v8705_v41 = vsub.s32 5, %v8702_v50  ;;  %v8706_v20 = vsub.s32 7, %v8702_v50 }
 0x487   :  { %4707 = vmatprep.mubr.f32.mxu1 %v4403_v11  ;;  %6723 = vmatpush3.bf16.msra.mxu0 %v6722_v46  ;;  %v6742_v46 = vpack.c.bf16 %v4487_v9, %v4486_v17 }
 0x488   :  { %6755 = vmatpush3.bf16.msra.mxu1 %v6754_v2  ;;  %6725 = vmatprep.subr.bf16.mxu0 %v6724_v12  ;;  %v4518_v2 = vld [vmem:[%s8684_s10 + $0x370] sm:$0xff]  ;;  %v4519_v12 = vld [vmem:[%s8684_s10 + $0x378] sm:$0xff]  ;;  %v8611_v52 = vrot.slane %v8084_v37, %v8704_v4  ;;  %v8616_v24 = vrot.slane %v8084_v37, %v8705_v41  ;;  %v8621_v26 = vrot.slane %v8084_v37, %v8706_v20  ;;  %s7214_s10 = smov [#allocation19]  }
 0x489   :  { %4623 = vmatmul.mubr.f32.gmra.mrb[46].mxu0 %v4400_v56  ;;  %6757 = vmatprep.subr.bf16.mxu1 %v6756_v1  ;;  %v6774_v25 = vpack.c.bf16 %v4519_v12, %v4518_v2  ;;  %v8703_v1 = vsub.s32 4, %v8702_v50  ;;  %s4892_s5 = sshll.u32 %s7214_s10, 4  ;;  %s4893_s5 = int_to_ptr.vmem [resolvable:$true] %s4892_s5 }
 0x48a   :  { %4708 = vmatmul.mubr.f32.gmra.mrb[46].mxu1 %v4402_v34  ;;  %s7164_s18 = scalar_lea.vmem %s4893_s5, 512  ;;  %p7169_p9 = scmp.lt.s32.totalorder %s4893_s5, %s4893_s5 }
 0x48b   :  { %6727 = vmatpush3.bf16.msra.mxu0 %v6726_v54  ;;  %v8606_v6 = vrot.slane %v8084_v37, %v8703_v1  ;;  %p7165_p8 = scmp.ne.s32.totalorder %s4893_s5, %s7164_s18  ;;  %p7170_p10 = scmp.lt.s32.totalorder %s7164_s18, %s7164_s18 }
 0x48c   :  { %6759 = vmatpush3.bf16.msra.mxu1 %v6758_v33  ;;  %6729 = vmatprep.subr.bf16.mxu0 %v6728_v23 }
 0x48d   :  { %6761 = vmatprep.subr.bf16.mxu1 %v6760_v42  ;;  %p7171_p11 = por %p7170_p10, %p7169_p9 }
 0x48f   :  { %6731 = vmatpush3.bf16.msra.mxu0 %v6730_v29  ;;  %p7172_p12 = pnand %p7171_p11, %p7165_p8 }
 0x490   :  { %6763 = vmatpush3.bf16.msra.mxu1 %v6762_v28  ;;  %6733 = vmatprep.subr.bf16.mxu0 %v6732_v18 }
 0x491   :  { %6765 = vmatprep.subr.bf16.mxu1 %v6764_v45 }
 0x493   :  { %6735 = vmatpush3.bf16.msra.mxu0 %v6734_v35 }
 0x494   :  { %6767 = vmatpush3.bf16.msra.mxu1 %v6766_v43  ;;  %6737 = vmatprep.subr.bf16.mxu0 %v6736_v47 }
 0x495   :  { %6769 = vmatprep.subr.bf16.mxu1 %v6768_v38 }
 0x497   :  { %6739 = vmatpush3.bf16.msra.mxu0 %v6738_v48 }
 0x498   :  { %6771 = vmatpush3.bf16.msra.mxu1 %v6770_v58  ;;  %6741 = vmatprep.subr.bf16.mxu0 %v6740_v15 }
 0x499   :  { %6773 = vmatprep.subr.bf16.mxu1 %v6772_v27 }
 0x49b   :  { %6743 = vmatpush3.bf16.msra.mxu0 %v6742_v46 }
 0x49c   :  { %6775 = vmatpush3.bf16.msra.mxu1 %v6774_v25 }
 0x52f   :  { %v3923_v44 = vpop.f32.mrb[32].mxu0 }
 0x530   :  { %v6824_v55 = vadd.f32 %v3923_v44, %v8606_v6  ;;  %v4279_v11 = vpop.f32.mrb[32].mxu1  ;;  %v3925_v30 = vpop.f32.mrb[33].mxu0 }
 0x531   :  { %v6832_v31 = vadd.f32 %v4279_v11, %v8611_v52  ;;  %v6825_v54 = vadd.f32 %v3925_v30, %v8616_v24  ;;  %v4281_v56 = vpop.f32.mrb[33].mxu1  ;;  %v4919_v30 = vld [vmem:[#allocation17] ss:$0 sm:$0xff] }
 0x532   :  { %vm4306_vm5 = vcmp.ge.f32.partialorder %v6824_v55, 0.0  ;;  %v4348_v33 = vmul.f32 %v6824_v55, %v8151_v63  ;;  %v6833_v23 = vadd.f32 %v4281_v56, %v8621_v26 }
 0x533   :  { %vm4308_vm6 = vcmp.ge.f32.partialorder %v6832_v31, 0.0  ;;  %v4350_v0 = vmul.f32 %v6832_v31, %v8151_v63  ;;  %v4349_v37 = vmul.f32 %v6825_v54, %v8151_v63  ;;  %v3929_v14 = vpop.f32.mrb[34].mxu0  ;;  %vm4307_vm7 = vcmp.ge.f32.partialorder %v6825_v54, 0.0 }
 0x534   :  { %v4380_v22 = vsel %vm4306_vm5, %v6824_v55, %v4348_v33  ;;  %v4351_v34 = vmul.f32 %v6833_v23, %v8151_v63  ;;  %v6826_v42 = vadd.f32 %v3929_v14, %v8606_v6  ;;  %v4285_v59 = vpop.f32.mrb[34].mxu1  ;;  %v3931_v7 = vpop.f32.mrb[35].mxu0  ;;  %vm4309_vm8 = vcmp.ge.f32.partialorder %v6833_v23, 0.0 }
 0x535   :  { %v4382_v3 = vsel %vm4308_vm6, %v6832_v31, %v4350_v0  ;;  %v6834_v8 = vadd.f32 %v4285_v59, %v8611_v52  ;;  %v6827_v53 = vadd.f32 %v3931_v7, %v8616_v24  ;;  %v4287_v29 = vpop.f32.mrb[35].mxu1  ;;  %v4381_v28 = vsel %vm4307_vm7, %v6825_v54, %v4349_v37 }
 0x536   :  { %v4356_v18 = vmul.f32 %v6826_v42, %v8151_v63  ;;  %v6835_v40 = vadd.f32 %v4287_v29, %v8621_v26  ;;  %4777 = vmatprep.mubr.f32.mxu0 %v4381_v28  ;;  %v4383_v36 = vsel %vm4309_vm8, %v6833_v23, %v4351_v34  ;;  %vm4314_vm9 = vcmp.ge.f32.partialorder %v6826_v42, 0.0 }
 0x537   :  { %v4358_v45 = vmul.f32 %v6834_v8, %v8151_v63  ;;  %v4357_v5 = vmul.f32 %v6827_v53, %v8151_v63  ;;  %4862 = vmatprep.mubr.f32.mxu1 %v4383_v36  ;;  %v3935_v57 = vpop.f32.mrb[36].mxu0  ;;  %4778 = vmatmul.mubr.f32.vlgmr.msra.gmra.mrb[48].mxu0 %v4380_v22  ;;  %vm4315_vm10 = vcmp.ge.f32.partialorder %v6827_v53, 0.0  ;;  %vm4316_vm11 = vcmp.ge.f32.partialorder %v6834_v8, 0.0 }
 0x538   :  { %v4359_v35 = vmul.f32 %v6835_v40, %v8151_v63  ;;  %v6828_v43 = vadd.f32 %v3935_v57, %v8606_v6  ;;  %v4291_v61 = vpop.f32.mrb[36].mxu1  ;;  %4863 = vmatmul.mubr.f32.vlgmr.msra.gmra.mrb[48].mxu1 %v4382_v3  ;;  %v3937_v16 = vpop.f32.mrb[37].mxu0  ;;  %vm4317_vm12 = vcmp.ge.f32.partialorder %v6835_v40, 0.0  ;;  %v4388_v32 = vsel %vm4314_vm9, %v6826_v42, %v4356_v18 }
 0x539   :  { %v6836_v47 = vadd.f32 %v4291_v61, %v8611_v52  ;;  %v6829_v10 = vadd.f32 %v3937_v16, %v8616_v24  ;;  %v4293_v21 = vpop.f32.mrb[37].mxu1  ;;  %v4389_v60 = vsel %vm4315_vm10, %v6827_v53, %v4357_v5  ;;  %v4390_v38 = vsel %vm4316_vm11, %v6834_v8, %v4358_v45 }
 0x53a   :  { %v4364_v48 = vmul.f32 %v6828_v43, %v8151_v63  ;;  %v6837_v39 = vadd.f32 %v4293_v21, %v8621_v26  ;;  %4782 = vmatprep.mubr.f32.mxu0 %v4389_v60  ;;  %v4391_v51 = vsel %vm4317_vm12, %v6835_v40, %v4359_v35  ;;  %vm4322_vm13 = vcmp.ge.f32.partialorder %v6828_v43, 0.0 }
 0x53b   :  { %v4366_v58 = vmul.f32 %v6836_v47, %v8151_v63  ;;  %v4365_v19 = vmul.f32 %v6829_v10, %v8151_v63  ;;  %4867 = vmatprep.mubr.f32.mxu1 %v4391_v51  ;;  %v3941_v49 = vpop.f32.mrb[38].mxu0  ;;  %4783 = vmatmul.mubr.f32.gmra.mrb[50].mxu0 %v4388_v32  ;;  %vm4323_vm14 = vcmp.ge.f32.partialorder %v6829_v10, 0.0  ;;  %vm4324_vm15 = vcmp.ge.f32.partialorder %v6836_v47, 0.0 }
 0x53c   :  { %v4367_v13 = vmul.f32 %v6837_v39, %v8151_v63  ;;  %v6830_v15 = vadd.f32 %v3941_v49, %v8606_v6  ;;  %v4297_v62 = vpop.f32.mrb[38].mxu1  ;;  %4868 = vmatmul.mubr.f32.gmra.mrb[50].mxu1 %v4390_v38  ;;  %v3943_v17 = vpop.f32.mrb[39].mxu0  ;;  %vm4325_vm1 = vcmp.ge.f32.partialorder %v6837_v39, 0.0  ;;  %v4396_v12 = vsel %vm4322_vm13, %v6828_v43, %v4364_v48 }
 0x53d   :  { %v6838_v9 = vadd.f32 %v4297_v62, %v8611_v52  ;;  %v6831_v27 = vadd.f32 %v3943_v17, %v8616_v24  ;;  %v4299_v46 = vpop.f32.mrb[39].mxu1  ;;  %v4397_v2 = vsel %vm4323_vm14, %v6829_v10, %v4365_v19  ;;  %v4398_v6 = vsel %vm4324_vm15, %v6836_v47, %v4366_v58 }
 0x53e   :  { %v4372_v25 = vmul.f32 %v6830_v15, %v8151_v63  ;;  %v6839_v50 = vadd.f32 %v4299_v46, %v8621_v26  ;;  %4787 = vmatprep.mubr.f32.mxu0 %v4397_v2  ;;  %v4399_v1 = vsel %vm4325_vm1, %v6837_v39, %v4367_v13  ;;  %vm4330_vm3 = vcmp.ge.f32.partialorder %v6830_v15, 0.0 }
 0x53f   :  { %v4374_v4 = vmul.f32 %v6838_v9, %v8151_v63  ;;  %v4373_v41 = vmul.f32 %v6831_v27, %v8151_v63  ;;  %4872 = vmatprep.mubr.f32.mxu1 %v4399_v1  ;;  %4788 = vmatmul.mubr.f32.gmra.mrb[52].mxu0 %v4396_v12  ;;  %vm4331_vm2 = vcmp.ge.f32.partialorder %v6831_v27, 0.0  ;;  %vm4332_vm5 = vcmp.ge.f32.partialorder %v6838_v9, 0.0 }
 0x540   :  { %v4375_v52 = vmul.f32 %v6839_v50, %v8151_v63  ;;  %4873 = vmatmul.mubr.f32.gmra.mrb[52].mxu1 %v4398_v6  ;;  %vm4333_vm4 = vcmp.ge.f32.partialorder %v6839_v50, 0.0  ;;  %v4404_v26 = vsel %vm4330_vm3, %v6830_v15, %v4372_v25 }
 0x541   :  { %v4405_v24 = vsel %vm4331_vm2, %v6831_v27, %v4373_v41  ;;  %v4406_v44 = vsel %vm4332_vm5, %v6838_v9, %v4374_v4 }
 0x542   :  { %4792 = vmatprep.mubr.f32.mxu0 %v4405_v24  ;;  %v4407_v20 = vsel %vm4333_vm4, %v6839_v50, %v4375_v52 }
 0x543   :  { %4877 = vmatprep.mubr.f32.mxu1 %v4407_v20  ;;  %4793 = vmatmul.mubr.f32.gmra.mrb[54].mxu0 %v4404_v26 }
 0x544   :  { %4878 = vmatmul.mubr.f32.gmra.mrb[54].mxu1 %v4406_v44 }
 0x550   :  { %v4952_v55 = vpop.f32.mrb[40].mxu0 }
 0x551   :  { %v4996_v11 = vpop.f32.mrb[40].mxu1  ;;  %v4953_v31 = vpop.f32.mrb[41].mxu0 }
 0x552   :  { %v4954_v54 = vadd.f32 %v4953_v31, %v4952_v55  ;;  %v4997_v56 = vpop.f32.mrb[41].mxu1 }
 0x553   :  { %v4998_v33 = vadd.f32 %v4997_v56, %v4996_v11 }
 0x554   :  { %v4610_v23 = vadd.f32 %v4954_v54, %v4919_v30  ;;  %v4955_v63 = vpop.f32.mrb[42].mxu0 }
 0x555   :  { %v4999_v0 = vpop.f32.mrb[42].mxu1  ;;  %v4956_v37 = vpop.f32.mrb[43].mxu0 }
 0x556   :  { %v4695_v14 = vadd.f32 %v4998_v33, %v4610_v23  ;;  %v4957_v22 = vadd.f32 %v4956_v37, %v4955_v63  ;;  %v5000_v34 = vpop.f32.mrb[43].mxu1 }
 0x557   :  { %v5001_v42 = vadd.f32 %v5000_v34, %v4999_v0 }
 0x558   :  { %v4615_v59 = vadd.f32 %v4957_v22, %v4919_v30  ;;  %v4958_v7 = vpop.f32.mrb[44].mxu0 }
 0x559   :  { %v5002_v3 = vpop.f32.mrb[44].mxu1  ;;  %v4959_v8 = vpop.f32.mrb[45].mxu0 }
 0x55a   :  { %v4700_v53 = vadd.f32 %v5001_v42, %v4615_v59  ;;  %v4960_v29 = vadd.f32 %v4959_v8, %v4958_v7  ;;  %v5003_v28 = vpop.f32.mrb[45].mxu1 }
 0x55b   :  { %v5004_v18 = vadd.f32 %v5003_v28, %v5002_v3 }
 0x55c   :  { %v4620_v40 = vadd.f32 %v4960_v29, %v4919_v30  ;;  %v4961_v36 = vpop.f32.mrb[46].mxu0 }
 0x55d   :  { %v5005_v45 = vpop.f32.mrb[46].mxu1  ;;  %v4962_v5 = vpop.f32.mrb[47].mxu0 }
 0x55e   :  { %v4705_v57 = vadd.f32 %v5004_v18, %v4620_v40  ;;  %v4963_v35 = vadd.f32 %v4962_v5, %v4961_v36  ;;  %v5006_v43 = vpop.f32.mrb[47].mxu1 }
 0x55f   :  { %v5007_v61 = vadd.f32 %v5006_v43, %v5005_v45 }
 0x560   :  { %v4625_v16 = vadd.f32 %v4963_v35, %v4919_v30 }
 0x562   :  { %v4710_v32 = vadd.f32 %v5007_v61, %v4625_v16 }
 0x60a   :  { %v5040_v47 = vpop.f32.mrb[48].mxu0 }
 0x60b   :  { %v5084_v10 = vpop.f32.mrb[48].mxu1  ;;  %v5041_v21 = vpop.f32.mrb[49].mxu0 }
 0x60c   :  { %v5042_v60 = vadd.f32 %v5041_v21, %v5040_v47  ;;  %v5085_v38 = vpop.f32.mrb[49].mxu1 }
 0x60d   :  { %v5086_v48 = vadd.f32 %v5085_v38, %v5084_v10 }
 0x60e   :  { %v4780_v39 = vadd.f32 %v5042_v60, %v4695_v14  ;;  %v5043_v51 = vpop.f32.mrb[50].mxu0 }
 0x60f   :  { %v5087_v58 = vpop.f32.mrb[50].mxu1  ;;  %v5044_v19 = vpop.f32.mrb[51].mxu0 }
 0x610   :  { %v4865_v49 = vadd.f32 %v5086_v48, %v4780_v39  ;;  %v5045_v13 = vadd.f32 %v5044_v19, %v5043_v51  ;;  %v5088_v15 = vpop.f32.mrb[51].mxu1 }
 0x611   :  { %v5089_v62 = vadd.f32 %v5088_v15, %v5087_v58 }
 0x612   :  { %4883 = vst.msk [vmem:[#allocation19] sm:$0xff] %vm191_vm0, %v4865_v49  ;;  %v4785_v17 = vadd.f32 %v5045_v13, %v4700_v53  ;;  %v5046_v9 = vpop.f32.mrb[52].mxu0 }
 0x613   :  { %v5090_v27 = vpop.f32.mrb[52].mxu1  ;;  %v5047_v46 = vpop.f32.mrb[53].mxu0 }
 0x614   :  { %v4870_v2 = vadd.f32 %v5089_v62, %v4785_v17  ;;  %v5048_v12 = vadd.f32 %v5047_v46, %v5046_v9  ;;  %v5091_v25 = vpop.f32.mrb[53].mxu1 }
 0x615   :  { %v5092_v50 = vadd.f32 %v5091_v25, %v5090_v27 }
 0x616   :  { %4884 = vst.msk [vmem:[#allocation19 + $0x8] sm:$0xff] %vm191_vm0, %v4870_v2  ;;  %v4790_v1 = vadd.f32 %v5048_v12, %v4705_v57  ;;  %v5049_v6 = vpop.f32.mrb[54].mxu0 }
 0x617   :  { %v5093_v4 = vpop.f32.mrb[54].mxu1  ;;  %v5050_v41 = vpop.f32.mrb[55].mxu0 }
 0x618   :  { %v4875_v52 = vadd.f32 %v5092_v50, %v4790_v1  ;;  %v5051_v24 = vadd.f32 %v5050_v41, %v5049_v6  ;;  %v5094_v20 = vpop.f32.mrb[55].mxu1 }
 0x619   :  { %v5095_v26 = vadd.f32 %v5094_v20, %v5093_v4 }
 0x61a   :  { %4885 = vst.msk [vmem:[#allocation19 + $0x10] sm:$0xff] %vm191_vm0, %v4875_v52  ;;  %v4795_v44 = vadd.f32 %v5051_v24, %v4710_v32 }
 0x61c   :  { %v4880_v55 = vadd.f32 %v5095_v26, %v4795_v44 }
 0x61e   :  { %4886 = vst.msk [vmem:[#allocation19 + $0x18] sm:$0xff] %vm191_vm0, %v4880_v55 }
 0x61f   :  { %7175 = shalt.err (!%p7172_p12)
}
 0x620   :  { %s7176_s26 = scalar_lea.hbm %s8686_s12, 512 }
 0x621   :  { %p7177_p13 = scmp.ne.s32.totalorder %s8686_s12, %s7176_s26  ;;  %p7180_p0 = scmp.lt.u32.totalorder %s7176_s26, %s8686_s12 }
 0x623   :  { %p7182_p1 = pnand %p7180_p0, %p7177_p13 }
 0x625   :  { %7185 = shalt.err (!%p7182_p1)
}
 0x626   :  { %4898 = dma.vmem_to_hbm [thread:$0]  %s4893_s5, 512, %s8686_s12, [#allocation7], %s7206_s7, %s7206_s7, %s7207_s1  }
 0x627   :  { %7196 = dma.done.wait [#allocation7], 512  }
 0x628   :  { %7197 = vsyncadd [#allocation7], 4294966784 }
 0x629   :  { %4902 = vsyncpa [#allocation6], 1 }
 0x62a   :  { %4903 = vsyncpa [#allocation9], 1 }
 0x62b   :  { %4904 = vsyncpa [#allocation12], 1 }
 0x62c   :  { %4905 = vsyncpa [#allocation15], 1 }
 0x62d   :  { %4906 = vsyncpa [#allocation18], 1 }
 0x62e   :  { %4907 = vsyncpa [#allocation7], 1 }

</bundles_post_ra>
